<compile_context>
chip_gen: v5e
topology: v5e:2x2
jax: 0.10.0
libtpu: 0.0.40
codegen_flags: <defaults>
</compile_context>

<pallas_src>
import jax
import jax.numpy as jnp
from jax import lax
from jax.experimental import pallas as pl
from jax.experimental.pallas import tpu as pltpu

MAX_LENGTH = 16
SOS_INDEX = 1
TEACHER_FORCING_RATIO = 1.0  # deterministic: always teacher-force
NEG_INF = -1e30              # finite "-inf" (avoids 0 * inf = NaN in CE/one-hot)
LANE = 128
SUBLANE = 8

VMEM_SPEC = pl.BlockSpec(memory_space=pltpu.MemorySpace.VMEM)
SMEM_SPEC = pl.BlockSpec(memory_space=pltpu.MemorySpace.SMEM)


def _round_up(x, m):
    return ((x + m - 1) // m) * m


# ---------------------------------------------------------------------------
# Encoder: 1-D conv + ReLU as a single im2col matmul kernel that writes the
# right-aligned, Mp-padded (Bp*Mp, H) encoder-output layout directly.
# ---------------------------------------------------------------------------
def _make_encoder_kernel(Bp, L_in, Mp, off):
    def kernel(x_ref, w_ref, b_ref, enc_ref, hid0_ref):
        # One bf16 im2col matmul for the whole (padded) batch, f32 accumulate.
        y = jnp.maximum(
            jnp.dot(x_ref[...], w_ref[...], preferred_element_type=jnp.float32)
            + b_ref[...], 0.0)                                   # (Bp*L_in, H)
        # Decoder-ready slab: zero everywhere, conv outputs right-aligned at
        # rows [b*Mp + off, b*Mp + off + L_in).  Offsets are multiples of 8 so
        # every store is sublane-aligned f32.
        enc_ref[...] = jnp.zeros_like(enc_ref)
        for bb in range(Bp):                                     # static, small
            r0 = bb * L_in
            d0 = bb * Mp + off
            enc_ref[d0:d0 + L_in, :] = y[r0:r0 + L_in, :]
            hid0_ref[bb:bb + 1, :] = y[r0 + L_in - 1:r0 + L_in, :]
    return kernel


def conv_encoder(x_emb, w, b, max_length, Mp):
    """x_emb: (Bp, L, E) f32, w: (K, E, H), b: (1, H)
       -> enc (Bp*Mp, H) f32 (right-aligned, zero-filled), hid0 (Bp, H) f32."""
    Bp, L, E = x_emb.shape
    K, _, H = w.shape
    pad = (K - 1) // 2  # TODO(synk): matches PyTorch Conv1d 'same' only for odd K
    xpad = jnp.pad(x_emb, ((0, 0), (pad, pad), (0, 0)))
    # im2col in the wrapper -> one (Bp*L, KEp) @ (KEp, H) MXU pass in-kernel.
    cols = jnp.concatenate([xpad[:, k:k + L, :] for k in range(K)], axis=-1)
    KE = K * E
    KEp = _round_up(KE, LANE)                   # lane-dense contraction dim
    x2d = jnp.pad(cols.reshape(Bp * L, KE), ((0, 0), (0, KEp - KE)))
    w2d = jnp.pad(w.reshape(KE, H), ((0, KEp - KE), (0, 0)))
    # TODO(synk): add a row-tiled grid (128-row blocks) once Bp*L exceeds a few
    # hundred; a single resident block is optimal at this size.
    return pl.pallas_call(
        _make_encoder_kernel(Bp, L, Mp, max_length - L),
        out_shape=(jax.ShapeDtypeStruct((Bp * Mp, H), jnp.float32),
                   jax.ShapeDtypeStruct((Bp, H), jnp.float32)),
        in_specs=[VMEM_SPEC] * 3,
        out_specs=(VMEM_SPEC, VMEM_SPEC),
    )(x2d.astype(jnp.bfloat16), w2d.astype(jnp.bfloat16), b)


# ---------------------------------------------------------------------------
# Fused decoder: attention + GRU + output proj + CE loss for ALL time steps in
# one grid-less pallas_call; time is an unrolled in-kernel fori_loop.
# ---------------------------------------------------------------------------
def _fused_decoder_kernel(emb_ref, oh_ref, hid0_ref, enc_ref, mask_ref,
                          wae_ref, wah_ref, ba_ref,
                          wce_ref, wca_ref, bc_ref,
                          wih_ref, bih_ref, whh_ref, bhh_ref,
                          wout_ref, bout_ref,
                          loss_ref):
    L_tgt = emb_ref.shape[0]
    Bp, H = hid0_ref.shape

    # Loaded once; resident across the unrolled time loop.
    enc = enc_ref[...]                    # (Bp*Mp, H) bf16 encoder outputs
    mask = mask_ref[...]                  # (Bp, Bp*Mp) f32 block-diag 0/1
    wae, wah, ba = wae_ref[...], wah_ref[...], ba_ref[...]
    wce, wca, bc = wce_ref[...], wca_ref[...], bc_ref[...]
    wih, bih = wih_ref[...], bih_ref[...]
    whh, bhh = whh_ref[...], bhh_ref[...]
    wout, bout = wout_ref[...], bout_ref[...]

    def step(t, carry):
        hid, loss = carry                 # hid: (Bp, H) f32 GRU state
        emb = emb_ref[t]                  # (Bp, H) f32 decoder-input embedding
        oh = oh_ref[t]                    # (Bp, Vp) f32 onehot*valid/count
        emb_b = emb.astype(jnp.bfloat16)
        hid_b = hid.astype(jnp.bfloat16)

        # ---- attention logits: two dots, one f32 accumulator (no concat) ----
        a = (jnp.dot(emb_b, wae, preferred_element_type=jnp.float32)
             + jnp.dot(hid_b, wah, preferred_element_type=jnp.float32)
             + ba)                                       # pads carry -1e30 bias
        a = a - jnp.max(a, axis=-1, keepdims=True)
        a_exp = jnp.exp(a)
        attn = a_exp / jnp.sum(a_exp, axis=-1, keepdims=True)   # (Bp, Mp) f32

        # ---- attention apply: precomputed block-diagonal mask -> one matmul
        attn_rep = jnp.concatenate([attn] * Bp, axis=1)          # (Bp, Bp*Mp)
        attn_block = (mask * attn_rep).astype(jnp.bfloat16)
        attn_applied = jnp.dot(attn_block, enc,
                               preferred_element_type=jnp.float32)  # (Bp, H)

        # ---- combine + ReLU: two dots, shared accumulator ----
        x = jnp.maximum(
            jnp.dot(emb_b, wce, preferred_element_type=jnp.float32)
            + jnp.dot(attn_applied.astype(jnp.bfloat16), wca,
                      preferred_element_type=jnp.float32)
            + bc, 0.0)

        # ---- GRU cell (PyTorch gate order r, z, n), split input/hidden dots
        gi = jnp.dot(x.astype(jnp.bfloat16), wih,
                     preferred_element_type=jnp.float32) + bih    # (Bp, 3H)
        gh = jnp.dot(hid_b, whh, preferred_element_type=jnp.float32) + bhh
        r = 1.0 / (1.0 + jnp.exp(-(gi[:, 0:H] + gh[:, 0:H])))
        z = 1.0 / (1.0 + jnp.exp(-(gi[:, H:2 * H] + gh[:, H:2 * H])))
        n = jnp.tanh(gi[:, 2 * H:3 * H] + r * gh[:, 2 * H:3 * H])
        new_h = (1.0 - z) * n + z * hid

        # ---- output projection + CE(ignore_index=0, mean-per-step) ----
        logits = jnp.dot(new_h.astype(jnp.bfloat16), wout,
                         preferred_element_type=jnp.float32) + bout  # (Bp, Vp)
        m = jnp.max(logits, axis=-1, keepdims=True)
        lse = jnp.log(jnp.sum(jnp.exp(logits - m), axis=-1, keepdims=True)) + m
        loss = loss - jnp.sum((logits - lse) * oh)
        return new_h, loss

    _, loss = lax.fori_loop(0, L_tgt, step,
                            (hid0_ref[...], jnp.zeros((), jnp.float32)),
                            unroll=True)
    loss_ref[0, 0] = loss


def _fused_decoder_call(emb_all, oh_all, hid0, enc_flat, mask, dp):
    loss = pl.pallas_call(
        _fused_decoder_kernel,
        out_shape=jax.ShapeDtypeStruct((1, 1), jnp.float32),
        in_specs=[VMEM_SPEC] * 17,
        out_specs=SMEM_SPEC,
    )(emb_all, oh_all, hid0, enc_flat, mask,
      dp['wae'], dp['wah'], dp['ba'],
      dp['wce'], dp['wca'], dp['bc'],
      dp['wih'], dp['bih'], dp['whh'], dp['bhh'],
      dp['wout'], dp['bout'])
    return loss[0, 0]


# ---------------------------------------------------------------------------
# Parameters (deterministic synthetic init) + one-time weight padding / casts
# ---------------------------------------------------------------------------
def init_params(key, vocab_size, embed_dim, hidden, max_length, conv_k):
    keys = jax.random.split(key, 16)
    s = 0.1

    def n(k, shape):
        return jax.random.normal(k, shape, jnp.float32) * s

    return dict(
        enc_embedding=n(keys[0], (vocab_size, embed_dim)),
        enc_conv_w=n(keys[1], (conv_k, embed_dim, hidden)),
        enc_conv_b=n(keys[2], (1, hidden)),
        dec_embedding=n(keys[3], (vocab_size, hidden)),
        wae=n(keys[4], (hidden, max_length)),
        wah=n(keys[5], (hidden, max_length)),
        ba=n(keys[6], (1, max_length)),
        wce=n(keys[7], (hidden, hidden)),
        wca=n(keys[8], (hidden, hidden)),
        bc=n(keys[9], (1, hidden)),
        wih=n(keys[10], (hidden, 3 * hidden)),
        whh=n(keys[11], (hidden, 3 * hidden)),
        bih=n(keys[12], (1, 3 * hidden)),
        bhh=n(keys[13], (1, 3 * hidden)),
        wout=n(keys[14], (hidden, vocab_size)),
        bout=n(keys[15], (1, vocab_size)),
    )


def _prepare_decoder_params(p, Mp, Vp):
    """Pad lane dims to 128 and cast matmul operands to bf16 (biases stay f32)."""
    M = p['wae'].shape[1]
    V = p['wout'].shape[1]
    bf = jnp.bfloat16
    return dict(
        wae=jnp.pad(p['wae'], ((0, 0), (0, Mp - M))).astype(bf),
        wah=jnp.pad(p['wah'], ((0, 0), (0, Mp - M))).astype(bf),
        ba=jnp.pad(p['ba'], ((0, 0), (0, Mp - M)),
                   constant_values=NEG_INF),            # padded cols -> 0 attn
        wce=p['wce'].astype(bf),
        wca=p['wca'].astype(bf),
        bc=p['bc'],
        wih=p['wih'].astype(bf),
        bih=p['bih'],
        whh=p['whh'].astype(bf),
        bhh=p['bhh'],
        wout=jnp.pad(p['wout'], ((0, 0), (0, Vp - V))).astype(bf),
        bout=jnp.pad(p['bout'], ((0, 0), (0, Vp - V)),
                     constant_values=NEG_INF),          # padded logits -> 0 in LSE
    )


# ---------------------------------------------------------------------------
# Full forward (teacher-forcing branch), mirrors ConvEncoderRNNDecoder.forward
# ---------------------------------------------------------------------------
def conv_encoder_rnn_decoder_forward(params, input_tensor, target_tensor,
                                     max_length=MAX_LENGTH):
    B, L_in = input_tensor.shape
    _, L_tgt = target_tensor.shape
    H = params['enc_conv_w'].shape[2]
    V = params['wout'].shape[1]
    Bp = _round_up(max(B, SUBLANE), SUBLANE)   # sublane-dense batch
    Mp = _round_up(max_length, LANE)
    Vp = _round_up(V, LANE)

    # --- pad batch: extra input rows use token 0; extra targets are 0, i.e.
    #     ignore_index, so padded rows never contribute to loss or count ---
    inp = jnp.pad(input_tensor.astype(jnp.int32), ((0, Bp - B), (0, 0)))
    tgt = jnp.pad(target_tensor.astype(jnp.int32), ((0, Bp - B), (0, 0)))

    # --- encoder: embedding lookup (glue) + im2col conv kernel that emits the
    #     decoder-ready (Bp*Mp, H) slab and the last hidden state directly ---
    x_emb = jnp.take(params['enc_embedding'], inp, axis=0)          # (Bp,L,E)
    enc_f32, hid0 = conv_encoder(x_emb, params['enc_conv_w'],
                                 params['enc_conv_b'], max_length, Mp)
    enc_flat = enc_f32.astype(jnp.bfloat16)                         # (Bp*Mp,H)

    dp = _prepare_decoder_params(params, Mp, Vp)

    # --- teacher forcing: decoder inputs are [SOS, target[:, :-1]]; pre-gather
    #     every step's embedding once in time-major (L_tgt, Bp, H) f32 ---
    dec_in = jnp.concatenate(
        [jnp.full((Bp, 1), SOS_INDEX, jnp.int32), tgt[:, :-1]], axis=1)
    emb_all = jnp.take(params['dec_embedding'], dec_in.T, axis=0)   # (L,Bp,H)

    # --- precomputed CE weights: onehot * valid / count  (L_tgt, Bp, Vp) ---
    tgt_t = tgt.T                                                   # (L,Bp)
    valid = (tgt_t != 0).astype(jnp.float32)                        # ignore_index=0
    count = jnp.maximum(jnp.sum(valid, axis=1, keepdims=True), 1.0)
    oh_all = (jax.nn.one_hot(tgt_t, Vp, dtype=jnp.float32)
              * (valid / count)[:, :, None])
    # TODO(synk): PyTorch CE(mean) yields NaN when every target of a step is
    # ignore_index; this kernel yields 0 for that degenerate step.

    # --- block-diagonal attention-apply mask (resident constant) ---
    col = lax.broadcasted_iota(jnp.int32, (Bp, Bp * Mp), 1)
    row = lax.broadcasted_iota(jnp.int32, (Bp, Bp * Mp), 0)
    mask = ((col >= row * Mp) & (col < (row + 1) * Mp)).astype(jnp.float32)

    loss_sum = _fused_decoder_call(emb_all, oh_all, hid0, enc_flat, mask, dp)
    return loss_sum / B  # matches `loss /= batch_size`; dpgan=False -> loss only


if __name__ == "__main__":
    B, L_in, L_tgt = 4, 8, 8
    E, H, V, K = 32, 128, 64, 3   # H lane-dense; M/V padded to 128 in wrapper

    params = init_params(jax.random.PRNGKey(0), V, E, H, MAX_LENGTH, K)

    k1, k2 = jax.random.split(jax.random.PRNGKey(0))
    input_tensor = jax.random.randint(k1, (B, L_in), 1, V, dtype=jnp.int32)
    target_tensor = jax.random.randint(k2, (B, L_tgt), 1, V, dtype=jnp.int32)

    fwd = jax.jit(conv_encoder_rnn_decoder_forward)
    loss = fwd(params, input_tensor, target_tensor)
    jax.block_until_ready(loss)
    assert jnp.isfinite(loss)
    print("KERNEL_OK")
</pallas_src>

<mosaic_0001>
module attributes {stable_mosaic.version = 11 : i64} {
  func.func @kernel(%arg0: memref<64x128xbf16, #tpu.memory_space<vmem>>, %arg1: memref<128x128xbf16, #tpu.memory_space<vmem>>, %arg2: memref<1x128xf32, #tpu.memory_space<vmem>>, %arg3: memref<1024x128xf32, #tpu.memory_space<vmem>>, %arg4: memref<8x128xf32, #tpu.memory_space<vmem>>) attributes {dimension_semantics = [], scalar_prefetch = 0 : i64, scratch_operands = 0 : i64, tpu.core_type = #tpu.core_type<tc>} {
    %c0 = arith.constant 0 : index
    %c0_0 = arith.constant 0 : index
    %0 = vector.load %arg0[%c0, %c0_0] : memref<64x128xbf16, #tpu.memory_space<vmem>>, vector<64x128xbf16>
    %c0_1 = arith.constant 0 : index
    %c0_2 = arith.constant 0 : index
    %1 = vector.load %arg1[%c0_1, %c0_2] : memref<128x128xbf16, #tpu.memory_space<vmem>>, vector<128x128xbf16>
    %cst = arith.constant dense<0.000000e+00> : vector<64x128xf32>
    %2 = tpu.matmul %0, %1, %cst {dimension_numbers = #tpu.dot_dimension_numbers<[1], [0], [0], [1], [0, 0, 1, 1], [], []>} : vector<64x128xbf16>, vector<128x128xbf16>, vector<64x128xf32> -> vector<64x128xf32>
    %c0_3 = arith.constant 0 : index
    %c0_4 = arith.constant 0 : index
    %3 = vector.load %arg2[%c0_3, %c0_4] : memref<1x128xf32, #tpu.memory_space<vmem>>, vector<1x128xf32>
    %4 = vector.broadcast %3 : vector<1x128xf32> to vector<64x128xf32>
    %5 = arith.addf %2, %4 : vector<64x128xf32>
    %cst_5 = arith.constant 0.000000e+00 : f32
    %6 = vector.broadcast %cst_5 : f32 to vector<64x128xf32>
    %7 = arith.maximumf %5, %6 : vector<64x128xf32>
    %cst_6 = arith.constant 0.000000e+00 : f32
    %8 = vector.broadcast %cst_6 : f32 to vector<1024x128xf32>
    %c0_7 = arith.constant 0 : index
    %c0_8 = arith.constant 0 : index
    %9 = vector.load %arg3[%c0_7, %c0_8] : memref<1024x128xf32, #tpu.memory_space<vmem>>, vector<1024x128xf32>
    tpu.vector_store %arg3[%c0_7, %c0_8], %8 {strides = array<i32>} : memref<1024x128xf32, #tpu.memory_space<vmem>>, vector<1024x128xf32>,
    %10 = vector.extract_strided_slice %7 {offsets = [0, 0], sizes = [8, 128], strides = [1, 1]} : vector<64x128xf32> to vector<8x128xf32>
    %c8 = arith.constant 8 : index
    %c0_9 = arith.constant 0 : index
    %11 = vector.load %arg3[%c8, %c0_9] : memref<1024x128xf32, #tpu.memory_space<vmem>>, vector<8x128xf32>
    tpu.vector_store %arg3[%c8, %c0_9], %10 {strides = array<i32>} : memref<1024x128xf32, #tpu.memory_space<vmem>>, vector<8x128xf32>,
    %12 = vector.extract_strided_slice %7 {offsets = [7, 0], sizes = [1, 128], strides = [1, 1]} : vector<64x128xf32> to vector<1x128xf32>
    %c0_10 = arith.constant 0 : index
    %c0_11 = arith.constant 0 : index
    %13 = vector.load %arg4[%c0_10, %c0_11] : memref<8x128xf32, #tpu.memory_space<vmem>>, vector<1x128xf32>
    tpu.vector_store %arg4[%c0_10, %c0_11], %12 {strides = array<i32>} : memref<8x128xf32, #tpu.memory_space<vmem>>, vector<1x128xf32>,
    %14 = vector.extract_strided_slice %7 {offsets = [8, 0], sizes = [8, 128], strides = [1, 1]} : vector<64x128xf32> to vector<8x128xf32>
    %c136 = arith.constant 136 : index
    %c0_12 = arith.constant 0 : index
    %15 = vector.load %arg3[%c136, %c0_12] : memref<1024x128xf32, #tpu.memory_space<vmem>>, vector<8x128xf32>
    tpu.vector_store %arg3[%c136, %c0_12], %14 {strides = array<i32>} : memref<1024x128xf32, #tpu.memory_space<vmem>>, vector<8x128xf32>,
    %16 = vector.extract_strided_slice %7 {offsets = [15, 0], sizes = [1, 128], strides = [1, 1]} : vector<64x128xf32> to vector<1x128xf32>
    %c1 = arith.constant 1 : index
    %c0_13 = arith.constant 0 : index
    %17 = vector.load %arg4[%c1, %c0_13] : memref<8x128xf32, #tpu.memory_space<vmem>>, vector<1x128xf32>
    tpu.vector_store %arg4[%c1, %c0_13], %16 {strides = array<i32>} : memref<8x128xf32, #tpu.memory_space<vmem>>, vector<1x128xf32>,
    %18 = vector.extract_strided_slice %7 {offsets = [16, 0], sizes = [8, 128], strides = [1, 1]} : vector<64x128xf32> to vector<8x128xf32>
    %c264 = arith.constant 264 : index
    %c0_14 = arith.constant 0 : index
    %19 = vector.load %arg3[%c264, %c0_14] : memref<1024x128xf32, #tpu.memory_space<vmem>>, vector<8x128xf32>
    tpu.vector_store %arg3[%c264, %c0_14], %18 {strides = array<i32>} : memref<1024x128xf32, #tpu.memory_space<vmem>>, vector<8x128xf32>,
    %20 = vector.extract_strided_slice %7 {offsets = [23, 0], sizes = [1, 128], strides = [1, 1]} : vector<64x128xf32> to vector<1x128xf32>
    %c2 = arith.constant 2 : index
    %c0_15 = arith.constant 0 : index
    %21 = vector.load %arg4[%c2, %c0_15] : memref<8x128xf32, #tpu.memory_space<vmem>>, vector<1x128xf32>
    tpu.vector_store %arg4[%c2, %c0_15], %20 {strides = array<i32>} : memref<8x128xf32, #tpu.memory_space<vmem>>, vector<1x128xf32>,
    %22 = vector.extract_strided_slice %7 {offsets = [24, 0], sizes = [8, 128], strides = [1, 1]} : vector<64x128xf32> to vector<8x128xf32>
    %c392 = arith.constant 392 : index
    %c0_16 = arith.constant 0 : index
    %23 = vector.load %arg3[%c392, %c0_16] : memref<1024x128xf32, #tpu.memory_space<vmem>>, vector<8x128xf32>
    tpu.vector_store %arg3[%c392, %c0_16], %22 {strides = array<i32>} : memref<1024x128xf32, #tpu.memory_space<vmem>>, vector<8x128xf32>,
    %24 = vector.extract_strided_slice %7 {offsets = [31, 0], sizes = [1, 128], strides = [1, 1]} : vector<64x128xf32> to vector<1x128xf32>
    %c3 = arith.constant 3 : index
    %c0_17 = arith.constant 0 : index
    %25 = vector.load %arg4[%c3, %c0_17] : memref<8x128xf32, #tpu.memory_space<vmem>>, vector<1x128xf32>
    tpu.vector_store %arg4[%c3, %c0_17], %24 {strides = array<i32>} : memref<8x128xf32, #tpu.memory_space<vmem>>, vector<1x128xf32>,
    %26 = vector.extract_strided_slice %7 {offsets = [32, 0], sizes = [8, 128], strides = [1, 1]} : vector<64x128xf32> to vector<8x128xf32>
    %c520 = arith.constant 520 : index
    %c0_18 = arith.constant 0 : index
    %27 = vector.load %arg3[%c520, %c0_18] : memref<1024x128xf32, #tpu.memory_space<vmem>>, vector<8x128xf32>
    tpu.vector_store %arg3[%c520, %c0_18], %26 {strides = array<i32>} : memref<1024x128xf32, #tpu.memory_space<vmem>>, vector<8x128xf32>,
    %28 = vector.extract_strided_slice %7 {offsets = [39, 0], sizes = [1, 128], strides = [1, 1]} : vector<64x128xf32> to vector<1x128xf32>
    %c4 = arith.constant 4 : index
    %c0_19 = arith.constant 0 : index
    %29 = vector.load %arg4[%c4, %c0_19] : memref<8x128xf32, #tpu.memory_space<vmem>>, vector<1x128xf32>
    tpu.vector_store %arg4[%c4, %c0_19], %28 {strides = array<i32>} : memref<8x128xf32, #tpu.memory_space<vmem>>, vector<1x128xf32>,
    %30 = vector.extract_strided_slice %7 {offsets = [40, 0], sizes = [8, 128], strides = [1, 1]} : vector<64x128xf32> to vector<8x128xf32>
    %c648 = arith.constant 648 : index
    %c0_20 = arith.constant 0 : index
    %31 = vector.load %arg3[%c648, %c0_20] : memref<1024x128xf32, #tpu.memory_space<vmem>>, vector<8x128xf32>
    tpu.vector_store %arg3[%c648, %c0_20], %30 {strides = array<i32>} : memref<1024x128xf32, #tpu.memory_space<vmem>>, vector<8x128xf32>,
    %32 = vector.extract_strided_slice %7 {offsets = [47, 0], sizes = [1, 128], strides = [1, 1]} : vector<64x128xf32> to vector<1x128xf32>
    %c5 = arith.constant 5 : index
    %c0_21 = arith.constant 0 : index
    %33 = vector.load %arg4[%c5, %c0_21] : memref<8x128xf32, #tpu.memory_space<vmem>>, vector<1x128xf32>
    tpu.vector_store %arg4[%c5, %c0_21], %32 {strides = array<i32>} : memref<8x128xf32, #tpu.memory_space<vmem>>, vector<1x128xf32>,
    %34 = vector.extract_strided_slice %7 {offsets = [48, 0], sizes = [8, 128], strides = [1, 1]} : vector<64x128xf32> to vector<8x128xf32>
    %c776 = arith.constant 776 : index
    %c0_22 = arith.constant 0 : index
    %35 = vector.load %arg3[%c776, %c0_22] : memref<1024x128xf32, #tpu.memory_space<vmem>>, vector<8x128xf32>
    tpu.vector_store %arg3[%c776, %c0_22], %34 {strides = array<i32>} : memref<1024x128xf32, #tpu.memory_space<vmem>>, vector<8x128xf32>,
    %36 = vector.extract_strided_slice %7 {offsets = [55, 0], sizes = [1, 128], strides = [1, 1]} : vector<64x128xf32> to vector<1x128xf32>
    %c6 = arith.constant 6 : index
    %c0_23 = arith.constant 0 : index
    %37 = vector.load %arg4[%c6, %c0_23] : memref<8x128xf32, #tpu.memory_space<vmem>>, vector<1x128xf32>
    tpu.vector_store %arg4[%c6, %c0_23], %36 {strides = array<i32>} : memref<8x128xf32, #tpu.memory_space<vmem>>, vector<1x128xf32>,
    %38 = vector.extract_strided_slice %7 {offsets = [56, 0], sizes = [8, 128], strides = [1, 1]} : vector<64x128xf32> to vector<8x128xf32>
    %c904 = arith.constant 904 : index
    %c0_24 = arith.constant 0 : index
    %39 = vector.load %arg3[%c904, %c0_24] : memref<1024x128xf32, #tpu.memory_space<vmem>>, vector<8x128xf32>
    tpu.vector_store %arg3[%c904, %c0_24], %38 {strides = array<i32>} : memref<1024x128xf32, #tpu.memory_space<vmem>>, vector<8x128xf32>,
    %40 = vector.extract_strided_slice %7 {offsets = [63, 0], sizes = [1, 128], strides = [1, 1]} : vector<64x128xf32> to vector<1x128xf32>
    %c7 = arith.constant 7 : index
    %c0_25 = arith.constant 0 : index
    %41 = vector.load %arg4[%c7, %c0_25] : memref<8x128xf32, #tpu.memory_space<vmem>>, vector<1x128xf32>
    tpu.vector_store %arg4[%c7, %c0_25], %40 {strides = array<i32>} : memref<8x128xf32, #tpu.memory_space<vmem>>, vector<1x128xf32>,
    return
  }
}

module attributes {stable_mosaic.version = 11 : i64} {
  func.func @_fused_decoder_kernel(%arg0: memref<8x8x128xf32, #tpu.memory_space<vmem>>, %arg1: memref<8x8x128xf32, #tpu.memory_space<vmem>>, %arg2: memref<8x128xf32, #tpu.memory_space<vmem>>, %arg3: memref<1024x128xbf16, #tpu.memory_space<vmem>>, %arg4: memref<8x1024xf32, #tpu.memory_space<vmem>>, %arg5: memref<128x128xbf16, #tpu.memory_space<vmem>>, %arg6: memref<128x128xbf16, #tpu.memory_space<vmem>>, %arg7: memref<1x128xf32, #tpu.memory_space<vmem>>, %arg8: memref<128x128xbf16, #tpu.memory_space<vmem>>, %arg9: memref<128x128xbf16, #tpu.memory_space<vmem>>, %arg10: memref<1x128xf32, #tpu.memory_space<vmem>>, %arg11: memref<128x384xbf16, #tpu.memory_space<vmem>>, %arg12: memref<1x384xf32, #tpu.memory_space<vmem>>, %arg13: memref<128x384xbf16, #tpu.memory_space<vmem>>, %arg14: memref<1x384xf32, #tpu.memory_space<vmem>>, %arg15: memref<128x128xbf16, #tpu.memory_space<vmem>>, %arg16: memref<1x128xf32, #tpu.memory_space<vmem>>, %arg17: memref<1x1xf32, #tpu.memory_space<smem>>) attributes {dimension_semantics = [], scalar_prefetch = 0 : i64, scratch_operands = 0 : i64, tpu.core_type = #tpu.core_type<tc>} {
    %c0 = arith.constant 0 : index
    %c0_0 = arith.constant 0 : index
    %0 = vector.load %arg3[%c0, %c0_0] : memref<1024x128xbf16, #tpu.memory_space<vmem>>, vector<1024x128xbf16>
    %c0_1 = arith.constant 0 : index
    %c0_2 = arith.constant 0 : index
    %1 = vector.load %arg4[%c0_1, %c0_2] : memref<8x1024xf32, #tpu.memory_space<vmem>>, vector<8x1024xf32>
    %c0_3 = arith.constant 0 : index
    %c0_4 = arith.constant 0 : index
    %2 = vector.load %arg5[%c0_3, %c0_4] : memref<128x128xbf16, #tpu.memory_space<vmem>>, vector<128x128xbf16>
    %c0_5 = arith.constant 0 : index
    %c0_6 = arith.constant 0 : index
    %3 = vector.load %arg6[%c0_5, %c0_6] : memref<128x128xbf16, #tpu.memory_space<vmem>>, vector<128x128xbf16>
    %c0_7 = arith.constant 0 : index
    %c0_8 = arith.constant 0 : index
    %4 = vector.load %arg7[%c0_7, %c0_8] : memref<1x128xf32, #tpu.memory_space<vmem>>, vector<1x128xf32>
    %c0_9 = arith.constant 0 : index
    %c0_10 = arith.constant 0 : index
    %5 = vector.load %arg8[%c0_9, %c0_10] : memref<128x128xbf16, #tpu.memory_space<vmem>>, vector<128x128xbf16>
    %c0_11 = arith.constant 0 : index
    %c0_12 = arith.constant 0 : index
    %6 = vector.load %arg9[%c0_11, %c0_12] : memref<128x128xbf16, #tpu.memory_space<vmem>>, vector<128x128xbf16>
    %c0_13 = arith.constant 0 : index
    %c0_14 = arith.constant 0 : index
    %7 = vector.load %arg10[%c0_13, %c0_14] : memref<1x128xf32, #tpu.memory_space<vmem>>, vector<1x128xf32>
    %c0_15 = arith.constant 0 : index
    %c0_16 = arith.constant 0 : index
    %8 = vector.load %arg11[%c0_15, %c0_16] : memref<128x384xbf16, #tpu.memory_space<vmem>>, vector<128x384xbf16>
    %c0_17 = arith.constant 0 : index
    %c0_18 = arith.constant 0 : index
    %9 = vector.load %arg12[%c0_17, %c0_18] : memref<1x384xf32, #tpu.memory_space<vmem>>, vector<1x384xf32>
    %c0_19 = arith.constant 0 : index
    %c0_20 = arith.constant 0 : index
    %10 = vector.load %arg13[%c0_19, %c0_20] : memref<128x384xbf16, #tpu.memory_space<vmem>>, vector<128x384xbf16>
    %c0_21 = arith.constant 0 : index
    %c0_22 = arith.constant 0 : index
    %11 = vector.load %arg14[%c0_21, %c0_22] : memref<1x384xf32, #tpu.memory_space<vmem>>, vector<1x384xf32>
    %c0_23 = arith.constant 0 : index
    %c0_24 = arith.constant 0 : index
    %12 = vector.load %arg15[%c0_23, %c0_24] : memref<128x128xbf16, #tpu.memory_space<vmem>>, vector<128x128xbf16>
    %c0_25 = arith.constant 0 : index
    %c0_26 = arith.constant 0 : index
    %13 = vector.load %arg16[%c0_25, %c0_26] : memref<1x128xf32, #tpu.memory_space<vmem>>, vector<1x128xf32>
    %c0_27 = arith.constant 0 : index
    %c0_28 = arith.constant 0 : index
    %14 = vector.load %arg2[%c0_27, %c0_28] : memref<8x128xf32, #tpu.memory_space<vmem>>, vector<8x128xf32>
    %cst = arith.constant 0.000000e+00 : f32
    %c0_i32 = arith.constant 0 : i32
    %15 = arith.index_cast %c0_i32 : i32 to index
    %c0_29 = arith.constant 0 : index
    %c0_30 = arith.constant 0 : index
    %16 = vector.load %arg0[%15, %c0_29, %c0_30] : memref<8x8x128xf32, #tpu.memory_space<vmem>>, vector<1x8x128xf32>
    %17 = vector.shape_cast %16 : vector<1x8x128xf32> to vector<8x128xf32>
    %18 = arith.index_cast %c0_i32 : i32 to index
    %c0_31 = arith.constant 0 : index
    %c0_32 = arith.constant 0 : index
    %19 = vector.load %arg1[%18, %c0_31, %c0_32] : memref<8x8x128xf32, #tpu.memory_space<vmem>>, vector<1x8x128xf32>
    %20 = vector.shape_cast %19 : vector<1x8x128xf32> to vector<8x128xf32>
    %21 = arith.truncf %17 : vector<8x128xf32> to vector<8x128xbf16>
    %22 = arith.truncf %14 : vector<8x128xf32> to vector<8x128xbf16>
    %cst_33 = arith.constant dense<0.000000e+00> : vector<8x128xf32>
    %23 = tpu.matmul %21, %2, %cst_33 {dimension_numbers = #tpu.dot_dimension_numbers<[1], [0], [0], [1], [0, 0, 1, 1], [], []>} : vector<8x128xbf16>, vector<128x128xbf16>, vector<8x128xf32> -> vector<8x128xf32>
    %cst_34 = arith.constant dense<0.000000e+00> : vector<8x128xf32>
    %24 = tpu.matmul %22, %3, %cst_34 {dimension_numbers = #tpu.dot_dimension_numbers<[1], [0], [0], [1], [0, 0, 1, 1], [], []>} : vector<8x128xbf16>, vector<128x128xbf16>, vector<8x128xf32> -> vector<8x128xf32>
    %25 = arith.addf %23, %24 : vector<8x128xf32>
    %26 = vector.broadcast %4 : vector<1x128xf32> to vector<8x128xf32>
    %27 = arith.addf %25, %26 : vector<8x128xf32>
    %cst_35 = arith.constant dense<0xFF800000> : vector<8xf32>
    %28 = vector.multi_reduction <maximumf>, %27, %cst_35 [1] : vector<8x128xf32> to vector<8xf32>
    %29 = vector.shape_cast %28 : vector<8xf32> to vector<8x1xf32>
    %30 = vector.broadcast %29 : vector<8x1xf32> to vector<8x128xf32>
    %31 = arith.subf %27, %30 : vector<8x128xf32>
    %32 = math.exp %31 : vector<8x128xf32>
    %cst_36 = arith.constant dense<0.000000e+00> : vector<8xf32>
    %33 = vector.multi_reduction <add>, %32, %cst_36 [1] : vector<8x128xf32> to vector<8xf32>
    %34 = vector.shape_cast %33 : vector<8xf32> to vector<8x1xf32>
    %35 = vector.broadcast %34 : vector<8x1xf32> to vector<8x128xf32>
    %36 = arith.divf %32, %35 : vector<8x128xf32>
    %37 = tpu.concatenate %36, %36, %36, %36, %36, %36, %36, %36 in 1 : vector<8x128xf32>, vector<8x128xf32>, vector<8x128xf32>, vector<8x128xf32>, vector<8x128xf32>, vector<8x128xf32>, vector<8x128xf32>, vector<8x128xf32> -> vector<8x1024xf32>
    %38 = arith.mulf %1, %37 : vector<8x1024xf32>
    %39 = arith.truncf %38 : vector<8x1024xf32> to vector<8x1024xbf16>
    %cst_37 = arith.constant dense<0.000000e+00> : vector<8x128xf32>
    %40 = tpu.matmul %39, %0, %cst_37 {dimension_numbers = #tpu.dot_dimension_numbers<[1], [0], [0], [1], [0, 0, 1, 1], [], []>} : vector<8x1024xbf16>, vector<1024x128xbf16>, vector<8x128xf32> -> vector<8x128xf32>
    %cst_38 = arith.constant dense<0.000000e+00> : vector<8x128xf32>
    %41 = tpu.matmul %21, %5, %cst_38 {dimension_numbers = #tpu.dot_dimension_numbers<[1], [0], [0], [1], [0, 0, 1, 1], [], []>} : vector<8x128xbf16>, vector<128x128xbf16>, vector<8x128xf32> -> vector<8x128xf32>
    %42 = arith.truncf %40 : vector<8x128xf32> to vector<8x128xbf16>
    %cst_39 = arith.constant dense<0.000000e+00> : vector<8x128xf32>
    %43 = tpu.matmul %42, %6, %cst_39 {dimension_numbers = #tpu.dot_dimension_numbers<[1], [0], [0], [1], [0, 0, 1, 1], [], []>} : vector<8x128xbf16>, vector<128x128xbf16>, vector<8x128xf32> -> vector<8x128xf32>
    %44 = arith.addf %41, %43 : vector<8x128xf32>
    %45 = vector.broadcast %7 : vector<1x128xf32> to vector<8x128xf32>
    %46 = arith.addf %44, %45 : vector<8x128xf32>
    %cst_40 = arith.constant 0.000000e+00 : f32
    %47 = vector.broadcast %cst_40 : f32 to vector<8x128xf32>
    %48 = arith.maximumf %46, %47 : vector<8x128xf32>
    %49 = arith.truncf %48 : vector<8x128xf32> to vector<8x128xbf16>
    %cst_41 = arith.constant dense<0.000000e+00> : vector<8x384xf32>
    %50 = tpu.matmul %49, %8, %cst_41 {dimension_numbers = #tpu.dot_dimension_numbers<[1], [0], [0], [1], [0, 0, 1, 1], [], []>} : vector<8x128xbf16>, vector<128x384xbf16>, vector<8x384xf32> -> vector<8x384xf32>
    %51 = vector.broadcast %9 : vector<1x384xf32> to vector<8x384xf32>
    %52 = arith.addf %50, %51 : vector<8x384xf32>
    %cst_42 = arith.constant dense<0.000000e+00> : vector<8x384xf32>
    %53 = tpu.matmul %22, %10, %cst_42 {dimension_numbers = #tpu.dot_dimension_numbers<[1], [0], [0], [1], [0, 0, 1, 1], [], []>} : vector<8x128xbf16>, vector<128x384xbf16>, vector<8x384xf32> -> vector<8x384xf32>
    %54 = vector.broadcast %11 : vector<1x384xf32> to vector<8x384xf32>
    %55 = arith.addf %53, %54 : vector<8x384xf32>
    %56 = vector.extract_strided_slice %52 {offsets = [0, 0], sizes = [8, 128], strides = [1, 1]} : vector<8x384xf32> to vector<8x128xf32>
    %57 = vector.extract_strided_slice %55 {offsets = [0, 0], sizes = [8, 128], strides = [1, 1]} : vector<8x384xf32> to vector<8x128xf32>
    %58 = arith.addf %56, %57 : vector<8x128xf32>
    %cst_43 = arith.constant 0.000000e+00 : f32
    %59 = vector.broadcast %cst_43 : f32 to vector<8x128xf32>
    %60 = arith.subf %59, %58 : vector<8x128xf32>
    %61 = math.exp %60 : vector<8x128xf32>
    %cst_44 = arith.constant 1.000000e+00 : f32
    %62 = vector.broadcast %cst_44 : f32 to vector<8x128xf32>
    %63 = arith.addf %62, %61 : vector<8x128xf32>
    %cst_45 = arith.constant 1.000000e+00 : f32
    %64 = vector.broadcast %cst_45 : f32 to vector<8x128xf32>
    %65 = arith.divf %64, %63 : vector<8x128xf32>
    %66 = vector.extract_strided_slice %52 {offsets = [0, 128], sizes = [8, 128], strides = [1, 1]} : vector<8x384xf32> to vector<8x128xf32>
    %67 = vector.extract_strided_slice %55 {offsets = [0, 128], sizes = [8, 128], strides = [1, 1]} : vector<8x384xf32> to vector<8x128xf32>
    %68 = arith.addf %66, %67 : vector<8x128xf32>
    %cst_46 = arith.constant 0.000000e+00 : f32
    %69 = vector.broadcast %cst_46 : f32 to vector<8x128xf32>
    %70 = arith.subf %69, %68 : vector<8x128xf32>
    %71 = math.exp %70 : vector<8x128xf32>
    %cst_47 = arith.constant 1.000000e+00 : f32
    %72 = vector.broadcast %cst_47 : f32 to vector<8x128xf32>
    %73 = arith.addf %72, %71 : vector<8x128xf32>
    %cst_48 = arith.constant 1.000000e+00 : f32
    %74 = vector.broadcast %cst_48 : f32 to vector<8x128xf32>
    %75 = arith.divf %74, %73 : vector<8x128xf32>
    %76 = vector.extract_strided_slice %52 {offsets = [0, 256], sizes = [8, 128], strides = [1, 1]} : vector<8x384xf32> to vector<8x128xf32>
    %77 = vector.extract_strided_slice %55 {offsets = [0, 256], sizes = [8, 128], strides = [1, 1]} : vector<8x384xf32> to vector<8x128xf32>
    %78 = arith.mulf %65, %77 : vector<8x128xf32>
    %79 = arith.addf %76, %78 : vector<8x128xf32>
    %80 = math.tanh %79 : vector<8x128xf32>
    %cst_49 = arith.constant 1.000000e+00 : f32
    %81 = vector.broadcast %cst_49 : f32 to vector<8x128xf32>
    %82 = arith.subf %81, %75 : vector<8x128xf32>
    %83 = arith.mulf %82, %80 : vector<8x128xf32>
    %84 = arith.mulf %75, %14 : vector<8x128xf32>
    %85 = arith.addf %83, %84 : vector<8x128xf32>
    %86 = arith.truncf %85 : vector<8x128xf32> to vector<8x128xbf16>
    %cst_50 = arith.constant dense<0.000000e+00> : vector<8x128xf32>
    %87 = tpu.matmul %86, %12, %cst_50 {dimension_numbers = #tpu.dot_dimension_numbers<[1], [0], [0], [1], [0, 0, 1, 1], [], []>} : vector<8x128xbf16>, vector<128x128xbf16>, vector<8x128xf32> -> vector<8x128xf32>
    %88 = vector.broadcast %13 : vector<1x128xf32> to vector<8x128xf32>
    %89 = arith.addf %87, %88 : vector<8x128xf32>
    %cst_51 = arith.constant dense<0xFF800000> : vector<8xf32>
    %90 = vector.multi_reduction <maximumf>, %89, %cst_51 [1] : vector<8x128xf32> to vector<8xf32>
    %91 = vector.shape_cast %90 : vector<8xf32> to vector<8x1xf32>
    %92 = vector.broadcast %91 : vector<8x1xf32> to vector<8x128xf32>
    %93 = arith.subf %89, %92 : vector<8x128xf32>
    %94 = math.exp %93 : vector<8x128xf32>
    %cst_52 = arith.constant dense<0.000000e+00> : vector<8xf32>
    %95 = vector.multi_reduction <add>, %94, %cst_52 [1] : vector<8x128xf32> to vector<8xf32>
    %96 = vector.shape_cast %95 : vector<8xf32> to vector<8x1xf32>
    %97 = math.log %96 : vector<8x1xf32>
    %98 = arith.addf %97, %91 : vector<8x1xf32>
    %99 = vector.broadcast %98 : vector<8x1xf32> to vector<8x128xf32>
    %100 = arith.subf %89, %99 : vector<8x128xf32>
    %101 = arith.mulf %100, %20 : vector<8x128xf32>
    %102 = vector.shape_cast %101 : vector<8x128xf32> to vector<1x8x128xf32>
    %cst_53 = arith.constant dense<0.000000e+00> : vector<1xf32>
    %103 = vector.multi_reduction <add>, %102, %cst_53 [1, 2] : vector<1x8x128xf32> to vector<1xf32>
    %104 = vector.shape_cast %103 : vector<1xf32> to vector<1x1x1xf32>
    %105 = vector.extract %104[0, 0, 0] : f32 from vector<1x1x1xf32>
    %106 = arith.subf %cst, %105 : f32
    %c1_i32 = arith.constant 1 : i32
    %107 = arith.index_cast %c1_i32 : i32 to index
    %c0_54 = arith.constant 0 : index
    %c0_55 = arith.constant 0 : index
    %108 = vector.load %arg0[%107, %c0_54, %c0_55] : memref<8x8x128xf32, #tpu.memory_space<vmem>>, vector<1x8x128xf32>
    %109 = vector.shape_cast %108 : vector<1x8x128xf32> to vector<8x128xf32>
    %110 = arith.index_cast %c1_i32 : i32 to index
    %c0_56 = arith.constant 0 : index
    %c0_57 = arith.constant 0 : index
    %111 = vector.load %arg1[%110, %c0_56, %c0_57] : memref<8x8x128xf32, #tpu.memory_space<vmem>>, vector<1x8x128xf32>
    %112 = vector.shape_cast %111 : vector<1x8x128xf32> to vector<8x128xf32>
    %113 = arith.truncf %109 : vector<8x128xf32> to vector<8x128xbf16>
    %114 = arith.truncf %85 : vector<8x128xf32> to vector<8x128xbf16>
    %cst_58 = arith.constant dense<0.000000e+00> : vector<8x128xf32>
    %115 = tpu.matmul %113, %2, %cst_58 {dimension_numbers = #tpu.dot_dimension_numbers<[1], [0], [0], [1], [0, 0, 1, 1], [], []>} : vector<8x128xbf16>, vector<128x128xbf16>, vector<8x128xf32> -> vector<8x128xf32>
    %cst_59 = arith.constant dense<0.000000e+00> : vector<8x128xf32>
    %116 = tpu.matmul %114, %3, %cst_59 {dimension_numbers = #tpu.dot_dimension_numbers<[1], [0], [0], [1], [0, 0, 1, 1], [], []>} : vector<8x128xbf16>, vector<128x128xbf16>, vector<8x128xf32> -> vector<8x128xf32>
    %117 = arith.addf %115, %116 : vector<8x128xf32>
    %118 = vector.broadcast %4 : vector<1x128xf32> to vector<8x128xf32>
    %119 = arith.addf %117, %118 : vector<8x128xf32>
    %cst_60 = arith.constant dense<0xFF800000> : vector<8xf32>
    %120 = vector.multi_reduction <maximumf>, %119, %cst_60 [1] : vector<8x128xf32> to vector<8xf32>
    %121 = vector.shape_cast %120 : vector<8xf32> to vector<8x1xf32>
    %122 = vector.broadcast %121 : vector<8x1xf32> to vector<8x128xf32>
    %123 = arith.subf %119, %122 : vector<8x128xf32>
    %124 = math.exp %123 : vector<8x128xf32>
    %cst_61 = arith.constant dense<0.000000e+00> : vector<8xf32>
    %125 = vector.multi_reduction <add>, %124, %cst_61 [1] : vector<8x128xf32> to vector<8xf32>
    %126 = vector.shape_cast %125 : vector<8xf32> to vector<8x1xf32>
    %127 = vector.broadcast %126 : vector<8x1xf32> to vector<8x128xf32>
    %128 = arith.divf %124, %127 : vector<8x128xf32>
    %129 = tpu.concatenate %128, %128, %128, %128, %128, %128, %128, %128 in 1 : vector<8x128xf32>, vector<8x128xf32>, vector<8x128xf32>, vector<8x128xf32>, vector<8x128xf32>, vector<8x128xf32>, vector<8x128xf32>, vector<8x128xf32> -> vector<8x1024xf32>
    %130 = arith.mulf %1, %129 : vector<8x1024xf32>
    %131 = arith.truncf %130 : vector<8x1024xf32> to vector<8x1024xbf16>
    %cst_62 = arith.constant dense<0.000000e+00> : vector<8x128xf32>
    %132 = tpu.matmul %131, %0, %cst_62 {dimension_numbers = #tpu.dot_dimension_numbers<[1], [0], [0], [1], [0, 0, 1, 1], [], []>} : vector<8x1024xbf16>, vector<1024x128xbf16>, vector<8x128xf32> -> vector<8x128xf32>
    %cst_63 = arith.constant dense<0.000000e+00> : vector<8x128xf32>
    %133 = tpu.matmul %113, %5, %cst_63 {dimension_numbers = #tpu.dot_dimension_numbers<[1], [0], [0], [1], [0, 0, 1, 1], [], []>} : vector<8x128xbf16>, vector<128x128xbf16>, vector<8x128xf32> -> vector<8x128xf32>
    %134 = arith.truncf %132 : vector<8x128xf32> to vector<8x128xbf16>
    %cst_64 = arith.constant dense<0.000000e+00> : vector<8x128xf32>
    %135 = tpu.matmul %134, %6, %cst_64 {dimension_numbers = #tpu.dot_dimension_numbers<[1], [0], [0], [1], [0, 0, 1, 1], [], []>} : vector<8x128xbf16>, vector<128x128xbf16>, vector<8x128xf32> -> vector<8x128xf32>
    %136 = arith.addf %133, %135 : vector<8x128xf32>
    %137 = vector.broadcast %7 : vector<1x128xf32> to vector<8x128xf32>
    %138 = arith.addf %136, %137 : vector<8x128xf32>
    %cst_65 = arith.constant 0.000000e+00 : f32
    %139 = vector.broadcast %cst_65 : f32 to vector<8x128xf32>
    %140 = arith.maximumf %138, %139 : vector<8x128xf32>
    %141 = arith.truncf %140 : vector<8x128xf32> to vector<8x128xbf16>
    %cst_66 = arith.constant dense<0.000000e+00> : vector<8x384xf32>
    %142 = tpu.matmul %141, %8, %cst_66 {dimension_numbers = #tpu.dot_dimension_numbers<[1], [0], [0], [1], [0, 0, 1, 1], [], []>} : vector<8x128xbf16>, vector<128x384xbf16>, vector<8x384xf32> -> vector<8x384xf32>
    %143 = vector.broadcast %9 : vector<1x384xf32> to vector<8x384xf32>
    %144 = arith.addf %142, %143 : vector<8x384xf32>
    %cst_67 = arith.constant dense<0.000000e+00> : vector<8x384xf32>
    %145 = tpu.matmul %114, %10, %cst_67 {dimension_numbers = #tpu.dot_dimension_numbers<[1], [0], [0], [1], [0, 0, 1, 1], [], []>} : vector<8x128xbf16>, vector<128x384xbf16>, vector<8x384xf32> -> vector<8x384xf32>
    %146 = vector.broadcast %11 : vector<1x384xf32> to vector<8x384xf32>
    %147 = arith.addf %145, %146 : vector<8x384xf32>
    %148 = vector.extract_strided_slice %144 {offsets = [0, 0], sizes = [8, 128], strides = [1, 1]} : vector<8x384xf32> to vector<8x128xf32>
    %149 = vector.extract_strided_slice %147 {offsets = [0, 0], sizes = [8, 128], strides = [1, 1]} : vector<8x384xf32> to vector<8x128xf32>
    %150 = arith.addf %148, %149 : vector<8x128xf32>
    %cst_68 = arith.constant 0.000000e+00 : f32
    %151 = vector.broadcast %cst_68 : f32 to vector<8x128xf32>
    %152 = arith.subf %151, %150 : vector<8x128xf32>
    %153 = math.exp %152 : vector<8x128xf32>
    %cst_69 = arith.constant 1.000000e+00 : f32
    %154 = vector.broadcast %cst_69 : f32 to vector<8x128xf32>
    %155 = arith.addf %154, %153 : vector<8x128xf32>
    %cst_70 = arith.constant 1.000000e+00 : f32
    %156 = vector.broadcast %cst_70 : f32 to vector<8x128xf32>
    %157 = arith.divf %156, %155 : vector<8x128xf32>
    %158 = vector.extract_strided_slice %144 {offsets = [0, 128], sizes = [8, 128], strides = [1, 1]} : vector<8x384xf32> to vector<8x128xf32>
    %159 = vector.extract_strided_slice %147 {offsets = [0, 128], sizes = [8, 128], strides = [1, 1]} : vector<8x384xf32> to vector<8x128xf32>
    %160 = arith.addf %158, %159 : vector<8x128xf32>
    %cst_71 = arith.constant 0.000000e+00 : f32
    %161 = vector.broadcast %cst_71 : f32 to vector<8x128xf32>
    %162 = arith.subf %161, %160 : vector<8x128xf32>
    %163 = math.exp %162 : vector<8x128xf32>
    %cst_72 = arith.constant 1.000000e+00 : f32
    %164 = vector.broadcast %cst_72 : f32 to vector<8x128xf32>
    %165 = arith.addf %164, %163 : vector<8x128xf32>
    %cst_73 = arith.constant 1.000000e+00 : f32
    %166 = vector.broadcast %cst_73 : f32 to vector<8x128xf32>
    %167 = arith.divf %166, %165 : vector<8x128xf32>
    %168 = vector.extract_strided_slice %144 {offsets = [0, 256], sizes = [8, 128], strides = [1, 1]} : vector<8x384xf32> to vector<8x128xf32>
    %169 = vector.extract_strided_slice %147 {offsets = [0, 256], sizes = [8, 128], strides = [1, 1]} : vector<8x384xf32> to vector<8x128xf32>
    %170 = arith.mulf %157, %169 : vector<8x128xf32>
    %171 = arith.addf %168, %170 : vector<8x128xf32>
    %172 = math.tanh %171 : vector<8x128xf32>
    %cst_74 = arith.constant 1.000000e+00 : f32
    %173 = vector.broadcast %cst_74 : f32 to vector<8x128xf32>
    %174 = arith.subf %173, %167 : vector<8x128xf32>
    %175 = arith.mulf %174, %172 : vector<8x128xf32>
    %176 = arith.mulf %167, %85 : vector<8x128xf32>
    %177 = arith.addf %175, %176 : vector<8x128xf32>
    %178 = arith.truncf %177 : vector<8x128xf32> to vector<8x128xbf16>
    %cst_75 = arith.constant dense<0.000000e+00> : vector<8x128xf32>
    %179 = tpu.matmul %178, %12, %cst_75 {dimension_numbers = #tpu.dot_dimension_numbers<[1], [0], [0], [1], [0, 0, 1, 1], [], []>} : vector<8x128xbf16>, vector<128x128xbf16>, vector<8x128xf32> -> vector<8x128xf32>
    %180 = vector.broadcast %13 : vector<1x128xf32> to vector<8x128xf32>
    %181 = arith.addf %179, %180 : vector<8x128xf32>
    %cst_76 = arith.constant dense<0xFF800000> : vector<8xf32>
    %182 = vector.multi_reduction <maximumf>, %181, %cst_76 [1] : vector<8x128xf32> to vector<8xf32>
    %183 = vector.shape_cast %182 : vector<8xf32> to vector<8x1xf32>
    %184 = vector.broadcast %183 : vector<8x1xf32> to vector<8x128xf32>
    %185 = arith.subf %181, %184 : vector<8x128xf32>
    %186 = math.exp %185 : vector<8x128xf32>
    %cst_77 = arith.constant dense<0.000000e+00> : vector<8xf32>
    %187 = vector.multi_reduction <add>, %186, %cst_77 [1] : vector<8x128xf32> to vector<8xf32>
    %188 = vector.shape_cast %187 : vector<8xf32> to vector<8x1xf32>
    %189 = math.log %188 : vector<8x1xf32>
    %190 = arith.addf %189, %183 : vector<8x1xf32>
    %191 = vector.broadcast %190 : vector<8x1xf32> to vector<8x128xf32>
    %192 = arith.subf %181, %191 : vector<8x128xf32>
    %193 = arith.mulf %192, %112 : vector<8x128xf32>
    %194 = vector.shape_cast %193 : vector<8x128xf32> to vector<1x8x128xf32>
    %cst_78 = arith.constant dense<0.000000e+00> : vector<1xf32>
    %195 = vector.multi_reduction <add>, %194, %cst_78 [1, 2] : vector<1x8x128xf32> to vector<1xf32>
    %196 = vector.shape_cast %195 : vector<1xf32> to vector<1x1x1xf32>
    %197 = vector.extract %196[0, 0, 0] : f32 from vector<1x1x1xf32>
    %198 = arith.subf %106, %197 : f32
    %c2_i32 = arith.constant 2 : i32
    %199 = arith.index_cast %c2_i32 : i32 to index
    %c0_79 = arith.constant 0 : index
    %c0_80 = arith.constant 0 : index
    %200 = vector.load %arg0[%199, %c0_79, %c0_80] : memref<8x8x128xf32, #tpu.memory_space<vmem>>, vector<1x8x128xf32>
    %201 = vector.shape_cast %200 : vector<1x8x128xf32> to vector<8x128xf32>
    %202 = arith.index_cast %c2_i32 : i32 to index
    %c0_81 = arith.constant 0 : index
    %c0_82 = arith.constant 0 : index
    %203 = vector.load %arg1[%202, %c0_81, %c0_82] : memref<8x8x128xf32, #tpu.memory_space<vmem>>, vector<1x8x128xf32>
    %204 = vector.shape_cast %203 : vector<1x8x128xf32> to vector<8x128xf32>
    %205 = arith.truncf %201 : vector<8x128xf32> to vector<8x128xbf16>
    %206 = arith.truncf %177 : vector<8x128xf32> to vector<8x128xbf16>
    %cst_83 = arith.constant dense<0.000000e+00> : vector<8x128xf32>
    %207 = tpu.matmul %205, %2, %cst_83 {dimension_numbers = #tpu.dot_dimension_numbers<[1], [0], [0], [1], [0, 0, 1, 1], [], []>} : vector<8x128xbf16>, vector<128x128xbf16>, vector<8x128xf32> -> vector<8x128xf32>
    %cst_84 = arith.constant dense<0.000000e+00> : vector<8x128xf32>
    %208 = tpu.matmul %206, %3, %cst_84 {dimension_numbers = #tpu.dot_dimension_numbers<[1], [0], [0], [1], [0, 0, 1, 1], [], []>} : vector<8x128xbf16>, vector<128x128xbf16>, vector<8x128xf32> -> vector<8x128xf32>
    %209 = arith.addf %207, %208 : vector<8x128xf32>
    %210 = vector.broadcast %4 : vector<1x128xf32> to vector<8x128xf32>
    %211 = arith.addf %209, %210 : vector<8x128xf32>
    %cst_85 = arith.constant dense<0xFF800000> : vector<8xf32>
    %212 = vector.multi_reduction <maximumf>, %211, %cst_85 [1] : vector<8x128xf32> to vector<8xf32>
    %213 = vector.shape_cast %212 : vector<8xf32> to vector<8x1xf32>
    %214 = vector.broadcast %213 : vector<8x1xf32> to vector<8x128xf32>
    %215 = arith.subf %211, %214 : vector<8x128xf32>
    %216 = math.exp %215 : vector<8x128xf32>
    %cst_86 = arith.constant dense<0.000000e+00> : vector<8xf32>
    %217 = vector.multi_reduction <add>, %216, %cst_86 [1] : vector<8x128xf32> to vector<8xf32>
    %218 = vector.shape_cast %217 : vector<8xf32> to vector<8x1xf32>
    %219 = vector.broadcast %218 : vector<8x1xf32> to vector<8x128xf32>
    %220 = arith.divf %216, %219 : vector<8x128xf32>
    %221 = tpu.concatenate %220, %220, %220, %220, %220, %220, %220, %220 in 1 : vector<8x128xf32>, vector<8x128xf32>, vector<8x128xf32>, vector<8x128xf32>, vector<8x128xf32>, vector<8x128xf32>, vector<8x128xf32>, vector<8x128xf32> -> vector<8x1024xf32>
    %222 = arith.mulf %1, %221 : vector<8x1024xf32>
    %223 = arith.truncf %222 : vector<8x1024xf32> to vector<8x1024xbf16>
    %cst_87 = arith.constant dense<0.000000e+00> : vector<8x128xf32>
    %224 = tpu.matmul %223, %0, %cst_87 {dimension_numbers = #tpu.dot_dimension_numbers<[1], [0], [0], [1], [0, 0, 1, 1], [], []>} : vector<8x1024xbf16>, vector<1024x128xbf16>, vector<8x128xf32> -> vector<8x128xf32>
    %cst_88 = arith.constant dense<0.000000e+00> : vector<8x128xf32>
    %225 = tpu.matmul %205, %5, %cst_88 {dimension_numbers = #tpu.dot_dimension_numbers<[1], [0], [0], [1], [0, 0, 1, 1], [], []>} : vector<8x128xbf16>, vector<128x128xbf16>, vector<8x128xf32> -> vector<8x128xf32>
    %226 = arith.truncf %224 : vector<8x128xf32> to vector<8x128xbf16>
    %cst_89 = arith.constant dense<0.000000e+00> : vector<8x128xf32>
    %227 = tpu.matmul %226, %6, %cst_89 {dimension_numbers = #tpu.dot_dimension_numbers<[1], [0], [0], [1], [0, 0, 1, 1], [], []>} : vector<8x128xbf16>, vector<128x128xbf16>, vector<8x128xf32> -> vector<8x128xf32>
    %228 = arith.addf %225, %227 : vector<8x128xf32>
    %229 = vector.broadcast %7 : vector<1x128xf32> to vector<8x128xf32>
    %230 = arith.addf %228, %229 : vector<8x128xf32>
    %cst_90 = arith.constant 0.000000e+00 : f32
    %231 = vector.broadcast %cst_90 : f32 to vector<8x128xf32>
    %232 = arith.maximumf %230, %231 : vector<8x128xf32>
    %233 = arith.truncf %232 : vector<8x128xf32> to vector<8x128xbf16>
    %cst_91 = arith.constant dense<0.000000e+00> : vector<8x384xf32>
    %234 = tpu.matmul %233, %8, %cst_91 {dimension_numbers = #tpu.dot_dimension_numbers<[1], [0], [0], [1], [0, 0, 1, 1], [], []>} : vector<8x128xbf16>, vector<128x384xbf16>, vector<8x384xf32> -> vector<8x384xf32>
    %235 = vector.broadcast %9 : vector<1x384xf32> to vector<8x384xf32>
    %236 = arith.addf %234, %235 : vector<8x384xf32>
    %cst_92 = arith.constant dense<0.000000e+00> : vector<8x384xf32>
    %237 = tpu.matmul %206, %10, %cst_92 {dimension_numbers = #tpu.dot_dimension_numbers<[1], [0], [0], [1], [0, 0, 1, 1], [], []>} : vector<8x128xbf16>, vector<128x384xbf16>, vector<8x384xf32> -> vector<8x384xf32>
    %238 = vector.broadcast %11 : vector<1x384xf32> to vector<8x384xf32>
    %239 = arith.addf %237, %238 : vector<8x384xf32>
    %240 = vector.extract_strided_slice %236 {offsets = [0, 0], sizes = [8, 128], strides = [1, 1]} : vector<8x384xf32> to vector<8x128xf32>
    %241 = vector.extract_strided_slice %239 {offsets = [0, 0], sizes = [8, 128], strides = [1, 1]} : vector<8x384xf32> to vector<8x128xf32>
    %242 = arith.addf %240, %241 : vector<8x128xf32>
    %cst_93 = arith.constant 0.000000e+00 : f32
    %243 = vector.broadcast %cst_93 : f32 to vector<8x128xf32>
    %244 = arith.subf %243, %242 : vector<8x128xf32>
    %245 = math.exp %244 : vector<8x128xf32>
    %cst_94 = arith.constant 1.000000e+00 : f32
    %246 = vector.broadcast %cst_94 : f32 to vector<8x128xf32>
    %247 = arith.addf %246, %245 : vector<8x128xf32>
    %cst_95 = arith.constant 1.000000e+00 : f32
    %248 = vector.broadcast %cst_95 : f32 to vector<8x128xf32>
    %249 = arith.divf %248, %247 : vector<8x128xf32>
    %250 = vector.extract_strided_slice %236 {offsets = [0, 128], sizes = [8, 128], strides = [1, 1]} : vector<8x384xf32> to vector<8x128xf32>
    %251 = vector.extract_strided_slice %239 {offsets = [0, 128], sizes = [8, 128], strides = [1, 1]} : vector<8x384xf32> to vector<8x128xf32>
    %252 = arith.addf %250, %251 : vector<8x128xf32>
    %cst_96 = arith.constant 0.000000e+00 : f32
    %253 = vector.broadcast %cst_96 : f32 to vector<8x128xf32>
    %254 = arith.subf %253, %252 : vector<8x128xf32>
    %255 = math.exp %254 : vector<8x128xf32>
    %cst_97 = arith.constant 1.000000e+00 : f32
    %256 = vector.broadcast %cst_97 : f32 to vector<8x128xf32>
    %257 = arith.addf %256, %255 : vector<8x128xf32>
    %cst_98 = arith.constant 1.000000e+00 : f32
    %258 = vector.broadcast %cst_98 : f32 to vector<8x128xf32>
    %259 = arith.divf %258, %257 : vector<8x128xf32>
    %260 = vector.extract_strided_slice %236 {offsets = [0, 256], sizes = [8, 128], strides = [1, 1]} : vector<8x384xf32> to vector<8x128xf32>
    %261 = vector.extract_strided_slice %239 {offsets = [0, 256], sizes = [8, 128], strides = [1, 1]} : vector<8x384xf32> to vector<8x128xf32>
    %262 = arith.mulf %249, %261 : vector<8x128xf32>
    %263 = arith.addf %260, %262 : vector<8x128xf32>
    %264 = math.tanh %263 : vector<8x128xf32>
    %cst_99 = arith.constant 1.000000e+00 : f32
    %265 = vector.broadcast %cst_99 : f32 to vector<8x128xf32>
    %266 = arith.subf %265, %259 : vector<8x128xf32>
    %267 = arith.mulf %266, %264 : vector<8x128xf32>
    %268 = arith.mulf %259, %177 : vector<8x128xf32>
    %269 = arith.addf %267, %268 : vector<8x128xf32>
    %270 = arith.truncf %269 : vector<8x128xf32> to vector<8x128xbf16>
    %cst_100 = arith.constant dense<0.000000e+00> : vector<8x128xf32>
    %271 = tpu.matmul %270, %12, %cst_100 {dimension_numbers = #tpu.dot_dimension_numbers<[1], [0], [0], [1], [0, 0, 1, 1], [], []>} : vector<8x128xbf16>, vector<128x128xbf16>, vector<8x128xf32> -> vector<8x128xf32>
    %272 = vector.broadcast %13 : vector<1x128xf32> to vector<8x128xf32>
    %273 = arith.addf %271, %272 : vector<8x128xf32>
    %cst_101 = arith.constant dense<0xFF800000> : vector<8xf32>
    %274 = vector.multi_reduction <maximumf>, %273, %cst_101 [1] : vector<8x128xf32> to vector<8xf32>
    %275 = vector.shape_cast %274 : vector<8xf32> to vector<8x1xf32>
    %276 = vector.broadcast %275 : vector<8x1xf32> to vector<8x128xf32>
    %277 = arith.subf %273, %276 : vector<8x128xf32>
    %278 = math.exp %277 : vector<8x128xf32>
    %cst_102 = arith.constant dense<0.000000e+00> : vector<8xf32>
    %279 = vector.multi_reduction <add>, %278, %cst_102 [1] : vector<8x128xf32> to vector<8xf32>
    %280 = vector.shape_cast %279 : vector<8xf32> to vector<8x1xf32>
    %281 = math.log %280 : vector<8x1xf32>
    %282 = arith.addf %281, %275 : vector<8x1xf32>
    %283 = vector.broadcast %282 : vector<8x1xf32> to vector<8x128xf32>
    %284 = arith.subf %273, %283 : vector<8x128xf32>
    %285 = arith.mulf %284, %204 : vector<8x128xf32>
    %286 = vector.shape_cast %285 : vector<8x128xf32> to vector<1x8x128xf32>
    %cst_103 = arith.constant dense<0.000000e+00> : vector<1xf32>
    %287 = vector.multi_reduction <add>, %286, %cst_103 [1, 2] : vector<1x8x128xf32> to vector<1xf32>
    %288 = vector.shape_cast %287 : vector<1xf32> to vector<1x1x1xf32>
    %289 = vector.extract %288[0, 0, 0] : f32 from vector<1x1x1xf32>
    %290 = arith.subf %198, %289 : f32
    %c3_i32 = arith.constant 3 : i32
    %291 = arith.index_cast %c3_i32 : i32 to index
    %c0_104 = arith.constant 0 : index
    %c0_105 = arith.constant 0 : index
    %292 = vector.load %arg0[%291, %c0_104, %c0_105] : memref<8x8x128xf32, #tpu.memory_space<vmem>>, vector<1x8x128xf32>
    %293 = vector.shape_cast %292 : vector<1x8x128xf32> to vector<8x128xf32>
    %294 = arith.index_cast %c3_i32 : i32 to index
    %c0_106 = arith.constant 0 : index
    %c0_107 = arith.constant 0 : index
    %295 = vector.load %arg1[%294, %c0_106, %c0_107] : memref<8x8x128xf32, #tpu.memory_space<vmem>>, vector<1x8x128xf32>
    %296 = vector.shape_cast %295 : vector<1x8x128xf32> to vector<8x128xf32>
    %297 = arith.truncf %293 : vector<8x128xf32> to vector<8x128xbf16>
    %298 = arith.truncf %269 : vector<8x128xf32> to vector<8x128xbf16>
    %cst_108 = arith.constant dense<0.000000e+00> : vector<8x128xf32>
    %299 = tpu.matmul %297, %2, %cst_108 {dimension_numbers = #tpu.dot_dimension_numbers<[1], [0], [0], [1], [0, 0, 1, 1], [], []>} : vector<8x128xbf16>, vector<128x128xbf16>, vector<8x128xf32> -> vector<8x128xf32>
    %cst_109 = arith.constant dense<0.000000e+00> : vector<8x128xf32>
    %300 = tpu.matmul %298, %3, %cst_109 {dimension_numbers = #tpu.dot_dimension_numbers<[1], [0], [0], [1], [0, 0, 1, 1], [], []>} : vector<8x128xbf16>, vector<128x128xbf16>, vector<8x128xf32> -> vector<8x128xf32>
    %301 = arith.addf %299, %300 : vector<8x128xf32>
    %302 = vector.broadcast %4 : vector<1x128xf32> to vector<8x128xf32>
    %303 = arith.addf %301, %302 : vector<8x128xf32>
    %cst_110 = arith.constant dense<0xFF800000> : vector<8xf32>
    %304 = vector.multi_reduction <maximumf>, %303, %cst_110 [1] : vector<8x128xf32> to vector<8xf32>
    %305 = vector.shape_cast %304 : vector<8xf32> to vector<8x1xf32>
    %306 = vector.broadcast %305 : vector<8x1xf32> to vector<8x128xf32>
    %307 = arith.subf %303, %306 : vector<8x128xf32>
    %308 = math.exp %307 : vector<8x128xf32>
    %cst_111 = arith.constant dense<0.000000e+00> : vector<8xf32>
    %309 = vector.multi_reduction <add>, %308, %cst_111 [1] : vector<8x128xf32> to vector<8xf32>
    %310 = vector.shape_cast %309 : vector<8xf32> to vector<8x1xf32>
    %311 = vector.broadcast %310 : vector<8x1xf32> to vector<8x128xf32>
    %312 = arith.divf %308, %311 : vector<8x128xf32>
    %313 = tpu.concatenate %312, %312, %312, %312, %312, %312, %312, %312 in 1 : vector<8x128xf32>, vector<8x128xf32>, vector<8x128xf32>, vector<8x128xf32>, vector<8x128xf32>, vector<8x128xf32>, vector<8x128xf32>, vector<8x128xf32> -> vector<8x1024xf32>
    %314 = arith.mulf %1, %313 : vector<8x1024xf32>
    %315 = arith.truncf %314 : vector<8x1024xf32> to vector<8x1024xbf16>
    %cst_112 = arith.constant dense<0.000000e+00> : vector<8x128xf32>
    %316 = tpu.matmul %315, %0, %cst_112 {dimension_numbers = #tpu.dot_dimension_numbers<[1], [0], [0], [1], [0, 0, 1, 1], [], []>} : vector<8x1024xbf16>, vector<1024x128xbf16>, vector<8x128xf32> -> vector<8x128xf32>
    %cst_113 = arith.constant dense<0.000000e+00> : vector<8x128xf32>
    %317 = tpu.matmul %297, %5, %cst_113 {dimension_numbers = #tpu.dot_dimension_numbers<[1], [0], [0], [1], [0, 0, 1, 1], [], []>} : vector<8x128xbf16>, vector<128x128xbf16>, vector<8x128xf32> -> vector<8x128xf32>
    %318 = arith.truncf %316 : vector<8x128xf32> to vector<8x128xbf16>
    %cst_114 = arith.constant dense<0.000000e+00> : vector<8x128xf32>
    %319 = tpu.matmul %318, %6, %cst_114 {dimension_numbers = #tpu.dot_dimension_numbers<[1], [0], [0], [1], [0, 0, 1, 1], [], []>} : vector<8x128xbf16>, vector<128x128xbf16>, vector<8x128xf32> -> vector<8x128xf32>
    %320 = arith.addf %317, %319 : vector<8x128xf32>
    %321 = vector.broadcast %7 : vector<1x128xf32> to vector<8x128xf32>
    %322 = arith.addf %320, %321 : vector<8x128xf32>
    %cst_115 = arith.constant 0.000000e+00 : f32
    %323 = vector.broadcast %cst_115 : f32 to vector<8x128xf32>
    %324 = arith.maximumf %322, %323 : vector<8x128xf32>
    %325 = arith.truncf %324 : vector<8x128xf32> to vector<8x128xbf16>
    %cst_116 = arith.constant dense<0.000000e+00> : vector<8x384xf32>
    %326 = tpu.matmul %325, %8, %cst_116 {dimension_numbers = #tpu.dot_dimension_numbers<[1], [0], [0], [1], [0, 0, 1, 1], [], []>} : vector<8x128xbf16>, vector<128x384xbf16>, vector<8x384xf32> -> vector<8x384xf32>
    %327 = vector.broadcast %9 : vector<1x384xf32> to vector<8x384xf32>
    %328 = arith.addf %326, %327 : vector<8x384xf32>
    %cst_117 = arith.constant dense<0.000000e+00> : vector<8x384xf32>
    %329 = tpu.matmul %298, %10, %cst_117 {dimension_numbers = #tpu.dot_dimension_numbers<[1], [0], [0], [1], [0, 0, 1, 1], [], []>} : vector<8x128xbf16>, vector<128x384xbf16>, vector<8x384xf32> -> vector<8x384xf32>
    %330 = vector.broadcast %11 : vector<1x384xf32> to vector<8x384xf32>
    %331 = arith.addf %329, %330 : vector<8x384xf32>
    %332 = vector.extract_strided_slice %328 {offsets = [0, 0], sizes = [8, 128], strides = [1, 1]} : vector<8x384xf32> to vector<8x128xf32>
    %333 = vector.extract_strided_slice %331 {offsets = [0, 0], sizes = [8, 128], strides = [1, 1]} : vector<8x384xf32> to vector<8x128xf32>
    %334 = arith.addf %332, %333 : vector<8x128xf32>
    %cst_118 = arith.constant 0.000000e+00 : f32
    %335 = vector.broadcast %cst_118 : f32 to vector<8x128xf32>
    %336 = arith.subf %335, %334 : vector<8x128xf32>
    %337 = math.exp %336 : vector<8x128xf32>
    %cst_119 = arith.constant 1.000000e+00 : f32
    %338 = vector.broadcast %cst_119 : f32 to vector<8x128xf32>
    %339 = arith.addf %338, %337 : vector<8x128xf32>
    %cst_120 = arith.constant 1.000000e+00 : f32
    %340 = vector.broadcast %cst_120 : f32 to vector<8x128xf32>
    %341 = arith.divf %340, %339 : vector<8x128xf32>
    %342 = vector.extract_strided_slice %328 {offsets = [0, 128], sizes = [8, 128], strides = [1, 1]} : vector<8x384xf32> to vector<8x128xf32>
    %343 = vector.extract_strided_slice %331 {offsets = [0, 128], sizes = [8, 128], strides = [1, 1]} : vector<8x384xf32> to vector<8x128xf32>
    %344 = arith.addf %342, %343 : vector<8x128xf32>
    %cst_121 = arith.constant 0.000000e+00 : f32
    %345 = vector.broadcast %cst_121 : f32 to vector<8x128xf32>
    %346 = arith.subf %345, %344 : vector<8x128xf32>
    %347 = math.exp %346 : vector<8x128xf32>
    %cst_122 = arith.constant 1.000000e+00 : f32
    %348 = vector.broadcast %cst_122 : f32 to vector<8x128xf32>
    %349 = arith.addf %348, %347 : vector<8x128xf32>
    %cst_123 = arith.constant 1.000000e+00 : f32
    %350 = vector.broadcast %cst_123 : f32 to vector<8x128xf32>
    %351 = arith.divf %350, %349 : vector<8x128xf32>
    %352 = vector.extract_strided_slice %328 {offsets = [0, 256], sizes = [8, 128], strides = [1, 1]} : vector<8x384xf32> to vector<8x128xf32>
    %353 = vector.extract_strided_slice %331 {offsets = [0, 256], sizes = [8, 128], strides = [1, 1]} : vector<8x384xf32> to vector<8x128xf32>
    %354 = arith.mulf %341, %353 : vector<8x128xf32>
    %355 = arith.addf %352, %354 : vector<8x128xf32>
    %356 = math.tanh %355 : vector<8x128xf32>
    %cst_124 = arith.constant 1.000000e+00 : f32
    %357 = vector.broadcast %cst_124 : f32 to vector<8x128xf32>
    %358 = arith.subf %357, %351 : vector<8x128xf32>
    %359 = arith.mulf %358, %356 : vector<8x128xf32>
    %360 = arith.mulf %351, %269 : vector<8x128xf32>
    %361 = arith.addf %359, %360 : vector<8x128xf32>
    %362 = arith.truncf %361 : vector<8x128xf32> to vector<8x128xbf16>
    %cst_125 = arith.constant dense<0.000000e+00> : vector<8x128xf32>
    %363 = tpu.matmul %362, %12, %cst_125 {dimension_numbers = #tpu.dot_dimension_numbers<[1], [0], [0], [1], [0, 0, 1, 1], [], []>} : vector<8x128xbf16>, vector<128x128xbf16>, vector<8x128xf32> -> vector<8x128xf32>
    %364 = vector.broadcast %13 : vector<1x128xf32> to vector<8x128xf32>
    %365 = arith.addf %363, %364 : vector<8x128xf32>
    %cst_126 = arith.constant dense<0xFF800000> : vector<8xf32>
    %366 = vector.multi_reduction <maximumf>, %365, %cst_126 [1] : vector<8x128xf32> to vector<8xf32>
    %367 = vector.shape_cast %366 : vector<8xf32> to vector<8x1xf32>
    %368 = vector.broadcast %367 : vector<8x1xf32> to vector<8x128xf32>
    %369 = arith.subf %365, %368 : vector<8x128xf32>
    %370 = math.exp %369 : vector<8x128xf32>
    %cst_127 = arith.constant dense<0.000000e+00> : vector<8xf32>
    %371 = vector.multi_reduction <add>, %370, %cst_127 [1] : vector<8x128xf32> to vector<8xf32>
    %372 = vector.shape_cast %371 : vector<8xf32> to vector<8x1xf32>
    %373 = math.log %372 : vector<8x1xf32>
    %374 = arith.addf %373, %367 : vector<8x1xf32>
    %375 = vector.broadcast %374 : vector<8x1xf32> to vector<8x128xf32>
    %376 = arith.subf %365, %375 : vector<8x128xf32>
    %377 = arith.mulf %376, %296 : vector<8x128xf32>
    %378 = vector.shape_cast %377 : vector<8x128xf32> to vector<1x8x128xf32>
    %cst_128 = arith.constant dense<0.000000e+00> : vector<1xf32>
    %379 = vector.multi_reduction <add>, %378, %cst_128 [1, 2] : vector<1x8x128xf32> to vector<1xf32>
    %380 = vector.shape_cast %379 : vector<1xf32> to vector<1x1x1xf32>
    %381 = vector.extract %380[0, 0, 0] : f32 from vector<1x1x1xf32>
    %382 = arith.subf %290, %381 : f32
    %c4_i32 = arith.constant 4 : i32
    %383 = arith.index_cast %c4_i32 : i32 to index
    %c0_129 = arith.constant 0 : index
    %c0_130 = arith.constant 0 : index
    %384 = vector.load %arg0[%383, %c0_129, %c0_130] : memref<8x8x128xf32, #tpu.memory_space<vmem>>, vector<1x8x128xf32>
    %385 = vector.shape_cast %384 : vector<1x8x128xf32> to vector<8x128xf32>
    %386 = arith.index_cast %c4_i32 : i32 to index
    %c0_131 = arith.constant 0 : index
    %c0_132 = arith.constant 0 : index
    %387 = vector.load %arg1[%386, %c0_131, %c0_132] : memref<8x8x128xf32, #tpu.memory_space<vmem>>, vector<1x8x128xf32>
    %388 = vector.shape_cast %387 : vector<1x8x128xf32> to vector<8x128xf32>
    %389 = arith.truncf %385 : vector<8x128xf32> to vector<8x128xbf16>
    %390 = arith.truncf %361 : vector<8x128xf32> to vector<8x128xbf16>
    %cst_133 = arith.constant dense<0.000000e+00> : vector<8x128xf32>
    %391 = tpu.matmul %389, %2, %cst_133 {dimension_numbers = #tpu.dot_dimension_numbers<[1], [0], [0], [1], [0, 0, 1, 1], [], []>} : vector<8x128xbf16>, vector<128x128xbf16>, vector<8x128xf32> -> vector<8x128xf32>
    %cst_134 = arith.constant dense<0.000000e+00> : vector<8x128xf32>
    %392 = tpu.matmul %390, %3, %cst_134 {dimension_numbers = #tpu.dot_dimension_numbers<[1], [0], [0], [1], [0, 0, 1, 1], [], []>} : vector<8x128xbf16>, vector<128x128xbf16>, vector<8x128xf32> -> vector<8x128xf32>
    %393 = arith.addf %391, %392 : vector<8x128xf32>
    %394 = vector.broadcast %4 : vector<1x128xf32> to vector<8x128xf32>
    %395 = arith.addf %393, %394 : vector<8x128xf32>
    %cst_135 = arith.constant dense<0xFF800000> : vector<8xf32>
    %396 = vector.multi_reduction <maximumf>, %395, %cst_135 [1] : vector<8x128xf32> to vector<8xf32>
    %397 = vector.shape_cast %396 : vector<8xf32> to vector<8x1xf32>
    %398 = vector.broadcast %397 : vector<8x1xf32> to vector<8x128xf32>
    %399 = arith.subf %395, %398 : vector<8x128xf32>
    %400 = math.exp %399 : vector<8x128xf32>
    %cst_136 = arith.constant dense<0.000000e+00> : vector<8xf32>
    %401 = vector.multi_reduction <add>, %400, %cst_136 [1] : vector<8x128xf32> to vector<8xf32>
    %402 = vector.shape_cast %401 : vector<8xf32> to vector<8x1xf32>
    %403 = vector.broadcast %402 : vector<8x1xf32> to vector<8x128xf32>
    %404 = arith.divf %400, %403 : vector<8x128xf32>
    %405 = tpu.concatenate %404, %404, %404, %404, %404, %404, %404, %404 in 1 : vector<8x128xf32>, vector<8x128xf32>, vector<8x128xf32>, vector<8x128xf32>, vector<8x128xf32>, vector<8x128xf32>, vector<8x128xf32>, vector<8x128xf32> -> vector<8x1024xf32>
    %406 = arith.mulf %1, %405 : vector<8x1024xf32>
    %407 = arith.truncf %406 : vector<8x1024xf32> to vector<8x1024xbf16>
    %cst_137 = arith.constant dense<0.000000e+00> : vector<8x128xf32>
    %408 = tpu.matmul %407, %0, %cst_137 {dimension_numbers = #tpu.dot_dimension_numbers<[1], [0], [0], [1], [0, 0, 1, 1], [], []>} : vector<8x1024xbf16>, vector<1024x128xbf16>, vector<8x128xf32> -> vector<8x128xf32>
    %cst_138 = arith.constant dense<0.000000e+00> : vector<8x128xf32>
    %409 = tpu.matmul %389, %5, %cst_138 {dimension_numbers = #tpu.dot_dimension_numbers<[1], [0], [0], [1], [0, 0, 1, 1], [], []>} : vector<8x128xbf16>, vector<128x128xbf16>, vector<8x128xf32> -> vector<8x128xf32>
    %410 = arith.truncf %408 : vector<8x128xf32> to vector<8x128xbf16>
    %cst_139 = arith.constant dense<0.000000e+00> : vector<8x128xf32>
    %411 = tpu.matmul %410, %6, %cst_139 {dimension_numbers = #tpu.dot_dimension_numbers<[1], [0], [0], [1], [0, 0, 1, 1], [], []>} : vector<8x128xbf16>, vector<128x128xbf16>, vector<8x128xf32> -> vector<8x128xf32>
    %412 = arith.addf %409, %411 : vector<8x128xf32>
    %413 = vector.broadcast %7 : vector<1x128xf32> to vector<8x128xf32>
    %414 = arith.addf %412, %413 : vector<8x128xf32>
    %cst_140 = arith.constant 0.000000e+00 : f32
    %415 = vector.broadcast %cst_140 : f32 to vector<8x128xf32>
    %416 = arith.maximumf %414, %415 : vector<8x128xf32>
    %417 = arith.truncf %416 : vector<8x128xf32> to vector<8x128xbf16>
    %cst_141 = arith.constant dense<0.000000e+00> : vector<8x384xf32>
    %418 = tpu.matmul %417, %8, %cst_141 {dimension_numbers = #tpu.dot_dimension_numbers<[1], [0], [0], [1], [0, 0, 1, 1], [], []>} : vector<8x128xbf16>, vector<128x384xbf16>, vector<8x384xf32> -> vector<8x384xf32>
    %419 = vector.broadcast %9 : vector<1x384xf32> to vector<8x384xf32>
    %420 = arith.addf %418, %419 : vector<8x384xf32>
    %cst_142 = arith.constant dense<0.000000e+00> : vector<8x384xf32>
    %421 = tpu.matmul %390, %10, %cst_142 {dimension_numbers = #tpu.dot_dimension_numbers<[1], [0], [0], [1], [0, 0, 1, 1], [], []>} : vector<8x128xbf16>, vector<128x384xbf16>, vector<8x384xf32> -> vector<8x384xf32>
    %422 = vector.broadcast %11 : vector<1x384xf32> to vector<8x384xf32>
    %423 = arith.addf %421, %422 : vector<8x384xf32>
    %424 = vector.extract_strided_slice %420 {offsets = [0, 0], sizes = [8, 128], strides = [1, 1]} : vector<8x384xf32> to vector<8x128xf32>
    %425 = vector.extract_strided_slice %423 {offsets = [0, 0], sizes = [8, 128], strides = [1, 1]} : vector<8x384xf32> to vector<8x128xf32>
    %426 = arith.addf %424, %425 : vector<8x128xf32>
    %cst_143 = arith.constant 0.000000e+00 : f32
    %427 = vector.broadcast %cst_143 : f32 to vector<8x128xf32>
    %428 = arith.subf %427, %426 : vector<8x128xf32>
    %429 = math.exp %428 : vector<8x128xf32>
    %cst_144 = arith.constant 1.000000e+00 : f32
    %430 = vector.broadcast %cst_144 : f32 to vector<8x128xf32>
    %431 = arith.addf %430, %429 : vector<8x128xf32>
    %cst_145 = arith.constant 1.000000e+00 : f32
    %432 = vector.broadcast %cst_145 : f32 to vector<8x128xf32>
    %433 = arith.divf %432, %431 : vector<8x128xf32>
    %434 = vector.extract_strided_slice %420 {offsets = [0, 128], sizes = [8, 128], strides = [1, 1]} : vector<8x384xf32> to vector<8x128xf32>
    %435 = vector.extract_strided_slice %423 {offsets = [0, 128], sizes = [8, 128], strides = [1, 1]} : vector<8x384xf32> to vector<8x128xf32>
    %436 = arith.addf %434, %435 : vector<8x128xf32>
    %cst_146 = arith.constant 0.000000e+00 : f32
    %437 = vector.broadcast %cst_146 : f32 to vector<8x128xf32>
    %438 = arith.subf %437, %436 : vector<8x128xf32>
    %439 = math.exp %438 : vector<8x128xf32>
    %cst_147 = arith.constant 1.000000e+00 : f32
    %440 = vector.broadcast %cst_147 : f32 to vector<8x128xf32>
    %441 = arith.addf %440, %439 : vector<8x128xf32>
    %cst_148 = arith.constant 1.000000e+00 : f32
    %442 = vector.broadcast %cst_148 : f32 to vector<8x128xf32>
    %443 = arith.divf %442, %441 : vector<8x128xf32>
    %444 = vector.extract_strided_slice %420 {offsets = [0, 256], sizes = [8, 128], strides = [1, 1]} : vector<8x384xf32> to vector<8x128xf32>
    %445 = vector.extract_strided_slice %423 {offsets = [0, 256], sizes = [8, 128], strides = [1, 1]} : vector<8x384xf32> to vector<8x128xf32>
    %446 = arith.mulf %433, %445 : vector<8x128xf32>
    %447 = arith.addf %444, %446 : vector<8x128xf32>
    %448 = math.tanh %447 : vector<8x128xf32>
    %cst_149 = arith.constant 1.000000e+00 : f32
    %449 = vector.broadcast %cst_149 : f32 to vector<8x128xf32>
    %450 = arith.subf %449, %443 : vector<8x128xf32>
    %451 = arith.mulf %450, %448 : vector<8x128xf32>
    %452 = arith.mulf %443, %361 : vector<8x128xf32>
    %453 = arith.addf %451, %452 : vector<8x128xf32>
    %454 = arith.truncf %453 : vector<8x128xf32> to vector<8x128xbf16>
    %cst_150 = arith.constant dense<0.000000e+00> : vector<8x128xf32>
    %455 = tpu.matmul %454, %12, %cst_150 {dimension_numbers = #tpu.dot_dimension_numbers<[1], [0], [0], [1], [0, 0, 1, 1], [], []>} : vector<8x128xbf16>, vector<128x128xbf16>, vector<8x128xf32> -> vector<8x128xf32>
    %456 = vector.broadcast %13 : vector<1x128xf32> to vector<8x128xf32>
    %457 = arith.addf %455, %456 : vector<8x128xf32>
    %cst_151 = arith.constant dense<0xFF800000> : vector<8xf32>
    %458 = vector.multi_reduction <maximumf>, %457, %cst_151 [1] : vector<8x128xf32> to vector<8xf32>
    %459 = vector.shape_cast %458 : vector<8xf32> to vector<8x1xf32>
    %460 = vector.broadcast %459 : vector<8x1xf32> to vector<8x128xf32>
    %461 = arith.subf %457, %460 : vector<8x128xf32>
    %462 = math.exp %461 : vector<8x128xf32>
    %cst_152 = arith.constant dense<0.000000e+00> : vector<8xf32>
    %463 = vector.multi_reduction <add>, %462, %cst_152 [1] : vector<8x128xf32> to vector<8xf32>
    %464 = vector.shape_cast %463 : vector<8xf32> to vector<8x1xf32>
    %465 = math.log %464 : vector<8x1xf32>
    %466 = arith.addf %465, %459 : vector<8x1xf32>
    %467 = vector.broadcast %466 : vector<8x1xf32> to vector<8x128xf32>
    %468 = arith.subf %457, %467 : vector<8x128xf32>
    %469 = arith.mulf %468, %388 : vector<8x128xf32>
    %470 = vector.shape_cast %469 : vector<8x128xf32> to vector<1x8x128xf32>
    %cst_153 = arith.constant dense<0.000000e+00> : vector<1xf32>
    %471 = vector.multi_reduction <add>, %470, %cst_153 [1, 2] : vector<1x8x128xf32> to vector<1xf32>
    %472 = vector.shape_cast %471 : vector<1xf32> to vector<1x1x1xf32>
    %473 = vector.extract %472[0, 0, 0] : f32 from vector<1x1x1xf32>
    %474 = arith.subf %382, %473 : f32
    %c5_i32 = arith.constant 5 : i32
    %475 = arith.index_cast %c5_i32 : i32 to index
    %c0_154 = arith.constant 0 : index
    %c0_155 = arith.constant 0 : index
    %476 = vector.load %arg0[%475, %c0_154, %c0_155] : memref<8x8x128xf32, #tpu.memory_space<vmem>>, vector<1x8x128xf32>
    %477 = vector.shape_cast %476 : vector<1x8x128xf32> to vector<8x128xf32>
    %478 = arith.index_cast %c5_i32 : i32 to index
    %c0_156 = arith.constant 0 : index
    %c0_157 = arith.constant 0 : index
    %479 = vector.load %arg1[%478, %c0_156, %c0_157] : memref<8x8x128xf32, #tpu.memory_space<vmem>>, vector<1x8x128xf32>
    %480 = vector.shape_cast %479 : vector<1x8x128xf32> to vector<8x128xf32>
    %481 = arith.truncf %477 : vector<8x128xf32> to vector<8x128xbf16>
    %482 = arith.truncf %453 : vector<8x128xf32> to vector<8x128xbf16>
    %cst_158 = arith.constant dense<0.000000e+00> : vector<8x128xf32>
    %483 = tpu.matmul %481, %2, %cst_158 {dimension_numbers = #tpu.dot_dimension_numbers<[1], [0], [0], [1], [0, 0, 1, 1], [], []>} : vector<8x128xbf16>, vector<128x128xbf16>, vector<8x128xf32> -> vector<8x128xf32>
    %cst_159 = arith.constant dense<0.000000e+00> : vector<8x128xf32>
    %484 = tpu.matmul %482, %3, %cst_159 {dimension_numbers = #tpu.dot_dimension_numbers<[1], [0], [0], [1], [0, 0, 1, 1], [], []>} : vector<8x128xbf16>, vector<128x128xbf16>, vector<8x128xf32> -> vector<8x128xf32>
    %485 = arith.addf %483, %484 : vector<8x128xf32>
    %486 = vector.broadcast %4 : vector<1x128xf32> to vector<8x128xf32>
    %487 = arith.addf %485, %486 : vector<8x128xf32>
    %cst_160 = arith.constant dense<0xFF800000> : vector<8xf32>
    %488 = vector.multi_reduction <maximumf>, %487, %cst_160 [1] : vector<8x128xf32> to vector<8xf32>
    %489 = vector.shape_cast %488 : vector<8xf32> to vector<8x1xf32>
    %490 = vector.broadcast %489 : vector<8x1xf32> to vector<8x128xf32>
    %491 = arith.subf %487, %490 : vector<8x128xf32>
    %492 = math.exp %491 : vector<8x128xf32>
    %cst_161 = arith.constant dense<0.000000e+00> : vector<8xf32>
    %493 = vector.multi_reduction <add>, %492, %cst_161 [1] : vector<8x128xf32> to vector<8xf32>
    %494 = vector.shape_cast %493 : vector<8xf32> to vector<8x1xf32>
    %495 = vector.broadcast %494 : vector<8x1xf32> to vector<8x128xf32>
    %496 = arith.divf %492, %495 : vector<8x128xf32>
    %497 = tpu.concatenate %496, %496, %496, %496, %496, %496, %496, %496 in 1 : vector<8x128xf32>, vector<8x128xf32>, vector<8x128xf32>, vector<8x128xf32>, vector<8x128xf32>, vector<8x128xf32>, vector<8x128xf32>, vector<8x128xf32> -> vector<8x1024xf32>
    %498 = arith.mulf %1, %497 : vector<8x1024xf32>
    %499 = arith.truncf %498 : vector<8x1024xf32> to vector<8x1024xbf16>
    %cst_162 = arith.constant dense<0.000000e+00> : vector<8x128xf32>
    %500 = tpu.matmul %499, %0, %cst_162 {dimension_numbers = #tpu.dot_dimension_numbers<[1], [0], [0], [1], [0, 0, 1, 1], [], []>} : vector<8x1024xbf16>, vector<1024x128xbf16>, vector<8x128xf32> -> vector<8x128xf32>
    %cst_163 = arith.constant dense<0.000000e+00> : vector<8x128xf32>
    %501 = tpu.matmul %481, %5, %cst_163 {dimension_numbers = #tpu.dot_dimension_numbers<[1], [0], [0], [1], [0, 0, 1, 1], [], []>} : vector<8x128xbf16>, vector<128x128xbf16>, vector<8x128xf32> -> vector<8x128xf32>
    %502 = arith.truncf %500 : vector<8x128xf32> to vector<8x128xbf16>
    %cst_164 = arith.constant dense<0.000000e+00> : vector<8x128xf32>
    %503 = tpu.matmul %502, %6, %cst_164 {dimension_numbers = #tpu.dot_dimension_numbers<[1], [0], [0], [1], [0, 0, 1, 1], [], []>} : vector<8x128xbf16>, vector<128x128xbf16>, vector<8x128xf32> -> vector<8x128xf32>
    %504 = arith.addf %501, %503 : vector<8x128xf32>
    %505 = vector.broadcast %7 : vector<1x128xf32> to vector<8x128xf32>
    %506 = arith.addf %504, %505 : vector<8x128xf32>
    %cst_165 = arith.constant 0.000000e+00 : f32
    %507 = vector.broadcast %cst_165 : f32 to vector<8x128xf32>
    %508 = arith.maximumf %506, %507 : vector<8x128xf32>
    %509 = arith.truncf %508 : vector<8x128xf32> to vector<8x128xbf16>
    %cst_166 = arith.constant dense<0.000000e+00> : vector<8x384xf32>
    %510 = tpu.matmul %509, %8, %cst_166 {dimension_numbers = #tpu.dot_dimension_numbers<[1], [0], [0], [1], [0, 0, 1, 1], [], []>} : vector<8x128xbf16>, vector<128x384xbf16>, vector<8x384xf32> -> vector<8x384xf32>
    %511 = vector.broadcast %9 : vector<1x384xf32> to vector<8x384xf32>
    %512 = arith.addf %510, %511 : vector<8x384xf32>
    %cst_167 = arith.constant dense<0.000000e+00> : vector<8x384xf32>
    %513 = tpu.matmul %482, %10, %cst_167 {dimension_numbers = #tpu.dot_dimension_numbers<[1], [0], [0], [1], [0, 0, 1, 1], [], []>} : vector<8x128xbf16>, vector<128x384xbf16>, vector<8x384xf32> -> vector<8x384xf32>
    %514 = vector.broadcast %11 : vector<1x384xf32> to vector<8x384xf32>
    %515 = arith.addf %513, %514 : vector<8x384xf32>
    %516 = vector.extract_strided_slice %512 {offsets = [0, 0], sizes = [8, 128], strides = [1, 1]} : vector<8x384xf32> to vector<8x128xf32>
    %517 = vector.extract_strided_slice %515 {offsets = [0, 0], sizes = [8, 128], strides = [1, 1]} : vector<8x384xf32> to vector<8x128xf32>
    %518 = arith.addf %516, %517 : vector<8x128xf32>
    %cst_168 = arith.constant 0.000000e+00 : f32
    %519 = vector.broadcast %cst_168 : f32 to vector<8x128xf32>
    %520 = arith.subf %519, %518 : vector<8x128xf32>
    %521 = math.exp %520 : vector<8x128xf32>
    %cst_169 = arith.constant 1.000000e+00 : f32
    %522 = vector.broadcast %cst_169 : f32 to vector<8x128xf32>
    %523 = arith.addf %522, %521 : vector<8x128xf32>
    %cst_170 = arith.constant 1.000000e+00 : f32
    %524 = vector.broadcast %cst_170 : f32 to vector<8x128xf32>
    %525 = arith.divf %524, %523 : vector<8x128xf32>
    %526 = vector.extract_strided_slice %512 {offsets = [0, 128], sizes = [8, 128], strides = [1, 1]} : vector<8x384xf32> to vector<8x128xf32>
    %527 = vector.extract_strided_slice %515 {offsets = [0, 128], sizes = [8, 128], strides = [1, 1]} : vector<8x384xf32> to vector<8x128xf32>
    %528 = arith.addf %526, %527 : vector<8x128xf32>
    %cst_171 = arith.constant 0.000000e+00 : f32
    %529 = vector.broadcast %cst_171 : f32 to vector<8x128xf32>
    %530 = arith.subf %529, %528 : vector<8x128xf32>
    %531 = math.exp %530 : vector<8x128xf32>
    %cst_172 = arith.constant 1.000000e+00 : f32
    %532 = vector.broadcast %cst_172 : f32 to vector<8x128xf32>
    %533 = arith.addf %532, %531 : vector<8x128xf32>
    %cst_173 = arith.constant 1.000000e+00 : f32
    %534 = vector.broadcast %cst_173 : f32 to vector<8x128xf32>
    %535 = arith.divf %534, %533 : vector<8x128xf32>
    %536 = vector.extract_strided_slice %512 {offsets = [0, 256], sizes = [8, 128], strides = [1, 1]} : vector<8x384xf32> to vector<8x128xf32>
    %537 = vector.extract_strided_slice %515 {offsets = [0, 256], sizes = [8, 128], strides = [1, 1]} : vector<8x384xf32> to vector<8x128xf32>
    %538 = arith.mulf %525, %537 : vector<8x128xf32>
    %539 = arith.addf %536, %538 : vector<8x128xf32>
    %540 = math.tanh %539 : vector<8x128xf32>
    %cst_174 = arith.constant 1.000000e+00 : f32
    %541 = vector.broadcast %cst_174 : f32 to vector<8x128xf32>
    %542 = arith.subf %541, %535 : vector<8x128xf32>
    %543 = arith.mulf %542, %540 : vector<8x128xf32>
    %544 = arith.mulf %535, %453 : vector<8x128xf32>
    %545 = arith.addf %543, %544 : vector<8x128xf32>
    %546 = arith.truncf %545 : vector<8x128xf32> to vector<8x128xbf16>
    %cst_175 = arith.constant dense<0.000000e+00> : vector<8x128xf32>
    %547 = tpu.matmul %546, %12, %cst_175 {dimension_numbers = #tpu.dot_dimension_numbers<[1], [0], [0], [1], [0, 0, 1, 1], [], []>} : vector<8x128xbf16>, vector<128x128xbf16>, vector<8x128xf32> -> vector<8x128xf32>
    %548 = vector.broadcast %13 : vector<1x128xf32> to vector<8x128xf32>
    %549 = arith.addf %547, %548 : vector<8x128xf32>
    %cst_176 = arith.constant dense<0xFF800000> : vector<8xf32>
    %550 = vector.multi_reduction <maximumf>, %549, %cst_176 [1] : vector<8x128xf32> to vector<8xf32>
    %551 = vector.shape_cast %550 : vector<8xf32> to vector<8x1xf32>
    %552 = vector.broadcast %551 : vector<8x1xf32> to vector<8x128xf32>
    %553 = arith.subf %549, %552 : vector<8x128xf32>
    %554 = math.exp %553 : vector<8x128xf32>
    %cst_177 = arith.constant dense<0.000000e+00> : vector<8xf32>
    %555 = vector.multi_reduction <add>, %554, %cst_177 [1] : vector<8x128xf32> to vector<8xf32>
    %556 = vector.shape_cast %555 : vector<8xf32> to vector<8x1xf32>
    %557 = math.log %556 : vector<8x1xf32>
    %558 = arith.addf %557, %551 : vector<8x1xf32>
    %559 = vector.broadcast %558 : vector<8x1xf32> to vector<8x128xf32>
    %560 = arith.subf %549, %559 : vector<8x128xf32>
    %561 = arith.mulf %560, %480 : vector<8x128xf32>
    %562 = vector.shape_cast %561 : vector<8x128xf32> to vector<1x8x128xf32>
    %cst_178 = arith.constant dense<0.000000e+00> : vector<1xf32>
    %563 = vector.multi_reduction <add>, %562, %cst_178 [1, 2] : vector<1x8x128xf32> to vector<1xf32>
    %564 = vector.shape_cast %563 : vector<1xf32> to vector<1x1x1xf32>
    %565 = vector.extract %564[0, 0, 0] : f32 from vector<1x1x1xf32>
    %566 = arith.subf %474, %565 : f32
    %c6_i32 = arith.constant 6 : i32
    %567 = arith.index_cast %c6_i32 : i32 to index
    %c0_179 = arith.constant 0 : index
    %c0_180 = arith.constant 0 : index
    %568 = vector.load %arg0[%567, %c0_179, %c0_180] : memref<8x8x128xf32, #tpu.memory_space<vmem>>, vector<1x8x128xf32>
    %569 = vector.shape_cast %568 : vector<1x8x128xf32> to vector<8x128xf32>
    %570 = arith.index_cast %c6_i32 : i32 to index
    %c0_181 = arith.constant 0 : index
    %c0_182 = arith.constant 0 : index
    %571 = vector.load %arg1[%570, %c0_181, %c0_182] : memref<8x8x128xf32, #tpu.memory_space<vmem>>, vector<1x8x128xf32>
    %572 = vector.shape_cast %571 : vector<1x8x128xf32> to vector<8x128xf32>
    %573 = arith.truncf %569 : vector<8x128xf32> to vector<8x128xbf16>
    %574 = arith.truncf %545 : vector<8x128xf32> to vector<8x128xbf16>
    %cst_183 = arith.constant dense<0.000000e+00> : vector<8x128xf32>
    %575 = tpu.matmul %573, %2, %cst_183 {dimension_numbers = #tpu.dot_dimension_numbers<[1], [0], [0], [1], [0, 0, 1, 1], [], []>} : vector<8x128xbf16>, vector<128x128xbf16>, vector<8x128xf32> -> vector<8x128xf32>
    %cst_184 = arith.constant dense<0.000000e+00> : vector<8x128xf32>
    %576 = tpu.matmul %574, %3, %cst_184 {dimension_numbers = #tpu.dot_dimension_numbers<[1], [0], [0], [1], [0, 0, 1, 1], [], []>} : vector<8x128xbf16>, vector<128x128xbf16>, vector<8x128xf32> -> vector<8x128xf32>
    %577 = arith.addf %575, %576 : vector<8x128xf32>
    %578 = vector.broadcast %4 : vector<1x128xf32> to vector<8x128xf32>
    %579 = arith.addf %577, %578 : vector<8x128xf32>
    %cst_185 = arith.constant dense<0xFF800000> : vector<8xf32>
    %580 = vector.multi_reduction <maximumf>, %579, %cst_185 [1] : vector<8x128xf32> to vector<8xf32>
    %581 = vector.shape_cast %580 : vector<8xf32> to vector<8x1xf32>
    %582 = vector.broadcast %581 : vector<8x1xf32> to vector<8x128xf32>
    %583 = arith.subf %579, %582 : vector<8x128xf32>
    %584 = math.exp %583 : vector<8x128xf32>
    %cst_186 = arith.constant dense<0.000000e+00> : vector<8xf32>
    %585 = vector.multi_reduction <add>, %584, %cst_186 [1] : vector<8x128xf32> to vector<8xf32>
    %586 = vector.shape_cast %585 : vector<8xf32> to vector<8x1xf32>
    %587 = vector.broadcast %586 : vector<8x1xf32> to vector<8x128xf32>
    %588 = arith.divf %584, %587 : vector<8x128xf32>
    %589 = tpu.concatenate %588, %588, %588, %588, %588, %588, %588, %588 in 1 : vector<8x128xf32>, vector<8x128xf32>, vector<8x128xf32>, vector<8x128xf32>, vector<8x128xf32>, vector<8x128xf32>, vector<8x128xf32>, vector<8x128xf32> -> vector<8x1024xf32>
    %590 = arith.mulf %1, %589 : vector<8x1024xf32>
    %591 = arith.truncf %590 : vector<8x1024xf32> to vector<8x1024xbf16>
    %cst_187 = arith.constant dense<0.000000e+00> : vector<8x128xf32>
    %592 = tpu.matmul %591, %0, %cst_187 {dimension_numbers = #tpu.dot_dimension_numbers<[1], [0], [0], [1], [0, 0, 1, 1], [], []>} : vector<8x1024xbf16>, vector<1024x128xbf16>, vector<8x128xf32> -> vector<8x128xf32>
    %cst_188 = arith.constant dense<0.000000e+00> : vector<8x128xf32>
    %593 = tpu.matmul %573, %5, %cst_188 {dimension_numbers = #tpu.dot_dimension_numbers<[1], [0], [0], [1], [0, 0, 1, 1], [], []>} : vector<8x128xbf16>, vector<128x128xbf16>, vector<8x128xf32> -> vector<8x128xf32>
    %594 = arith.truncf %592 : vector<8x128xf32> to vector<8x128xbf16>
    %cst_189 = arith.constant dense<0.000000e+00> : vector<8x128xf32>
    %595 = tpu.matmul %594, %6, %cst_189 {dimension_numbers = #tpu.dot_dimension_numbers<[1], [0], [0], [1], [0, 0, 1, 1], [], []>} : vector<8x128xbf16>, vector<128x128xbf16>, vector<8x128xf32> -> vector<8x128xf32>
    %596 = arith.addf %593, %595 : vector<8x128xf32>
    %597 = vector.broadcast %7 : vector<1x128xf32> to vector<8x128xf32>
    %598 = arith.addf %596, %597 : vector<8x128xf32>
    %cst_190 = arith.constant 0.000000e+00 : f32
    %599 = vector.broadcast %cst_190 : f32 to vector<8x128xf32>
    %600 = arith.maximumf %598, %599 : vector<8x128xf32>
    %601 = arith.truncf %600 : vector<8x128xf32> to vector<8x128xbf16>
    %cst_191 = arith.constant dense<0.000000e+00> : vector<8x384xf32>
    %602 = tpu.matmul %601, %8, %cst_191 {dimension_numbers = #tpu.dot_dimension_numbers<[1], [0], [0], [1], [0, 0, 1, 1], [], []>} : vector<8x128xbf16>, vector<128x384xbf16>, vector<8x384xf32> -> vector<8x384xf32>
    %603 = vector.broadcast %9 : vector<1x384xf32> to vector<8x384xf32>
    %604 = arith.addf %602, %603 : vector<8x384xf32>
    %cst_192 = arith.constant dense<0.000000e+00> : vector<8x384xf32>
    %605 = tpu.matmul %574, %10, %cst_192 {dimension_numbers = #tpu.dot_dimension_numbers<[1], [0], [0], [1], [0, 0, 1, 1], [], []>} : vector<8x128xbf16>, vector<128x384xbf16>, vector<8x384xf32> -> vector<8x384xf32>
    %606 = vector.broadcast %11 : vector<1x384xf32> to vector<8x384xf32>
    %607 = arith.addf %605, %606 : vector<8x384xf32>
    %608 = vector.extract_strided_slice %604 {offsets = [0, 0], sizes = [8, 128], strides = [1, 1]} : vector<8x384xf32> to vector<8x128xf32>
    %609 = vector.extract_strided_slice %607 {offsets = [0, 0], sizes = [8, 128], strides = [1, 1]} : vector<8x384xf32> to vector<8x128xf32>
    %610 = arith.addf %608, %609 : vector<8x128xf32>
    %cst_193 = arith.constant 0.000000e+00 : f32
    %611 = vector.broadcast %cst_193 : f32 to vector<8x128xf32>
    %612 = arith.subf %611, %610 : vector<8x128xf32>
    %613 = math.exp %612 : vector<8x128xf32>
    %cst_194 = arith.constant 1.000000e+00 : f32
    %614 = vector.broadcast %cst_194 : f32 to vector<8x128xf32>
    %615 = arith.addf %614, %613 : vector<8x128xf32>
    %cst_195 = arith.constant 1.000000e+00 : f32
    %616 = vector.broadcast %cst_195 : f32 to vector<8x128xf32>
    %617 = arith.divf %616, %615 : vector<8x128xf32>
    %618 = vector.extract_strided_slice %604 {offsets = [0, 128], sizes = [8, 128], strides = [1, 1]} : vector<8x384xf32> to vector<8x128xf32>
    %619 = vector.extract_strided_slice %607 {offsets = [0, 128], sizes = [8, 128], strides = [1, 1]} : vector<8x384xf32> to vector<8x128xf32>
    %620 = arith.addf %618, %619 : vector<8x128xf32>
    %cst_196 = arith.constant 0.000000e+00 : f32
    %621 = vector.broadcast %cst_196 : f32 to vector<8x128xf32>
    %622 = arith.subf %621, %620 : vector<8x128xf32>
    %623 = math.exp %622 : vector<8x128xf32>
    %cst_197 = arith.constant 1.000000e+00 : f32
    %624 = vector.broadcast %cst_197 : f32 to vector<8x128xf32>
    %625 = arith.addf %624, %623 : vector<8x128xf32>
    %cst_198 = arith.constant 1.000000e+00 : f32
    %626 = vector.broadcast %cst_198 : f32 to vector<8x128xf32>
    %627 = arith.divf %626, %625 : vector<8x128xf32>
    %628 = vector.extract_strided_slice %604 {offsets = [0, 256], sizes = [8, 128], strides = [1, 1]} : vector<8x384xf32> to vector<8x128xf32>
    %629 = vector.extract_strided_slice %607 {offsets = [0, 256], sizes = [8, 128], strides = [1, 1]} : vector<8x384xf32> to vector<8x128xf32>
    %630 = arith.mulf %617, %629 : vector<8x128xf32>
    %631 = arith.addf %628, %630 : vector<8x128xf32>
    %632 = math.tanh %631 : vector<8x128xf32>
    %cst_199 = arith.constant 1.000000e+00 : f32
    %633 = vector.broadcast %cst_199 : f32 to vector<8x128xf32>
    %634 = arith.subf %633, %627 : vector<8x128xf32>
    %635 = arith.mulf %634, %632 : vector<8x128xf32>
    %636 = arith.mulf %627, %545 : vector<8x128xf32>
    %637 = arith.addf %635, %636 : vector<8x128xf32>
    %638 = arith.truncf %637 : vector<8x128xf32> to vector<8x128xbf16>
    %cst_200 = arith.constant dense<0.000000e+00> : vector<8x128xf32>
    %639 = tpu.matmul %638, %12, %cst_200 {dimension_numbers = #tpu.dot_dimension_numbers<[1], [0], [0], [1], [0, 0, 1, 1], [], []>} : vector<8x128xbf16>, vector<128x128xbf16>, vector<8x128xf32> -> vector<8x128xf32>
    %640 = vector.broadcast %13 : vector<1x128xf32> to vector<8x128xf32>
    %641 = arith.addf %639, %640 : vector<8x128xf32>
    %cst_201 = arith.constant dense<0xFF800000> : vector<8xf32>
    %642 = vector.multi_reduction <maximumf>, %641, %cst_201 [1] : vector<8x128xf32> to vector<8xf32>
    %643 = vector.shape_cast %642 : vector<8xf32> to vector<8x1xf32>
    %644 = vector.broadcast %643 : vector<8x1xf32> to vector<8x128xf32>
    %645 = arith.subf %641, %644 : vector<8x128xf32>
    %646 = math.exp %645 : vector<8x128xf32>
    %cst_202 = arith.constant dense<0.000000e+00> : vector<8xf32>
    %647 = vector.multi_reduction <add>, %646, %cst_202 [1] : vector<8x128xf32> to vector<8xf32>
    %648 = vector.shape_cast %647 : vector<8xf32> to vector<8x1xf32>
    %649 = math.log %648 : vector<8x1xf32>
    %650 = arith.addf %649, %643 : vector<8x1xf32>
    %651 = vector.broadcast %650 : vector<8x1xf32> to vector<8x128xf32>
    %652 = arith.subf %641, %651 : vector<8x128xf32>
    %653 = arith.mulf %652, %572 : vector<8x128xf32>
    %654 = vector.shape_cast %653 : vector<8x128xf32> to vector<1x8x128xf32>
    %cst_203 = arith.constant dense<0.000000e+00> : vector<1xf32>
    %655 = vector.multi_reduction <add>, %654, %cst_203 [1, 2] : vector<1x8x128xf32> to vector<1xf32>
    %656 = vector.shape_cast %655 : vector<1xf32> to vector<1x1x1xf32>
    %657 = vector.extract %656[0, 0, 0] : f32 from vector<1x1x1xf32>
    %658 = arith.subf %566, %657 : f32
    %c7_i32 = arith.constant 7 : i32
    %659 = arith.index_cast %c7_i32 : i32 to index
    %c0_204 = arith.constant 0 : index
    %c0_205 = arith.constant 0 : index
    %660 = vector.load %arg0[%659, %c0_204, %c0_205] : memref<8x8x128xf32, #tpu.memory_space<vmem>>, vector<1x8x128xf32>
    %661 = vector.shape_cast %660 : vector<1x8x128xf32> to vector<8x128xf32>
    %662 = arith.index_cast %c7_i32 : i32 to index
    %c0_206 = arith.constant 0 : index
    %c0_207 = arith.constant 0 : index
    %663 = vector.load %arg1[%662, %c0_206, %c0_207] : memref<8x8x128xf32, #tpu.memory_space<vmem>>, vector<1x8x128xf32>
    %664 = vector.shape_cast %663 : vector<1x8x128xf32> to vector<8x128xf32>
    %665 = arith.truncf %661 : vector<8x128xf32> to vector<8x128xbf16>
    %666 = arith.truncf %637 : vector<8x128xf32> to vector<8x128xbf16>
    %cst_208 = arith.constant dense<0.000000e+00> : vector<8x128xf32>
    %667 = tpu.matmul %665, %2, %cst_208 {dimension_numbers = #tpu.dot_dimension_numbers<[1], [0], [0], [1], [0, 0, 1, 1], [], []>} : vector<8x128xbf16>, vector<128x128xbf16>, vector<8x128xf32> -> vector<8x128xf32>
    %cst_209 = arith.constant dense<0.000000e+00> : vector<8x128xf32>
    %668 = tpu.matmul %666, %3, %cst_209 {dimension_numbers = #tpu.dot_dimension_numbers<[1], [0], [0], [1], [0, 0, 1, 1], [], []>} : vector<8x128xbf16>, vector<128x128xbf16>, vector<8x128xf32> -> vector<8x128xf32>
    %669 = arith.addf %667, %668 : vector<8x128xf32>
    %670 = vector.broadcast %4 : vector<1x128xf32> to vector<8x128xf32>
    %671 = arith.addf %669, %670 : vector<8x128xf32>
    %cst_210 = arith.constant dense<0xFF800000> : vector<8xf32>
    %672 = vector.multi_reduction <maximumf>, %671, %cst_210 [1] : vector<8x128xf32> to vector<8xf32>
    %673 = vector.shape_cast %672 : vector<8xf32> to vector<8x1xf32>
    %674 = vector.broadcast %673 : vector<8x1xf32> to vector<8x128xf32>
    %675 = arith.subf %671, %674 : vector<8x128xf32>
    %676 = math.exp %675 : vector<8x128xf32>
    %cst_211 = arith.constant dense<0.000000e+00> : vector<8xf32>
    %677 = vector.multi_reduction <add>, %676, %cst_211 [1] : vector<8x128xf32> to vector<8xf32>
    %678 = vector.shape_cast %677 : vector<8xf32> to vector<8x1xf32>
    %679 = vector.broadcast %678 : vector<8x1xf32> to vector<8x128xf32>
    %680 = arith.divf %676, %679 : vector<8x128xf32>
    %681 = tpu.concatenate %680, %680, %680, %680, %680, %680, %680, %680 in 1 : vector<8x128xf32>, vector<8x128xf32>, vector<8x128xf32>, vector<8x128xf32>, vector<8x128xf32>, vector<8x128xf32>, vector<8x128xf32>, vector<8x128xf32> -> vector<8x1024xf32>
    %682 = arith.mulf %1, %681 : vector<8x1024xf32>
    %683 = arith.truncf %682 : vector<8x1024xf32> to vector<8x1024xbf16>
    %cst_212 = arith.constant dense<0.000000e+00> : vector<8x128xf32>
    %684 = tpu.matmul %683, %0, %cst_212 {dimension_numbers = #tpu.dot_dimension_numbers<[1], [0], [0], [1], [0, 0, 1, 1], [], []>} : vector<8x1024xbf16>, vector<1024x128xbf16>, vector<8x128xf32> -> vector<8x128xf32>
    %cst_213 = arith.constant dense<0.000000e+00> : vector<8x128xf32>
    %685 = tpu.matmul %665, %5, %cst_213 {dimension_numbers = #tpu.dot_dimension_numbers<[1], [0], [0], [1], [0, 0, 1, 1], [], []>} : vector<8x128xbf16>, vector<128x128xbf16>, vector<8x128xf32> -> vector<8x128xf32>
    %686 = arith.truncf %684 : vector<8x128xf32> to vector<8x128xbf16>
    %cst_214 = arith.constant dense<0.000000e+00> : vector<8x128xf32>
    %687 = tpu.matmul %686, %6, %cst_214 {dimension_numbers = #tpu.dot_dimension_numbers<[1], [0], [0], [1], [0, 0, 1, 1], [], []>} : vector<8x128xbf16>, vector<128x128xbf16>, vector<8x128xf32> -> vector<8x128xf32>
    %688 = arith.addf %685, %687 : vector<8x128xf32>
    %689 = vector.broadcast %7 : vector<1x128xf32> to vector<8x128xf32>
    %690 = arith.addf %688, %689 : vector<8x128xf32>
    %cst_215 = arith.constant 0.000000e+00 : f32
    %691 = vector.broadcast %cst_215 : f32 to vector<8x128xf32>
    %692 = arith.maximumf %690, %691 : vector<8x128xf32>
    %693 = arith.truncf %692 : vector<8x128xf32> to vector<8x128xbf16>
    %cst_216 = arith.constant dense<0.000000e+00> : vector<8x384xf32>
    %694 = tpu.matmul %693, %8, %cst_216 {dimension_numbers = #tpu.dot_dimension_numbers<[1], [0], [0], [1], [0, 0, 1, 1], [], []>} : vector<8x128xbf16>, vector<128x384xbf16>, vector<8x384xf32> -> vector<8x384xf32>
    %695 = vector.broadcast %9 : vector<1x384xf32> to vector<8x384xf32>
    %696 = arith.addf %694, %695 : vector<8x384xf32>
    %cst_217 = arith.constant dense<0.000000e+00> : vector<8x384xf32>
    %697 = tpu.matmul %666, %10, %cst_217 {dimension_numbers = #tpu.dot_dimension_numbers<[1], [0], [0], [1], [0, 0, 1, 1], [], []>} : vector<8x128xbf16>, vector<128x384xbf16>, vector<8x384xf32> -> vector<8x384xf32>
    %698 = vector.broadcast %11 : vector<1x384xf32> to vector<8x384xf32>
    %699 = arith.addf %697, %698 : vector<8x384xf32>
    %700 = vector.extract_strided_slice %696 {offsets = [0, 0], sizes = [8, 128], strides = [1, 1]} : vector<8x384xf32> to vector<8x128xf32>
    %701 = vector.extract_strided_slice %699 {offsets = [0, 0], sizes = [8, 128], strides = [1, 1]} : vector<8x384xf32> to vector<8x128xf32>
    %702 = arith.addf %700, %701 : vector<8x128xf32>
    %cst_218 = arith.constant 0.000000e+00 : f32
    %703 = vector.broadcast %cst_218 : f32 to vector<8x128xf32>
    %704 = arith.subf %703, %702 : vector<8x128xf32>
    %705 = math.exp %704 : vector<8x128xf32>
    %cst_219 = arith.constant 1.000000e+00 : f32
    %706 = vector.broadcast %cst_219 : f32 to vector<8x128xf32>
    %707 = arith.addf %706, %705 : vector<8x128xf32>
    %cst_220 = arith.constant 1.000000e+00 : f32
    %708 = vector.broadcast %cst_220 : f32 to vector<8x128xf32>
    %709 = arith.divf %708, %707 : vector<8x128xf32>
    %710 = vector.extract_strided_slice %696 {offsets = [0, 128], sizes = [8, 128], strides = [1, 1]} : vector<8x384xf32> to vector<8x128xf32>
    %711 = vector.extract_strided_slice %699 {offsets = [0, 128], sizes = [8, 128], strides = [1, 1]} : vector<8x384xf32> to vector<8x128xf32>
    %712 = arith.addf %710, %711 : vector<8x128xf32>
    %cst_221 = arith.constant 0.000000e+00 : f32
    %713 = vector.broadcast %cst_221 : f32 to vector<8x128xf32>
    %714 = arith.subf %713, %712 : vector<8x128xf32>
    %715 = math.exp %714 : vector<8x128xf32>
    %cst_222 = arith.constant 1.000000e+00 : f32
    %716 = vector.broadcast %cst_222 : f32 to vector<8x128xf32>
    %717 = arith.addf %716, %715 : vector<8x128xf32>
    %cst_223 = arith.constant 1.000000e+00 : f32
    %718 = vector.broadcast %cst_223 : f32 to vector<8x128xf32>
    %719 = arith.divf %718, %717 : vector<8x128xf32>
    %720 = vector.extract_strided_slice %696 {offsets = [0, 256], sizes = [8, 128], strides = [1, 1]} : vector<8x384xf32> to vector<8x128xf32>
    %721 = vector.extract_strided_slice %699 {offsets = [0, 256], sizes = [8, 128], strides = [1, 1]} : vector<8x384xf32> to vector<8x128xf32>
    %722 = arith.mulf %709, %721 : vector<8x128xf32>
    %723 = arith.addf %720, %722 : vector<8x128xf32>
    %724 = math.tanh %723 : vector<8x128xf32>
    %cst_224 = arith.constant 1.000000e+00 : f32
    %725 = vector.broadcast %cst_224 : f32 to vector<8x128xf32>
    %726 = arith.subf %725, %719 : vector<8x128xf32>
    %727 = arith.mulf %726, %724 : vector<8x128xf32>
    %728 = arith.mulf %719, %637 : vector<8x128xf32>
    %729 = arith.addf %727, %728 : vector<8x128xf32>
    %730 = arith.truncf %729 : vector<8x128xf32> to vector<8x128xbf16>
    %cst_225 = arith.constant dense<0.000000e+00> : vector<8x128xf32>
    %731 = tpu.matmul %730, %12, %cst_225 {dimension_numbers = #tpu.dot_dimension_numbers<[1], [0], [0], [1], [0, 0, 1, 1], [], []>} : vector<8x128xbf16>, vector<128x128xbf16>, vector<8x128xf32> -> vector<8x128xf32>
    %732 = vector.broadcast %13 : vector<1x128xf32> to vector<8x128xf32>
    %733 = arith.addf %731, %732 : vector<8x128xf32>
    %cst_226 = arith.constant dense<0xFF800000> : vector<8xf32>
    %734 = vector.multi_reduction <maximumf>, %733, %cst_226 [1] : vector<8x128xf32> to vector<8xf32>
    %735 = vector.shape_cast %734 : vector<8xf32> to vector<8x1xf32>
    %736 = vector.broadcast %735 : vector<8x1xf32> to vector<8x128xf32>
    %737 = arith.subf %733, %736 : vector<8x128xf32>
    %738 = math.exp %737 : vector<8x128xf32>
    %cst_227 = arith.constant dense<0.000000e+00> : vector<8xf32>
    %739 = vector.multi_reduction <add>, %738, %cst_227 [1] : vector<8x128xf32> to vector<8xf32>
    %740 = vector.shape_cast %739 : vector<8xf32> to vector<8x1xf32>
    %741 = math.log %740 : vector<8x1xf32>
    %742 = arith.addf %741, %735 : vector<8x1xf32>
    %743 = vector.broadcast %742 : vector<8x1xf32> to vector<8x128xf32>
    %744 = arith.subf %733, %743 : vector<8x128xf32>
    %745 = arith.mulf %744, %664 : vector<8x128xf32>
    %746 = vector.shape_cast %745 : vector<8x128xf32> to vector<1x8x128xf32>
    %cst_228 = arith.constant dense<0.000000e+00> : vector<1xf32>
    %747 = vector.multi_reduction <add>, %746, %cst_228 [1, 2] : vector<1x8x128xf32> to vector<1xf32>
    %748 = vector.shape_cast %747 : vector<1xf32> to vector<1x1x1xf32>
    %749 = vector.extract %748[0, 0, 0] : f32 from vector<1x1x1xf32>
    %750 = arith.subf %658, %749 : f32
    %c8_i32 = arith.constant 8 : i32
    %c0_229 = arith.constant 0 : index
    %c0_230 = arith.constant 0 : index
    %751 = memref.load %arg17[%c0_229, %c0_230] : memref<1x1xf32, #tpu.memory_space<smem>>
    memref.store %750, %arg17[%c0_229, %c0_230] : memref<1x1xf32, #tpu.memory_space<smem>>
    return
  }
}

</mosaic_0001>

<bundles_post_ra>
// kernel: conv_encoder_rnn_decoder_forward.2
= control target key start
LH: loop header
LB: loop body
LE: loop exit
PB: predicated region body
PF: predicated region fallthrough
CT: control target
= control target key end

     0   :  { %v391_v12 = vmov 0.0   ;;  %s984_s1 = inlined_call_operand.vmem [shape: bf16[128,128], index: 1, kind: input, shape index: {}]   ;;  %s985_s2 = inlined_call_operand.vmem [shape: f32[1,128], index: 2, kind: input, shape index: {}]   ;;  %s986_s0 = inlined_call_operand.vmem [shape: bf16[64,128], index: 0, kind: input, shape index: {}]   ;;  %s987_s3 = inlined_call_operand.vmem [shape: f32[1024,128], index: 3, kind: output, shape index: {0}]   ;;  %s988_s4 = inlined_call_operand.vmem [shape: f32[8,128], index: 4, kind: output, shape index: {1}]  }
   0x1   :  { %v364_v0 = vld [vmem:[%s984_s1 + $0x38] sm:$0xff]  ;;  %v363_v1 = vld [vmem:[%s984_s1 + $0x30] sm:$0xff]  ;;  %v362_v2 = vld [vmem:[%s984_s1 + $0x28] sm:$0xff]  ;;  %153 = vst [vmem:[%s987_s3] sm:$0xff] %v391_v12 }
   0x2   :  { %116 = vmatpush.bf16.msra.mxu0 %v364_v0  ;;  %365 = vmatpush.bf16.msra.mxu1 %v364_v0  ;;  %v361_v3 = vld [vmem:[%s984_s1 + $0x20] sm:$0xff]  ;;  %v360_v4 = vld [vmem:[%s984_s1 + $0x18] sm:$0xff]  ;;  %v359_v5 = vld [vmem:[%s984_s1 + $0x10] sm:$0xff]  ;;  %155 = vst [vmem:[%s987_s3 + $0x10] sm:$0xff] %v391_v12 }
   0x3   :  { %366 = vmatpush.bf16.msra.mxu2 %v364_v0  ;;  %367 = vmatpush.bf16.msra.mxu3 %v364_v0  ;;  %v358_v6 = vld [vmem:[%s984_s1 + $0x8] sm:$0xff]  ;;  %v357_v7 = vld [vmem:[%s984_s1] sm:$0xff]  ;;  %v355_v10 = vld [vmem:[%s986_s0 + $0x10] sm:$0xff]  ;;  %156 = vst [vmem:[%s987_s3 + $0x18] sm:$0xff] %v391_v12 }
   0x4   :  { %v353_v8 = vld [vmem:[%s986_s0] sm:$0xff]  ;;  %v354_v9 = vld [vmem:[%s986_s0 + $0x8] sm:$0xff]  ;;  %v356_v11 = vld [vmem:[%s986_s0 + $0x18] sm:$0xff]  ;;  %157 = vst [vmem:[%s987_s3 + $0x20] sm:$0xff] %v391_v12 }
   0x5   :  { %158 = vst [vmem:[%s987_s3 + $0x28] sm:$0xff] %v391_v12  ;;  %v390_v14 = vld [vmem:[%s985_s2] ss:$0 sm:$0xff] }
   0x6   :  { %117 = vmatpush.bf16.msra.mxu0 %v363_v1  ;;  %368 = vmatpush.bf16.msra.mxu1 %v363_v1  ;;  %159 = vst [vmem:[%s987_s3 + $0x30] sm:$0xff] %v391_v12 }
   0x7   :  { %369 = vmatpush.bf16.msra.mxu2 %v363_v1  ;;  %370 = vmatpush.bf16.msra.mxu3 %v363_v1  ;;  %160 = vst [vmem:[%s987_s3 + $0x38] sm:$0xff] %v391_v12 }
   0x8   :  { %161 = vst [vmem:[%s987_s3 + $0x40] sm:$0xff] %v391_v12 }
   0x9   :  { %162 = vst [vmem:[%s987_s3 + $0x48] sm:$0xff] %v391_v12 }
   0xa   :  { %118 = vmatpush.bf16.msra.mxu0 %v362_v2  ;;  %371 = vmatpush.bf16.msra.mxu1 %v362_v2  ;;  %163 = vst [vmem:[%s987_s3 + $0x50] sm:$0xff] %v391_v12 }
   0xb   :  { %372 = vmatpush.bf16.msra.mxu2 %v362_v2  ;;  %373 = vmatpush.bf16.msra.mxu3 %v362_v2  ;;  %164 = vst [vmem:[%s987_s3 + $0x58] sm:$0xff] %v391_v12 }
   0xc   :  { %165 = vst [vmem:[%s987_s3 + $0x60] sm:$0xff] %v391_v12 }
   0xd   :  { %166 = vst [vmem:[%s987_s3 + $0x68] sm:$0xff] %v391_v12 }
   0xe   :  { %119 = vmatpush.bf16.msra.mxu0 %v361_v3  ;;  %374 = vmatpush.bf16.msra.mxu1 %v361_v3  ;;  %167 = vst [vmem:[%s987_s3 + $0x70] sm:$0xff] %v391_v12 }
   0xf   :  { %375 = vmatpush.bf16.msra.mxu2 %v361_v3  ;;  %376 = vmatpush.bf16.msra.mxu3 %v361_v3  ;;  %168 = vst [vmem:[%s987_s3 + $0x78] sm:$0xff] %v391_v12 }
  0x10   :  { %169 = vst [vmem:[%s987_s3 + $0x80] sm:$0xff] %v391_v12 }
  0x11   :  { %171 = vst [vmem:[%s987_s3 + $0x90] sm:$0xff] %v391_v12 }
  0x12   :  { %120 = vmatpush.bf16.msra.mxu0 %v360_v4  ;;  %377 = vmatpush.bf16.msra.mxu1 %v360_v4  ;;  %172 = vst [vmem:[%s987_s3 + $0x98] sm:$0xff] %v391_v12 }
  0x13   :  { %378 = vmatpush.bf16.msra.mxu2 %v360_v4  ;;  %379 = vmatpush.bf16.msra.mxu3 %v360_v4  ;;  %173 = vst [vmem:[%s987_s3 + $0xa0] sm:$0xff] %v391_v12 }
  0x14   :  { %174 = vst [vmem:[%s987_s3 + $0xa8] sm:$0xff] %v391_v12 }
  0x15   :  { %175 = vst [vmem:[%s987_s3 + $0xb0] sm:$0xff] %v391_v12 }
  0x16   :  { %121 = vmatpush.bf16.msra.mxu0 %v359_v5  ;;  %380 = vmatpush.bf16.msra.mxu1 %v359_v5  ;;  %176 = vst [vmem:[%s987_s3 + $0xb8] sm:$0xff] %v391_v12 }
  0x17   :  { %381 = vmatpush.bf16.msra.mxu2 %v359_v5  ;;  %382 = vmatpush.bf16.msra.mxu3 %v359_v5  ;;  %177 = vst [vmem:[%s987_s3 + $0xc0] sm:$0xff] %v391_v12 }
  0x18   :  { %178 = vst [vmem:[%s987_s3 + $0xc8] sm:$0xff] %v391_v12 }
  0x19   :  { %179 = vst [vmem:[%s987_s3 + $0xd0] sm:$0xff] %v391_v12 }
  0x1a   :  { %122 = vmatpush.bf16.msra.mxu0 %v358_v6  ;;  %383 = vmatpush.bf16.msra.mxu1 %v358_v6  ;;  %180 = vst [vmem:[%s987_s3 + $0xd8] sm:$0xff] %v391_v12 }
  0x1b   :  { %384 = vmatpush.bf16.msra.mxu2 %v358_v6  ;;  %385 = vmatpush.bf16.msra.mxu3 %v358_v6  ;;  %181 = vst [vmem:[%s987_s3 + $0xe0] sm:$0xff] %v391_v12 }
  0x1c   :  { %182 = vst [vmem:[%s987_s3 + $0xe8] sm:$0xff] %v391_v12 }
  0x1d   :  { %183 = vst [vmem:[%s987_s3 + $0xf0] sm:$0xff] %v391_v12 }
  0x1e   :  { %123 = vmatpush.bf16.msra.mxu0 %v357_v7  ;;  %386 = vmatpush.bf16.msra.mxu1 %v357_v7  ;;  %184 = vst [vmem:[%s987_s3 + $0xf8] sm:$0xff] %v391_v12 }
  0x1f   :  { %387 = vmatpush.bf16.msra.mxu2 %v357_v7  ;;  %388 = vmatpush.bf16.msra.mxu3 %v357_v7  ;;  %185 = vst [vmem:[%s987_s3 + $0x100] sm:$0xff] %v391_v12 }
  0x20   :  { %187 = vst [vmem:[%s987_s3 + $0x110] sm:$0xff] %v391_v12 }
  0x21   :  { %124 = vmatmul.bf16.vlgmr.msra.gmra.mxu0 %v353_v8  ;;  %129 = vmatmul.bf16.vlgmr.msra.gmra.mxu1 %v354_v9  ;;  %188 = vst [vmem:[%s987_s3 + $0x118] sm:$0xff] %v391_v12 }
  0x22   :  { %134 = vmatmul.bf16.vlgmr.msra.gmra.mxu2 %v355_v10  ;;  %139 = vmatmul.bf16.vlgmr.msra.gmra.mxu3 %v356_v11  ;;  %189 = vst [vmem:[%s987_s3 + $0x120] sm:$0xff] %v391_v12 }
  0x23   :  { %190 = vst [vmem:[%s987_s3 + $0x128] sm:$0xff] %v391_v12 }
  0x24   :  { %191 = vst [vmem:[%s987_s3 + $0x130] sm:$0xff] %v391_v12 }
  0x25   :  { %192 = vst [vmem:[%s987_s3 + $0x138] sm:$0xff] %v391_v12 }
  0x26   :  { %193 = vst [vmem:[%s987_s3 + $0x140] sm:$0xff] %v391_v12 }
  0x27   :  { %194 = vst [vmem:[%s987_s3 + $0x148] sm:$0xff] %v391_v12 }
  0x28   :  { %195 = vst [vmem:[%s987_s3 + $0x150] sm:$0xff] %v391_v12 }
  0x29   :  { %196 = vst [vmem:[%s987_s3 + $0x158] sm:$0xff] %v391_v12 }
  0x2a   :  { %197 = vst [vmem:[%s987_s3 + $0x160] sm:$0xff] %v391_v12 }
  0x2b   :  { %198 = vst [vmem:[%s987_s3 + $0x168] sm:$0xff] %v391_v12 }
  0x2c   :  { %199 = vst [vmem:[%s987_s3 + $0x170] sm:$0xff] %v391_v12 }
  0x2d   :  { %200 = vst [vmem:[%s987_s3 + $0x178] sm:$0xff] %v391_v12 }
  0x2e   :  { %201 = vst [vmem:[%s987_s3 + $0x180] sm:$0xff] %v391_v12 }
  0x2f   :  { %203 = vst [vmem:[%s987_s3 + $0x190] sm:$0xff] %v391_v12 }
  0x30   :  { %204 = vst [vmem:[%s987_s3 + $0x198] sm:$0xff] %v391_v12 }
  0x31   :  { %205 = vst [vmem:[%s987_s3 + $0x1a0] sm:$0xff] %v391_v12 }
  0x32   :  { %206 = vst [vmem:[%s987_s3 + $0x1a8] sm:$0xff] %v391_v12 }
  0x33   :  { %207 = vst [vmem:[%s987_s3 + $0x1b0] sm:$0xff] %v391_v12 }
  0x34   :  { %208 = vst [vmem:[%s987_s3 + $0x1b8] sm:$0xff] %v391_v12 }
  0x35   :  { %209 = vst [vmem:[%s987_s3 + $0x1c0] sm:$0xff] %v391_v12 }
  0x36   :  { %210 = vst [vmem:[%s987_s3 + $0x1c8] sm:$0xff] %v391_v12 }
  0x37   :  { %211 = vst [vmem:[%s987_s3 + $0x1d0] sm:$0xff] %v391_v12 }
  0x38   :  { %212 = vst [vmem:[%s987_s3 + $0x1d8] sm:$0xff] %v391_v12 }
  0x39   :  { %213 = vst [vmem:[%s987_s3 + $0x1e0] sm:$0xff] %v391_v12 }
  0x3a   :  { %214 = vst [vmem:[%s987_s3 + $0x1e8] sm:$0xff] %v391_v12 }
  0x3b   :  { %215 = vst [vmem:[%s987_s3 + $0x1f0] sm:$0xff] %v391_v12 }
  0x3c   :  { %216 = vst [vmem:[%s987_s3 + $0x1f8] sm:$0xff] %v391_v12 }
  0x3d   :  { %217 = vst [vmem:[%s987_s3 + $0x200] sm:$0xff] %v391_v12 }
  0x3e   :  { %219 = vst [vmem:[%s987_s3 + $0x210] sm:$0xff] %v391_v12 }
  0x3f   :  { %220 = vst [vmem:[%s987_s3 + $0x218] sm:$0xff] %v391_v12 }
  0x40   :  { %221 = vst [vmem:[%s987_s3 + $0x220] sm:$0xff] %v391_v12 }
  0x41   :  { %222 = vst [vmem:[%s987_s3 + $0x228] sm:$0xff] %v391_v12 }
  0x42   :  { %223 = vst [vmem:[%s987_s3 + $0x230] sm:$0xff] %v391_v12 }
  0x43   :  { %224 = vst [vmem:[%s987_s3 + $0x238] sm:$0xff] %v391_v12 }
  0x44   :  { %225 = vst [vmem:[%s987_s3 + $0x240] sm:$0xff] %v391_v12 }
  0x45   :  { %226 = vst [vmem:[%s987_s3 + $0x248] sm:$0xff] %v391_v12 }
  0x46   :  { %227 = vst [vmem:[%s987_s3 + $0x250] sm:$0xff] %v391_v12 }
  0x47   :  { %228 = vst [vmem:[%s987_s3 + $0x258] sm:$0xff] %v391_v12 }
  0x48   :  { %229 = vst [vmem:[%s987_s3 + $0x260] sm:$0xff] %v391_v12 }
  0x49   :  { %230 = vst [vmem:[%s987_s3 + $0x268] sm:$0xff] %v391_v12 }
  0x4a   :  { %231 = vst [vmem:[%s987_s3 + $0x270] sm:$0xff] %v391_v12 }
  0x4b   :  { %232 = vst [vmem:[%s987_s3 + $0x278] sm:$0xff] %v391_v12 }
  0x4c   :  { %233 = vst [vmem:[%s987_s3 + $0x280] sm:$0xff] %v391_v12 }
  0x4d   :  { %235 = vst [vmem:[%s987_s3 + $0x290] sm:$0xff] %v391_v12 }
  0x4e   :  { %236 = vst [vmem:[%s987_s3 + $0x298] sm:$0xff] %v391_v12 }
  0x4f   :  { %237 = vst [vmem:[%s987_s3 + $0x2a0] sm:$0xff] %v391_v12 }
  0x50   :  { %238 = vst [vmem:[%s987_s3 + $0x2a8] sm:$0xff] %v391_v12 }
  0x51   :  { %239 = vst [vmem:[%s987_s3 + $0x2b0] sm:$0xff] %v391_v12 }
  0x52   :  { %240 = vst [vmem:[%s987_s3 + $0x2b8] sm:$0xff] %v391_v12 }
  0x53   :  { %241 = vst [vmem:[%s987_s3 + $0x2c0] sm:$0xff] %v391_v12 }
  0x54   :  { %242 = vst [vmem:[%s987_s3 + $0x2c8] sm:$0xff] %v391_v12 }
  0x55   :  { %243 = vst [vmem:[%s987_s3 + $0x2d0] sm:$0xff] %v391_v12 }
  0x56   :  { %244 = vst [vmem:[%s987_s3 + $0x2d8] sm:$0xff] %v391_v12 }
  0x57   :  { %245 = vst [vmem:[%s987_s3 + $0x2e0] sm:$0xff] %v391_v12 }
  0x58   :  { %246 = vst [vmem:[%s987_s3 + $0x2e8] sm:$0xff] %v391_v12 }
  0x59   :  { %247 = vst [vmem:[%s987_s3 + $0x2f0] sm:$0xff] %v391_v12 }
  0x5a   :  { %248 = vst [vmem:[%s987_s3 + $0x2f8] sm:$0xff] %v391_v12 }
  0x5b   :  { %249 = vst [vmem:[%s987_s3 + $0x300] sm:$0xff] %v391_v12 }
  0x5c   :  { %251 = vst [vmem:[%s987_s3 + $0x310] sm:$0xff] %v391_v12 }
  0x5d   :  { %252 = vst [vmem:[%s987_s3 + $0x318] sm:$0xff] %v391_v12 }
  0x5e   :  { %253 = vst [vmem:[%s987_s3 + $0x320] sm:$0xff] %v391_v12 }
  0x5f   :  { %254 = vst [vmem:[%s987_s3 + $0x328] sm:$0xff] %v391_v12 }
  0x60   :  { %255 = vst [vmem:[%s987_s3 + $0x330] sm:$0xff] %v391_v12 }
  0x61   :  { %256 = vst [vmem:[%s987_s3 + $0x338] sm:$0xff] %v391_v12 }
  0x62   :  { %257 = vst [vmem:[%s987_s3 + $0x340] sm:$0xff] %v391_v12 }
  0x63   :  { %258 = vst [vmem:[%s987_s3 + $0x348] sm:$0xff] %v391_v12 }
  0x64   :  { %259 = vst [vmem:[%s987_s3 + $0x350] sm:$0xff] %v391_v12 }
  0x65   :  { %260 = vst [vmem:[%s987_s3 + $0x358] sm:$0xff] %v391_v12 }
  0x66   :  { %261 = vst [vmem:[%s987_s3 + $0x360] sm:$0xff] %v391_v12 }
  0x67   :  { %262 = vst [vmem:[%s987_s3 + $0x368] sm:$0xff] %v391_v12 }
  0x68   :  { %263 = vst [vmem:[%s987_s3 + $0x370] sm:$0xff] %v391_v12 }
  0x69   :  { %264 = vst [vmem:[%s987_s3 + $0x378] sm:$0xff] %v391_v12 }
  0x6a   :  { %265 = vst [vmem:[%s987_s3 + $0x380] sm:$0xff] %v391_v12 }
  0x6b   :  { %267 = vst [vmem:[%s987_s3 + $0x390] sm:$0xff] %v391_v12 }
  0x6c   :  { %268 = vst [vmem:[%s987_s3 + $0x398] sm:$0xff] %v391_v12 }
  0x6d   :  { %269 = vst [vmem:[%s987_s3 + $0x3a0] sm:$0xff] %v391_v12 }
  0x6e   :  { %270 = vst [vmem:[%s987_s3 + $0x3a8] sm:$0xff] %v391_v12 }
  0x6f   :  { %271 = vst [vmem:[%s987_s3 + $0x3b0] sm:$0xff] %v391_v12 }
  0x70   :  { %272 = vst [vmem:[%s987_s3 + $0x3b8] sm:$0xff] %v391_v12 }
  0x71   :  { %273 = vst [vmem:[%s987_s3 + $0x3c0] sm:$0xff] %v391_v12 }
  0x72   :  { %274 = vst [vmem:[%s987_s3 + $0x3c8] sm:$0xff] %v391_v12 }
  0x73   :  { %275 = vst [vmem:[%s987_s3 + $0x3d0] sm:$0xff] %v391_v12 }
  0x74   :  { %276 = vst [vmem:[%s987_s3 + $0x3d8] sm:$0xff] %v391_v12 }
  0x75   :  { %277 = vst [vmem:[%s987_s3 + $0x3e0] sm:$0xff] %v391_v12 }
  0x76   :  { %278 = vst [vmem:[%s987_s3 + $0x3e8] sm:$0xff] %v391_v12 }
  0x77   :  { %279 = vst [vmem:[%s987_s3 + $0x3f0] sm:$0xff] %v391_v12 }
  0x78   :  { %280 = vst [vmem:[%s987_s3 + $0x3f8] sm:$0xff] %v391_v12 }
  0x9e   :  { %v125_v13 = vpop.f32.mrf.mxu0  ;;  %v130_v15 = vpop.f32.mrf.mxu1 }
  0x9f   :  { %v126_v17 = vadd.f32 %v390_v14, %v125_v13  ;;  %v131_v19 = vadd.f32 %v390_v14, %v130_v15 }
  0xa1   :  { %v145_v20 = vmax.f32 %v126_v17, 0.0  ;;  %v147_v23 = vmax.f32 %v131_v19, 0.0 }
  0xa3   :  { %281 = vst [vmem:[%s987_s3 + $0x8] sm:$0xff] %v145_v20 }
  0xa4   :  { %282 = vst [vmem:[%s988_s4 - $0x7] sm:$0x80] %v145_v20 }
  0xa5   :  { %v135_v16 = vpop.f32.mrf.mxu2  ;;  %v140_v18 = vpop.f32.mrf.mxu3  ;;  %285 = vst [vmem:[%s987_s3 + $0x108] sm:$0xff] %v147_v23 }
  0xa6   :  { %v136_v21 = vadd.f32 %v390_v14, %v135_v16  ;;  %v127_v22 = vpop.f32.mrf.mxu0  ;;  %v141_v24 = vadd.f32 %v390_v14, %v140_v18  ;;  %v132_v25 = vpop.f32.mrf.mxu1  ;;  %286 = vst [vmem:[%s988_s4 - $0x5] sm:$0x80] %v147_v23 }
  0xa7   :  { %v128_v27 = vadd.f32 %v390_v14, %v127_v22  ;;  %v133_v30 = vadd.f32 %v390_v14, %v132_v25 }
  0xa8   :  { %v149_v26 = vmax.f32 %v136_v21, 0.0  ;;  %v151_v29 = vmax.f32 %v141_v24, 0.0 }
  0xa9   :  { %v146_v32 = vmax.f32 %v128_v27, 0.0  ;;  %v148_v34 = vmax.f32 %v133_v30, 0.0 }
  0xaa   :  { %289 = vst [vmem:[%s987_s3 + $0x208] sm:$0xff] %v149_v26 }
  0xab   :  { %290 = vst [vmem:[%s988_s4 - $0x3] sm:$0x80] %v149_v26 }
  0xac   :  { %293 = vst [vmem:[%s987_s3 + $0x308] sm:$0xff] %v151_v29 }
  0xad   :  { %v137_v28 = vpop.f32.mrf.mxu2  ;;  %v142_v31 = vpop.f32.mrf.mxu3  ;;  %294 = vst [vmem:[%s988_s4 - $0x1] sm:$0x80] %v151_v29 }
  0xae   :  { %v138_v33 = vadd.f32 %v390_v14, %v137_v28  ;;  %v143_v35 = vadd.f32 %v390_v14, %v142_v31  ;;  %283 = vst [vmem:[%s987_s3 + $0x88] sm:$0xff] %v146_v32 }
  0xaf   :  { %284 = vst [vmem:[%s988_s4 - $0x6] sm:$0x80] %v146_v32 }
  0xb0   :  { %v150_v36 = vmax.f32 %v138_v33, 0.0  ;;  %287 = vst [vmem:[%s987_s3 + $0x188] sm:$0xff] %v148_v34  ;;  %v152_v37 = vmax.f32 %v143_v35, 0.0 }
  0xb1   :  { %288 = vst [vmem:[%s988_s4 - $0x4] sm:$0x80] %v148_v34 }
  0xb2   :  { %291 = vst [vmem:[%s987_s3 + $0x288] sm:$0xff] %v150_v36 }
  0xb3   :  { %292 = vst [vmem:[%s988_s4 - $0x2] sm:$0x80] %v150_v36 }
  0xb4   :  { %295 = vst [vmem:[%s987_s3 + $0x388] sm:$0xff] %v152_v37 }
  0xb5   :  { %296 = vst [vmem:[%s988_s4] sm:$0x80] %v152_v37 }

// kernel: conv_encoder_rnn_decoder_forward.3
= control target key start
LH: loop header
LB: loop body
LE: loop exit
PB: predicated region body
PF: predicated region fallthrough
CT: control target
= control target key end

     0   :  { %s9906_s0 = inlined_call_operand.vmem [shape: f32[8,8,128], index: 0, kind: input, shape index: {}]   ;;  %s9907_s1 = inlined_call_operand.vmem [shape: f32[8,8,128], index: 1, kind: input, shape index: {}]   ;;  %s9908_s2 = inlined_call_operand.vmem [shape: f32[8,128], index: 2, kind: input, shape index: {}]   ;;  %s9909_s3 = inlined_call_operand.vmem [shape: bf16[1024,128], index: 3, kind: input, shape index: {}]   ;;  %s9910_s4 = inlined_call_operand.vmem [shape: f32[8,1024], index: 4, kind: input, shape index: {}]   ;;  %s9911_s5 = inlined_call_operand.vmem [shape: bf16[128,128], index: 5, kind: input, shape index: {}]   ;;  %s9912_s6 = inlined_call_operand.vmem [shape: bf16[128,128], index: 6, kind: input, shape index: {}]   ;;  %s9913_s7 = inlined_call_operand.vmem [shape: f32[1,128], index: 7, kind: input, shape index: {}]   ;;  %s9914_s8 = inlined_call_operand.vmem [shape: bf16[128,128], index: 8, kind: input, shape index: {}]   ;;  %s9915_s9 = inlined_call_operand.vmem [shape: bf16[128,128], index: 9, kind: input, shape index: {}]   ;;  %s9916_s10 = inlined_call_operand.vmem [shape: f32[1,128], index: 10, kind: input, shape index: {}]   ;;  %s9917_s11 = inlined_call_operand.vmem [shape: bf16[128,384], index: 11, kind: input, shape index: {}]   ;;  %s9918_s12 = inlined_call_operand.vmem [shape: f32[1,384], index: 12, kind: input, shape index: {}]   ;;  %s9919_s13 = inlined_call_operand.vmem [shape: bf16[128,384], index: 13, kind: input, shape index: {}]   ;;  %s9920_s14 = inlined_call_operand.vmem [shape: f32[1,384], index: 14, kind: input, shape index: {}]   ;;  %s9921_s15 = inlined_call_operand.vmem [shape: bf16[128,128], index: 15, kind: input, shape index: {}]   ;;  %s9922_s16 = inlined_call_operand.vmem [shape: f32[1,128], index: 16, kind: input, shape index: {}]   ;;  %s9923_s17 = inlined_call_operand.hbm [shape: f32[1,1], index: 17, kind: output, shape index: {}]  }
   0x1   :  { %10316 = sst [smem:[#allocation117_spill]] %s9906_s0 }
   0x2   :  { %10317 = sst [smem:[#allocation118_spill]] %s9907_s1 }
   0x3   :  { %v5591_v0 = vld [vmem:[%s9912_s6 + $0x38] sm:$0xff]  ;;  %v5603_v2 = vld [vmem:[%s9912_s6 + $0x30] sm:$0xff]  ;;  %v5613_v4 = vld [vmem:[%s9912_s6 + $0x28] sm:$0xff] }
   0x4   :  { %v5596_v1 = vld [vmem:[%s9911_s5 + $0x38] sm:$0xff]  ;;  %395 = vmatpush.bf16.msra.mxu0 %v5591_v0  ;;  %v5608_v3 = vld [vmem:[%s9911_s5 + $0x30] sm:$0xff]  ;;  %v5618_v5 = vld [vmem:[%s9911_s5 + $0x28] sm:$0xff] }
   0x5   :  { %456 = vmatpush.bf16.msra.mxu1 %v5596_v1 }
   0x8   :  { %396 = vmatpush.bf16.msra.mxu0 %v5603_v2 }
   0x9   :  { %457 = vmatpush.bf16.msra.mxu1 %v5608_v3 }
   0xa   :  { %22 = vsyncpa [#allocation3], 0  ;;  %v5627_v6 = vld [vmem:[%s9912_s6 + $0x20] sm:$0xff]  ;;  %v5639_v8 = vld [vmem:[%s9912_s6 + $0x18] sm:$0xff]  ;;  %s10318_s0 = sld [smem:[#allocation117_spill]]  ;;  %s4172_s26 = sshll.u32 %s9923_s17, 4  ;;  %s4173_s26 = int_to_ptr.hbm [resolvable:$true] %s4172_s26 }
   0xb   :  { %v5632_v7 = vld [vmem:[%s9911_s5 + $0x20] sm:$0xff]  ;;  %v5644_v9 = vld [vmem:[%s9911_s5 + $0x18] sm:$0xff]  ;;  %v5651_v10 = vld [vmem:[%s9912_s6 + $0x10] sm:$0xff]  ;;  %s11068_s25 = sld [smem:[#allocation118_spill]] }
   0xc   :  { %397 = vmatpush.bf16.msra.mxu0 %v5613_v4  ;;  %v5656_v11 = vld [vmem:[%s9911_s5 + $0x10] sm:$0xff]  ;;  %v5663_v12 = vld [vmem:[%s9912_s6 + $0x8] sm:$0xff]  ;;  %v5673_v14 = vld [vmem:[%s9912_s6] sm:$0xff] }
   0xd   :  { %458 = vmatpush.bf16.msra.mxu1 %v5618_v5  ;;  %v5668_v13 = vld [vmem:[%s9911_s5 + $0x8] sm:$0xff]  ;;  %v5680_v15 = vld [vmem:[%s9911_s5] sm:$0xff]  ;;  %v5702_v27 = vld [vmem:[%s9909_s3 + $0x38] sm:$0xff] }
   0xe   :  { %v342_v16 = vld [vmem:[%s9908_s2] sm:$0xff]  ;;  %v4819_v28 = vld [vmem:[%s9909_s3 + $0x78] sm:$0xff]  ;;  %895 = vmatpush.bf16.msra.mxu2 %v5702_v27  ;;  %v5721_v31 = vld [vmem:[%s9909_s3 + $0x30] sm:$0xff] }
   0xf   :  { %v5688_v18 = vpack.c.bf16 %v342_v16, %v342_v16  ;;  %v4973_v20 = vld [vmem:[%s9913_s7] ss:$0 sm:$0xff]  ;;  %v5710_v29 = vld [vmem:[%s9909_s3 + $0xb8] sm:$0xff]  ;;  %908 = vmatpush.bf16.msra.mxu3 %v4819_v28  ;;  %v4818_v32 = vld [vmem:[%s9909_s3 + $0x70] sm:$0xff] }
  0x10   :  { %398 = vmatpush.bf16.msra.mxu0 %v5627_v6  ;;  %v343_v17 = vld [vmem:[%s10318_s0] sm:$0xff]  ;;  %v5715_v30 = vld [vmem:[%s9909_s3 + $0xf8] sm:$0xff]  ;;  %v5731_v33 = vld [vmem:[%s9909_s3 + $0xb0] sm:$0xff] }
  0x11   :  { %459 = vmatpush.bf16.msra.mxu1 %v5632_v7  ;;  %v5690_v19 = vpack.c.bf16 %v343_v17, %v343_v17  ;;  %v5736_v34 = vld [vmem:[%s9909_s3 + $0xf0] sm:$0xff]  ;;  %v5742_v35 = vld [vmem:[%s9909_s3 + $0x28] sm:$0xff]  ;;  %v5763_v39 = vld [vmem:[%s9909_s3 + $0x20] sm:$0xff] }
  0x12   :  { %896 = vmatpush.bf16.msra.mxu2 %v5721_v31  ;;  %v4817_v36 = vld [vmem:[%s9909_s3 + $0x68] sm:$0xff]  ;;  %v4816_v40 = vld [vmem:[%s9909_s3 + $0x60] sm:$0xff]  ;;  %v5784_v43 = vld [vmem:[%s9909_s3 + $0x18] sm:$0xff] }
  0x13   :  { %909 = vmatpush.bf16.msra.mxu3 %v4818_v32  ;;  %v5752_v37 = vld [vmem:[%s9909_s3 + $0xa8] sm:$0xff]  ;;  %v5773_v41 = vld [vmem:[%s9909_s3 + $0xa0] sm:$0xff]  ;;  %v4815_v44 = vld [vmem:[%s9909_s3 + $0x58] sm:$0xff] }
  0x14   :  { %399 = vmatpush.bf16.msra.mxu0 %v5639_v8  ;;  %v5757_v38 = vld [vmem:[%s9909_s3 + $0xe8] sm:$0xff]  ;;  %v5778_v42 = vld [vmem:[%s9909_s3 + $0xe0] sm:$0xff]  ;;  %v5794_v45 = vld [vmem:[%s9909_s3 + $0x98] sm:$0xff] }
  0x15   :  { %460 = vmatpush.bf16.msra.mxu1 %v5644_v9  ;;  %v5799_v46 = vld [vmem:[%s9909_s3 + $0xd8] sm:$0xff]  ;;  %v5810_v51 = vld [vmem:[%s9909_s3 + $0x10] sm:$0xff]  ;;  %v5831_v55 = vld [vmem:[%s9909_s3 + $0x8] sm:$0xff] }
  0x16   :  { %897 = vmatpush.bf16.msra.mxu2 %v5742_v35  ;;  %v4814_v52 = vld [vmem:[%s9909_s3 + $0x50] sm:$0xff]  ;;  %v4813_v56 = vld [vmem:[%s9909_s3 + $0x48] sm:$0xff]  ;;  %v5852_v59 = vld [vmem:[%s9909_s3] sm:$0xff] }
  0x17   :  { %910 = vmatpush.bf16.msra.mxu3 %v4817_v36  ;;  %v5818_v53 = vld [vmem:[%s9909_s3 + $0x90] sm:$0xff]  ;;  %v5839_v57 = vld [vmem:[%s9909_s3 + $0x88] sm:$0xff]  ;;  %v4812_v60 = vld [vmem:[%s9909_s3 + $0x40] sm:$0xff] }
  0x18   :  { %400 = vmatpush.bf16.msra.mxu0 %v5651_v10  ;;  %v5823_v54 = vld [vmem:[%s9909_s3 + $0xd0] sm:$0xff]  ;;  %v5844_v58 = vld [vmem:[%s9909_s3 + $0xc8] sm:$0xff]  ;;  %v5860_v61 = vld [vmem:[%s9909_s3 + $0x80] sm:$0xff] }
  0x19   :  { %461 = vmatpush.bf16.msra.mxu1 %v5656_v11  ;;  %10319 = vst [vmem:[#allocation5_spill] sm:$0xff] %v5823_v54  ;;  %v5865_v62 = vld [vmem:[%s9909_s3 + $0xc0] sm:$0xff]  ;;  %v5870_v63 = vld [vmem:[%s9909_s3 + $0x138] sm:$0xff]  ;;  %v4857_v28 = vld [vmem:[%s9909_s3 + $0x1a8] sm:$0xff] }
  0x1a   :  { %898 = vmatpush.bf16.msra.mxu2 %v5763_v39  ;;  %10320 = vst [vmem:[#allocation6_spill] sm:$0xff] %v5844_v58  ;;  %v4851_v16 = vld [vmem:[%s9909_s3 + $0x178] sm:$0xff]  ;;  %v5920_v32 = vld [vmem:[%s9909_s3 + $0x1e8] sm:$0xff]  ;;  %v5926_v36 = vld [vmem:[%s9909_s3 + $0x120] sm:$0xff] }
  0x1b   :  { %911 = vmatpush.bf16.msra.mxu3 %v4816_v40  ;;  %10321 = vst [vmem:[#allocation7_spill] sm:$0xff] %v5865_v62  ;;  %v4859_v17 = vld [vmem:[%s9909_s3 + $0x1b8] sm:$0xff]  ;;  %v4848_v40 = vld [vmem:[%s9909_s3 + $0x160] sm:$0xff] }
  0x1c   :  { %401 = vmatpush.bf16.msra.mxu0 %v5663_v12  ;;  %10324 = vst [vmem:[#allocation10_spill] sm:$0xff] %v5920_v32 }
  0x1d   :  { %462 = vmatpush.bf16.msra.mxu1 %v5668_v13 }
  0x1e   :  { %899 = vmatpush.bf16.msra.mxu2 %v5784_v43 }
  0x1f   :  { %912 = vmatpush.bf16.msra.mxu3 %v4815_v44  ;;  %v4856_v44 = vld [vmem:[%s9909_s3 + $0x1a0] sm:$0xff] }
  0x20   :  { %402 = vmatpush.bf16.msra.mxu0 %v5673_v14 }
  0x21   :  { %463 = vmatpush.bf16.msra.mxu1 %v5680_v15 }
  0x22   :  { %900 = vmatpush.bf16.msra.mxu2 %v5810_v51 }
  0x23   :  { %403 = vmatmul.bf16.vlgmr.msra.gmra.mxu0 %v5688_v18  ;;  %913 = vmatpush.bf16.msra.mxu3 %v4814_v52  ;;  %v4855_v52 = vld [vmem:[%s9909_s3 + $0x198] sm:$0xff] }
  0x24   :  { %464 = vmatmul.bf16.vlgmr.msra.gmra.mxu1 %v5690_v19  ;;  %921 = vmatpush.bf16.msrb.mxu0 %v5710_v29 }
  0x25   :  { %934 = vmatpush.bf16.msrb.mxu1 %v5715_v30 }
  0x26   :  { %901 = vmatpush.bf16.msra.mxu2 %v5831_v55 }
  0x27   :  { %914 = vmatpush.bf16.msra.mxu3 %v4813_v56  ;;  %v5956_v56 = vld [vmem:[%s9909_s3 + $0x1d8] sm:$0xff] }
  0x28   :  { %922 = vmatpush.bf16.msrb.mxu0 %v5731_v33  ;;  %10327 = vst [vmem:[#allocation13_spill] sm:$0xff] %v5956_v56 }
  0x29   :  { %935 = vmatpush.bf16.msrb.mxu1 %v5736_v34 }
  0x2a   :  { %902 = vmatpush.bf16.msra.mxu2 %v5852_v59 }
  0x2b   :  { %915 = vmatpush.bf16.msra.mxu3 %v4812_v60  ;;  %v5962_v60 = vld [vmem:[%s9909_s3 + $0x110] sm:$0xff] }
  0x2c   :  { %923 = vmatpush.bf16.msrb.mxu0 %v5752_v37  ;;  %10328 = vst [vmem:[#allocation14_spill] sm:$0xff] %v5962_v60 }
  0x2d   :  { %936 = vmatpush.bf16.msrb.mxu1 %v5757_v38 }
  0x2e   :  { %947 = vmatpush.bf16.msrb.mxu2 %v5870_v63 }
  0x2f   :  { %960 = vmatpush.bf16.msrb.mxu3 %v4851_v16  ;;  %v5967_v16 = vld [vmem:[%s9909_s3 + $0x150] sm:$0xff] }
  0x30   :  { %924 = vmatpush.bf16.msrb.mxu0 %v5773_v41  ;;  %10329 = vst [vmem:[#allocation15_spill] sm:$0xff] %v5967_v16 }
  0x31   :  { %937 = vmatpush.bf16.msrb.mxu1 %v5778_v42 }
  0x34   :  { %925 = vmatpush.bf16.msrb.mxu0 %v5794_v45 }
  0x35   :  { %938 = vmatpush.bf16.msrb.mxu1 %v5799_v46 }
  0x38   :  { %926 = vmatpush.bf16.msrb.mxu0 %v5818_v53 }
  0x39   :  { %939 = vmatpush.bf16.msrb.mxu1 %v5823_v54 }
  0x3c   :  { %927 = vmatpush.bf16.msrb.mxu0 %v5839_v57 }
  0x3d   :  { %940 = vmatpush.bf16.msrb.mxu1 %v5844_v58 }
  0x40   :  { %928 = vmatpush.bf16.msrb.mxu0 %v5860_v61 }
  0x41   :  { %941 = vmatpush.bf16.msrb.mxu1 %v5865_v62  ;;  %v6060_v62 = vld [vmem:[%s9914_s8 + $0x38] sm:$0xff] }
  0x42   :  { %10344 = vst [vmem:[#allocation30_spill] sm:$0xff] %v6060_v62 }
  0x44   :  { %973 = vmatpush.bf16.msra.mxu0 %v4859_v17  ;;  %v5973_v17 = vld [vmem:[%s9909_s3 + $0x190] sm:$0xff] }
  0x45   :  { %10330 = vst [vmem:[#allocation16_spill] sm:$0xff] %v5973_v17 }
  0xa0   :  { %v404_v21 = vpop.f32.mrf.mxu0 }
  0xa1   :  { %v465_v22 = vpop.f32.mrf.mxu1 }
  0xa2   :  { %v466_v23 = vadd.f32 %v465_v22, %v404_v21  ;;  %v5891_v21 = vld [vmem:[%s9909_s3 + $0x130] sm:$0xff] }
  0xa3   :  { %v4850_v22 = vld [vmem:[%s9909_s3 + $0x170] sm:$0xff]  ;;  %948 = vmatpush.bf16.msrb.mxu2 %v5891_v21 }
  0xa4   :  { %v472_v24 = vadd.f32 %v4973_v20, %v466_v23  ;;  %v5882_v20 = vld [vmem:[%s9909_s3 + $0x1f8] sm:$0xff]  ;;  %v4858_v23 = vld [vmem:[%s9909_s3 + $0x1b0] sm:$0xff]  ;;  %961 = vmatpush.bf16.msrb.mxu3 %v4850_v22 }
  0xa5   :  { %10322 = vst [vmem:[#allocation8_spill] sm:$0xff] %v5882_v20  ;;  %986 = vmatpush.bf16.msra.mxu1 %v5882_v20  ;;  %974 = vmatpush.bf16.msra.mxu0 %v4858_v23  ;;  %v5978_v22 = vld [vmem:[%s9909_s3 + $0x1d0] sm:$0xff]  ;;  %v5985_v23 = vld [vmem:[%s9909_s3 + $0x108] sm:$0xff] }
  0xa6   :  { %473 = vmax.xlane.f32.xlu0 %v472_v24  ;;  %10331 = vst [vmem:[#allocation17_spill] sm:$0xff] %v5978_v22 }
  0xa7   :  { %10332 = vst [vmem:[#allocation18_spill] sm:$0xff] %v5985_v23 }
  0xa8   :  { %v406_v25 = vpop.f32.mrf.mxu0 }
  0xa9   :  { %v467_v26 = vpop.f32.mrf.mxu1  ;;  %v5909_v25 = vld [vmem:[%s9909_s3 + $0x128] sm:$0xff]  ;;  %975 = vmatpush.bf16.msra.mxu0 %v4857_v28 }
  0xaa   :  { %v4849_v26 = vld [vmem:[%s9909_s3 + $0x168] sm:$0xff]  ;;  %949 = vmatpush.bf16.msrb.mxu2 %v5909_v25 }
  0xab   :  { %962 = vmatpush.bf16.msrb.mxu3 %v4849_v26  ;;  %v5990_v26 = vld [vmem:[%s9909_s3 + $0x148] sm:$0xff] }
  0xac   :  { %10333 = vst [vmem:[#allocation19_spill] sm:$0xff] %v5990_v26  ;;  %v5997_v28 = vld [vmem:[%s9909_s3 + $0x188] sm:$0xff] }
  0xad   :  { %976 = vmatpush.bf16.msra.mxu0 %v4856_v44  ;;  %10334 = vst [vmem:[#allocation20_spill] sm:$0xff] %v5997_v28 }
  0xae   :  { %950 = vmatpush.bf16.msrb.mxu2 %v5926_v36 }
  0xaf   :  { %963 = vmatpush.bf16.msrb.mxu3 %v4848_v40  ;;  %v6002_v40 = vld [vmem:[%s9909_s3 + $0x1c8] sm:$0xff] }
  0xb0   :  { %10335 = vst [vmem:[#allocation21_spill] sm:$0xff] %v6002_v40 }
  0xb1   :  { %977 = vmatpush.bf16.msra.mxu0 %v4855_v52  ;;  %v6014_v52 = vld [vmem:[%s9909_s3 + $0x140] sm:$0xff] }
  0xb2   :  { %10337 = vst [vmem:[#allocation23_spill] sm:$0xff] %v6014_v52 }
  0xb5   :  { %978 = vmatpush.bf16.msra.mxu0 %v5973_v17  ;;  %v6021_v17 = vld [vmem:[%s9909_s3 + $0x180] sm:$0xff] }
  0xb6   :  { %10338 = vst [vmem:[#allocation24_spill] sm:$0xff] %v6021_v17 }
  0xb9   :  { %979 = vmatpush.bf16.msra.mxu0 %v5997_v28 }
  0xbd   :  { %980 = vmatpush.bf16.msra.mxu0 %v6021_v17 }
 0x119   :  { %v474_v47 = vpop.xlane.xlu0 %473 }
 0x11a   :  { %v475_v48 = vsub.f32 %v472_v24, %v474_v47  ;;  %v5902_v24 = vld [vmem:[%s9909_s3 + $0x1f0] sm:$0xff]  ;;  %v5938_v47 = vld [vmem:[%s9909_s3 + $0x1e0] sm:$0xff] }
 0x11b   :  { %10323 = vst [vmem:[#allocation9_spill] sm:$0xff] %v5902_v24  ;;  %987 = vmatpush.bf16.msra.mxu1 %v5902_v24 }
 0x11c   :  { %v476_v49 = vmul.f32 1.442695, %v475_v48  ;;  %10325 = vst [vmem:[#allocation11_spill] sm:$0xff] %v5938_v47  ;;  %v5945_v48 = vld [vmem:[%s9909_s3 + $0x118] sm:$0xff] }
 0x11d   :  { %10326 = vst [vmem:[#allocation12_spill] sm:$0xff] %v5945_v48  ;;  %951 = vmatpush.bf16.msrb.mxu2 %v5945_v48  ;;  %v4912_v48 = vld [vmem:[%s9917_s11 + $0x64] sm:$0xf] }
 0x11e   :  { %4976 = vpow2.f32 %v476_v49  ;;  %v4847_v49 = vld [vmem:[%s9909_s3 + $0x158] sm:$0xff] }
 0x11f   :  { %988 = vmatpush.bf16.msra.mxu1 %v5920_v32  ;;  %964 = vmatpush.bf16.msrb.mxu3 %v4847_v49  ;;  %v6009_v49 = vld [vmem:[%s9909_s3 + $0x100] sm:$0xff] }
 0x120   :  { %10336 = vst [vmem:[#allocation22_spill] sm:$0xff] %v6009_v49 }
 0x121   :  { %952 = vmatpush.bf16.msrb.mxu2 %v5962_v60 }
 0x123   :  { %989 = vmatpush.bf16.msra.mxu1 %v5938_v47  ;;  %965 = vmatpush.bf16.msrb.mxu3 %v5967_v16 }
 0x124   :  { %v5804_v50 = vpop.eup %4976 }
 0x125   :  { %478 = vadd.xlane.f32.xlu0 %v5804_v50  ;;  %953 = vmatpush.bf16.msrb.mxu2 %v5985_v23  ;;  %v4648_v23 = vld [vmem:[%s9917_s11 + $0x98] sm:$0xf] }
 0x127   :  { %990 = vmatpush.bf16.msra.mxu1 %v5956_v56  ;;  %966 = vmatpush.bf16.msrb.mxu3 %v5990_v26  ;;  %v6026_v26 = vld [vmem:[%s9909_s3 + $0x1c0] sm:$0xff] }
 0x128   :  { %10339 = vst [vmem:[#allocation25_spill] sm:$0xff] %v6026_v26 }
 0x129   :  { %954 = vmatpush.bf16.msrb.mxu2 %v6009_v49 }
 0x12b   :  { %991 = vmatpush.bf16.msra.mxu1 %v5978_v22  ;;  %967 = vmatpush.bf16.msrb.mxu3 %v6014_v52  ;;  %v6035_v52 = vld [vmem:[%s9910_s4] sm:$0xff] }
 0x12c   :  { %10340 = vst [vmem:[#allocation26_spill] sm:$0xff] %v6035_v52 }
 0x12f   :  { %992 = vmatpush.bf16.msra.mxu1 %v6002_v40 }
 0x133   :  { %993 = vmatpush.bf16.msra.mxu1 %v6026_v26 }
 0x198   :  { %v479_v44 = vpop.xlane.xlu0 %478 }
 0x199   :  { %4978 = vrcp.f32 %v479_v44  ;;  %v491_v22 = vand.u32 2147483648, %v479_v44  ;;  %v489_v47 = vand.u32 2147483647, %v479_v44  ;;  %vm485_vm1 = vweird.f32 %v479_v44 }
 0x19b   :  { %v492_v24 = vor.u32 1.1754944e-38, %v491_v22  ;;  %vm490_vm3 = vcmp.eq.f32.partialorder %v489_v47, 8.507059e+37 }
 0x19f   :  { %v4979_v16 = vpop.eup %4978 }
 0x1a0   :  { %v481_v28 = vmul.f32 %v4979_v16, %v479_v44  ;;  %vm486_vm0 = vweird.f32 %v4979_v16 }
 0x1a1   :  { %vm487_vm2 = vmor %vm485_vm1, %vm486_vm0 }
 0x1a2   :  { %v482_v40 = vsub.f32 1.0, %v481_v28  ;;  %v6040_v28 = vld [vmem:[%s9910_s4 + $0x8] sm:$0xff] }
 0x1a3   :  { %10341 = vst [vmem:[#allocation27_spill] sm:$0xff] %v6040_v28 }
 0x1a4   :  { %v483_v56 = vmul.f32 %v4979_v16, %v482_v40 }
 0x1a6   :  { %v484_v32 = vadd.f32 %v4979_v16, %v483_v56  ;;  %v6045_v56 = vld [vmem:[%s9910_s4 + $0x10] sm:$0xff] }
 0x1a7   :  { %10342 = vst [vmem:[#allocation28_spill] sm:$0xff] %v6045_v56 }
 0x1a8   :  { %v488_v20 = vsel %vm487_vm2, %v4979_v16, %v484_v32  ;;  %v6050_v32 = vld [vmem:[%s9910_s4 + $0x18] sm:$0xff] }
 0x1a9   :  { %v493_v17 = vsel %vm490_vm3, %v492_v24, %v488_v20  ;;  %10343 = vst [vmem:[#allocation29_spill] sm:$0xff] %v6050_v32 }
 0x1aa   :  { %v494_v47 = vmul.f32 %v5804_v50, %v493_v17  ;;  %v6066_v50 = vld [vmem:[%s9914_s8 + $0x30] sm:$0xff]  ;;  %v6072_v17 = vld [vmem:[%s9910_s4 + $0x20] sm:$0xff] }
 0x1ab   :  { %10345 = vst [vmem:[#allocation31_spill] sm:$0xff] %v6066_v50 }
 0x1ac   :  { %v495_v16 = vmul.f32 %v494_v47, %v6035_v52  ;;  %v496_v20 = vmul.f32 %v494_v47, %v6040_v28  ;;  %v497_v24 = vmul.f32 %v494_v47, %v6045_v56  ;;  %v498_v22 = vmul.f32 %v494_v47, %v6050_v32  ;;  %10346 = vst [vmem:[#allocation32_spill] sm:$0xff] %v6072_v17  ;;  %v6096_v56 = vld [vmem:[%s9915_s9 + $0x38] sm:$0xff]  ;;  %v4918_v52 = vld [vmem:[%s9917_s11 + $0x94] sm:$0xf] }
 0x1ad   :  { %10350 = vst [vmem:[#allocation36_spill] sm:$0xff] %v6096_v56 }
 0x1ae   :  { %v503_v40 = vpack.c.bf16 %v495_v16, %v495_v16  ;;  %v504_v44 = vpack.c.bf16 %v496_v20, %v496_v20  ;;  %v505_v26 = vpack.c.bf16 %v497_v24, %v497_v24  ;;  %v506_v49 = vpack.c.bf16 %v498_v22, %v498_v22  ;;  %v6077_v16 = vld [vmem:[%s9910_s4 + $0x28] sm:$0xff] }
 0x1af   :  { %10347 = vst [vmem:[#allocation33_spill] sm:$0xff] %v6077_v16  ;;  %v499_v20 = vmul.f32 %v494_v47, %v6072_v17  ;;  %v500_v24 = vmul.f32 %v494_v47, %v6077_v16  ;;  %v6101_v16 = vld [vmem:[%s9914_s8 + $0x28] sm:$0xff]  ;;  %v4916_v17 = vld [vmem:[%s9917_s11 + $0x80] sm:$0xf0] }
 0x1b0   :  { %903 = vmatmul.bf16.vlgmr.msra.gmra.mxu2 %v503_v40  ;;  %916 = vmatmul.bf16.vlgmr.msra.gmra.mxu3 %v504_v44  ;;  %10351 = vst [vmem:[#allocation37_spill] sm:$0xff] %v6101_v16 }
 0x1b1   :  { %929 = vmatmul.bf16.vlgmr.msrb.gmra.mxu0 %v505_v26  ;;  %942 = vmatmul.bf16.vlgmr.msrb.gmra.mxu1 %v506_v49  ;;  %v6082_v26 = vld [vmem:[%s9910_s4 + $0x30] sm:$0xff]  ;;  %v6087_v49 = vld [vmem:[%s9910_s4 + $0x38] sm:$0xff]  ;;  %v507_v44 = vpack.c.bf16 %v499_v20, %v499_v20  ;;  %v6132_v20 = vld [vmem:[%s9915_s9 + $0x20] sm:$0xff] }
 0x1b2   :  { %1109 = vmatpush.bf16.msra.mxu3 %v6060_v62  ;;  %10348 = vst [vmem:[#allocation34_spill] sm:$0xff] %v6082_v26  ;;  %v501_v22 = vmul.f32 %v494_v47, %v6082_v26  ;;  %v502_v40 = vmul.f32 %v494_v47, %v6087_v49  ;;  %1048 = vmatpush.bf16.msra.mxu2 %v6096_v56  ;;  %v6108_v47 = vld [vmem:[%s9915_s9 + $0x30] sm:$0xff] }
 0x1b3   :  { %10349 = vst [vmem:[#allocation35_spill] sm:$0xff] %v6087_v49  ;;  %v4946_v49 = vld [vmem:[%s9919_s13 + $0xb0] sm:$0xf0] }
 0x1b4   :  { %v509_v62 = vpack.c.bf16 %v501_v22, %v501_v22  ;;  %v510_v32 = vpack.c.bf16 %v502_v40, %v502_v40  ;;  %10352 = vst [vmem:[#allocation38_spill] sm:$0xff] %v6108_v47  ;;  %v6144_v22 = vld [vmem:[%s9915_s9 + $0x18] sm:$0xff]  ;;  %v6149_v40 = vld [vmem:[%s9914_s8 + $0x8] sm:$0xff] }
 0x1b5   :  { %10356 = vst [vmem:[#allocation42_spill] sm:$0xff] %v6132_v20 }
 0x1b6   :  { %1110 = vmatpush.bf16.msra.mxu3 %v6066_v50  ;;  %v508_v50 = vpack.c.bf16 %v500_v24, %v500_v24  ;;  %1049 = vmatpush.bf16.msra.mxu2 %v6108_v47  ;;  %v6137_v24 = vld [vmem:[%s9914_s8 + $0x10] sm:$0xff]  ;;  %10358 = vst [vmem:[#allocation44_spill] sm:$0xff] %v6144_v22 }
 0x1b7   :  { %10357 = vst [vmem:[#allocation43_spill] sm:$0xff] %v6137_v24 }
 0x1b8   :  { %10359 = vst [vmem:[#allocation45_spill] sm:$0xff] %v6149_v40 }
 0x1ba   :  { %1111 = vmatpush.bf16.msra.mxu3 %v6101_v16  ;;  %v4660_v16 = vld [vmem:[%s9917_s11 + $0xb0] sm:$0xf] }
 0x1c0   :  { %955 = vmatmul.bf16.vlgmr.msrb.gmra.mxu2 %v507_v44  ;;  %968 = vmatmul.bf16.vlgmr.msrb.gmra.mxu3 %v508_v50  ;;  %v6125_v50 = vld [vmem:[%s9914_s8 + $0x18] sm:$0xff]  ;;  %v6156_v44 = vld [vmem:[%s9915_s9 + $0x10] sm:$0xff] }
 0x1c1   :  { %981 = vmatmul.bf16.vlgmr.msra.gmra.mxu0 %v509_v62  ;;  %994 = vmatmul.bf16.vlgmr.msra.gmra.mxu1 %v510_v32  ;;  %v6113_v62 = vld [vmem:[%s9914_s8 + $0x20] sm:$0xff]  ;;  %v6120_v32 = vld [vmem:[%s9915_s9 + $0x28] sm:$0xff]  ;;  %10355 = vst [vmem:[#allocation41_spill] sm:$0xff] %v6125_v50 }
 0x1c2   :  { %10353 = vst [vmem:[#allocation39_spill] sm:$0xff] %v6113_v62  ;;  %1112 = vmatpush.bf16.msra.mxu3 %v6113_v62  ;;  %1050 = vmatpush.bf16.msra.mxu2 %v6120_v32  ;;  %v4748_v62 = vld [vmem:[%s9919_s13 + $0xa8] sm:$0xf] }
 0x1c3   :  { %10354 = vst [vmem:[#allocation40_spill] sm:$0xff] %v6120_v32  ;;  %v6202_v26 = vor.u32 %v4946_v49, %v4748_v62  ;;  %v4736_v32 = vld [vmem:[%s9919_s13 + $0x90] sm:$0xf]  ;;  %v4943_v49 = vld [vmem:[%s9919_s13 + $0x98] sm:$0xf0] }
 0x1c4   :  { %10360 = vst [vmem:[#allocation46_spill] sm:$0xff] %v6156_v44  ;;  %v6220_v62 = vor.u32 %v4943_v49, %v4736_v32  ;;  %v4923_v32 = vld [vmem:[%s9917_s11 + $0xb8] sm:$0xf0]  ;;  %v4724_v49 = vld [vmem:[%s9919_s13 + $0x78] sm:$0xf] }
 0x1c5   :  { %10365 = vst [vmem:[#allocation51_spill] sm:$0xff] %v6202_v26  ;;  %v6242_v28 = vor.u32 %v4923_v32, %v4660_v16  ;;  %v4920_v16 = vld [vmem:[%s9917_s11 + $0xa0] sm:$0xf0] }
 0x1c6   :  { %1113 = vmatpush.bf16.msra.mxu3 %v6125_v50  ;;  %1051 = vmatpush.bf16.msra.mxu2 %v6132_v20  ;;  %10367 = vst [vmem:[#allocation53_spill] sm:$0xff] %v6220_v62  ;;  %v6272_v60 = vor.u32 %v4920_v16, %v4648_v23  ;;  %v4636_v23 = vld [vmem:[%s9917_s11 + $0x80] sm:$0xf]  ;;  %v4910_v16 = vld [vmem:[%s9917_s11 + $0x50] sm:$0xf0] }
 0x1c7   :  { %10369 = vst [vmem:[#allocation55_spill] sm:$0xff] %v6242_v28 }
 0x1c8   :  { %10373 = vst [vmem:[#allocation59_spill] sm:$0xff] %v6272_v60 }
 0x1ca   :  { %1114 = vmatpush.bf16.msra.mxu3 %v6137_v24  ;;  %1052 = vmatpush.bf16.msra.mxu2 %v6144_v22  ;;  %v6161_v24 = vld [vmem:[%s9914_s8] sm:$0xff]  ;;  %v6168_v22 = vld [vmem:[%s9915_s9 + $0x8] sm:$0xff] }
 0x1cb   :  { %10361 = vst [vmem:[#allocation47_spill] sm:$0xff] %v6161_v24 }
 0x1cc   :  { %10362 = vst [vmem:[#allocation48_spill] sm:$0xff] %v6168_v22 }
 0x1ce   :  { %1115 = vmatpush.bf16.msra.mxu3 %v6149_v40  ;;  %1053 = vmatpush.bf16.msra.mxu2 %v6156_v44  ;;  %v6175_v40 = vld [vmem:[%s9915_s9] sm:$0xff] }
 0x1cf   :  { %10363 = vst [vmem:[#allocation49_spill] sm:$0xff] %v6175_v40 }
 0x1d2   :  { %1116 = vmatpush.bf16.msra.mxu3 %v6161_v24  ;;  %1054 = vmatpush.bf16.msra.mxu2 %v6168_v22  ;;  %v4652_v24 = vld [vmem:[%s9917_s11 + $0xa8] sm:$0xf]  ;;  %v4640_v22 = vld [vmem:[%s9917_s11 + $0x90] sm:$0xf] }
 0x1d5   :  { %1117 = vmatmul.bf16.vlgmr.msra.gmra.mxu3 %v5690_v19  ;;  %v4922_v19 = vld [vmem:[%s9917_s11 + $0xb0] sm:$0xf0] }
 0x1d6   :  { %1055 = vmatpush.bf16.msra.mxu2 %v6175_v40  ;;  %v6191_v20 = vor.u32 %v4922_v19, %v4652_v24  ;;  %v4919_v40 = vld [vmem:[%s9917_s11 + $0x98] sm:$0xf0]  ;;  %v4628_v19 = vld [vmem:[%s9917_s11 + $0x78] sm:$0xf]  ;;  %1437 = vmatpush.bf16.msrb.mxu3 %v6202_v26  ;;  %v4940_v26 = vld [vmem:[%s9919_s13 + $0x80] sm:$0xf0] }
 0x1d7   :  { %v6208_v24 = vor.u32 %v4919_v40, %v4640_v22  ;;  %v4921_v22 = vld [vmem:[%s9917_s11 + $0xac] sm:$0xf]  ;;  %v4654_v40 = vld [vmem:[%s9917_s11 + $0xb4] sm:$0xf0] }
 0x1d8   :  { %10364 = vst [vmem:[#allocation50_spill] sm:$0xff] %v6191_v20  ;;  %1263 = vmatpush.bf16.msrb.mxu0 %v6191_v20  ;;  %v6231_v56 = vor.u32 %v4921_v22, %v4654_v40  ;;  %v6248_v22 = vor.u32 %v4916_v17, %v4628_v19  ;;  %v4642_v40 = vld [vmem:[%s9917_s11 + $0x9c] sm:$0xf0]  ;;  %v4913_v19 = vld [vmem:[%s9917_s11 + $0x68] sm:$0xf0] }
 0x1d9   :  { %10366 = vst [vmem:[#allocation52_spill] sm:$0xff] %v6208_v24  ;;  %v4616_v17 = vld [vmem:[%s9917_s11 + $0x60] sm:$0xf] }
 0x1da   :  { %10368 = vst [vmem:[#allocation54_spill] sm:$0xff] %v6231_v56  ;;  %1276 = vmatpush.bf16.msrb.mxu1 %v6231_v56  ;;  %1438 = vmatpush.bf16.msrb.mxu3 %v6220_v62  ;;  %v6270_v56 = vor.u32 %v4918_v52, %v4642_v40  ;;  %v4915_v62 = vld [vmem:[%s9917_s11 + $0x7c] sm:$0xf]  ;;  %v4917_v52 = vld [vmem:[%s9917_s11 + $0x88] sm:$0xf0] }
 0x1db   :  { %10370 = vst [vmem:[#allocation56_spill] sm:$0xff] %v6248_v22  ;;  %1289 = vmatpush.bf16.msrb.mxu2 %v6242_v28  ;;  %v4604_v40 = vld [vmem:[%s9917_s11 + $0x48] sm:$0xf] }
 0x1dc   :  { %1264 = vmatpush.bf16.msrb.mxu0 %v6208_v24  ;;  %v6268_v24 = vor.u32 %v4940_v26, %v4724_v49  ;;  %10372 = vst [vmem:[#allocation58_spill] sm:$0xff] %v6270_v56  ;;  %v4630_v26 = vld [vmem:[%s9917_s11 + $0x84] sm:$0xf0]  ;;  %v6293_v49 = vor.u32 %v4913_v19, %v4616_v17  ;;  %v6308_v17 = vor.u32 %v4917_v52, %v4636_v23 }
 0x1dd   :  { %v6302_v28 = vor.u32 %v4915_v62, %v4630_v26  ;;  %v4700_v19 = vld [vmem:[%s9919_s13 + $0x48] sm:$0xf]  ;;  %v4914_v26 = vld [vmem:[%s9917_s11 + $0x70] sm:$0xf0]  ;;  %v6329_v23 = vor.u32 %v4910_v16, %v4604_v40 }
 0x1de   :  { %10371 = vst [vmem:[#allocation57_spill] sm:$0xff] %v6268_v24  ;;  %1277 = vmatpush.bf16.msrb.mxu1 %v6270_v56  ;;  %1439 = vmatpush.bf16.msrb.mxu3 %v6268_v24 }
 0x1df   :  { %10374 = vst [vmem:[#allocation60_spill] sm:$0xff] %v6293_v49  ;;  %1290 = vmatpush.bf16.msrb.mxu2 %v6272_v60  ;;  %v4592_v60 = vld [vmem:[%s9917_s11 + $0x30] sm:$0xf] }
 0x1e0   :  { %1265 = vmatpush.bf16.msrb.mxu0 %v6248_v22  ;;  %10375 = vst [vmem:[#allocation61_spill] sm:$0xff] %v6302_v28 }
 0x1e1   :  { %10377 = vst [vmem:[#allocation63_spill] sm:$0xff] %v6308_v17 }
 0x1e2   :  { %10378 = vst [vmem:[#allocation64_spill] sm:$0xff] %v6329_v23  ;;  %1278 = vmatpush.bf16.msrb.mxu1 %v6302_v28 }
 0x1e3   :  { %1291 = vmatpush.bf16.msrb.mxu2 %v6308_v17 }
 0x1e4   :  { %1266 = vmatpush.bf16.msrb.mxu0 %v6293_v49  ;;  %v4907_v49 = vld [vmem:[%s9917_s11 + $0x38] sm:$0xf0] }
 0x1e5   :  { %v6354_v16 = vor.u32 %v4907_v49, %v4592_v60 }
 0x1e7   :  { %10382 = vst [vmem:[#allocation68_spill] sm:$0xff] %v6354_v16 }
 0x1e8   :  { %1267 = vmatpush.bf16.msrb.mxu0 %v6329_v23 }
 0x1ec   :  { %1268 = vmatpush.bf16.msrb.mxu0 %v6354_v16 }
 0x22e   :  { %v6178_v50 = vpop.f32.mrf.mxu0  ;;  %v6180_v44 = vpop.f32.mrf.mxu1 }
 0x233   :  { %v904_v47 = vpop.f32.mrf.mxu2  ;;  %v917_v20 = vpop.f32.mrf.mxu3 }
 0x234   :  { %v918_v54 = vadd.f32 %v917_v20, %v904_v47  ;;  %v4618_v47 = vld [vmem:[%s9917_s11 + $0x6c] sm:$0xf0] }
 0x235   :  { %v6332_v52 = vor.u32 %v4912_v48, %v4618_v47 }
 0x236   :  { %v932_v32 = vpop.f32.mrf.mxu0  ;;  %v945_v58 = vpop.f32.mrf.mxu1 }
 0x237   :  { %v4712_v58 = vld [vmem:[%s9919_s13 + $0x60] sm:$0xf]  ;;  %v4937_v32 = vld [vmem:[%s9919_s13 + $0x68] sm:$0xf0]  ;;  %10379 = vst [vmem:[#allocation65_spill] sm:$0xff] %v6332_v52  ;;  %1279 = vmatpush.bf16.msrb.mxu1 %v6332_v52 }
 0x238   :  { %v6306_v22 = vor.u32 %v4937_v32, %v4712_v58  ;;  %v4934_v58 = vld [vmem:[%s9919_s13 + $0x50] sm:$0xf0]  ;;  %v4624_v32 = vld [vmem:[%s9917_s11 + $0x68] sm:$0xf] }
 0x239   :  { %v6343_v40 = vor.u32 %v4934_v58, %v4700_v19  ;;  %v6345_v48 = vor.u32 %v4914_v26, %v4624_v32  ;;  %v4580_v19 = vld [vmem:[%s9917_s11 + $0x18] sm:$0xf]  ;;  %v4904_v58 = vld [vmem:[%s9917_s11 + $0x20] sm:$0xf0] }
 0x23a   :  { %10376 = vst [vmem:[#allocation62_spill] sm:$0xff] %v6306_v22  ;;  %1440 = vmatpush.bf16.msrb.mxu3 %v6306_v22 }
 0x23b   :  { %v906_v20 = vpop.f32.mrf.mxu2  ;;  %v919_v62 = vpop.f32.mrf.mxu3  ;;  %10380 = vst [vmem:[#allocation66_spill] sm:$0xff] %v6343_v40  ;;  %1292 = vmatpush.bf16.msrb.mxu2 %v6345_v48 }
 0x23c   :  { %v931_v20 = vadd.f32 %v6178_v50, %v918_v54  ;;  %10381 = vst [vmem:[#allocation67_spill] sm:$0xff] %v6345_v48  ;;  %v4688_v54 = vld [vmem:[%s9919_s13 + $0x30] sm:$0xf]  ;;  %v4931_v50 = vld [vmem:[%s9919_s13 + $0x38] sm:$0xf0] }
 0x23d   :  { %v6366_v32 = vor.u32 %v4931_v50, %v4688_v54  ;;  %v4568_v50 = vld [vmem:[%s9917_s11] sm:$0xf] }
 0x23e   :  { %v982_v62 = vpop.f32.mrf.mxu0  ;;  %v995_v24 = vpop.f32.mrf.mxu1  ;;  %v944_v47 = vadd.f32 %v6180_v44, %v931_v20  ;;  %1441 = vmatpush.bf16.msrb.mxu3 %v6343_v40  ;;  %v6369_v44 = vor.u32 %v4904_v58, %v4580_v19  ;;  %v4750_v19 = vld [vmem:[%s9919_s13 + $0xb4] sm:$0xf0] }
 0x23f   :  { %10383 = vst [vmem:[#allocation69_spill] sm:$0xff] %v6366_v32  ;;  %v4676_v58 = vld [vmem:[%s9919_s13 + $0x18] sm:$0xf] }
 0x240   :  { %10384 = vst [vmem:[#allocation70_spill] sm:$0xff] %v6369_v44  ;;  %1269 = vmatpush.bf16.msrb.mxu0 %v6369_v44 }
 0x242   :  { %1442 = vmatpush.bf16.msrb.mxu3 %v6366_v32 }
 0x243   :  { %v956_v60 = vpop.f32.mrf.mxu2  ;;  %v969_v49 = vpop.f32.mrf.mxu3 }
 0x244   :  { %v957_v26 = vadd.f32 %v956_v60, %v944_v47  ;;  %v4901_v47 = vld [vmem:[%s9917_s11 + $0x8] sm:$0xf0] }
 0x246   :  { %v970_v20 = vadd.f32 %v969_v49, %v957_v26  ;;  %v984_v40 = vpop.f32.mrf.mxu0  ;;  %v997_v22 = vpop.f32.mrf.mxu1  ;;  %v4928_v49 = vld [vmem:[%s9919_s13 + $0x20] sm:$0xf0]  ;;  %v4906_v26 = vld [vmem:[%s9917_s11 + $0x34] sm:$0xf] }
 0x247   :  { %v4909_v22 = vld [vmem:[%s9917_s11 + $0x4c] sm:$0xf] }
 0x248   :  { %v983_v17 = vadd.f32 %v982_v62, %v970_v20  ;;  %v6382_v62 = vor.u32 %v4901_v47, %v4568_v50  ;;  %v4594_v20 = vld [vmem:[%s9917_s11 + $0x3c] sm:$0xf0]  ;;  %v4600_v47 = vld [vmem:[%s9917_s11 + $0x38] sm:$0xf] }
 0x249   :  { %v6422_v50 = vor.u32 %v4906_v26, %v4594_v20 }
 0x24a   :  { %v996_v23 = vadd.f32 %v995_v24, %v983_v17  ;;  %10385 = vst [vmem:[#allocation71_spill] sm:$0xff] %v6382_v62  ;;  %v4606_v24 = vld [vmem:[%s9917_s11 + $0x54] sm:$0xf0]  ;;  %v4612_v17 = vld [vmem:[%s9917_s11 + $0x50] sm:$0xf]  ;;  %1270 = vmatpush.bf16.msrb.mxu0 %v6382_v62 }
 0x24b   :  { %v958_v52 = vpop.f32.mrf.mxu2  ;;  %v971_v48 = vpop.f32.mrf.mxu3  ;;  %10390 = vst [vmem:[#allocation76_spill] sm:$0xff] %v6422_v50 }
 0x24c   :  { %v999_v54 = vpack.c.bf16 %v996_v23, %v996_v23  ;;  %v4911_v23 = vld [vmem:[%s9917_s11 + $0x58] sm:$0xf0]  ;;  %v6393_v52 = vor.u32 %v4909_v22, %v4606_v24  ;;  %v4945_v48 = vld [vmem:[%s9919_s13 + $0xac] sm:$0xf]  ;;  %v4908_v22 = vld [vmem:[%s9917_s11 + $0x40] sm:$0xf0] }
 0x24d   :  { %v6395_v40 = vor.u32 %v4911_v23, %v4612_v17  ;;  %v6407_v60 = vor.u32 %v4945_v48, %v4750_v19  ;;  %v4942_v24 = vld [vmem:[%s9919_s13 + $0x94] sm:$0xf]  ;;  %v6434_v17 = vor.u32 %v4908_v22, %v4600_v47  ;;  %v4738_v23 = vld [vmem:[%s9919_s13 + $0x9c] sm:$0xf0]  ;;  %v4925_v19 = vld [vmem:[%s9919_s13 + $0x8] sm:$0xf0] }
 0x24e   :  { %1056 = vmatmul.bf16.vlgmr.msra.gmra.mxu2 %v999_v54  ;;  %10386 = vst [vmem:[#allocation72_spill] sm:$0xff] %v6393_v52  ;;  %1280 = vmatpush.bf16.msrb.mxu1 %v6393_v52  ;;  %v6420_v54 = vor.u32 %v4928_v49, %v4676_v58  ;;  %v4664_v48 = vld [vmem:[%s9919_s13] sm:$0xf]  ;;  %v6446_v58 = vor.u32 %v4942_v24, %v4738_v23  ;;  %v4726_v47 = vld [vmem:[%s9919_s13 + $0x84] sm:$0xf0] }
 0x24f   :  { %10387 = vst [vmem:[#allocation73_spill] sm:$0xff] %v6395_v40  ;;  %1293 = vmatpush.bf16.msrb.mxu2 %v6395_v40  ;;  %1450 = vmatpush.bf16.msra.mxu0 %v6407_v60  ;;  %v6448_v49 = vor.u32 %v4925_v19, %v4664_v48  ;;  %v4900_v22 = vld [vmem:[%s9917_s11 + $0x4] sm:$0xf]  ;;  %v4576_v24 = vld [vmem:[%s9917_s11 + $0x8] sm:$0xf] }
 0x250   :  { %10388 = vst [vmem:[#allocation74_spill] sm:$0xff] %v6407_v60  ;;  %1443 = vmatpush.bf16.msrb.mxu3 %v6420_v54  ;;  %v4902_v48 = vld [vmem:[%s9917_s11 + $0x10] sm:$0xf0]  ;;  %v4936_v19 = vld [vmem:[%s9919_s13 + $0x64] sm:$0xf] }
 0x251   :  { %10389 = vst [vmem:[#allocation75_spill] sm:$0xff] %v6420_v54 }
 0x252   :  { %10391 = vst [vmem:[#allocation77_spill] sm:$0xff] %v6434_v17  ;;  %1281 = vmatpush.bf16.msrb.mxu1 %v6422_v50 }
 0x253   :  { %10392 = vst [vmem:[#allocation78_spill] sm:$0xff] %v6446_v58  ;;  %1294 = vmatpush.bf16.msrb.mxu2 %v6434_v17  ;;  %1451 = vmatpush.bf16.msra.mxu0 %v6446_v58 }
 0x254   :  { %10393 = vst [vmem:[#allocation79_spill] sm:$0xff] %v6448_v49  ;;  %1444 = vmatpush.bf16.msrb.mxu3 %v6448_v49 }
 0x257   :  { %1445 = vmatmul.bf16.vlgmr.msrb.gmra.mxu3 %v5688_v18 }
 0x258   :  { %1615 = vmatpush.bf16.msra.mxu3 %v5591_v0  ;;  %v6461_v26 = vpop.f32.mrf.mxu3  ;;  %v4903_v0 = vld [vmem:[%s9917_s11 + $0x1c] sm:$0xf] }
 0x25c   :  { %1616 = vmatpush.bf16.msra.mxu3 %v5603_v2  ;;  %v4582_v2 = vld [vmem:[%s9917_s11 + $0x24] sm:$0xf0] }
 0x260   :  { %1617 = vmatpush.bf16.msra.mxu3 %v5613_v4  ;;  %v4588_v4 = vld [vmem:[%s9917_s11 + $0x20] sm:$0xf] }
 0x264   :  { %1618 = vmatpush.bf16.msra.mxu3 %v5627_v6  ;;  %v1120_v6 = vpop.f32.mrf.mxu3 }
 0x265   :  { %v4756_v6 = vld [vmem:[%s9919_s13 + $0xb0] sm:$0xf] }
 0x268   :  { %1619 = vmatpush.bf16.msra.mxu3 %v5639_v8  ;;  %v6474_v8 = vor.u32 %v4903_v0, %v4582_v2  ;;  %v4714_v0 = vld [vmem:[%s9919_s13 + $0x6c] sm:$0xf0]  ;;  %v6514_v2 = vor.u32 %v4902_v48, %v4576_v24  ;;  %v4944_v24 = vld [vmem:[%s9919_s13 + $0xa0] sm:$0xf0]  ;;  %v4930_v48 = vld [vmem:[%s9919_s13 + $0x34] sm:$0xf] }
 0x26a   :  { %10394 = vst [vmem:[#allocation80_spill] sm:$0xff] %v6474_v8  ;;  %1282 = vmatpush.bf16.msrb.mxu1 %v6474_v8 }
 0x26b   :  { %10398 = vst [vmem:[#allocation84_spill] sm:$0xff] %v6514_v2 }
 0x26c   :  { %1620 = vmatpush.bf16.msra.mxu3 %v5651_v10  ;;  %v4905_v10 = vld [vmem:[%s9917_s11 + $0x28] sm:$0xf0] }
 0x26d   :  { %v6483_v20 = vor.u32 %v4905_v10, %v4588_v4  ;;  %v6516_v4 = vor.u32 %v4936_v19, %v4714_v0  ;;  %v4947_v10 = vld [vmem:[%s9919_s13 + $0xb8] sm:$0xf0]  ;;  %v4732_v0 = vld [vmem:[%s9919_s13 + $0x80] sm:$0xf] }
 0x26f   :  { %10395 = vst [vmem:[#allocation81_spill] sm:$0xff] %v6483_v20  ;;  %1295 = vmatpush.bf16.msrb.mxu2 %v6483_v20 }
 0x270   :  { %1621 = vmatpush.bf16.msra.mxu3 %v5663_v12  ;;  %v4939_v12 = vld [vmem:[%s9919_s13 + $0x7c] sm:$0xf]  ;;  %10399 = vst [vmem:[#allocation85_spill] sm:$0xff] %v6516_v4 }
 0x273   :  { %1296 = vmatpush.bf16.msrb.mxu2 %v6514_v2 }
 0x274   :  { %1622 = vmatpush.bf16.msra.mxu3 %v5673_v14  ;;  %v6489_v14 = vor.u32 %v4939_v12, %v4726_v47  ;;  %v6526_v12 = vor.u32 %v4947_v10, %v4756_v6  ;;  %v4702_v47 = vld [vmem:[%s9919_s13 + $0x54] sm:$0xf0]  ;;  %v4941_v6 = vld [vmem:[%s9919_s13 + $0x88] sm:$0xf0] }
 0x276   :  { %10396 = vst [vmem:[#allocation82_spill] sm:$0xff] %v6489_v14  ;;  %1452 = vmatpush.bf16.msra.mxu0 %v6489_v14 }
 0x277   :  { %10400 = vst [vmem:[#allocation86_spill] sm:$0xff] %v6526_v12 }
 0x278   :  { %1706 = vmatpush.bf16.msrb.mxu3 %v5710_v29  ;;  %v4570_v29 = vld [vmem:[%s9917_s11 + $0xc] sm:$0xf0] }
 0x279   :  { %v6502_v23 = vor.u32 %v4900_v22, %v4570_v29  ;;  %v4744_v29 = vld [vmem:[%s9919_s13 + $0x98] sm:$0xf] }
 0x27a   :  { %1453 = vmatpush.bf16.msra.mxu0 %v6516_v4  ;;  %v6548_v19 = vor.u32 %v4944_v24, %v4744_v29  ;;  %v4678_v29 = vld [vmem:[%s9919_s13 + $0x24] sm:$0xf0] }
 0x27b   :  { %10397 = vst [vmem:[#allocation83_spill] sm:$0xff] %v6502_v23  ;;  %1283 = vmatpush.bf16.msrb.mxu1 %v6502_v23  ;;  %v4720_v24 = vld [vmem:[%s9919_s13 + $0x68] sm:$0xf] }
 0x27c   :  { %1707 = vmatpush.bf16.msrb.mxu3 %v5731_v33  ;;  %v4933_v33 = vld [vmem:[%s9919_s13 + $0x4c] sm:$0xf]  ;;  %10402 = vst [vmem:[#allocation88_spill] sm:$0xff] %v6548_v19 }
 0x27d   :  { %v6535_v22 = vor.u32 %v4933_v33, %v4702_v47  ;;  %v6564_v33 = vor.u32 %v4941_v6, %v4732_v0  ;;  %v4927_v47 = vld [vmem:[%s9919_s13 + $0x1c] sm:$0xf]  ;;  %v4924_v0 = vld [vmem:[%s9919_s13 + $0x4] sm:$0xf]  ;;  %v4666_v6 = vld [vmem:[%s9919_s13 + $0xc] sm:$0xf0] }
 0x27e   :  { %v6592_v2 = vor.u32 %v4924_v0, %v4666_v6  ;;  %v4684_v0 = vld [vmem:[%s9919_s13 + $0x20] sm:$0xf]  ;;  %v4929_v6 = vld [vmem:[%s9919_s13 + $0x28] sm:$0xf0] }
 0x27f   :  { %10401 = vst [vmem:[#allocation87_spill] sm:$0xff] %v6535_v22  ;;  %1463 = vmatpush.bf16.msra.mxu1 %v6526_v12  ;;  %1454 = vmatpush.bf16.msra.mxu0 %v6535_v22 }
 0x280   :  { %1708 = vmatpush.bf16.msrb.mxu3 %v5752_v37  ;;  %v4690_v37 = vld [vmem:[%s9919_s13 + $0x3c] sm:$0xf0]  ;;  %10404 = vst [vmem:[#allocation90_spill] sm:$0xff] %v6564_v33 }
 0x281   :  { %v6560_v10 = vor.u32 %v4930_v48, %v4690_v37  ;;  %v6579_v48 = vor.u32 %v4927_v47, %v4678_v29  ;;  %10407 = vst [vmem:[#allocation93_spill] sm:$0xff] %v6592_v2  ;;  %v4935_v47 = vld [vmem:[%s9919_s13 + $0x58] sm:$0xf0] }
 0x283   :  { %10403 = vst [vmem:[#allocation89_spill] sm:$0xff] %v6560_v10  ;;  %1464 = vmatpush.bf16.msra.mxu1 %v6548_v19  ;;  %1455 = vmatpush.bf16.msra.mxu0 %v6560_v10 }
 0x284   :  { %1709 = vmatpush.bf16.msrb.mxu3 %v5773_v41  ;;  %v4938_v41 = vld [vmem:[%s9919_s13 + $0x70] sm:$0xf0]  ;;  %10405 = vst [vmem:[#allocation91_spill] sm:$0xff] %v6579_v48 }
 0x285   :  { %v6583_v37 = vor.u32 %v4938_v41, %v4720_v24  ;;  %v4696_v24 = vld [vmem:[%s9919_s13 + $0x38] sm:$0xf] }
 0x287   :  { %1465 = vmatpush.bf16.msra.mxu1 %v6564_v33  ;;  %10406 = vst [vmem:[#allocation92_spill] sm:$0xff] %v6583_v37  ;;  %1456 = vmatpush.bf16.msra.mxu0 %v6579_v48 }
 0x288   :  { %1710 = vmatpush.bf16.msrb.mxu3 %v5794_v45  ;;  %v4708_v45 = vld [vmem:[%s9919_s13 + $0x50] sm:$0xf] }
 0x289   :  { %v6602_v29 = vor.u32 %v4935_v47, %v4708_v45  ;;  %v6623_v45 = vor.u32 %v4929_v6, %v4684_v0  ;;  %v4672_v47 = vld [vmem:[%s9919_s13 + $0x8] sm:$0xf] }
 0x28b   :  { %1466 = vmatpush.bf16.msra.mxu1 %v6583_v37  ;;  %10408 = vst [vmem:[#allocation94_spill] sm:$0xff] %v6602_v29  ;;  %1457 = vmatpush.bf16.msra.mxu0 %v6592_v2 }
 0x28c   :  { %1711 = vmatpush.bf16.msrb.mxu3 %v5818_v53  ;;  %v4932_v53 = vld [vmem:[%s9919_s13 + $0x40] sm:$0xf0]  ;;  %10410 = vst [vmem:[#allocation96_spill] sm:$0xff] %v6623_v45 }
 0x28d   :  { %v6613_v41 = vor.u32 %v4932_v53, %v4696_v24  ;;  %v4926_v24 = vld [vmem:[%s9919_s13 + $0x10] sm:$0xf0] }
 0x28e   :  { %v6638_v0 = vor.u32 %v4926_v24, %v4672_v47 }
 0x28f   :  { %1467 = vmatpush.bf16.msra.mxu1 %v6602_v29  ;;  %10409 = vst [vmem:[#allocation95_spill] sm:$0xff] %v6613_v41 }
 0x290   :  { %1712 = vmatpush.bf16.msrb.mxu3 %v5839_v57  ;;  %v6628_v57 = vld [vmem:[%s9916_s10] ss:$0 sm:$0xff]  ;;  %10411 = vst [vmem:[#allocation97_spill] sm:$0xff] %v6638_v0 }
 0x293   :  { %1468 = vmatpush.bf16.msra.mxu1 %v6613_v41 }
 0x294   :  { %1713 = vmatpush.bf16.msrb.mxu3 %v5860_v61 }
 0x297   :  { %1469 = vmatpush.bf16.msra.mxu1 %v6623_v45 }
 0x29b   :  { %1470 = vmatpush.bf16.msra.mxu1 %v6638_v0 }
 0x2d1   :  { %v1057_v53 = vpop.f32.mrf.mxu2 }
 0x2d2   :  { %v1119_v61 = vadd.f32 %v6461_v26, %v1057_v53  ;;  %v6720_v26 = vld [vmem:[%s9921_s15 + $0x18] sm:$0xff]  ;;  %v6731_v53 = vld [vmem:[%s9921_s15 + $0x10] sm:$0xff] }
 0x2d4   :  { %v1125_v6 = vadd.f32 %v6628_v57, %v1119_v61 }
 0x2d6   :  { %v1126_v2 = vmax.f32 %v1125_v6, 0.0 }
 0x2d8   :  { %v1127_v49 = vpack.c.bf16 %v1126_v2, %v1126_v2 }
 0x2d9   :  { %v1059_v48 = vpop.f32.mrf.mxu2 }
 0x2da   :  { %1271 = vmatmul.bf16.vlgmr.msrb.gmra.mxu0 %v1127_v49  ;;  %1284 = vmatmul.bf16.vlgmr.msrb.gmra.mxu1 %v1127_v49 }
 0x2db   :  { %1297 = vmatmul.bf16.vlgmr.msrb.gmra.mxu2 %v1127_v49  ;;  %1628 = vmatpush.bf16.msrb.mxu0 %v5596_v1  ;;  %v10412_v1 = vld [vmem:[#allocation12_spill] sm:$0xff] }
 0x2dc   :  { %1680 = vmatpush.bf16.msrb.mxu1 %v5702_v27  ;;  %v324_v27 = vld [vmem:[%s9920_s14] sm:$0x7] }
 0x2dd   :  { %v6725_v48 = vperm.slane %v324_v27, 1 }
 0x2df   :  { %1629 = vmatpush.bf16.msrb.mxu0 %v5608_v3  ;;  %v10413_v3 = vld [vmem:[#allocation5_spill] sm:$0xff] }
 0x2e0   :  { %1681 = vmatpush.bf16.msrb.mxu1 %v5721_v31  ;;  %v6684_v31 = vperm.slane %v324_v27, 0 }
 0x2e2   :  { %10419 = vst [vmem:[#allocation12_spill] sm:$0xff] %v6684_v31 }
 0x2e3   :  { %1630 = vmatpush.bf16.msrb.mxu0 %v5618_v5  ;;  %v10414_v5 = vld [vmem:[#allocation14_spill] sm:$0xff] }
 0x2e4   :  { %1682 = vmatpush.bf16.msrb.mxu1 %v5742_v35 }
 0x2e7   :  { %1631 = vmatpush.bf16.msrb.mxu0 %v5632_v7  ;;  %v10415_v7 = vld [vmem:[#allocation6_spill] sm:$0xff] }
 0x2e8   :  { %1683 = vmatpush.bf16.msrb.mxu1 %v5763_v39  ;;  %v6699_v39 = vld [vmem:[%s9921_s15 + $0x30] sm:$0xff]  ;;  %10422 = vst [vmem:[#allocation6_spill] sm:$0xff] %v6725_v48 }
 0x2ea   :  { %1458 = vmatmul.bf16.vlgmr.msra.gmra.mxu0 %v5688_v18  ;;  %1471 = vmatmul.bf16.vlgmr.msra.gmra.mxu1 %v5688_v18 }
 0x2eb   :  { %1632 = vmatpush.bf16.msrb.mxu0 %v5644_v9  ;;  %v10416_v9 = vld [vmem:[#allocation18_spill] sm:$0xff] }
 0x2ec   :  { %1684 = vmatpush.bf16.msrb.mxu1 %v5784_v43 }
 0x2ef   :  { %1633 = vmatpush.bf16.msrb.mxu0 %v5656_v11  ;;  %v10417_v11 = vld [vmem:[#allocation7_spill] sm:$0xff] }
 0x2f0   :  { %1685 = vmatpush.bf16.msrb.mxu1 %v5810_v51 }
 0x2f3   :  { %1634 = vmatpush.bf16.msrb.mxu0 %v5668_v13  ;;  %v10418_v13 = vld [vmem:[#allocation22_spill] sm:$0xff] }
 0x2f4   :  { %1686 = vmatpush.bf16.msrb.mxu1 %v5831_v55  ;;  %v6706_v55 = vld [vmem:[%s9921_s15 + $0x28] sm:$0xff] }
 0x2f7   :  { %1635 = vmatpush.bf16.msrb.mxu0 %v5680_v15  ;;  %v1446_v15 = vpop.f32.mrf.mxu3 }
 0x2f8   :  { %1687 = vmatpush.bf16.msrb.mxu1 %v5852_v59 }
 0x2fb   :  { %1719 = vmatpush.bf16.msra.mxu0 %v5715_v30  ;;  %v6682_v30 = vld [vmem:[%s9918_s12] sm:$0x7] }
 0x2fc   :  { %1732 = vmatpush.bf16.msra.mxu1 %v5870_v63  ;;  %v6692_v35 = vperm.slane %v6682_v30, 0  ;;  %v6723_v2 = vperm.slane %v6682_v30, 1 }
 0x2fe   :  { %10420 = vst [vmem:[#allocation5_spill] sm:$0xff] %v6692_v35 }
 0x2ff   :  { %1720 = vmatpush.bf16.msra.mxu0 %v5736_v34  ;;  %v1448_v18 = vpop.f32.mrf.mxu3  ;;  %v6689_v34 = vld [vmem:[%s9921_s15 + $0x38] sm:$0xff]  ;;  %10421 = vst [vmem:[#allocation14_spill] sm:$0xff] %v6723_v2 }
 0x300   :  { %1733 = vmatpush.bf16.msra.mxu1 %v5891_v21  ;;  %1575 = vmatpush.bf16.msra.mxu2 %v6689_v34 }
 0x303   :  { %1721 = vmatpush.bf16.msra.mxu0 %v5757_v38  ;;  %v1447_v38 = vadd.f32 %v1446_v15, %v6684_v31  ;;  %v4790_v15 = vld [vmem:[%s10318_s0 + $0x8] sm:$0xff] }
 0x304   :  { %1734 = vmatpush.bf16.msra.mxu1 %v5909_v25  ;;  %1576 = vmatpush.bf16.msra.mxu2 %v6699_v39  ;;  %v6714_v25 = vld [vmem:[%s9921_s15 + $0x20] sm:$0xff]  ;;  %v6750_v18 = vpack.c.bf16 %v4790_v15, %v4790_v15 }
 0x306   :  { %1636 = vmatmul.bf16.vlgmr.msrb.gmra.mxu0 %v6750_v18 }
 0x307   :  { %1722 = vmatpush.bf16.msra.mxu0 %v5778_v42 }
 0x308   :  { %1735 = vmatpush.bf16.msra.mxu1 %v5926_v36  ;;  %1577 = vmatpush.bf16.msra.mxu2 %v6706_v55 }
 0x30b   :  { %1723 = vmatpush.bf16.msra.mxu0 %v5799_v46 }
 0x30c   :  { %1736 = vmatpush.bf16.msra.mxu1 %v10412_v1  ;;  %1578 = vmatpush.bf16.msra.mxu2 %v6714_v25 }
 0x30f   :  { %1724 = vmatpush.bf16.msra.mxu0 %v10413_v3 }
 0x310   :  { %1737 = vmatpush.bf16.msra.mxu1 %v10414_v5  ;;  %1579 = vmatpush.bf16.msra.mxu2 %v6720_v26 }
 0x313   :  { %1725 = vmatpush.bf16.msra.mxu0 %v10415_v7 }
 0x314   :  { %1738 = vmatpush.bf16.msra.mxu1 %v10416_v9  ;;  %1580 = vmatpush.bf16.msra.mxu2 %v6731_v53  ;;  %v6739_v9 = vld [vmem:[%s9921_s15 + $0x8] sm:$0xff] }
 0x317   :  { %1726 = vmatpush.bf16.msra.mxu0 %v10417_v11 }
 0x318   :  { %1739 = vmatpush.bf16.msra.mxu1 %v10418_v13  ;;  %1581 = vmatpush.bf16.msra.mxu2 %v6739_v9  ;;  %v6745_v13 = vld [vmem:[%s9921_s15] sm:$0xff] }
 0x31c   :  { %1582 = vmatpush.bf16.msra.mxu2 %v6745_v13 }
 0x357   :  { %v1272_v42 = vpop.f32.mrf.mxu0  ;;  %v1285_v43 = vpop.f32.mrf.mxu1 }
 0x358   :  { %v1273_v46 = vadd.f32 %v1272_v42, %v6692_v35  ;;  %v1286_v3 = vadd.f32 %v1285_v43, %v6723_v2 }
 0x35a   :  { %v1476_v51 = vadd.f32 %v1447_v38, %v1273_v46 }
 0x35c   :  { %v1477_v59 = vsub.f32 0.0, %v1476_v51 }
 0x35e   :  { %v1478_v63 = vmul.f32 1.442695, %v1477_v59  ;;  %v6709_v21 = vpop.f32.mrf.mxu2  ;;  %v10423_v59 = vld [vmem:[#allocation8_spill] sm:$0xff] }
 0x35f   :  { %v1274_v36 = vpop.f32.mrf.mxu0  ;;  %v1287_v49 = vpop.f32.mrf.mxu1  ;;  %1771 = vmatpush.bf16.msrb.mxu0 %v10423_v59 }
 0x360   :  { %4980 = vpow2.f32 %v1478_v63  ;;  %v6758_v63 = vld [vmem:[%s9909_s3 + $0x78] sm:$0xff] }
 0x361   :  { %1693 = vmatpush.bf16.msrb.mxu2 %v6758_v63 }
 0x366   :  { %v4981_v47 = vpop.eup %4980  ;;  %v1300_v24 = vpop.f32.mrf.mxu2 }
 0x367   :  { %v1480_v61 = vadd.f32 1.0, %v4981_v47  ;;  %v1459_v6 = vpop.f32.mrf.mxu0  ;;  %v1472_v1 = vpop.f32.mrf.mxu1  ;;  %v10424_v24 = vld [vmem:[#allocation9_spill] sm:$0xff] }
 0x368   :  { %v1460_v5 = vadd.f32 %v1459_v6, %v6725_v48  ;;  %1772 = vmatpush.bf16.msrb.mxu0 %v10424_v24  ;;  %v6762_v6 = vperm.slane %v324_v27, 2 }
 0x369   :  { %4982 = vrcp.f32 %v1480_v61  ;;  %v1492_v47 = vand.u32 2147483648, %v1480_v61  ;;  %vm1486_vm5 = vweird.f32 %v1480_v61 }
 0x36a   :  { %v1496_v7 = vadd.f32 %v1460_v5, %v1286_v3  ;;  %10425 = vst [vmem:[#allocation18_spill] sm:$0xff] %v6762_v6  ;;  %v1490_v3 = vand.u32 2147483647, %v1480_v61  ;;  %v6767_v5 = vld [vmem:[%s9909_s3 + $0x70] sm:$0xff]  ;;  %v1473_v27 = vadd.f32 %v1472_v1, %v6762_v6 }
 0x36b   :  { %1694 = vmatpush.bf16.msrb.mxu2 %v6767_v5 }
 0x36c   :  { %v1497_v11 = vsub.f32 0.0, %v1496_v7  ;;  %vm1491_vm7 = vcmp.eq.f32.partialorder %v1490_v3, 8.507059e+37  ;;  %v10431_v3 = vld [vmem:[#allocation13_spill] sm:$0xff] }
 0x36e   :  { %v1498_v38 = vmul.f32 1.442695, %v1497_v11 }
 0x36f   :  { %v4983_v42 = vpop.eup %4982  ;;  %v1461_v43 = vpop.f32.mrf.mxu0 }
 0x370   :  { %v1474_v46 = vpop.f32.mrf.mxu1  ;;  %4984 = vpow2.f32 %v1498_v38  ;;  %v1482_v51 = vmul.f32 %v4983_v42, %v1480_v61  ;;  %vm1487_vm4 = vweird.f32 %v4983_v42  ;;  %v1493_v43 = vor.u32 1.1754944e-38, %v1492_v47 }
 0x371   :  { %vm1488_vm6 = vmor %vm1486_vm5, %vm1487_vm4  ;;  %v10426_v46 = vld [vmem:[#allocation10_spill] sm:$0xff]  ;;  %v6779_v61 = vperm.slane %v6682_v30, 2  ;;  %v6794_v30 = vld [vmem:[%s9909_s3 + $0x58] sm:$0xff] }
 0x372   :  { %v1483_v36 = vsub.f32 1.0, %v1482_v51  ;;  %1773 = vmatpush.bf16.msrb.mxu0 %v10426_v46  ;;  %v6775_v51 = vld [vmem:[%s9909_s3 + $0x68] sm:$0xff]  ;;  %10432 = vst [vmem:[#allocation9_spill] sm:$0xff] %v6794_v30 }
 0x373   :  { %10427 = vst [vmem:[#allocation7_spill] sm:$0xff] %v6775_v51  ;;  %1695 = vmatpush.bf16.msrb.mxu2 %v6775_v51  ;;  %v1299_v47 = vadd.f32 %v6709_v21, %v6779_v61  ;;  %v6801_v21 = vld [vmem:[%s9909_s3 + $0x50] sm:$0xff] }
 0x374   :  { %v1484_v49 = vmul.f32 %v4983_v42, %v1483_v36  ;;  %10428 = vst [vmem:[#allocation22_spill] sm:$0xff] %v6779_v61  ;;  %v10429_v36 = vld [vmem:[#allocation11_spill] sm:$0xff] }
 0x375   :  { %10434 = vst [vmem:[#allocation10_spill] sm:$0xff] %v6801_v21 }
 0x376   :  { %v4985_v7 = vpop.eup %4984  ;;  %v1485_v11 = vadd.f32 %v4983_v42, %v1484_v49  ;;  %1774 = vmatpush.bf16.msrb.mxu0 %v10429_v36  ;;  %v6785_v49 = vld [vmem:[%s9909_s3 + $0x60] sm:$0xff] }
 0x377   :  { %v1500_v15 = vadd.f32 1.0, %v4985_v7  ;;  %10430 = vst [vmem:[#allocation8_spill] sm:$0xff] %v6785_v49  ;;  %1696 = vmatpush.bf16.msrb.mxu2 %v6785_v49 }
 0x378   :  { %v1489_v38 = vsel %vm1488_vm6, %v4983_v42, %v1485_v11 }
 0x379   :  { %4986 = vrcp.f32 %v1500_v15  ;;  %v1494_v59 = vsel %vm1491_vm7, %v1493_v43, %v1489_v38  ;;  %v1512_v38 = vand.u32 2147483648, %v1500_v15  ;;  %v1510_v46 = vand.u32 2147483647, %v1500_v15 }
 0x37a   :  { %v1516_v42 = vmul.f32 %v1494_v59, %v1473_v27  ;;  %1775 = vmatpush.bf16.msrb.mxu0 %v10431_v3  ;;  %v10433_v27 = vld [vmem:[#allocation17_spill] sm:$0xff]  ;;  %vm1506_vm9 = vweird.f32 %v1500_v15  ;;  %v6808_v3 = vld [vmem:[%s9909_s3 + $0x48] sm:$0xff] }
 0x37b   :  { %1697 = vmatpush.bf16.msrb.mxu2 %v6794_v30  ;;  %v1513_v36 = vor.u32 1.1754944e-38, %v1512_v38  ;;  %vm1511_vm11 = vcmp.eq.f32.partialorder %v1510_v46, 8.507059e+37  ;;  %10436 = vst [vmem:[#allocation11_spill] sm:$0xff] %v6808_v3 }
 0x37c   :  { %v1517_v7 = vadd.f32 %v1516_v42, %v1299_v47  ;;  %v10435_v47 = vld [vmem:[#allocation21_spill] sm:$0xff] }
 0x37e   :  { %1776 = vmatpush.bf16.msrb.mxu0 %v10433_v27  ;;  %4988 = vtanh.f32 %v1517_v7 }
 0x37f   :  { %v4987_v1 = vpop.eup %4986  ;;  %1698 = vmatpush.bf16.msrb.mxu2 %v6801_v21  ;;  %v10461_v21 = vld [vmem:[#allocation29_spill] sm:$0xff] }
 0x380   :  { %v1502_v24 = vmul.f32 %v4987_v1, %v1500_v15  ;;  %vm1507_vm8 = vweird.f32 %v4987_v1  ;;  %v5127_v15 = vld [vmem:[%s9908_s2] sm:$0xff] }
 0x381   :  { %vm1508_vm10 = vmor %vm1506_vm9, %vm1507_vm8 }
 0x382   :  { %v1503_v11 = vsub.f32 1.0, %v1502_v24  ;;  %1777 = vmatpush.bf16.msrb.mxu0 %v10435_v47  ;;  %v6844_v47 = vld [vmem:[%s9909_s3 + $0x170] sm:$0xff] }
 0x383   :  { %1699 = vmatpush.bf16.msrb.mxu2 %v6808_v3  ;;  %10442 = vst [vmem:[#allocation98_spill] sm:$0xff] %v6844_v47 }
 0x384   :  { %v1504_v43 = vmul.f32 %v4987_v1, %v1503_v11  ;;  %v4989_v11 = vpop.eup %4988 }
 0x386   :  { %v1505_v59 = vadd.f32 %v4987_v1, %v1504_v43  ;;  %v6818_v43 = vld [vmem:[%s9909_s3 + $0x40] sm:$0xff] }
 0x387   :  { %10438 = vst [vmem:[#allocation13_spill] sm:$0xff] %v6818_v43  ;;  %1700 = vmatpush.bf16.msrb.mxu2 %v6818_v43  ;;  %v10460_v43 = vld [vmem:[#allocation28_spill] sm:$0xff] }
 0x388   :  { %v1509_v42 = vsel %vm1508_vm10, %v4987_v1, %v1505_v59  ;;  %v10437_v1 = vld [vmem:[#allocation25_spill] sm:$0xff] }
 0x389   :  { %v1514_v24 = vsel %vm1511_vm11, %v1513_v36, %v1509_v42  ;;  %1778 = vmatpush.bf16.msrb.mxu0 %v10437_v1  ;;  %v6832_v36 = vld [vmem:[%s9909_s3 + $0x178] sm:$0xff] }
 0x38a   :  { %v1519_v7 = vsub.f32 1.0, %v1514_v24  ;;  %v1521_v38 = vmul.f32 %v5127_v15, %v1514_v24  ;;  %10440 = vst [vmem:[#allocation21_spill] sm:$0xff] %v6832_v36  ;;  %v6838_v42 = vld [vmem:[%s9909_s3 + $0x1b8] sm:$0xff]  ;;  %v6850_v24 = vld [vmem:[%s9909_s3 + $0x1b0] sm:$0xff]  ;;  %v6874_v15 = vld [vmem:[%s9909_s3 + $0x1a0] sm:$0xff] }
 0x38b   :  { %10441 = vst [vmem:[#allocation25_spill] sm:$0xff] %v6838_v42  ;;  %v6886_v1 = vld [vmem:[%s9909_s3 + $0x198] sm:$0xff] }
 0x38c   :  { %v1520_v27 = vmul.f32 %v4989_v11, %v1519_v7  ;;  %10443 = vst [vmem:[#allocation99_spill] sm:$0xff] %v6850_v24  ;;  %v6856_v7 = vld [vmem:[%s9909_s3 + $0x168] sm:$0xff] }
 0x38d   :  { %10444 = vst [vmem:[#allocation100_spill] sm:$0xff] %v6856_v7  ;;  %v6862_v11 = vld [vmem:[%s9909_s3 + $0x1a8] sm:$0xff] }
 0x38e   :  { %v6821_v46 = vadd.f32 %v1521_v38, %v1520_v27  ;;  %10445 = vst [vmem:[#allocation101_spill] sm:$0xff] %v6862_v11  ;;  %v6868_v27 = vld [vmem:[%s9909_s3 + $0x160] sm:$0xff]  ;;  %v6880_v38 = vld [vmem:[%s9909_s3 + $0x158] sm:$0xff] }
 0x38f   :  { %10446 = vst [vmem:[#allocation102_spill] sm:$0xff] %v6868_v27 }
 0x390   :  { %10439 = vst [vmem:[#allocation17_spill] sm:$0xff] %v6821_v46  ;;  %v6825_v59 = vpack.c.bf16 %v6821_v46, %v6821_v46 }
 0x391   :  { %10447 = vst [vmem:[#allocation103_spill] sm:$0xff] %v6874_v15 }
 0x392   :  { %1583 = vmatmul.bf16.vlgmr.msra.gmra.mxu2 %v6825_v59  ;;  %1623 = vmatmul.bf16.vlgmr.msra.gmra.mxu3 %v6825_v59  ;;  %10448 = vst [vmem:[#allocation104_spill] sm:$0xff] %v6880_v38 }
 0x393   :  { %1745 = vmatpush.bf16.msra.mxu2 %v6832_v36  ;;  %1758 = vmatpush.bf16.msra.mxu3 %v6838_v42  ;;  %10449 = vst [vmem:[#allocation105_spill] sm:$0xff] %v6886_v1 }
 0x397   :  { %1746 = vmatpush.bf16.msra.mxu2 %v6844_v47  ;;  %1759 = vmatpush.bf16.msra.mxu3 %v6850_v24  ;;  %v10454_v24 = vld [vmem:[#allocation23_spill] sm:$0xff]  ;;  %v10455_v47 = vld [vmem:[#allocation24_spill] sm:$0xff] }
 0x39b   :  { %1747 = vmatpush.bf16.msra.mxu2 %v6856_v7  ;;  %1760 = vmatpush.bf16.msra.mxu3 %v6862_v11  ;;  %v10451_v11 = vld [vmem:[#allocation16_spill] sm:$0xff]  ;;  %v10452_v7 = vld [vmem:[#allocation19_spill] sm:$0xff] }
 0x39f   :  { %1748 = vmatpush.bf16.msra.mxu2 %v6868_v27  ;;  %1761 = vmatpush.bf16.msra.mxu3 %v6874_v15  ;;  %v10450_v27 = vld [vmem:[#allocation15_spill] sm:$0xff]  ;;  %v10453_v15 = vld [vmem:[#allocation20_spill] sm:$0xff] }
 0x3a3   :  { %1749 = vmatpush.bf16.msra.mxu2 %v6880_v38  ;;  %1762 = vmatpush.bf16.msra.mxu3 %v6886_v1  ;;  %v1637_v38 = vpop.f32.mrf.mxu0 }
 0x3a7   :  { %1750 = vmatpush.bf16.msra.mxu2 %v10450_v27  ;;  %1763 = vmatpush.bf16.msra.mxu3 %v10451_v11  ;;  %v6900_v27 = vld [vmem:[%s9913_s7] ss:$0 sm:$0xff] }
 0x3a8   :  { %10457 = vst [vmem:[#allocation16_spill] sm:$0xff] %v6900_v27 }
 0x3ab   :  { %1751 = vmatpush.bf16.msra.mxu2 %v10452_v7  ;;  %1764 = vmatpush.bf16.msra.mxu3 %v10453_v15  ;;  %v1639_v42 = vpop.f32.mrf.mxu0 }
 0x3af   :  { %1752 = vmatpush.bf16.msra.mxu2 %v10454_v24  ;;  %1765 = vmatpush.bf16.msra.mxu3 %v10455_v47 }
 0x415   :  { %v6895_v36 = vpop.f32.mrf.mxu2  ;;  %v1624_v46 = vpop.f32.mrf.mxu3 }
 0x416   :  { %10456 = vst [vmem:[#allocation15_spill] sm:$0xff] %v6895_v36  ;;  %v1638_v61 = vadd.f32 %v1637_v38, %v1624_v46 }
 0x418   :  { %v1641_v11 = vadd.f32 %v6900_v27, %v1638_v61 }
 0x41a   :  { %1642 = vmax.xlane.f32.xlu1 %v1641_v11 }
 0x41d   :  { %v1586_v7 = vpop.f32.mrf.mxu2  ;;  %v1626_v15 = vpop.f32.mrf.mxu3 }
 0x48d   :  { %v1643_v1 = vpop.xlane.xlu1 %1642 }
 0x48e   :  { %v1644_v24 = vsub.f32 %v1641_v11, %v1643_v1 }
 0x490   :  { %v1645_v6 = vmul.f32 1.442695, %v1644_v24  ;;  %v10459_v24 = vld [vmem:[#allocation27_spill] sm:$0xff] }
 0x492   :  { %4990 = vpow2.f32 %v1645_v6  ;;  %v10458_v6 = vld [vmem:[#allocation26_spill] sm:$0xff] }
 0x498   :  { %v4991_v47 = vpop.eup %4990 }
 0x499   :  { %1647 = vadd.xlane.f32.xlu1 %v4991_v47 }
 0x50c   :  { %v1648_v42 = vpop.xlane.xlu1 %1647 }
 0x50d   :  { %4992 = vrcp.f32 %v1648_v42  ;;  %v1660_v48 = vand.u32 2147483648, %v1648_v42  ;;  %v1658_v35 = vand.u32 2147483647, %v1648_v42  ;;  %vm1654_vm13 = vweird.f32 %v1648_v42 }
 0x50f   :  { %v1661_v61 = vor.u32 1.1754944e-38, %v1660_v48  ;;  %vm1659_vm15 = vcmp.eq.f32.partialorder %v1658_v35, 8.507059e+37  ;;  %v10463_v35 = vld [vmem:[#allocation36_spill] sm:$0xff]  ;;  %v10465_v48 = vld [vmem:[#allocation54_spill] sm:$0xff] }
 0x513   :  { %v4993_v36 = vpop.eup %4992 }
 0x514   :  { %v1650_v46 = vmul.f32 %v4993_v36, %v1648_v42  ;;  %vm1655_vm12 = vweird.f32 %v4993_v36  ;;  %v10473_v42 = vld [vmem:[#allocation34_spill] sm:$0xff] }
 0x515   :  { %vm1656_vm14 = vmor %vm1654_vm13, %vm1655_vm12 }
 0x516   :  { %v1651_v38 = vsub.f32 1.0, %v1650_v46 }
 0x518   :  { %v1652_v2 = vmul.f32 %v4993_v36, %v1651_v38 }
 0x51a   :  { %v1653_v31 = vadd.f32 %v4993_v36, %v1652_v2  ;;  %v10464_v2 = vld [vmem:[#allocation50_spill] sm:$0xff] }
 0x51c   :  { %v1657_v7 = vsel %vm1656_vm14, %v4993_v36, %v1653_v31  ;;  %v10462_v31 = vld [vmem:[#allocation30_spill] sm:$0xff]  ;;  %v10466_v36 = vld [vmem:[#allocation31_spill] sm:$0xff] }
 0x51d   :  { %v1662_v1 = vsel %vm1659_vm15, %v1661_v61, %v1657_v7  ;;  %v10474_v7 = vld [vmem:[#allocation35_spill] sm:$0xff] }
 0x51e   :  { %v1663_v11 = vmul.f32 %v4991_v47, %v1662_v1  ;;  %v10472_v47 = vld [vmem:[#allocation40_spill] sm:$0xff] }
 0x520   :  { %v1664_v15 = vmul.f32 %v1663_v11, %v10458_v6  ;;  %v1665_v27 = vmul.f32 %v1663_v11, %v10459_v24  ;;  %v1666_v3 = vmul.f32 %v1663_v11, %v10460_v43  ;;  %v1667_v46 = vmul.f32 %v1663_v11, %v10461_v21  ;;  %v10467_v43 = vld [vmem:[#allocation38_spill] sm:$0xff]  ;;  %v10468_v21 = vld [vmem:[#allocation52_spill] sm:$0xff] }
 0x521   :  { %v1670_v61 = vmul.f32 %v1663_v11, %v10473_v42  ;;  %v1671_v1 = vmul.f32 %v1663_v11, %v10474_v7  ;;  %v10475_v6 = vld [vmem:[#allocation56_spill] sm:$0xff]  ;;  %v10487_v42 = vld [vmem:[#allocation47_spill] sm:$0xff] }
 0x522   :  { %v1672_v30 = vpack.c.bf16 %v1664_v15, %v1664_v15  ;;  %v1673_v38 = vpack.c.bf16 %v1665_v27, %v1665_v27  ;;  %v1674_v49 = vpack.c.bf16 %v1666_v3, %v1666_v3  ;;  %v1675_v51 = vpack.c.bf16 %v1667_v46, %v1667_v46  ;;  %v10471_v3 = vld [vmem:[#allocation33_spill] sm:$0xff]  ;;  %v10476_v15 = vld [vmem:[#allocation39_spill] sm:$0xff] }
 0x523   :  { %v1669_v27 = vmul.f32 %v1663_v11, %v10471_v3  ;;  %v10484_v3 = vld [vmem:[#allocation46_spill] sm:$0xff]  ;;  %v10489_v7 = vld [vmem:[#allocation51_spill] sm:$0xff] }
 0x524   :  { %1688 = vmatmul.bf16.vlgmr.msrb.gmra.mxu1 %v1672_v30  ;;  %1701 = vmatmul.bf16.vlgmr.msrb.gmra.mxu2 %v1673_v38  ;;  %v10469_v30 = vld [vmem:[#allocation37_spill] sm:$0xff]  ;;  %v10477_v38 = vld [vmem:[#allocation42_spill] sm:$0xff] }
 0x525   :  { %1714 = vmatmul.bf16.vlgmr.msrb.gmra.mxu3 %v1674_v49  ;;  %1727 = vmatmul.bf16.vlgmr.msra.gmra.mxu0 %v1675_v51  ;;  %v10470_v49 = vld [vmem:[#allocation32_spill] sm:$0xff]  ;;  %v1677_v46 = vpack.c.bf16 %v1669_v27, %v1669_v27  ;;  %v10485_v27 = vld [vmem:[#allocation45_spill] sm:$0xff] }
 0x526   :  { %1798 = vmatpush.bf16.msrb.mxu2 %v10462_v31  ;;  %1785 = vmatpush.bf16.msrb.mxu1 %v10463_v35  ;;  %v1668_v51 = vmul.f32 %v1663_v11, %v10470_v49  ;;  %v1678_v31 = vpack.c.bf16 %v1670_v61, %v1670_v61  ;;  %v1679_v35 = vpack.c.bf16 %v1671_v1, %v1671_v1  ;;  %v10480_v11 = vld [vmem:[#allocation41_spill] sm:$0xff]  ;;  %v10482_v49 = vld [vmem:[#allocation64_spill] sm:$0xff]  ;;  %v10490_v1 = vld [vmem:[#allocation55_spill] sm:$0xff] }
 0x527   :  { %1814 = vmatpush.bf16.msrb.mxu3 %v10464_v2  ;;  %1827 = vmatpush.bf16.msra.mxu0 %v10465_v48  ;;  %v10488_v61 = vld [vmem:[#allocation49_spill] sm:$0xff] }
 0x528   :  { %v1676_v24 = vpack.c.bf16 %v1668_v51, %v1668_v51  ;;  %v10483_v51 = vld [vmem:[#allocation43_spill] sm:$0xff] }
 0x52a   :  { %1799 = vmatpush.bf16.msrb.mxu2 %v10466_v36  ;;  %1786 = vmatpush.bf16.msrb.mxu1 %v10467_v43  ;;  %v10478_v36 = vld [vmem:[#allocation60_spill] sm:$0xff]  ;;  %v10479_v43 = vld [vmem:[#allocation65_spill] sm:$0xff] }
 0x52b   :  { %1815 = vmatpush.bf16.msrb.mxu3 %v10468_v21  ;;  %1828 = vmatpush.bf16.msra.mxu0 %v6270_v56 }
 0x52e   :  { %1800 = vmatpush.bf16.msrb.mxu2 %v10469_v30  ;;  %1787 = vmatpush.bf16.msrb.mxu1 %v10472_v47  ;;  %v10481_v30 = vld [vmem:[#allocation44_spill] sm:$0xff] }
 0x52f   :  { %1816 = vmatpush.bf16.msrb.mxu3 %v10475_v6  ;;  %1829 = vmatpush.bf16.msra.mxu0 %v6302_v28  ;;  %v10486_v47 = vld [vmem:[#allocation48_spill] sm:$0xff] }
 0x532   :  { %1801 = vmatpush.bf16.msrb.mxu2 %v10476_v15  ;;  %1788 = vmatpush.bf16.msrb.mxu1 %v10477_v38  ;;  %v10491_v15 = vld [vmem:[#allocation53_spill] sm:$0xff]  ;;  %v10494_v38 = vld [vmem:[#allocation63_spill] sm:$0xff] }
 0x533   :  { %1817 = vmatpush.bf16.msrb.mxu3 %v10478_v36  ;;  %1830 = vmatpush.bf16.msra.mxu0 %v10479_v43 }
 0x534   :  { %1740 = vmatmul.bf16.vlgmr.msra.gmra.mxu1 %v1676_v24  ;;  %1753 = vmatmul.bf16.vlgmr.msra.gmra.mxu2 %v1677_v46  ;;  %v10492_v24 = vld [vmem:[#allocation59_spill] sm:$0xff]  ;;  %v10493_v46 = vld [vmem:[#allocation57_spill] sm:$0xff] }
 0x535   :  { %1766 = vmatmul.bf16.vlgmr.msra.gmra.mxu3 %v1678_v31  ;;  %1779 = vmatmul.bf16.vlgmr.msrb.gmra.mxu0 %v1679_v35  ;;  %v10496_v31 = vld [vmem:[#allocation67_spill] sm:$0xff]  ;;  %v10497_v35 = vld [vmem:[#allocation66_spill] sm:$0xff] }
 0x536   :  { %1802 = vmatpush.bf16.msrb.mxu2 %v10480_v11  ;;  %1789 = vmatpush.bf16.msrb.mxu1 %v10481_v30  ;;  %v10498_v11 = vld [vmem:[#allocation91_spill] sm:$0xff] }
 0x537   :  { %1818 = vmatpush.bf16.msrb.mxu3 %v10482_v49  ;;  %1831 = vmatpush.bf16.msra.mxu0 %v6393_v52  ;;  %v10499_v30 = vld [vmem:[#allocation79_spill] sm:$0xff] }
 0x53a   :  { %1803 = vmatpush.bf16.msrb.mxu2 %v10483_v51  ;;  %1790 = vmatpush.bf16.msrb.mxu1 %v10484_v3  ;;  %v10500_v51 = vld [vmem:[#allocation84_spill] sm:$0xff] }
 0x53b   :  { %1819 = vmatpush.bf16.msrb.mxu3 %v6354_v16  ;;  %1832 = vmatpush.bf16.msra.mxu0 %v6422_v50  ;;  %v6977_v3 = vld [vmem:[%s9912_s6 + $0x38] sm:$0xff] }
 0x53c   :  { %10501 = vst [vmem:[#allocation19_spill] sm:$0xff] %v6977_v3 }
 0x53e   :  { %1804 = vmatpush.bf16.msrb.mxu2 %v10485_v27  ;;  %1791 = vmatpush.bf16.msrb.mxu1 %v10486_v47  ;;  %v10502_v27 = vld [vmem:[#allocation93_spill] sm:$0xff]  ;;  %v6986_v47 = vld [vmem:[%s9912_s6 + $0x30] sm:$0xff] }
 0x53f   :  { %1820 = vmatpush.bf16.msrb.mxu3 %v6369_v44  ;;  %1833 = vmatpush.bf16.msra.mxu0 %v6474_v8  ;;  %10503 = vst [vmem:[#allocation20_spill] sm:$0xff] %v6986_v47 }
 0x542   :  { %1805 = vmatpush.bf16.msrb.mxu2 %v10487_v42  ;;  %1792 = vmatpush.bf16.msrb.mxu1 %v10488_v61  ;;  %v6992_v42 = vld [vmem:[%s9912_s6 + $0x28] sm:$0xff]  ;;  %v6998_v61 = vld [vmem:[%s9912_s6 + $0x20] sm:$0xff] }
 0x543   :  { %1821 = vmatpush.bf16.msrb.mxu3 %v6382_v62  ;;  %1834 = vmatpush.bf16.msra.mxu0 %v6502_v23  ;;  %10504 = vst [vmem:[#allocation23_spill] sm:$0xff] %v6992_v42 }
 0x544   :  { %10505 = vst [vmem:[#allocation24_spill] sm:$0xff] %v6998_v61 }
 0x545   :  { %1806 = vmatmul.bf16.vlgmr.msrb.gmra.mxu2 %v6750_v18  ;;  %v10495_v18 = vld [vmem:[#allocation62_spill] sm:$0xff] }
 0x546   :  { %1853 = vmatpush.bf16.msra.mxu2 %v10489_v7  ;;  %1840 = vmatpush.bf16.msra.mxu1 %v10490_v1 }
 0x547   :  { %1866 = vmatpush.bf16.msra.mxu3 %v6407_v60  ;;  %1879 = vmatpush.bf16.msrb.mxu0 %v6526_v12 }
 0x54a   :  { %1854 = vmatpush.bf16.msra.mxu2 %v10491_v15  ;;  %1841 = vmatpush.bf16.msra.mxu1 %v10492_v24 }
 0x54b   :  { %1867 = vmatpush.bf16.msra.mxu3 %v6446_v58  ;;  %1880 = vmatpush.bf16.msrb.mxu0 %v6548_v19 }
 0x54e   :  { %1855 = vmatpush.bf16.msra.mxu2 %v10493_v46  ;;  %1842 = vmatpush.bf16.msra.mxu1 %v10494_v38 }
 0x54f   :  { %1868 = vmatpush.bf16.msra.mxu3 %v6489_v14  ;;  %1881 = vmatpush.bf16.msrb.mxu0 %v6564_v33 }
 0x552   :  { %1856 = vmatpush.bf16.msra.mxu2 %v10495_v18  ;;  %1843 = vmatpush.bf16.msra.mxu1 %v10496_v31 }
 0x553   :  { %1869 = vmatpush.bf16.msra.mxu3 %v6516_v4  ;;  %1882 = vmatpush.bf16.msrb.mxu0 %v6583_v37 }
 0x556   :  { %1857 = vmatpush.bf16.msra.mxu2 %v10497_v35  ;;  %1844 = vmatpush.bf16.msra.mxu1 %v6395_v40 }
 0x557   :  { %1870 = vmatpush.bf16.msra.mxu3 %v6535_v22  ;;  %1883 = vmatpush.bf16.msrb.mxu0 %v6602_v29 }
 0x55a   :  { %1858 = vmatpush.bf16.msra.mxu2 %v6366_v32  ;;  %1845 = vmatpush.bf16.msra.mxu1 %v6434_v17 }
 0x55b   :  { %1871 = vmatpush.bf16.msra.mxu3 %v6560_v10  ;;  %1884 = vmatpush.bf16.msrb.mxu0 %v6613_v41 }
 0x55e   :  { %1859 = vmatpush.bf16.msra.mxu2 %v6420_v54  ;;  %1846 = vmatpush.bf16.msra.mxu1 %v6483_v20 }
 0x55f   :  { %1872 = vmatpush.bf16.msra.mxu3 %v10498_v11  ;;  %1885 = vmatpush.bf16.msrb.mxu0 %v6623_v45 }
 0x562   :  { %1860 = vmatpush.bf16.msra.mxu2 %v10499_v30  ;;  %1847 = vmatpush.bf16.msra.mxu1 %v10500_v51 }
 0x563   :  { %1873 = vmatpush.bf16.msra.mxu3 %v10502_v27  ;;  %1886 = vmatpush.bf16.msrb.mxu0 %v6638_v0  ;;  %v7004_v0 = vld [vmem:[%s9912_s6 + $0x18] sm:$0xff] }
 0x564   :  { %10506 = vst [vmem:[#allocation26_spill] sm:$0xff] %v7004_v0 }
 0x565   :  { %1861 = vmatmul.bf16.vlgmr.msra.gmra.mxu2 %v6825_v59 }
 0x566   :  { %1980 = vmatpush.bf16.msrb.mxu2 %v6977_v3 }
 0x56a   :  { %1981 = vmatpush.bf16.msrb.mxu2 %v6986_v47  ;;  %v7010_v47 = vld [vmem:[%s9912_s6 + $0x10] sm:$0xff] }
 0x56b   :  { %10507 = vst [vmem:[#allocation27_spill] sm:$0xff] %v7010_v47 }
 0x56e   :  { %1982 = vmatpush.bf16.msrb.mxu2 %v6992_v42  ;;  %v7016_v42 = vld [vmem:[%s9912_s6 + $0x8] sm:$0xff] }
 0x56f   :  { %10508 = vst [vmem:[#allocation28_spill] sm:$0xff] %v7016_v42 }
 0x572   :  { %1983 = vmatpush.bf16.msrb.mxu2 %v6998_v61  ;;  %v7022_v61 = vld [vmem:[%s9912_s6] sm:$0xff] }
 0x573   :  { %10509 = vst [vmem:[#allocation29_spill] sm:$0xff] %v7022_v61 }
 0x576   :  { %1984 = vmatpush.bf16.msrb.mxu2 %v7004_v0  ;;  %v7028_v0 = vld [vmem:[%s9909_s3 + $0xb8] sm:$0xff] }
 0x577   :  { %10510 = vst [vmem:[#allocation30_spill] sm:$0xff] %v7028_v0 }
 0x57a   :  { %1985 = vmatpush.bf16.msrb.mxu2 %v7010_v47  ;;  %v7034_v47 = vld [vmem:[%s9909_s3 + $0xb0] sm:$0xff] }
 0x57b   :  { %10511 = vst [vmem:[#allocation36_spill] sm:$0xff] %v7034_v47 }
 0x57e   :  { %1986 = vmatpush.bf16.msrb.mxu2 %v7016_v42  ;;  %v7040_v42 = vld [vmem:[%s9909_s3 + $0xa8] sm:$0xff] }
 0x57f   :  { %10512 = vst [vmem:[#allocation31_spill] sm:$0xff] %v7040_v42 }
 0x582   :  { %1987 = vmatpush.bf16.msrb.mxu2 %v7022_v61  ;;  %v7046_v61 = vld [vmem:[%s9909_s3 + $0xa0] sm:$0xff] }
 0x583   :  { %10513 = vst [vmem:[#allocation38_spill] sm:$0xff] %v7046_v61 }
 0x586   :  { %2071 = vmatpush.bf16.msra.mxu2 %v7028_v0  ;;  %v7052_v0 = vld [vmem:[%s9909_s3 + $0x98] sm:$0xff] }
 0x587   :  { %10514 = vst [vmem:[#allocation37_spill] sm:$0xff] %v7052_v0 }
 0x58a   :  { %2072 = vmatpush.bf16.msra.mxu2 %v7034_v47  ;;  %v7058_v47 = vld [vmem:[%s9909_s3 + $0x90] sm:$0xff] }
 0x58b   :  { %10515 = vst [vmem:[#allocation32_spill] sm:$0xff] %v7058_v47 }
 0x58e   :  { %2073 = vmatpush.bf16.msra.mxu2 %v7040_v42  ;;  %v7064_v42 = vld [vmem:[%s9909_s3 + $0x88] sm:$0xff] }
 0x58f   :  { %10516 = vst [vmem:[#allocation33_spill] sm:$0xff] %v7064_v42 }
 0x592   :  { %2074 = vmatpush.bf16.msra.mxu2 %v7046_v61  ;;  %v7070_v61 = vld [vmem:[%s9909_s3 + $0x80] sm:$0xff] }
 0x593   :  { %10517 = vst [vmem:[#allocation40_spill] sm:$0xff] %v7070_v61 }
 0x596   :  { %2075 = vmatpush.bf16.msra.mxu2 %v7052_v0 }
 0x59a   :  { %2076 = vmatpush.bf16.msra.mxu2 %v7058_v47 }
 0x59e   :  { %2077 = vmatpush.bf16.msra.mxu2 %v7064_v42 }
 0x5a1   :  { %v1689_v0 = vpop.f32.mrf.mxu1 }
 0x5a2   :  { %2078 = vmatpush.bf16.msra.mxu2 %v7070_v61  ;;  %v1728_v27 = vpop.f32.mrf.mxu0 }
 0x5a7   :  { %v1702_v3 = vpop.f32.mrf.mxu2 }
 0x5a8   :  { %v1715_v51 = vpop.f32.mrf.mxu3  ;;  %v1703_v45 = vadd.f32 %v1702_v3, %v1689_v0  ;;  %v7107_v0 = vld [vmem:[%s9909_s3 + $0x30] sm:$0xff]  ;;  %v10523_v3 = vld [vmem:[#allocation13_spill] sm:$0xff] }
 0x5a9   :  { %v1691_v30 = vpop.f32.mrf.mxu1 }
 0x5aa   :  { %v1730_v47 = vpop.f32.mrf.mxu0  ;;  %v1716_v20 = vadd.f32 %v1715_v51, %v1703_v45  ;;  %v7094_v45 = vld [vmem:[%s9909_s3 + $0x38] sm:$0xff]  ;;  %v7180_v30 = vld [vmem:[%s9911_s5] sm:$0xff] }
 0x5ab   :  { %v7186_v51 = vld [vmem:[%s9909_s3 + $0xf8] sm:$0xff] }
 0x5ac   :  { %v1729_v42 = vadd.f32 %v1728_v27, %v1716_v20  ;;  %v7193_v27 = vld [vmem:[%s9909_s3] sm:$0xff]  ;;  %v7199_v47 = vld [vmem:[%s9909_s3 + $0x138] sm:$0xff] }
 0x5ad   :  { %10524 = vst [vmem:[#allocation34_spill] sm:$0xff] %v7193_v27 }
 0x5ae   :  { %10525 = vst [vmem:[#allocation35_spill] sm:$0xff] %v7199_v47 }
 0x5af   :  { %v1704_v11 = vpop.f32.mrf.mxu2 }
 0x5b0   :  { %v1717_v54 = vpop.f32.mrf.mxu3  ;;  %v7174_v11 = vld [vmem:[%s9909_s3 + $0x8] sm:$0xff] }
 0x5b1   :  { %v1741_v41 = vpop.f32.mrf.mxu1 }
 0x5b2   :  { %v1780_v10 = vpop.f32.mrf.mxu0  ;;  %v1742_v17 = vadd.f32 %v1741_v41, %v1729_v42  ;;  %v7087_v41 = vld [vmem:[%s9911_s5 + $0x38] sm:$0xff]  ;;  %v7205_v42 = vld [vmem:[%s9909_s3 + $0xf0] sm:$0xff] }
 0x5b3   :  { %10526 = vst [vmem:[#allocation39_spill] sm:$0xff] %v7205_v42 }
 0x5b7   :  { %v1754_v32 = vpop.f32.mrf.mxu2 }
 0x5b8   :  { %v1755_v29 = vadd.f32 %v1754_v32, %v1742_v17  ;;  %v1767_v22 = vpop.f32.mrf.mxu3 }
 0x5b9   :  { %v1743_v40 = vpop.f32.mrf.mxu1 }
 0x5ba   :  { %v1768_v35 = vadd.f32 %v1767_v22, %v1755_v29  ;;  %v1782_v61 = vpop.f32.mrf.mxu0 }
 0x5bb   :  { %v7211_v61 = vld [vmem:[%s9909_s3 + $0x130] sm:$0xff] }
 0x5bc   :  { %v1781_v37 = vadd.f32 %v1780_v10, %v1768_v35  ;;  %v10522_v35 = vld [vmem:[#allocation11_spill] sm:$0xff]  ;;  %10527 = vst [vmem:[#allocation42_spill] sm:$0xff] %v7211_v61 }
 0x5be   :  { %v1784_v4 = vpack.c.bf16 %v1781_v37, %v1781_v37 }
 0x5bf   :  { %v1756_v31 = vpop.f32.mrf.mxu2 }
 0x5c0   :  { %v1769_v18 = vpop.f32.mrf.mxu3  ;;  %1793 = vmatmul.bf16.vlgmr.msrb.gmra.mxu1 %v1784_v4  ;;  %v7167_v31 = vld [vmem:[%s9911_s5 + $0x8] sm:$0xff] }
 0x5c1   :  { %1940 = vmatpush.bf16.msrb.mxu1 %v6689_v34  ;;  %v7113_v34 = vld [vmem:[%s9911_s5 + $0x28] sm:$0xff]  ;;  %v7161_v18 = vld [vmem:[%s9909_s3 + $0x10] sm:$0xff] }
 0x5c5   :  { %1941 = vmatpush.bf16.msrb.mxu1 %v6699_v39  ;;  %v10518_v39 = vld [vmem:[#allocation7_spill] sm:$0xff] }
 0x5c8   :  { %v1807_v54 = vpop.f32.mrf.mxu2 }
 0x5c9   :  { %1942 = vmatpush.bf16.msrb.mxu1 %v6706_v55  ;;  %v7120_v55 = vld [vmem:[%s9909_s3 + $0x28] sm:$0xff] }
 0x5cd   :  { %1943 = vmatpush.bf16.msrb.mxu1 %v6714_v25  ;;  %v7126_v25 = vld [vmem:[%s9911_s5 + $0x20] sm:$0xff] }
 0x5d0   :  { %v1809_v20 = vpop.f32.mrf.mxu2 }
 0x5d1   :  { %1944 = vmatpush.bf16.msrb.mxu1 %v6720_v26  ;;  %v10519_v26 = vld [vmem:[#allocation8_spill] sm:$0xff]  ;;  %v7223_v20 = vld [vmem:[%s9909_s3 + $0x128] sm:$0xff] }
 0x5d2   :  { %10529 = vst [vmem:[#allocation44_spill] sm:$0xff] %v7223_v20 }
 0x5d5   :  { %1945 = vmatpush.bf16.msrb.mxu1 %v6731_v53  ;;  %v7133_v53 = vld [vmem:[%s9909_s3 + $0x20] sm:$0xff] }
 0x5d9   :  { %1946 = vmatpush.bf16.msrb.mxu1 %v6739_v9  ;;  %v7141_v9 = vld [vmem:[%s9911_s5 + $0x18] sm:$0xff] }
 0x5dd   :  { %1947 = vmatpush.bf16.msrb.mxu1 %v6745_v13  ;;  %v10520_v13 = vld [vmem:[#allocation9_spill] sm:$0xff] }
 0x5e8   :  { %v7081_v32 = vpop.f32.mrf.mxu2 }
 0x5f0   :  { %v1864_v40 = vpop.f32.mrf.mxu2 }
 0x5f1   :  { %v7229_v40 = vld [vmem:[%s9909_s3 + $0xe0] sm:$0xff] }
 0x5f2   :  { %10530 = vst [vmem:[#allocation43_spill] sm:$0xff] %v7229_v40 }
 0x63d   :  { %v1794_v17 = vpop.f32.mrf.mxu1 }
 0x63e   :  { %v1808_v4 = vadd.f32 %v1807_v54, %v1794_v17  ;;  %v7217_v54 = vld [vmem:[%s9909_s3 + $0xe8] sm:$0xff]  ;;  %v7235_v17 = vld [vmem:[%s9909_s3 + $0x120] sm:$0xff] }
 0x63f   :  { %10528 = vst [vmem:[#allocation41_spill] sm:$0xff] %v7217_v54 }
 0x640   :  { %v1811_v22 = vadd.f32 %v6628_v57, %v1808_v4  ;;  %v7100_v57 = vld [vmem:[%s9911_s5 + $0x30] sm:$0xff]  ;;  %10531 = vst [vmem:[#allocation46_spill] sm:$0xff] %v7235_v17  ;;  %v7241_v4 = vld [vmem:[%s9909_s3 + $0xd8] sm:$0xff] }
 0x641   :  { %10532 = vst [vmem:[#allocation45_spill] sm:$0xff] %v7241_v4 }
 0x642   :  { %v1812_v10 = vmax.f32 %v1811_v22, 0.0  ;;  %v7247_v22 = vld [vmem:[%s9909_s3 + $0x118] sm:$0xff] }
 0x643   :  { %10533 = vst [vmem:[#allocation48_spill] sm:$0xff] %v7247_v22 }
 0x644   :  { %v1813_v37 = vpack.c.bf16 %v1812_v10, %v1812_v10  ;;  %v7253_v10 = vld [vmem:[%s9909_s3 + $0xd0] sm:$0xff] }
 0x645   :  { %v1796_v29 = vpop.f32.mrf.mxu1  ;;  %10534 = vst [vmem:[#allocation47_spill] sm:$0xff] %v7253_v10 }
 0x646   :  { %1822 = vmatmul.bf16.vlgmr.msrb.gmra.mxu3 %v1813_v37  ;;  %1835 = vmatmul.bf16.vlgmr.msra.gmra.mxu0 %v1813_v37  ;;  %v7265_v29 = vld [vmem:[%s9909_s3 + $0xc8] sm:$0xff] }
 0x647   :  { %1848 = vmatmul.bf16.vlgmr.msra.gmra.mxu1 %v1813_v37  ;;  %1993 = vmatpush.bf16.msrb.mxu3 %v7087_v41  ;;  %v7259_v37 = vld [vmem:[%s9909_s3 + $0x110] sm:$0xff]  ;;  %10536 = vst [vmem:[#allocation7_spill] sm:$0xff] %v7265_v29 }
 0x648   :  { %2058 = vmatpush.bf16.msra.mxu1 %v6758_v63  ;;  %2045 = vmatpush.bf16.msra.mxu0 %v7094_v45  ;;  %v7148_v63 = vld [vmem:[%s9909_s3 + $0x18] sm:$0xff]  ;;  %10535 = vst [vmem:[#allocation49_spill] sm:$0xff] %v7259_v37 }
 0x64b   :  { %1994 = vmatpush.bf16.msrb.mxu3 %v7100_v57 }
 0x64c   :  { %2059 = vmatpush.bf16.msra.mxu1 %v6767_v5  ;;  %2046 = vmatpush.bf16.msra.mxu0 %v7107_v0  ;;  %v7154_v5 = vld [vmem:[%s9911_s5 + $0x10] sm:$0xff] }
 0x64f   :  { %1995 = vmatpush.bf16.msrb.mxu3 %v7113_v34 }
 0x650   :  { %2060 = vmatpush.bf16.msra.mxu1 %v10518_v39  ;;  %2047 = vmatpush.bf16.msra.mxu0 %v7120_v55  ;;  %v7271_v39 = vld [vmem:[%s9909_s3 + $0x108] sm:$0xff] }
 0x651   :  { %10537 = vst [vmem:[#allocation8_spill] sm:$0xff] %v7271_v39 }
 0x653   :  { %1996 = vmatpush.bf16.msrb.mxu3 %v7126_v25 }
 0x654   :  { %2061 = vmatpush.bf16.msra.mxu1 %v10519_v26  ;;  %2048 = vmatpush.bf16.msra.mxu0 %v7133_v53  ;;  %v7277_v26 = vld [vmem:[%s9909_s3 + $0xc0] sm:$0xff] }
 0x655   :  { %10538 = vst [vmem:[#allocation9_spill] sm:$0xff] %v7277_v26 }
 0x656   :  { %1874 = vmatmul.bf16.vlgmr.msra.gmra.mxu3 %v6825_v59  ;;  %1887 = vmatmul.bf16.vlgmr.msrb.gmra.mxu0 %v6825_v59  ;;  %v10521_v59 = vld [vmem:[#allocation10_spill] sm:$0xff] }
 0x657   :  { %1997 = vmatpush.bf16.msrb.mxu3 %v7141_v9 }
 0x658   :  { %2062 = vmatpush.bf16.msra.mxu1 %v10520_v13  ;;  %2049 = vmatpush.bf16.msra.mxu0 %v7148_v63  ;;  %v7283_v13 = vld [vmem:[%s9909_s3 + $0x100] sm:$0xff] }
 0x659   :  { %10539 = vst [vmem:[#allocation10_spill] sm:$0xff] %v7283_v13 }
 0x65b   :  { %1998 = vmatpush.bf16.msrb.mxu3 %v7154_v5 }
 0x65c   :  { %2063 = vmatpush.bf16.msra.mxu1 %v10521_v59  ;;  %2050 = vmatpush.bf16.msra.mxu0 %v7161_v18 }
 0x65f   :  { %1999 = vmatpush.bf16.msrb.mxu3 %v7167_v31 }
 0x660   :  { %2064 = vmatpush.bf16.msra.mxu1 %v10522_v35  ;;  %2051 = vmatpush.bf16.msra.mxu0 %v7174_v11 }
 0x663   :  { %2000 = vmatpush.bf16.msrb.mxu3 %v7180_v30 }
 0x664   :  { %2065 = vmatpush.bf16.msra.mxu1 %v10523_v3  ;;  %2052 = vmatpush.bf16.msra.mxu0 %v7193_v27 }
 0x667   :  { %2084 = vmatpush.bf16.msra.mxu3 %v7186_v51 }
 0x668   :  { %2097 = vmatpush.bf16.msrb.mxu0 %v7199_v47 }
 0x66b   :  { %2085 = vmatpush.bf16.msra.mxu3 %v7205_v42 }
 0x66c   :  { %2098 = vmatpush.bf16.msrb.mxu0 %v7211_v61 }
 0x66f   :  { %2086 = vmatpush.bf16.msra.mxu3 %v7217_v54 }
 0x670   :  { %2099 = vmatpush.bf16.msrb.mxu0 %v7223_v20 }
 0x673   :  { %2087 = vmatpush.bf16.msra.mxu3 %v7229_v40 }
 0x674   :  { %2100 = vmatpush.bf16.msrb.mxu0 %v7235_v17 }
 0x677   :  { %2088 = vmatpush.bf16.msra.mxu3 %v7241_v4 }
 0x678   :  { %2101 = vmatpush.bf16.msrb.mxu0 %v7247_v22 }
 0x67b   :  { %2089 = vmatpush.bf16.msra.mxu3 %v7253_v10 }
 0x67c   :  { %2102 = vmatpush.bf16.msrb.mxu0 %v7259_v37  ;;  %v10541_v37 = vld [vmem:[#allocation5_spill] sm:$0xff] }
 0x67f   :  { %2090 = vmatpush.bf16.msra.mxu3 %v7265_v29  ;;  %v10540_v29 = vld [vmem:[#allocation12_spill] sm:$0xff] }
 0x680   :  { %2103 = vmatpush.bf16.msrb.mxu0 %v7271_v39  ;;  %v1863_v39 = vadd.f32 %v7081_v32, %v10540_v29  ;;  %v10542_v32 = vld [vmem:[#allocation14_spill] sm:$0xff] }
 0x683   :  { %2091 = vmatpush.bf16.msra.mxu3 %v7277_v26 }
 0x684   :  { %2104 = vmatpush.bf16.msrb.mxu0 %v7283_v13  ;;  %v4792_v13 = vld [vmem:[%s10318_s0 + $0x10] sm:$0xff] }
 0x685   :  { %v7292_v27 = vpack.c.bf16 %v4792_v13, %v4792_v13  ;;  %v7312_v13 = vld [vmem:[%s9909_s3 + $0x1e8] sm:$0xff] }
 0x686   :  { %10546 = vst [vmem:[#allocation106_spill] sm:$0xff] %v7312_v13 }
 0x687   :  { %2001 = vmatmul.bf16.vlgmr.msrb.gmra.mxu3 %v7292_v27 }
 0x6c3   :  { %v1836_v59 = vpop.f32.mrf.mxu0 }
 0x6c4   :  { %v1849_v35 = vpop.f32.mrf.mxu1  ;;  %v1837_v29 = vadd.f32 %v1836_v59, %v10542_v32 }
 0x6c9   :  { %v1823_v3 = vpop.f32.mrf.mxu3 }
 0x6ca   :  { %v1824_v10 = vadd.f32 %v1823_v3, %v10541_v37  ;;  %v10543_v3 = vld [vmem:[#allocation6_spill] sm:$0xff] }
 0x6cb   :  { %v1838_v22 = vpop.f32.mrf.mxu0 }
 0x6cc   :  { %v1892_v4 = vadd.f32 %v1863_v39, %v1824_v10  ;;  %v1851_v17 = vpop.f32.mrf.mxu1  ;;  %v7306_v10 = vld [vmem:[%s9909_s3 + $0x1f0] sm:$0xff] }
 0x6cd   :  { %10545 = vst [vmem:[#allocation13_spill] sm:$0xff] %v7306_v10 }
 0x6ce   :  { %v1893_v40 = vsub.f32 0.0, %v1892_v4 }
 0x6d0   :  { %v1894_v26 = vmul.f32 1.442695, %v1893_v40  ;;  %v7300_v40 = vld [vmem:[%s9909_s3 + $0x1f8] sm:$0xff] }
 0x6d1   :  { %v1825_v20 = vpop.f32.mrf.mxu3  ;;  %10544 = vst [vmem:[#allocation11_spill] sm:$0xff] %v7300_v40  ;;  %2136 = vmatpush.bf16.msrb.mxu3 %v7300_v40 }
 0x6d2   :  { %4994 = vpow2.f32 %v1894_v26 }
 0x6d3   :  { %v1888_v54 = vpop.f32.mrf.mxu0 }
 0x6d5   :  { %2137 = vmatpush.bf16.msrb.mxu3 %v7306_v10 }
 0x6d8   :  { %v4995_v61 = vpop.eup %4994 }
 0x6d9   :  { %v1896_v42 = vadd.f32 1.0, %v4995_v61  ;;  %v1875_v47 = vpop.f32.mrf.mxu3  ;;  %2138 = vmatpush.bf16.msrb.mxu3 %v7312_v13  ;;  %v7324_v13 = vld [vmem:[%s9909_s3 + $0x1d8] sm:$0xff] }
 0x6da   :  { %v1876_v22 = vadd.f32 %v1875_v47, %v10543_v3  ;;  %10548 = vst [vmem:[#allocation108_spill] sm:$0xff] %v7324_v13 }
 0x6db   :  { %4996 = vrcp.f32 %v1896_v42  ;;  %v1890_v17 = vpop.f32.mrf.mxu0  ;;  %vm1902_vm1 = vweird.f32 %v1896_v42 }
 0x6dc   :  { %v1912_v20 = vadd.f32 %v1876_v22, %v1837_v29  ;;  %v1908_v22 = vand.u32 2147483648, %v1896_v42  ;;  %v1906_v17 = vand.u32 2147483647, %v1896_v42 }
 0x6de   :  { %v1913_v61 = vsub.f32 0.0, %v1912_v20  ;;  %v1909_v10 = vor.u32 1.1754944e-38, %v1908_v22  ;;  %vm1907_vm3 = vcmp.eq.f32.partialorder %v1906_v17, 8.507059e+37  ;;  %v10551_v22 = vld [vmem:[#allocation22_spill] sm:$0xff] }
 0x6e0   :  { %v1914_v4 = vmul.f32 1.442695, %v1913_v61 }
 0x6e1   :  { %v4997_v47 = vpop.eup %4996  ;;  %v1877_v39 = vpop.f32.mrf.mxu3 }
 0x6e2   :  { %v1898_v26 = vmul.f32 %v4997_v47, %v1896_v42  ;;  %4998 = vpow2.f32 %v1914_v4  ;;  %vm1903_vm0 = vweird.f32 %v4997_v47  ;;  %v7318_v39 = vld [vmem:[%s9909_s3 + $0x1e0] sm:$0xff]  ;;  %v10549_v42 = vld [vmem:[#allocation18_spill] sm:$0xff] }
 0x6e3   :  { %10547 = vst [vmem:[#allocation107_spill] sm:$0xff] %v7318_v39  ;;  %2139 = vmatpush.bf16.msrb.mxu3 %v7318_v39  ;;  %vm1904_vm2 = vmor %vm1902_vm1, %vm1903_vm0  ;;  %v7331_v39 = vld [vmem:[%s9909_s3 + $0x1d0] sm:$0xff] }
 0x6e4   :  { %v1899_v29 = vsub.f32 1.0, %v1898_v26  ;;  %10550 = vst [vmem:[#allocation109_spill] sm:$0xff] %v7331_v39 }
 0x6e6   :  { %v1900_v59 = vmul.f32 %v4997_v47, %v1899_v29 }
 0x6e7   :  { %2140 = vmatpush.bf16.msrb.mxu3 %v7324_v13 }
 0x6e8   :  { %v4999_v20 = vpop.eup %4998  ;;  %v1901_v61 = vadd.f32 %v4997_v47, %v1900_v59  ;;  %v1889_v59 = vadd.f32 %v1888_v54, %v10549_v42 }
 0x6e9   :  { %v1916_v4 = vadd.f32 1.0, %v4999_v20 }
 0x6ea   :  { %v1905_v26 = vsel %vm1904_vm2, %v4997_v47, %v1901_v61 }
 0x6eb   :  { %5000 = vrcp.f32 %v1916_v4  ;;  %v1910_v29 = vsel %vm1907_vm3, %v1909_v10, %v1905_v26  ;;  %2141 = vmatpush.bf16.msrb.mxu3 %v7331_v39  ;;  %v1850_v10 = vadd.f32 %v1849_v35, %v10551_v22  ;;  %v7338_v26 = vld [vmem:[%s9909_s3 + $0x1c8] sm:$0xff]  ;;  %v1928_v54 = vand.u32 2147483648, %v1916_v4  ;;  %v7344_v35 = vld [vmem:[%s9909_s3 + $0x1c0] sm:$0xff] }
 0x6ec   :  { %v1932_v3 = vmul.f32 %v1910_v29, %v1889_v59  ;;  %10552 = vst [vmem:[#allocation110_spill] sm:$0xff] %v7338_v26  ;;  %v1926_v59 = vand.u32 2147483647, %v1916_v4  ;;  %vm1922_vm5 = vweird.f32 %v1916_v4  ;;  %v10554_v39 = vld [vmem:[#allocation17_spill] sm:$0xff] }
 0x6ed   :  { %10553 = vst [vmem:[#allocation111_spill] sm:$0xff] %v7344_v35 }
 0x6ee   :  { %v1933_v20 = vadd.f32 %v1932_v3, %v1850_v10  ;;  %v1929_v3 = vor.u32 1.1754944e-38, %v1928_v54  ;;  %vm1927_vm7 = vcmp.eq.f32.partialorder %v1926_v59, 8.507059e+37  ;;  %v10557_v54 = vld [vmem:[#allocation25_spill] sm:$0xff]  ;;  %v10564_v59 = vld [vmem:[#allocation104_spill] sm:$0xff] }
 0x6ef   :  { %2142 = vmatpush.bf16.msrb.mxu3 %v7338_v26 }
 0x6f0   :  { %5002 = vtanh.f32 %v1933_v20 }
 0x6f1   :  { %v5001_v47 = vpop.eup %5000 }
 0x6f2   :  { %v1918_v17 = vmul.f32 %v5001_v47, %v1916_v4  ;;  %vm1923_vm4 = vweird.f32 %v5001_v47 }
 0x6f3   :  { %2143 = vmatpush.bf16.msrb.mxu3 %v7344_v35  ;;  %vm1924_vm6 = vmor %vm1922_vm5, %vm1923_vm4 }
 0x6f4   :  { %v1919_v61 = vsub.f32 1.0, %v1918_v17 }
 0x6f6   :  { %v1920_v29 = vmul.f32 %v5001_v47, %v1919_v61  ;;  %v5003_v26 = vpop.eup %5002 }
 0x6f8   :  { %v1921_v42 = vadd.f32 %v5001_v47, %v1920_v29  ;;  %v10556_v29 = vld [vmem:[#allocation21_spill] sm:$0xff] }
 0x6fa   :  { %v1925_v10 = vsel %vm1924_vm6, %v5001_v47, %v1921_v42  ;;  %v10558_v42 = vld [vmem:[#allocation98_spill] sm:$0xff]  ;;  %v10559_v47 = vld [vmem:[#allocation99_spill] sm:$0xff] }
 0x6fb   :  { %v1930_v17 = vsel %vm1927_vm7, %v1929_v3, %v1925_v10  ;;  %v10565_v3 = vld [vmem:[#allocation105_spill] sm:$0xff]  ;;  %v7369_v10 = vld [vmem:[%s9909_s3 + $0x150] sm:$0xff] }
 0x6fc   :  { %v1935_v22 = vsub.f32 1.0, %v1930_v17  ;;  %v1937_v13 = vmul.f32 %v1930_v17, %v10554_v39  ;;  %v10562_v39 = vld [vmem:[#allocation102_spill] sm:$0xff]  ;;  %10566 = vst [vmem:[#allocation21_spill] sm:$0xff] %v7369_v10  ;;  %v7375_v17 = vld [vmem:[%s9909_s3 + $0x190] sm:$0xff] }
 0x6fd   :  { %10567 = vst [vmem:[#allocation25_spill] sm:$0xff] %v7375_v17 }
 0x6fe   :  { %v1936_v61 = vmul.f32 %v5003_v26, %v1935_v22  ;;  %v10560_v22 = vld [vmem:[#allocation100_spill] sm:$0xff]  ;;  %v10563_v26 = vld [vmem:[#allocation103_spill] sm:$0xff] }
 0x700   :  { %v7348_v20 = vadd.f32 %v1937_v13, %v1936_v61  ;;  %v10561_v13 = vld [vmem:[#allocation101_spill] sm:$0xff]  ;;  %v7381_v61 = vld [vmem:[%s9909_s3 + $0x148] sm:$0xff] }
 0x701   :  { %10568 = vst [vmem:[#allocation98_spill] sm:$0xff] %v7381_v61 }
 0x702   :  { %10555 = vst [vmem:[#allocation17_spill] sm:$0xff] %v7348_v20  ;;  %v7352_v4 = vpack.c.bf16 %v7348_v20, %v7348_v20 }
 0x704   :  { %1948 = vmatmul.bf16.vlgmr.msrb.gmra.mxu1 %v7352_v4  ;;  %1988 = vmatmul.bf16.vlgmr.msrb.gmra.mxu2 %v7352_v4 }
 0x705   :  { %2110 = vmatpush.bf16.msrb.mxu1 %v10556_v29  ;;  %2123 = vmatpush.bf16.msrb.mxu2 %v10557_v54  ;;  %v7387_v29 = vld [vmem:[%s9909_s3 + $0x188] sm:$0xff]  ;;  %v7393_v54 = vld [vmem:[%s9909_s3 + $0x140] sm:$0xff] }
 0x706   :  { %10569 = vst [vmem:[#allocation99_spill] sm:$0xff] %v7387_v29 }
 0x707   :  { %10570 = vst [vmem:[#allocation100_spill] sm:$0xff] %v7393_v54 }
 0x709   :  { %2111 = vmatpush.bf16.msrb.mxu1 %v10558_v42  ;;  %2124 = vmatpush.bf16.msrb.mxu2 %v10559_v47  ;;  %v7399_v42 = vld [vmem:[%s9909_s3 + $0x180] sm:$0xff] }
 0x70a   :  { %10571 = vst [vmem:[#allocation101_spill] sm:$0xff] %v7399_v42  ;;  %v2002_v47 = vpop.f32.mrf.mxu3 }
 0x70d   :  { %2112 = vmatpush.bf16.msrb.mxu1 %v10560_v22  ;;  %2125 = vmatpush.bf16.msrb.mxu2 %v10561_v13 }
 0x711   :  { %2113 = vmatpush.bf16.msrb.mxu1 %v10562_v39  ;;  %2126 = vmatpush.bf16.msrb.mxu2 %v10563_v26 }
 0x712   :  { %v2004_v22 = vpop.f32.mrf.mxu3 }
 0x715   :  { %2114 = vmatpush.bf16.msrb.mxu1 %v10564_v59  ;;  %2127 = vmatpush.bf16.msrb.mxu2 %v10565_v3  ;;  %v10573_v3 = vld [vmem:[#allocation16_spill] sm:$0xff] }
 0x719   :  { %2115 = vmatpush.bf16.msrb.mxu1 %v7369_v10  ;;  %2128 = vmatpush.bf16.msrb.mxu2 %v7375_v17 }
 0x71d   :  { %2116 = vmatpush.bf16.msrb.mxu1 %v7381_v61  ;;  %2129 = vmatpush.bf16.msrb.mxu2 %v7387_v29 }
 0x721   :  { %2117 = vmatpush.bf16.msrb.mxu1 %v7393_v54  ;;  %2130 = vmatpush.bf16.msrb.mxu2 %v7399_v42 }
 0x781   :  { %v7402_v13 = vpop.f32.mrf.mxu1 }
 0x782   :  { %10572 = vst [vmem:[#allocation102_spill] sm:$0xff] %v7402_v13 }
 0x787   :  { %v1989_v39 = vpop.f32.mrf.mxu2 }
 0x788   :  { %v2003_v26 = vadd.f32 %v2002_v47, %v1989_v39 }
 0x789   :  { %v1951_v59 = vpop.f32.mrf.mxu1 }
 0x78a   :  { %v2006_v29 = vadd.f32 %v10573_v3, %v2003_v26 }
 0x78c   :  { %2007 = vmax.xlane.f32.xlu2 %v2006_v29 }
 0x78f   :  { %v1991_v61 = vpop.f32.mrf.mxu2 }
 0x7ff   :  { %v2008_v17 = vpop.xlane.xlu2 %2007 }
 0x800   :  { %v2009_v54 = vsub.f32 %v2006_v29, %v2008_v17 }
 0x802   :  { %v2010_v10 = vmul.f32 1.442695, %v2009_v54 }
 0x804   :  { %5004 = vpow2.f32 %v2010_v10  ;;  %v7408_v10 = vld [vmem:[%s9910_s4] sm:$0xff] }
 0x80a   :  { %v5005_v20 = vpop.eup %5004 }
 0x80b   :  { %2012 = vadd.xlane.f32.xlu2 %v5005_v20 }
 0x87e   :  { %v2013_v35 = vpop.xlane.xlu2 %2012 }
 0x87f   :  { %5006 = vrcp.f32 %v2013_v35  ;;  %v2025_v40 = vand.u32 2147483648, %v2013_v35  ;;  %v2023_v47 = vand.u32 2147483647, %v2013_v35  ;;  %vm2019_vm9 = vweird.f32 %v2013_v35 }
 0x881   :  { %v2026_v26 = vor.u32 1.1754944e-38, %v2025_v40  ;;  %vm2024_vm11 = vcmp.eq.f32.partialorder %v2023_v47, 8.507059e+37  ;;  %v7420_v40 = vld [vmem:[%s9910_s4 + $0x10] sm:$0xff] }
 0x885   :  { %v5007_v42 = vpop.eup %5006 }
 0x886   :  { %v2015_v32 = vmul.f32 %v5007_v42, %v2013_v35  ;;  %vm2020_vm8 = vweird.f32 %v5007_v42 }
 0x887   :  { %vm2021_vm10 = vmor %vm2019_vm9, %vm2020_vm8 }
 0x888   :  { %v2016_v22 = vsub.f32 1.0, %v2015_v32  ;;  %v7414_v32 = vld [vmem:[%s9910_s4 + $0x8] sm:$0xff] }
 0x88a   :  { %v2017_v13 = vmul.f32 %v5007_v42, %v2016_v22 }
 0x88c   :  { %v2018_v39 = vadd.f32 %v5007_v42, %v2017_v13 }
 0x88e   :  { %v2022_v61 = vsel %vm2021_vm10, %v5007_v42, %v2018_v39  ;;  %v7426_v42 = vld [vmem:[%s9910_s4 + $0x18] sm:$0xff] }
 0x88f   :  { %v2027_v17 = vsel %vm2024_vm11, %v2026_v26, %v2022_v61  ;;  %v7432_v39 = vld [vmem:[%s9914_s8 + $0x38] sm:$0xff]  ;;  %v7446_v61 = vld [vmem:[%s9914_s8 + $0x30] sm:$0xff] }
 0x890   :  { %v2028_v29 = vmul.f32 %v5005_v20, %v2027_v17  ;;  %v7438_v26 = vld [vmem:[%s9915_s9 + $0x38] sm:$0xff]  ;;  %v7452_v17 = vld [vmem:[%s9915_s9 + $0x30] sm:$0xff] }
 0x892   :  { %v2029_v54 = vmul.f32 %v7408_v10, %v2028_v29  ;;  %v2030_v35 = vmul.f32 %v7414_v32, %v2028_v29  ;;  %v2031_v20 = vmul.f32 %v7420_v40, %v2028_v29  ;;  %v2032_v13 = vmul.f32 %v7426_v42, %v2028_v29 }
 0x894   :  { %v2037_v59 = vpack.c.bf16 %v2029_v54, %v2029_v54  ;;  %v2038_v3 = vpack.c.bf16 %v2030_v35, %v2030_v35  ;;  %v2039_v22 = vpack.c.bf16 %v2031_v20, %v2031_v20  ;;  %v2040_v47 = vpack.c.bf16 %v2032_v13, %v2032_v13  ;;  %v7460_v54 = vld [vmem:[%s9914_s8 + $0x28] sm:$0xff]  ;;  %v7466_v35 = vld [vmem:[%s9910_s4 + $0x20] sm:$0xff] }
 0x895   :  { %10574 = vst [vmem:[#allocation103_spill] sm:$0xff] %v7460_v54  ;;  %v2033_v20 = vmul.f32 %v7466_v35, %v2028_v29  ;;  %v7472_v13 = vld [vmem:[%s9910_s4 + $0x28] sm:$0xff] }
 0x896   :  { %2053 = vmatmul.bf16.vlgmr.msra.gmra.mxu0 %v2037_v59  ;;  %2066 = vmatmul.bf16.vlgmr.msra.gmra.mxu1 %v2038_v3  ;;  %10575 = vst [vmem:[#allocation104_spill] sm:$0xff] %v7466_v35  ;;  %v2034_v59 = vmul.f32 %v7472_v13, %v2028_v29  ;;  %v7478_v3 = vld [vmem:[%s9915_s9 + $0x28] sm:$0xff]  ;;  %v7490_v35 = vld [vmem:[%s9910_s4 + $0x38] sm:$0xff] }
 0x897   :  { %2079 = vmatmul.bf16.vlgmr.msra.gmra.mxu2 %v2039_v22  ;;  %2092 = vmatmul.bf16.vlgmr.msra.gmra.mxu3 %v2040_v47  ;;  %10576 = vst [vmem:[#allocation105_spill] sm:$0xff] %v7472_v13  ;;  %v7484_v22 = vld [vmem:[%s9910_s4 + $0x30] sm:$0xff]  ;;  %v2036_v13 = vmul.f32 %v7490_v35, %v2028_v29 }
 0x898   :  { %2163 = vmatpush.bf16.msra.mxu1 %v7432_v39  ;;  %2150 = vmatpush.bf16.msra.mxu0 %v7438_v26  ;;  %10577 = vst [vmem:[#allocation16_spill] sm:$0xff] %v7478_v3  ;;  %v2035_v47 = vmul.f32 %v7484_v22, %v2028_v29 }
 0x899   :  { %2179 = vmatpush.bf16.msra.mxu2 %v10464_v2  ;;  %2192 = vmatpush.bf16.msra.mxu3 %v10465_v48  ;;  %10578 = vst [vmem:[#allocation112_spill] sm:$0xff] %v7484_v22  ;;  %v2042_v22 = vpack.c.bf16 %v2034_v59, %v2034_v59  ;;  %v7518_v59 = vld [vmem:[%s9915_s9 + $0x18] sm:$0xff] }
 0x89a   :  { %v2043_v29 = vpack.c.bf16 %v2035_v47, %v2035_v47  ;;  %v7554_v47 = vld [vmem:[%s9914_s8] sm:$0xff] }
 0x89b   :  { %10581 = vst [vmem:[#allocation115_spill] sm:$0xff] %v7554_v47 }
 0x89c   :  { %2164 = vmatpush.bf16.msra.mxu1 %v7446_v61  ;;  %2151 = vmatpush.bf16.msra.mxu0 %v7452_v17 }
 0x89d   :  { %2180 = vmatpush.bf16.msra.mxu2 %v10468_v21  ;;  %2193 = vmatpush.bf16.msra.mxu3 %v6270_v56  ;;  %v7504_v56 = vld [vmem:[%s9915_s9 + $0x20] sm:$0xff] }
 0x8a0   :  { %2165 = vmatpush.bf16.msra.mxu1 %v7460_v54  ;;  %2152 = vmatpush.bf16.msra.mxu0 %v7478_v3  ;;  %v7498_v3 = vld [vmem:[%s9914_s8 + $0x20] sm:$0xff]  ;;  %v2041_v54 = vpack.c.bf16 %v2033_v20, %v2033_v20  ;;  %v7512_v20 = vld [vmem:[%s9914_s8 + $0x18] sm:$0xff] }
 0x8a1   :  { %2181 = vmatpush.bf16.msra.mxu2 %v10475_v6  ;;  %2194 = vmatpush.bf16.msra.mxu3 %v6302_v28  ;;  %v2044_v6 = vpack.c.bf16 %v2036_v13, %v2036_v13  ;;  %v7540_v13 = vld [vmem:[%s9914_s8 + $0x8] sm:$0xff] }
 0x8a2   :  { %10579 = vst [vmem:[#allocation113_spill] sm:$0xff] %v7540_v13 }
 0x8a4   :  { %2166 = vmatpush.bf16.msra.mxu1 %v7498_v3  ;;  %2153 = vmatpush.bf16.msra.mxu0 %v7504_v56 }
 0x8a5   :  { %2182 = vmatpush.bf16.msra.mxu2 %v10478_v36  ;;  %2195 = vmatpush.bf16.msra.mxu3 %v10479_v43 }
 0x8a6   :  { %2105 = vmatmul.bf16.vlgmr.msrb.gmra.mxu0 %v2041_v54  ;;  %2118 = vmatmul.bf16.vlgmr.msrb.gmra.mxu1 %v2042_v22  ;;  %v7532_v54 = vld [vmem:[%s9915_s9 + $0x10] sm:$0xff]  ;;  %v7546_v22 = vld [vmem:[%s9915_s9 + $0x8] sm:$0xff] }
 0x8a7   :  { %2131 = vmatmul.bf16.vlgmr.msrb.gmra.mxu2 %v2043_v29  ;;  %2144 = vmatmul.bf16.vlgmr.msrb.gmra.mxu3 %v2044_v6  ;;  %v7526_v6 = vld [vmem:[%s9914_s8 + $0x10] sm:$0xff]  ;;  %10580 = vst [vmem:[#allocation114_spill] sm:$0xff] %v7546_v22  ;;  %v7560_v29 = vld [vmem:[%s9915_s9] sm:$0xff] }
 0x8a8   :  { %2167 = vmatpush.bf16.msra.mxu1 %v7512_v20  ;;  %2154 = vmatpush.bf16.msra.mxu0 %v7518_v59  ;;  %10582 = vst [vmem:[#allocation116_spill] sm:$0xff] %v7560_v29 }
 0x8a9   :  { %2183 = vmatpush.bf16.msra.mxu2 %v10482_v49  ;;  %2196 = vmatpush.bf16.msra.mxu3 %v6393_v52 }
 0x8ac   :  { %2168 = vmatpush.bf16.msra.mxu1 %v7526_v6  ;;  %2155 = vmatpush.bf16.msra.mxu0 %v7532_v54 }
 0x8ad   :  { %2184 = vmatpush.bf16.msra.mxu2 %v6354_v16  ;;  %2197 = vmatpush.bf16.msra.mxu3 %v6422_v50 }
 0x8b0   :  { %2169 = vmatpush.bf16.msra.mxu1 %v7540_v13  ;;  %2156 = vmatpush.bf16.msra.mxu0 %v7546_v22 }
 0x8b1   :  { %2185 = vmatpush.bf16.msra.mxu2 %v6369_v44  ;;  %2198 = vmatpush.bf16.msra.mxu3 %v6474_v8 }
 0x8b4   :  { %2170 = vmatpush.bf16.msra.mxu1 %v7554_v47  ;;  %2157 = vmatpush.bf16.msra.mxu0 %v7560_v29 }
 0x8b5   :  { %2186 = vmatpush.bf16.msra.mxu2 %v6382_v62  ;;  %2199 = vmatpush.bf16.msra.mxu3 %v6502_v23 }
 0x8b7   :  { %2171 = vmatmul.bf16.vlgmr.msra.gmra.mxu1 %v7292_v27  ;;  %v10583_v27 = vld [vmem:[#allocation62_spill] sm:$0xff] }
 0x8b8   :  { %2218 = vmatpush.bf16.msrb.mxu1 %v10489_v7  ;;  %2205 = vmatpush.bf16.msrb.mxu0 %v10490_v1 }
 0x8b9   :  { %2231 = vmatpush.bf16.msrb.mxu2 %v6407_v60  ;;  %2244 = vmatpush.bf16.msrb.mxu3 %v6526_v12  ;;  %v10584_v60 = vld [vmem:[#allocation67_spill] sm:$0xff]  ;;  %v10585_v12 = vld [vmem:[#allocation85_spill] sm:$0xff] }
 0x8bc   :  { %2219 = vmatpush.bf16.msrb.mxu1 %v10491_v15  ;;  %2206 = vmatpush.bf16.msrb.mxu0 %v10492_v24  ;;  %v10586_v15 = vld [vmem:[#allocation92_spill] sm:$0xff]  ;;  %v10587_v24 = vld [vmem:[#allocation66_spill] sm:$0xff] }
 0x8bd   :  { %2232 = vmatpush.bf16.msrb.mxu2 %v6446_v58  ;;  %2245 = vmatpush.bf16.msrb.mxu3 %v6548_v19  ;;  %v10588_v58 = vld [vmem:[#allocation73_spill] sm:$0xff]  ;;  %v10589_v19 = vld [vmem:[#allocation87_spill] sm:$0xff] }
 0x8c0   :  { %2220 = vmatpush.bf16.msrb.mxu1 %v10493_v46  ;;  %2207 = vmatpush.bf16.msrb.mxu0 %v10494_v38  ;;  %v10590_v46 = vld [vmem:[#allocation94_spill] sm:$0xff]  ;;  %v10591_v38 = vld [vmem:[#allocation69_spill] sm:$0xff] }
 0x8c1   :  { %2233 = vmatpush.bf16.msrb.mxu2 %v6489_v14  ;;  %2246 = vmatpush.bf16.msrb.mxu3 %v6564_v33  ;;  %v10592_v14 = vld [vmem:[#allocation77_spill] sm:$0xff] }
 0x8c2   :  { %v10593_v33 = vld [vmem:[#allocation89_spill] sm:$0xff] }
 0x8c4   :  { %2221 = vmatpush.bf16.msrb.mxu1 %v10583_v27  ;;  %2208 = vmatpush.bf16.msrb.mxu0 %v10584_v60  ;;  %v10594_v27 = vld [vmem:[#allocation95_spill] sm:$0xff] }
 0x8c5   :  { %2234 = vmatpush.bf16.msrb.mxu2 %v10585_v12  ;;  %2247 = vmatpush.bf16.msrb.mxu3 %v10586_v15  ;;  %v10595_v60 = vld [vmem:[#allocation75_spill] sm:$0xff]  ;;  %v10596_v12 = vld [vmem:[#allocation81_spill] sm:$0xff] }
 0x8c6   :  { %v10597_v15 = vld [vmem:[#allocation91_spill] sm:$0xff] }
 0x8c8   :  { %2222 = vmatpush.bf16.msrb.mxu1 %v10587_v24  ;;  %2209 = vmatpush.bf16.msrb.mxu0 %v10588_v58  ;;  %v10598_v24 = vld [vmem:[#allocation96_spill] sm:$0xff]  ;;  %v10599_v58 = vld [vmem:[#allocation79_spill] sm:$0xff] }
 0x8c9   :  { %2235 = vmatpush.bf16.msrb.mxu2 %v10589_v19  ;;  %2248 = vmatpush.bf16.msrb.mxu3 %v10590_v46  ;;  %v10600_v19 = vld [vmem:[#allocation84_spill] sm:$0xff]  ;;  %v10601_v46 = vld [vmem:[#allocation19_spill] sm:$0xff] }
 0x8cc   :  { %2223 = vmatpush.bf16.msrb.mxu1 %v10591_v38  ;;  %2210 = vmatpush.bf16.msrb.mxu0 %v10592_v14  ;;  %v10602_v38 = vld [vmem:[#allocation93_spill] sm:$0xff]  ;;  %v10613_v14 = vld [vmem:[#allocation31_spill] sm:$0xff] }
 0x8cd   :  { %2236 = vmatpush.bf16.msrb.mxu2 %v10593_v33  ;;  %2249 = vmatpush.bf16.msrb.mxu3 %v10594_v27  ;;  %v10603_v33 = vld [vmem:[#allocation97_spill] sm:$0xff]  ;;  %v10604_v27 = vld [vmem:[#allocation20_spill] sm:$0xff] }
 0x8d0   :  { %2224 = vmatpush.bf16.msrb.mxu1 %v10595_v60  ;;  %2211 = vmatpush.bf16.msrb.mxu0 %v10596_v12  ;;  %v10605_v60 = vld [vmem:[#allocation23_spill] sm:$0xff]  ;;  %v10606_v12 = vld [vmem:[#allocation24_spill] sm:$0xff] }
 0x8d1   :  { %2237 = vmatpush.bf16.msrb.mxu2 %v10597_v15  ;;  %2250 = vmatpush.bf16.msrb.mxu3 %v10598_v24  ;;  %v10607_v15 = vld [vmem:[#allocation26_spill] sm:$0xff]  ;;  %v10608_v24 = vld [vmem:[#allocation27_spill] sm:$0xff] }
 0x8d4   :  { %2225 = vmatpush.bf16.msrb.mxu1 %v10599_v58  ;;  %2212 = vmatpush.bf16.msrb.mxu0 %v10600_v19  ;;  %v10609_v58 = vld [vmem:[#allocation28_spill] sm:$0xff]  ;;  %v10610_v19 = vld [vmem:[#allocation29_spill] sm:$0xff] }
 0x8d5   :  { %2238 = vmatpush.bf16.msrb.mxu2 %v10602_v38  ;;  %2251 = vmatpush.bf16.msrb.mxu3 %v10603_v33  ;;  %v10612_v38 = vld [vmem:[#allocation36_spill] sm:$0xff]  ;;  %v10614_v33 = vld [vmem:[#allocation38_spill] sm:$0xff] }
 0x8d7   :  { %2226 = vmatmul.bf16.vlgmr.msrb.gmra.mxu1 %v7352_v4 }
 0x8d8   :  { %2345 = vmatpush.bf16.msra.mxu1 %v10601_v46  ;;  %v10611_v46 = vld [vmem:[#allocation30_spill] sm:$0xff] }
 0x8dc   :  { %2346 = vmatpush.bf16.msra.mxu1 %v10604_v27  ;;  %v10615_v27 = vld [vmem:[#allocation37_spill] sm:$0xff] }
 0x8e0   :  { %2347 = vmatpush.bf16.msra.mxu1 %v10605_v60  ;;  %v10616_v60 = vld [vmem:[#allocation32_spill] sm:$0xff] }
 0x8e4   :  { %2348 = vmatpush.bf16.msra.mxu1 %v10606_v12  ;;  %v10617_v12 = vld [vmem:[#allocation33_spill] sm:$0xff] }
 0x8e8   :  { %2349 = vmatpush.bf16.msra.mxu1 %v10607_v15  ;;  %v10618_v15 = vld [vmem:[#allocation40_spill] sm:$0xff] }
 0x8ec   :  { %2350 = vmatpush.bf16.msra.mxu1 %v10608_v24 }
 0x8f0   :  { %2351 = vmatpush.bf16.msra.mxu1 %v10609_v58 }
 0x8f4   :  { %2352 = vmatpush.bf16.msra.mxu1 %v10610_v19 }
 0x8f8   :  { %2436 = vmatpush.bf16.msrb.mxu1 %v10611_v46 }
 0x8fc   :  { %2437 = vmatpush.bf16.msrb.mxu1 %v10612_v38 }
 0x900   :  { %2438 = vmatpush.bf16.msrb.mxu1 %v10613_v14 }
 0x904   :  { %2439 = vmatpush.bf16.msrb.mxu1 %v10614_v33 }
 0x908   :  { %2440 = vmatpush.bf16.msrb.mxu1 %v10615_v27 }
 0x90c   :  { %2441 = vmatpush.bf16.msrb.mxu1 %v10616_v60 }
 0x910   :  { %2442 = vmatpush.bf16.msrb.mxu1 %v10617_v12 }
 0x913   :  { %v2054_v24 = vpop.f32.mrf.mxu0  ;;  %v2067_v58 = vpop.f32.mrf.mxu1 }
 0x914   :  { %2443 = vmatpush.bf16.msrb.mxu1 %v10618_v15  ;;  %v2068_v1 = vadd.f32 %v2067_v58, %v2054_v24 }
 0x91a   :  { %v2080_v23 = vpop.f32.mrf.mxu2  ;;  %v2093_v19 = vpop.f32.mrf.mxu3 }
 0x91b   :  { %v2056_v62 = vpop.f32.mrf.mxu0  ;;  %v2069_v46 = vpop.f32.mrf.mxu1  ;;  %v2081_v38 = vadd.f32 %v2080_v23, %v2068_v1  ;;  %v7618_v23 = vld [vmem:[%s9921_s15 + $0x38] sm:$0xff]  ;;  %v7624_v1 = vld [vmem:[%s9921_s15 + $0x30] sm:$0xff] }
 0x91c   :  { %v7668_v46 = vld [vmem:[%s9916_s10] ss:$0 sm:$0xff] }
 0x91d   :  { %v2094_v29 = vadd.f32 %v2093_v19, %v2081_v38 }
 0x922   :  { %v2082_v7 = vpop.f32.mrf.mxu2  ;;  %v2095_v14 = vpop.f32.mrf.mxu3 }
 0x923   :  { %v2106_v33 = vpop.f32.mrf.mxu0  ;;  %v2119_v47 = vpop.f32.mrf.mxu1 }
 0x924   :  { %v2107_v27 = vadd.f32 %v2106_v33, %v2094_v29 }
 0x926   :  { %v2120_v8 = vadd.f32 %v2119_v47, %v2107_v27  ;;  %v7660_v47 = vld [vmem:[%s9921_s15] sm:$0xff] }
 0x92a   :  { %v2132_v60 = vpop.f32.mrf.mxu2  ;;  %v2145_v44 = vpop.f32.mrf.mxu3 }
 0x92b   :  { %v2133_v12 = vadd.f32 %v2132_v60, %v2120_v8  ;;  %v2108_v22 = vpop.f32.mrf.mxu0  ;;  %v2121_v15 = vpop.f32.mrf.mxu1  ;;  %v7642_v8 = vld [vmem:[%s9921_s15 + $0x18] sm:$0xff] }
 0x92c   :  { %v7654_v22 = vld [vmem:[%s9921_s15 + $0x8] sm:$0xff]  ;;  %v7675_v60 = vld [vmem:[%s9909_s3 + $0x78] sm:$0xff]  ;;  %v10630_v15 = vld [vmem:[#allocation49_spill] sm:$0xff] }
 0x92d   :  { %v2146_v13 = vadd.f32 %v2145_v44, %v2133_v12  ;;  %v7683_v12 = vld [vmem:[%s9909_s3 + $0x70] sm:$0xff] }
 0x92f   :  { %v2149_v50 = vpack.c.bf16 %v2146_v13, %v2146_v13  ;;  %v7648_v13 = vld [vmem:[%s9921_s15 + $0x10] sm:$0xff] }
 0x931   :  { %2158 = vmatmul.bf16.vlgmr.msra.gmra.mxu0 %v2149_v50  ;;  %v7636_v50 = vld [vmem:[%s9921_s15 + $0x20] sm:$0xff] }
 0x932   :  { %v2134_v16 = vpop.f32.mrf.mxu2  ;;  %v2147_v62 = vpop.f32.mrf.mxu3  ;;  %2305 = vmatpush.bf16.msra.mxu0 %v7618_v23 }
 0x933   :  { %v7630_v16 = vld [vmem:[%s9921_s15 + $0x28] sm:$0xff]  ;;  %v10631_v62 = vld [vmem:[#allocation7_spill] sm:$0xff] }
 0x934   :  { %v2172_v7 = vpop.f32.mrf.mxu1 }
 0x936   :  { %2306 = vmatpush.bf16.msra.mxu0 %v7624_v1 }
 0x93a   :  { %2307 = vmatpush.bf16.msra.mxu0 %v7630_v16 }
 0x93c   :  { %v2174_v44 = vpop.f32.mrf.mxu1 }
 0x93d   :  { %v10633_v44 = vld [vmem:[#allocation9_spill] sm:$0xff] }
 0x93e   :  { %2308 = vmatpush.bf16.msra.mxu0 %v7636_v50 }
 0x942   :  { %2309 = vmatpush.bf16.msra.mxu0 %v7642_v8 }
 0x946   :  { %2310 = vmatpush.bf16.msra.mxu0 %v7648_v13 }
 0x94a   :  { %2311 = vmatpush.bf16.msra.mxu0 %v7654_v22 }
 0x94e   :  { %2312 = vmatpush.bf16.msra.mxu0 %v7660_v47 }
 0x954   :  { %v7663_v29 = vpop.f32.mrf.mxu1 }
 0x95c   :  { %v2229_v24 = vpop.f32.mrf.mxu1 }
 0x95d   :  { %v10634_v24 = vld [vmem:[#allocation10_spill] sm:$0xff] }
 0x9ae   :  { %v2159_v58 = vpop.f32.mrf.mxu0 }
 0x9af   :  { %v2173_v19 = vadd.f32 %v2172_v7, %v2159_v58  ;;  %v10632_v7 = vld [vmem:[#allocation8_spill] sm:$0xff] }
 0x9b1   :  { %v2176_v38 = vadd.f32 %v7668_v46, %v2173_v19 }
 0x9b3   :  { %v2177_v14 = vmax.f32 %v2176_v38, 0.0 }
 0x9b5   :  { %v2178_v33 = vpack.c.bf16 %v2177_v14, %v2177_v14  ;;  %v10635_v14 = vld [vmem:[#allocation12_spill] sm:$0xff] }
 0x9b6   :  { %v2161_v27 = vpop.f32.mrf.mxu0 }
 0x9b7   :  { %2187 = vmatmul.bf16.vlgmr.msra.gmra.mxu2 %v2178_v33  ;;  %2200 = vmatmul.bf16.vlgmr.msra.gmra.mxu3 %v2178_v33 }
 0x9b8   :  { %2213 = vmatmul.bf16.vlgmr.msrb.gmra.mxu0 %v2178_v33  ;;  %2358 = vmatpush.bf16.msra.mxu2 %v7087_v41  ;;  %v7691_v41 = vld [vmem:[%s9909_s3 + $0x68] sm:$0xff]  ;;  %v2228_v33 = vadd.f32 %v7663_v29, %v10635_v14 }
 0x9b9   :  { %2423 = vmatpush.bf16.msrb.mxu0 %v7675_v60  ;;  %2410 = vmatpush.bf16.msra.mxu3 %v7094_v45  ;;  %v7699_v45 = vld [vmem:[%s9909_s3 + $0x60] sm:$0xff] }
 0x9bc   :  { %2359 = vmatpush.bf16.msra.mxu2 %v7100_v57  ;;  %v7709_v57 = vld [vmem:[%s9909_s3 + $0x58] sm:$0xff] }
 0x9bd   :  { %2424 = vmatpush.bf16.msrb.mxu0 %v7683_v12  ;;  %2411 = vmatpush.bf16.msra.mxu3 %v7107_v0  ;;  %v7717_v0 = vld [vmem:[%s9909_s3 + $0x50] sm:$0xff] }
 0x9c0   :  { %2360 = vmatpush.bf16.msra.mxu2 %v7113_v34  ;;  %v7725_v34 = vld [vmem:[%s9909_s3 + $0x48] sm:$0xff] }
 0x9c1   :  { %2425 = vmatpush.bf16.msrb.mxu0 %v7691_v41  ;;  %2412 = vmatpush.bf16.msra.mxu3 %v7120_v55  ;;  %v7734_v55 = vld [vmem:[%s9909_s3 + $0x40] sm:$0xff] }
 0x9c4   :  { %2361 = vmatpush.bf16.msra.mxu2 %v7126_v25  ;;  %v10619_v25 = vld [vmem:[#allocation34_spill] sm:$0xff] }
 0x9c5   :  { %2426 = vmatpush.bf16.msrb.mxu0 %v7699_v45  ;;  %2413 = vmatpush.bf16.msra.mxu3 %v7133_v53  ;;  %v10620_v53 = vld [vmem:[#allocation35_spill] sm:$0xff] }
 0x9c7   :  { %2239 = vmatmul.bf16.vlgmr.msrb.gmra.mxu2 %v7352_v4  ;;  %2252 = vmatmul.bf16.vlgmr.msrb.gmra.mxu3 %v7352_v4  ;;  %v10629_v4 = vld [vmem:[#allocation47_spill] sm:$0xff] }
 0x9c8   :  { %2362 = vmatpush.bf16.msra.mxu2 %v7141_v9  ;;  %v10621_v9 = vld [vmem:[#allocation39_spill] sm:$0xff] }
 0x9c9   :  { %2427 = vmatpush.bf16.msrb.mxu0 %v7709_v57  ;;  %2414 = vmatpush.bf16.msra.mxu3 %v7148_v63  ;;  %v10622_v63 = vld [vmem:[#allocation42_spill] sm:$0xff] }
 0x9cc   :  { %2363 = vmatpush.bf16.msra.mxu2 %v7154_v5  ;;  %v10623_v5 = vld [vmem:[#allocation41_spill] sm:$0xff] }
 0x9cd   :  { %2428 = vmatpush.bf16.msrb.mxu0 %v7717_v0  ;;  %2415 = vmatpush.bf16.msra.mxu3 %v7161_v18  ;;  %v10624_v18 = vld [vmem:[#allocation44_spill] sm:$0xff] }
 0x9d0   :  { %2364 = vmatpush.bf16.msra.mxu2 %v7167_v31  ;;  %v10625_v31 = vld [vmem:[#allocation43_spill] sm:$0xff] }
 0x9d1   :  { %2429 = vmatpush.bf16.msrb.mxu0 %v7725_v34  ;;  %2416 = vmatpush.bf16.msra.mxu3 %v7174_v11  ;;  %v10626_v11 = vld [vmem:[#allocation46_spill] sm:$0xff] }
 0x9d4   :  { %2365 = vmatpush.bf16.msra.mxu2 %v7180_v30  ;;  %v10627_v30 = vld [vmem:[#allocation45_spill] sm:$0xff] }
 0x9d5   :  { %2430 = vmatpush.bf16.msrb.mxu0 %v7734_v55  ;;  %2417 = vmatpush.bf16.msra.mxu3 %v10619_v25 }
 0x9d8   :  { %2449 = vmatpush.bf16.msrb.mxu2 %v7186_v51  ;;  %v10628_v51 = vld [vmem:[#allocation48_spill] sm:$0xff] }
 0x9d9   :  { %2462 = vmatpush.bf16.msrb.mxu3 %v10620_v53 }
 0x9dc   :  { %2450 = vmatpush.bf16.msrb.mxu2 %v10621_v9 }
 0x9dd   :  { %2463 = vmatpush.bf16.msrb.mxu3 %v10622_v63 }
 0x9e0   :  { %2451 = vmatpush.bf16.msrb.mxu2 %v10623_v5 }
 0x9e1   :  { %2464 = vmatpush.bf16.msrb.mxu3 %v10624_v18 }
 0x9e4   :  { %2452 = vmatpush.bf16.msrb.mxu2 %v10625_v31  ;;  %v4794_v31 = vld [vmem:[%s10318_s0 + $0x18] sm:$0xff] }
 0x9e5   :  { %2465 = vmatpush.bf16.msrb.mxu3 %v10626_v11  ;;  %v7759_v11 = vpack.c.bf16 %v4794_v31, %v4794_v31 }
 0x9e7   :  { %2366 = vmatmul.bf16.vlgmr.msra.gmra.mxu2 %v7759_v11 }
 0x9e8   :  { %2453 = vmatpush.bf16.msrb.mxu2 %v10627_v30 }
 0x9e9   :  { %2466 = vmatpush.bf16.msrb.mxu3 %v10628_v51  ;;  %v10636_v51 = vld [vmem:[#allocation11_spill] sm:$0xff] }
 0x9ec   :  { %2454 = vmatpush.bf16.msrb.mxu2 %v10629_v4 }
 0x9ed   :  { %2467 = vmatpush.bf16.msrb.mxu3 %v10630_v15 }
 0x9f0   :  { %2455 = vmatpush.bf16.msrb.mxu2 %v10631_v62  ;;  %v10637_v62 = vld [vmem:[#allocation14_spill] sm:$0xff] }
 0x9f1   :  { %2468 = vmatpush.bf16.msrb.mxu3 %v10632_v7 }
 0x9f4   :  { %2456 = vmatpush.bf16.msrb.mxu2 %v10633_v44  ;;  %v10638_v44 = vld [vmem:[#allocation6_spill] sm:$0xff] }
 0x9f5   :  { %2469 = vmatpush.bf16.msrb.mxu3 %v10634_v24 }
 0x9f8   :  { %2501 = vmatpush.bf16.msra.mxu2 %v10636_v51 }
 0xa35   :  { %v2214_v58 = vpop.f32.mrf.mxu0 }
 0xa3a   :  { %v2188_v19 = vpop.f32.mrf.mxu2  ;;  %v2201_v38 = vpop.f32.mrf.mxu3 }
 0xa3b   :  { %v2189_v27 = vadd.f32 %v2188_v19, %v10541_v37  ;;  %v2202_v7 = vadd.f32 %v2201_v38, %v10637_v62  ;;  %v10646_v62 = vld [vmem:[#allocation22_spill] sm:$0xff] }
 0xa3d   :  { %v2257_v25 = vadd.f32 %v2228_v33, %v2189_v27  ;;  %v2216_v53 = vpop.f32.mrf.mxu0  ;;  %v10639_v33 = vld [vmem:[#allocation13_spill] sm:$0xff] }
 0xa3e   :  { %2502 = vmatpush.bf16.msra.mxu2 %v10639_v33  ;;  %v10640_v53 = vld [vmem:[#allocation106_spill] sm:$0xff] }
 0xa3f   :  { %v2258_v9 = vsub.f32 0.0, %v2257_v25 }
 0xa41   :  { %v2259_v63 = vmul.f32 1.442695, %v2258_v9 }
 0xa42   :  { %v2190_v5 = vpop.f32.mrf.mxu2  ;;  %v2203_v18 = vpop.f32.mrf.mxu3  ;;  %2503 = vmatpush.bf16.msra.mxu2 %v10640_v53  ;;  %v10643_v53 = vld [vmem:[#allocation109_spill] sm:$0xff] }
 0xa43   :  { %5008 = vpow2.f32 %v2259_v63 }
 0xa49   :  { %v5009_v30 = vpop.eup %5008 }
 0xa4a   :  { %v2261_v29 = vadd.f32 1.0, %v5009_v30  ;;  %v2240_v4 = vpop.f32.mrf.mxu2  ;;  %v2253_v15 = vpop.f32.mrf.mxu3  ;;  %v10641_v30 = vld [vmem:[#allocation107_spill] sm:$0xff] }
 0xa4b   :  { %v2241_v24 = vadd.f32 %v2240_v4, %v10638_v44  ;;  %2504 = vmatpush.bf16.msra.mxu2 %v10641_v30 }
 0xa4c   :  { %5010 = vrcp.f32 %v2261_v29  ;;  %v2273_v38 = vand.u32 2147483648, %v2261_v29  ;;  %v2271_v4 = vand.u32 2147483647, %v2261_v29  ;;  %vm2267_vm13 = vweird.f32 %v2261_v29 }
 0xa4d   :  { %v2277_v19 = vadd.f32 %v2241_v24, %v2202_v7  ;;  %v10642_v24 = vld [vmem:[#allocation108_spill] sm:$0xff] }
 0xa4e   :  { %vm2272_vm15 = vcmp.eq.f32.partialorder %v2271_v4, 8.507059e+37 }
 0xa4f   :  { %v2278_v27 = vsub.f32 0.0, %v2277_v19  ;;  %2505 = vmatpush.bf16.msra.mxu2 %v10642_v24 }
 0xa51   :  { %v2279_v25 = vmul.f32 1.442695, %v2278_v27  ;;  %v2274_v27 = vor.u32 1.1754944e-38, %v2273_v38 }
 0xa52   :  { %v5011_v9 = vpop.eup %5010  ;;  %v2242_v63 = vpop.f32.mrf.mxu2 }
 0xa53   :  { %v2255_v5 = vpop.f32.mrf.mxu3  ;;  %5012 = vpow2.f32 %v2279_v25  ;;  %v2263_v18 = vmul.f32 %v5011_v9, %v2261_v29  ;;  %vm2268_vm12 = vweird.f32 %v5011_v9  ;;  %2506 = vmatpush.bf16.msra.mxu2 %v10643_v53  ;;  %v10644_v63 = vld [vmem:[#allocation18_spill] sm:$0xff] }
 0xa54   :  { %vm2269_vm14 = vmor %vm2267_vm13, %vm2268_vm12  ;;  %v2254_v5 = vadd.f32 %v2253_v15, %v10644_v63 }
 0xa55   :  { %v2264_v31 = vsub.f32 1.0, %v2263_v18 }
 0xa57   :  { %v2265_v51 = vmul.f32 %v5011_v9, %v2264_v31  ;;  %v10645_v31 = vld [vmem:[#allocation110_spill] sm:$0xff] }
 0xa58   :  { %2507 = vmatpush.bf16.msra.mxu2 %v10645_v31 }
 0xa59   :  { %v5013_v44 = vpop.eup %5012  ;;  %v2266_v7 = vadd.f32 %v5011_v9, %v2265_v51  ;;  %v2215_v51 = vadd.f32 %v2214_v58, %v10646_v62 }
 0xa5a   :  { %v2281_v19 = vadd.f32 1.0, %v5013_v44  ;;  %v10647_v44 = vld [vmem:[#allocation111_spill] sm:$0xff] }
 0xa5b   :  { %v2270_v33 = vsel %vm2269_vm14, %v5011_v9, %v2266_v7 }
 0xa5c   :  { %5014 = vrcp.f32 %v2281_v19  ;;  %v2275_v25 = vsel %vm2272_vm15, %v2274_v27, %v2270_v33  ;;  %2508 = vmatpush.bf16.msra.mxu2 %v10647_v44  ;;  %v2293_v9 = vand.u32 2147483648, %v2281_v19  ;;  %v2291_v4 = vand.u32 2147483647, %v2281_v19  ;;  %v7816_v44 = vld [vmem:[%s9909_s3 + $0x1a8] sm:$0xff] }
 0xa5d   :  { %v2297_v18 = vmul.f32 %v2275_v25, %v2254_v5  ;;  %vm2287_vm1 = vweird.f32 %v2281_v19  ;;  %v10648_v5 = vld [vmem:[#allocation17_spill] sm:$0xff]  ;;  %10655 = vst [vmem:[#allocation28_spill] sm:$0xff] %v7816_v44 }
 0xa5e   :  { %v2294_v15 = vor.u32 1.1754944e-38, %v2293_v9  ;;  %vm2292_vm3 = vcmp.eq.f32.partialorder %v2291_v4, 8.507059e+37  ;;  %v7822_v9 = vld [vmem:[%s9909_s3 + $0x160] sm:$0xff]  ;;  %v7834_v4 = vld [vmem:[%s9909_s3 + $0x158] sm:$0xff] }
 0xa5f   :  { %v2298_v37 = vadd.f32 %v2297_v18, %v2215_v51  ;;  %10656 = vst [vmem:[#allocation29_spill] sm:$0xff] %v7822_v9 }
 0xa60   :  { %10658 = vst [vmem:[#allocation36_spill] sm:$0xff] %v7834_v4 }
 0xa61   :  { %5016 = vtanh.f32 %v2298_v37  ;;  %v7786_v37 = vld [vmem:[%s9909_s3 + $0x178] sm:$0xff] }
 0xa62   :  { %v5015_v30 = vpop.eup %5014  ;;  %10650 = vst [vmem:[#allocation20_spill] sm:$0xff] %v7786_v37 }
 0xa63   :  { %v2283_v29 = vmul.f32 %v5015_v30, %v2281_v19  ;;  %vm2288_vm0 = vweird.f32 %v5015_v30  ;;  %v7792_v19 = vld [vmem:[%s9909_s3 + $0x1b8] sm:$0xff] }
 0xa64   :  { %vm2289_vm2 = vmor %vm2287_vm1, %vm2288_vm0  ;;  %10651 = vst [vmem:[#allocation23_spill] sm:$0xff] %v7792_v19 }
 0xa65   :  { %v2284_v24 = vsub.f32 1.0, %v2283_v29  ;;  %v7804_v29 = vld [vmem:[%s9909_s3 + $0x1b0] sm:$0xff] }
 0xa66   :  { %10653 = vst [vmem:[#allocation26_spill] sm:$0xff] %v7804_v29 }
 0xa67   :  { %v2285_v38 = vmul.f32 %v5015_v30, %v2284_v24  ;;  %v5017_v53 = vpop.eup %5016  ;;  %v7810_v24 = vld [vmem:[%s9909_s3 + $0x168] sm:$0xff] }
 0xa68   :  { %10654 = vst [vmem:[#allocation27_spill] sm:$0xff] %v7810_v24 }
 0xa69   :  { %v2286_v7 = vadd.f32 %v5015_v30, %v2285_v38  ;;  %v7828_v38 = vld [vmem:[%s9909_s3 + $0x1a0] sm:$0xff] }
 0xa6a   :  { %10657 = vst [vmem:[#allocation30_spill] sm:$0xff] %v7828_v38 }
 0xa6b   :  { %v2290_v33 = vsel %vm2289_vm2, %v5015_v30, %v2286_v7  ;;  %v7798_v30 = vld [vmem:[%s9909_s3 + $0x170] sm:$0xff]  ;;  %v7840_v7 = vld [vmem:[%s9909_s3 + $0x198] sm:$0xff] }
 0xa6c   :  { %v2295_v27 = vsel %vm2292_vm3, %v2294_v15, %v2290_v33  ;;  %10652 = vst [vmem:[#allocation24_spill] sm:$0xff] %v7798_v30  ;;  %v10660_v15 = vld [vmem:[#allocation21_spill] sm:$0xff] }
 0xa6d   :  { %v2300_v25 = vsub.f32 1.0, %v2295_v27  ;;  %v2302_v18 = vmul.f32 %v2295_v27, %v10648_v5  ;;  %10659 = vst [vmem:[#allocation31_spill] sm:$0xff] %v7840_v7  ;;  %v10661_v33 = vld [vmem:[#allocation25_spill] sm:$0xff]  ;;  %v10662_v27 = vld [vmem:[#allocation98_spill] sm:$0xff]  ;;  %v2367_v5 = vpop.f32.mrf.mxu2 }
 0xa6f   :  { %v2301_v58 = vmul.f32 %v5017_v53, %v2300_v25  ;;  %v10663_v25 = vld [vmem:[#allocation99_spill] sm:$0xff]  ;;  %v10664_v53 = vld [vmem:[#allocation100_spill] sm:$0xff] }
 0xa71   :  { %v7775_v31 = vadd.f32 %v2302_v18, %v2301_v58  ;;  %v10665_v58 = vld [vmem:[#allocation101_spill] sm:$0xff] }
 0xa73   :  { %10649 = vst [vmem:[#allocation19_spill] sm:$0xff] %v7775_v31  ;;  %v7779_v51 = vpack.c.bf16 %v7775_v31, %v7775_v31 }
 0xa75   :  { %2313 = vmatmul.bf16.vlgmr.msra.gmra.mxu0 %v7779_v51  ;;  %2353 = vmatmul.bf16.vlgmr.msra.gmra.mxu1 %v7779_v51  ;;  %v2369_v18 = vpop.f32.mrf.mxu2 }
 0xa76   :  { %2475 = vmatpush.bf16.msra.mxu0 %v7786_v37  ;;  %2488 = vmatpush.bf16.msra.mxu1 %v7792_v19 }
 0xa7a   :  { %2476 = vmatpush.bf16.msra.mxu0 %v7798_v30  ;;  %2489 = vmatpush.bf16.msra.mxu1 %v7804_v29 }
 0xa7e   :  { %2477 = vmatpush.bf16.msra.mxu0 %v7810_v24  ;;  %2490 = vmatpush.bf16.msra.mxu1 %v7816_v44 }
 0xa82   :  { %2478 = vmatpush.bf16.msra.mxu0 %v7822_v9  ;;  %2491 = vmatpush.bf16.msra.mxu1 %v7828_v38 }
 0xa86   :  { %2479 = vmatpush.bf16.msra.mxu0 %v7834_v4  ;;  %2492 = vmatpush.bf16.msra.mxu1 %v7840_v7 }
 0xa8a   :  { %2480 = vmatpush.bf16.msra.mxu0 %v10660_v15  ;;  %2493 = vmatpush.bf16.msra.mxu1 %v10661_v33  ;;  %v7854_v15 = vld [vmem:[%s9913_s7] ss:$0 sm:$0xff] }
 0xa8b   :  { %10667 = vst [vmem:[#allocation37_spill] sm:$0xff] %v7854_v15 }
 0xa8e   :  { %2481 = vmatpush.bf16.msra.mxu0 %v10662_v27  ;;  %2494 = vmatpush.bf16.msra.mxu1 %v10663_v25 }
 0xa92   :  { %2482 = vmatpush.bf16.msra.mxu0 %v10664_v53  ;;  %2495 = vmatpush.bf16.msra.mxu1 %v10665_v58 }
 0xaf2   :  { %v7849_v4 = vpop.f32.mrf.mxu0  ;;  %v2354_v38 = vpop.f32.mrf.mxu1 }
 0xaf3   :  { %10666 = vst [vmem:[#allocation38_spill] sm:$0xff] %v7849_v4  ;;  %v2368_v9 = vadd.f32 %v2367_v5, %v2354_v38 }
 0xaf5   :  { %v2371_v33 = vadd.f32 %v7854_v15, %v2368_v9 }
 0xaf7   :  { %2372 = vmax.xlane.f32.xlu0 %v2371_v33 }
 0xafa   :  { %v2316_v27 = vpop.f32.mrf.mxu0  ;;  %v2356_v25 = vpop.f32.mrf.mxu1 }
 0xb6a   :  { %v2373_v7 = vpop.xlane.xlu0 %2372 }
 0xb6b   :  { %v2374_v53 = vsub.f32 %v2371_v33, %v2373_v7 }
 0xb6d   :  { %v2375_v44 = vmul.f32 1.442695, %v2374_v53 }
 0xb6f   :  { %5018 = vpow2.f32 %v2375_v44 }
 0xb75   :  { %v5019_v58 = vpop.eup %5018 }
 0xb76   :  { %2377 = vadd.xlane.f32.xlu1 %v5019_v58 }
 0xbe9   :  { %v2378_v18 = vpop.xlane.xlu1 %2377 }
 0xbea   :  { %5020 = vrcp.f32 %v2378_v18  ;;  %v2390_v24 = vand.u32 2147483648, %v2378_v18  ;;  %v2388_v30 = vand.u32 2147483647, %v2378_v18  ;;  %vm2384_vm5 = vweird.f32 %v2378_v18 }
 0xbec   :  { %v2391_v9 = vor.u32 1.1754944e-38, %v2390_v24  ;;  %vm2389_vm7 = vcmp.eq.f32.partialorder %v2388_v30, 8.507059e+37 }
 0xbf0   :  { %v5021_v4 = vpop.eup %5020 }
 0xbf1   :  { %v2380_v38 = vmul.f32 %v5021_v4, %v2378_v18  ;;  %vm2385_vm4 = vweird.f32 %v5021_v4  ;;  %v10682_v18 = vld [vmem:[#allocation116_spill] sm:$0xff] }
 0xbf2   :  { %vm2386_vm6 = vmor %vm2384_vm5, %vm2385_vm4 }
 0xbf3   :  { %v2381_v5 = vsub.f32 1.0, %v2380_v38 }
 0xbf5   :  { %v2382_v29 = vmul.f32 %v5021_v4, %v2381_v5 }
 0xbf7   :  { %v2383_v19 = vadd.f32 %v5021_v4, %v2382_v29  ;;  %v10674_v29 = vld [vmem:[#allocation56_spill] sm:$0xff] }
 0xbf9   :  { %v2387_v27 = vsel %vm2386_vm6, %v5021_v4, %v2383_v19 }
 0xbfa   :  { %v2392_v7 = vsel %vm2389_vm7, %v2391_v9, %v2387_v27  ;;  %v10683_v9 = vld [vmem:[#allocation51_spill] sm:$0xff] }
 0xbfb   :  { %v2393_v33 = vmul.f32 %v5019_v58, %v2392_v7  ;;  %v10679_v58 = vld [vmem:[#allocation70_spill] sm:$0xff]  ;;  %v10686_v27 = vld [vmem:[#allocation83_spill] sm:$0xff] }
 0xbfc   :  { %v10687_v7 = vld [vmem:[#allocation74_spill] sm:$0xff] }
 0xbfd   :  { %v2394_v44 = vmul.f32 %v7408_v10, %v2393_v33  ;;  %v2395_v25 = vmul.f32 %v7414_v32, %v2393_v33  ;;  %v2396_v53 = vmul.f32 %v7420_v40, %v2393_v33  ;;  %v2397_v38 = vmul.f32 %v7426_v42, %v2393_v33  ;;  %v10668_v10 = vld [vmem:[#allocation58_spill] sm:$0xff]  ;;  %v10669_v32 = vld [vmem:[#allocation103_spill] sm:$0xff]  ;;  %v10670_v40 = vld [vmem:[#allocation104_spill] sm:$0xff] }
 0xbfe   :  { %v2398_v42 = vmul.f32 %v10670_v40, %v2393_v33  ;;  %v2401_v30 = vmul.f32 %v7490_v35, %v2393_v33  ;;  %v10676_v35 = vld [vmem:[#allocation76_spill] sm:$0xff]  ;;  %v10695_v40 = vld [vmem:[#allocation82_spill] sm:$0xff] }
 0xbff   :  { %v2402_v15 = vpack.c.bf16 %v2394_v44, %v2394_v44  ;;  %v2403_v5 = vpack.c.bf16 %v2395_v25, %v2395_v25  ;;  %v2404_v37 = vpack.c.bf16 %v2396_v53, %v2396_v53  ;;  %v2405_v31 = vpack.c.bf16 %v2397_v38, %v2397_v38  ;;  %v10689_v44 = vld [vmem:[#allocation53_spill] sm:$0xff]  ;;  %v10690_v25 = vld [vmem:[#allocation59_spill] sm:$0xff]  ;;  %v10691_v53 = vld [vmem:[#allocation78_spill] sm:$0xff] }
 0xc00   :  { %v2409_v4 = vpack.c.bf16 %v2401_v30, %v2401_v30  ;;  %v10692_v38 = vld [vmem:[#allocation88_spill] sm:$0xff]  ;;  %v10703_v30 = vld [vmem:[#allocation87_spill] sm:$0xff] }
 0xc01   :  { %2418 = vmatmul.bf16.vlgmr.msra.gmra.mxu3 %v2402_v15  ;;  %2431 = vmatmul.bf16.vlgmr.msrb.gmra.mxu0 %v2403_v5  ;;  %v10678_v15 = vld [vmem:[#allocation114_spill] sm:$0xff]  ;;  %v10693_v5 = vld [vmem:[#allocation57_spill] sm:$0xff] }
 0xc02   :  { %2444 = vmatmul.bf16.vlgmr.msrb.gmra.mxu1 %v2404_v37  ;;  %2457 = vmatmul.bf16.vlgmr.msrb.gmra.mxu2 %v2405_v31  ;;  %v10671_v31 = vld [vmem:[#allocation105_spill] sm:$0xff]  ;;  %v10672_v37 = vld [vmem:[#allocation16_spill] sm:$0xff] }
 0xc03   :  { %2528 = vmatpush.bf16.msrb.mxu0 %v7432_v39  ;;  %2515 = vmatpush.bf16.msra.mxu3 %v7438_v26  ;;  %v2399_v39 = vmul.f32 %v10671_v31, %v2393_v33  ;;  %v10673_v26 = vld [vmem:[#allocation112_spill] sm:$0xff]  ;;  %v10698_v31 = vld [vmem:[#allocation67_spill] sm:$0xff] }
 0xc04   :  { %2544 = vmatpush.bf16.msrb.mxu1 %v10464_v2  ;;  %2557 = vmatpush.bf16.msrb.mxu2 %v10465_v48  ;;  %v2400_v19 = vmul.f32 %v10673_v26, %v2393_v33  ;;  %v10688_v33 = vld [vmem:[#allocation86_spill] sm:$0xff] }
 0xc05   :  { %v10701_v26 = vld [vmem:[#allocation66_spill] sm:$0xff] }
 0xc06   :  { %v2408_v24 = vpack.c.bf16 %v2400_v19, %v2400_v19  ;;  %v10702_v19 = vld [vmem:[#allocation73_spill] sm:$0xff] }
 0xc07   :  { %2529 = vmatpush.bf16.msrb.mxu0 %v7446_v61  ;;  %2516 = vmatpush.bf16.msra.mxu3 %v7452_v17  ;;  %v2406_v61 = vpack.c.bf16 %v2398_v42, %v2398_v42  ;;  %v2407_v17 = vpack.c.bf16 %v2399_v39, %v2399_v39  ;;  %v10696_v42 = vld [vmem:[#allocation90_spill] sm:$0xff]  ;;  %v10699_v39 = vld [vmem:[#allocation85_spill] sm:$0xff] }
 0xc08   :  { %2545 = vmatpush.bf16.msrb.mxu1 %v10468_v21  ;;  %2558 = vmatpush.bf16.msrb.mxu2 %v10668_v10 }
 0xc0b   :  { %2530 = vmatpush.bf16.msrb.mxu0 %v10669_v32  ;;  %2517 = vmatpush.bf16.msra.mxu3 %v10672_v37  ;;  %v10694_v32 = vld [vmem:[#allocation63_spill] sm:$0xff]  ;;  %v10700_v37 = vld [vmem:[#allocation92_spill] sm:$0xff] }
 0xc0c   :  { %2546 = vmatpush.bf16.msrb.mxu1 %v10674_v29  ;;  %2559 = vmatpush.bf16.msrb.mxu2 %v6302_v28 }
 0xc0f   :  { %2531 = vmatpush.bf16.msrb.mxu0 %v7498_v3  ;;  %2518 = vmatpush.bf16.msra.mxu3 %v7504_v56  ;;  %v10675_v56 = vld [vmem:[#allocation68_spill] sm:$0xff]  ;;  %v10677_v3 = vld [vmem:[#allocation113_spill] sm:$0xff] }
 0xc10   :  { %2547 = vmatpush.bf16.msrb.mxu1 %v10478_v36  ;;  %2560 = vmatpush.bf16.msrb.mxu2 %v10479_v43 }
 0xc11   :  { %2470 = vmatmul.bf16.vlgmr.msrb.gmra.mxu3 %v2406_v61  ;;  %2483 = vmatmul.bf16.vlgmr.msra.gmra.mxu0 %v2407_v17  ;;  %v10704_v61 = vld [vmem:[#allocation94_spill] sm:$0xff]  ;;  %v10705_v17 = vld [vmem:[#allocation69_spill] sm:$0xff] }
 0xc12   :  { %2496 = vmatmul.bf16.vlgmr.msra.gmra.mxu1 %v2408_v24  ;;  %2509 = vmatmul.bf16.vlgmr.msra.gmra.mxu2 %v2409_v4  ;;  %v10706_v24 = vld [vmem:[#allocation77_spill] sm:$0xff] }
 0xc13   :  { %2532 = vmatpush.bf16.msrb.mxu0 %v7512_v20  ;;  %2519 = vmatpush.bf16.msra.mxu3 %v7518_v59  ;;  %v10680_v20 = vld [vmem:[#allocation80_spill] sm:$0xff]  ;;  %v10681_v59 = vld [vmem:[#allocation115_spill] sm:$0xff]  ;;  %v10707_v4 = vld [vmem:[#allocation89_spill] sm:$0xff] }
 0xc14   :  { %2548 = vmatpush.bf16.msrb.mxu1 %v10482_v49  ;;  %2561 = vmatpush.bf16.msrb.mxu2 %v6393_v52 }
 0xc17   :  { %2533 = vmatpush.bf16.msrb.mxu0 %v7526_v6  ;;  %2520 = vmatpush.bf16.msra.mxu3 %v7532_v54  ;;  %v10684_v6 = vld [vmem:[#allocation55_spill] sm:$0xff] }
 0xc18   :  { %2549 = vmatpush.bf16.msrb.mxu1 %v10675_v56  ;;  %2562 = vmatpush.bf16.msrb.mxu2 %v10676_v35  ;;  %v10685_v54 = vld [vmem:[#allocation71_spill] sm:$0xff] }
 0xc1b   :  { %2534 = vmatpush.bf16.msrb.mxu0 %v10677_v3  ;;  %2521 = vmatpush.bf16.msra.mxu3 %v10678_v15  ;;  %v10708_v3 = vld [vmem:[#allocation95_spill] sm:$0xff] }
 0xc1c   :  { %2550 = vmatpush.bf16.msrb.mxu1 %v10679_v58  ;;  %2563 = vmatpush.bf16.msrb.mxu2 %v10680_v20  ;;  %v10709_v15 = vld [vmem:[#allocation75_spill] sm:$0xff] }
 0xc1f   :  { %2535 = vmatpush.bf16.msrb.mxu0 %v10681_v59  ;;  %2522 = vmatpush.bf16.msra.mxu3 %v10682_v18  ;;  %v10710_v59 = vld [vmem:[#allocation81_spill] sm:$0xff]  ;;  %v10711_v18 = vld [vmem:[#allocation91_spill] sm:$0xff] }
 0xc20   :  { %2551 = vmatpush.bf16.msrb.mxu1 %v10685_v54  ;;  %2564 = vmatpush.bf16.msrb.mxu2 %v10686_v27 }
 0xc22   :  { %2536 = vmatmul.bf16.vlgmr.msrb.gmra.mxu0 %v7759_v11  ;;  %v10697_v11 = vld [vmem:[#allocation62_spill] sm:$0xff] }
 0xc23   :  { %2583 = vmatpush.bf16.msra.mxu0 %v10683_v9  ;;  %2570 = vmatpush.bf16.msrb.mxu3 %v10684_v6 }
 0xc24   :  { %2596 = vmatpush.bf16.msra.mxu1 %v10687_v7  ;;  %2609 = vmatpush.bf16.msra.mxu2 %v10688_v33 }
 0xc27   :  { %2584 = vmatpush.bf16.msra.mxu0 %v10689_v44  ;;  %2571 = vmatpush.bf16.msrb.mxu3 %v10690_v25 }
 0xc28   :  { %2597 = vmatpush.bf16.msra.mxu1 %v10691_v53  ;;  %2610 = vmatpush.bf16.msra.mxu2 %v10692_v38 }
 0xc2b   :  { %2585 = vmatpush.bf16.msra.mxu0 %v10693_v5  ;;  %2572 = vmatpush.bf16.msrb.mxu3 %v10694_v32 }
 0xc2c   :  { %2598 = vmatpush.bf16.msra.mxu1 %v10695_v40  ;;  %2611 = vmatpush.bf16.msra.mxu2 %v10696_v42 }
 0xc2f   :  { %2586 = vmatpush.bf16.msra.mxu0 %v10697_v11  ;;  %2573 = vmatpush.bf16.msrb.mxu3 %v10698_v31 }
 0xc30   :  { %2599 = vmatpush.bf16.msra.mxu1 %v10699_v39  ;;  %2612 = vmatpush.bf16.msra.mxu2 %v10700_v37 }
 0xc33   :  { %2587 = vmatpush.bf16.msra.mxu0 %v10701_v26  ;;  %2574 = vmatpush.bf16.msrb.mxu3 %v10702_v19  ;;  %v10712_v26 = vld [vmem:[#allocation96_spill] sm:$0xff]  ;;  %v10713_v19 = vld [vmem:[#allocation79_spill] sm:$0xff] }
 0xc34   :  { %2600 = vmatpush.bf16.msra.mxu1 %v10703_v30  ;;  %2613 = vmatpush.bf16.msra.mxu2 %v10704_v61  ;;  %v10714_v30 = vld [vmem:[#allocation84_spill] sm:$0xff] }
 0xc37   :  { %2588 = vmatpush.bf16.msra.mxu0 %v10705_v17  ;;  %2575 = vmatpush.bf16.msrb.mxu3 %v10706_v24  ;;  %v7931_v24 = vld [vmem:[%s9912_s6 + $0x38] sm:$0xff] }
 0xc38   :  { %2601 = vmatpush.bf16.msra.mxu1 %v10707_v4  ;;  %2614 = vmatpush.bf16.msra.mxu2 %v10708_v3  ;;  %10715 = vst [vmem:[#allocation32_spill] sm:$0xff] %v7931_v24  ;;  %v10716_v3 = vld [vmem:[#allocation93_spill] sm:$0xff] }
 0xc3b   :  { %2589 = vmatpush.bf16.msra.mxu0 %v10709_v15  ;;  %2576 = vmatpush.bf16.msrb.mxu3 %v10710_v59  ;;  %v10717_v59 = vld [vmem:[#allocation97_spill] sm:$0xff] }
 0xc3c   :  { %2602 = vmatpush.bf16.msra.mxu1 %v10711_v18  ;;  %2615 = vmatpush.bf16.msra.mxu2 %v10712_v26  ;;  %v7940_v26 = vld [vmem:[%s9912_s6 + $0x30] sm:$0xff] }
 0xc3d   :  { %10718 = vst [vmem:[#allocation33_spill] sm:$0xff] %v7940_v26 }
 0xc3f   :  { %2590 = vmatpush.bf16.msra.mxu0 %v10713_v19  ;;  %2577 = vmatpush.bf16.msrb.mxu3 %v10714_v30  ;;  %v7946_v30 = vld [vmem:[%s9912_s6 + $0x28] sm:$0xff] }
 0xc40   :  { %2603 = vmatpush.bf16.msra.mxu1 %v10716_v3  ;;  %2616 = vmatpush.bf16.msra.mxu2 %v10717_v59  ;;  %10719 = vst [vmem:[#allocation40_spill] sm:$0xff] %v7946_v30  ;;  %v7952_v3 = vld [vmem:[%s9912_s6 + $0x20] sm:$0xff]  ;;  %v7958_v59 = vld [vmem:[%s9912_s6 + $0x18] sm:$0xff] }
 0xc41   :  { %10720 = vst [vmem:[#allocation34_spill] sm:$0xff] %v7952_v3 }
 0xc42   :  { %2591 = vmatmul.bf16.vlgmr.msra.gmra.mxu0 %v7779_v51  ;;  %10721 = vst [vmem:[#allocation35_spill] sm:$0xff] %v7958_v59 }
 0xc43   :  { %2710 = vmatpush.bf16.msrb.mxu0 %v7931_v24 }
 0xc47   :  { %2711 = vmatpush.bf16.msrb.mxu0 %v7940_v26  ;;  %v7964_v26 = vld [vmem:[%s9912_s6 + $0x10] sm:$0xff] }
 0xc48   :  { %10722 = vst [vmem:[#allocation39_spill] sm:$0xff] %v7964_v26 }
 0xc4b   :  { %2712 = vmatpush.bf16.msrb.mxu0 %v7946_v30  ;;  %v7970_v30 = vld [vmem:[%s9912_s6 + $0x8] sm:$0xff] }
 0xc4c   :  { %10723 = vst [vmem:[#allocation42_spill] sm:$0xff] %v7970_v30 }
 0xc4f   :  { %2713 = vmatpush.bf16.msrb.mxu0 %v7952_v3  ;;  %v7976_v3 = vld [vmem:[%s9912_s6] sm:$0xff] }
 0xc50   :  { %10724 = vst [vmem:[#allocation41_spill] sm:$0xff] %v7976_v3 }
 0xc53   :  { %2714 = vmatpush.bf16.msrb.mxu0 %v7958_v59  ;;  %v7982_v59 = vld [vmem:[%s9909_s3 + $0xb8] sm:$0xff] }
 0xc54   :  { %10725 = vst [vmem:[#allocation44_spill] sm:$0xff] %v7982_v59 }
 0xc57   :  { %2715 = vmatpush.bf16.msrb.mxu0 %v7964_v26  ;;  %v7988_v26 = vld [vmem:[%s9909_s3 + $0xb0] sm:$0xff] }
 0xc58   :  { %10726 = vst [vmem:[#allocation43_spill] sm:$0xff] %v7988_v26 }
 0xc5b   :  { %2716 = vmatpush.bf16.msrb.mxu0 %v7970_v30  ;;  %v7994_v30 = vld [vmem:[%s9909_s3 + $0xa8] sm:$0xff] }
 0xc5c   :  { %10727 = vst [vmem:[#allocation46_spill] sm:$0xff] %v7994_v30 }
 0xc5f   :  { %2717 = vmatpush.bf16.msrb.mxu0 %v7976_v3  ;;  %v8000_v3 = vld [vmem:[%s9909_s3 + $0xa0] sm:$0xff] }
 0xc60   :  { %10728 = vst [vmem:[#allocation45_spill] sm:$0xff] %v8000_v3 }
 0xc63   :  { %2801 = vmatpush.bf16.msra.mxu0 %v7982_v59  ;;  %v8006_v59 = vld [vmem:[%s9909_s3 + $0x98] sm:$0xff] }
 0xc64   :  { %10729 = vst [vmem:[#allocation48_spill] sm:$0xff] %v8006_v59 }
 0xc67   :  { %2802 = vmatpush.bf16.msra.mxu0 %v7988_v26  ;;  %v8012_v26 = vld [vmem:[%s9909_s3 + $0x90] sm:$0xff] }
 0xc68   :  { %10730 = vst [vmem:[#allocation47_spill] sm:$0xff] %v8012_v26 }
 0xc6b   :  { %2803 = vmatpush.bf16.msra.mxu0 %v7994_v30  ;;  %v8018_v30 = vld [vmem:[%s9909_s3 + $0x88] sm:$0xff] }
 0xc6c   :  { %10731 = vst [vmem:[#allocation49_spill] sm:$0xff] %v8018_v30 }
 0xc6f   :  { %2804 = vmatpush.bf16.msra.mxu0 %v8000_v3  ;;  %v8024_v3 = vld [vmem:[%s9909_s3 + $0x80] sm:$0xff] }
 0xc70   :  { %10732 = vst [vmem:[#allocation7_spill] sm:$0xff] %v8024_v3 }
 0xc73   :  { %2805 = vmatpush.bf16.msra.mxu0 %v8006_v59 }
 0xc77   :  { %2806 = vmatpush.bf16.msra.mxu0 %v8012_v26 }
 0xc7b   :  { %2807 = vmatpush.bf16.msra.mxu0 %v8018_v30 }
 0xc7e   :  { %v2432_v59 = vpop.f32.mrf.mxu0 }
 0xc7f   :  { %2808 = vmatpush.bf16.msra.mxu0 %v8024_v3  ;;  %v2445_v24 = vpop.f32.mrf.mxu1 }
 0xc84   :  { %v2419_v19 = vpop.f32.mrf.mxu3 }
 0xc85   :  { %v2458_v18 = vpop.f32.mrf.mxu2  ;;  %v2433_v4 = vadd.f32 %v2432_v59, %v2419_v19  ;;  %v8231_v59 = vld [vmem:[%s9909_s3 + $0xc0] sm:$0xff] }
 0xc86   :  { %v2434_v15 = vpop.f32.mrf.mxu0  ;;  %10741 = vst [vmem:[#allocation108_spill] sm:$0xff] %v8231_v59 }
 0xc87   :  { %v2447_v26 = vpop.f32.mrf.mxu1  ;;  %v2446_v39 = vadd.f32 %v2445_v24, %v2433_v4  ;;  %v8207_v24 = vld [vmem:[%s9909_s3 + $0xd0] sm:$0xff]  ;;  %v8225_v15 = vld [vmem:[%s9909_s3 + $0x108] sm:$0xff] }
 0xc88   :  { %10737 = vst [vmem:[#allocation11_spill] sm:$0xff] %v8207_v24  ;;  %v8213_v4 = vld [vmem:[%s9909_s3 + $0x110] sm:$0xff] }
 0xc89   :  { %v2459_v30 = vadd.f32 %v2458_v18, %v2446_v39  ;;  %v8177_v39 = vld [vmem:[%s9909_s3 + $0x128] sm:$0xff]  ;;  %10738 = vst [vmem:[#allocation13_spill] sm:$0xff] %v8213_v4  ;;  %v8237_v18 = vld [vmem:[%s9909_s3 + $0x100] sm:$0xff] }
 0xc8a   :  { %10740 = vst [vmem:[#allocation107_spill] sm:$0xff] %v8225_v15 }
 0xc8b   :  { %10742 = vst [vmem:[#allocation109_spill] sm:$0xff] %v8237_v18 }
 0xc8c   :  { %v2421_v17 = vpop.f32.mrf.mxu3 }
 0xc8d   :  { %v2460_v61 = vpop.f32.mrf.mxu2  ;;  %v8201_v17 = vld [vmem:[%s9909_s3 + $0x118] sm:$0xff] }
 0xc8e   :  { %v2484_v37 = vpop.f32.mrf.mxu0  ;;  %v8195_v61 = vld [vmem:[%s9909_s3 + $0xd8] sm:$0xff]  ;;  %10736 = vst [vmem:[#allocation12_spill] sm:$0xff] %v8201_v17 }
 0xc8f   :  { %v2497_v31 = vpop.f32.mrf.mxu1  ;;  %10735 = vst [vmem:[#allocation10_spill] sm:$0xff] %v8195_v61 }
 0xc94   :  { %v2471_v11 = vpop.f32.mrf.mxu3 }
 0xc95   :  { %v2472_v42 = vadd.f32 %v2471_v11, %v2459_v30  ;;  %v2510_v40 = vpop.f32.mrf.mxu2  ;;  %v8159_v11 = vld [vmem:[%s9909_s3 + $0xf0] sm:$0xff]  ;;  %v8189_v30 = vld [vmem:[%s9909_s3 + $0x120] sm:$0xff] }
 0xc96   :  { %v2486_v32 = vpop.f32.mrf.mxu0  ;;  %10734 = vst [vmem:[#allocation9_spill] sm:$0xff] %v8189_v30 }
 0xc97   :  { %v2485_v5 = vadd.f32 %v2484_v37, %v2472_v42  ;;  %v2499_v38 = vpop.f32.mrf.mxu1  ;;  %v8134_v32 = vld [vmem:[%s9911_s5] sm:$0xff]  ;;  %v8153_v42 = vld [vmem:[%s9909_s3 + $0x138] sm:$0xff] }
 0xc98   :  { %v8183_v37 = vld [vmem:[%s9909_s3 + $0xe0] sm:$0xff] }
 0xc99   :  { %v2498_v3 = vadd.f32 %v2497_v31, %v2485_v5  ;;  %v8121_v5 = vld [vmem:[%s9911_s5 + $0x8] sm:$0xff]  ;;  %10733 = vst [vmem:[#allocation8_spill] sm:$0xff] %v8183_v37 }
 0xc9a   :  { %v8171_v31 = vld [vmem:[%s9909_s3 + $0xe8] sm:$0xff] }
 0xc9b   :  { %v2511_v53 = vadd.f32 %v2510_v40, %v2498_v3  ;;  %v8140_v40 = vld [vmem:[%s9909_s3 + $0xf8] sm:$0xff]  ;;  %v8219_v3 = vld [vmem:[%s9909_s3 + $0xc8] sm:$0xff] }
 0xc9c   :  { %v2473_v25 = vpop.f32.mrf.mxu3  ;;  %10739 = vst [vmem:[#allocation106_spill] sm:$0xff] %v8219_v3 }
 0xc9d   :  { %v2514_v44 = vpack.c.bf16 %v2511_v53, %v2511_v53  ;;  %v2512_v33 = vpop.f32.mrf.mxu2 }
 0xc9f   :  { %2523 = vmatmul.bf16.vlgmr.msra.gmra.mxu3 %v2514_v44  ;;  %v2537_v26 = vpop.f32.mrf.mxu0 }
 0xca0   :  { %2670 = vmatpush.bf16.msra.mxu3 %v7618_v23 }
 0xca4   :  { %2671 = vmatpush.bf16.msra.mxu3 %v7624_v1 }
 0xca7   :  { %v2539_v19 = vpop.f32.mrf.mxu0 }
 0xca8   :  { %2672 = vmatpush.bf16.msra.mxu3 %v7630_v16 }
 0xcac   :  { %2673 = vmatpush.bf16.msra.mxu3 %v7636_v50  ;;  %v8041_v50 = vld [vmem:[%s9911_s5 + $0x38] sm:$0xff] }
 0xcb0   :  { %2674 = vmatpush.bf16.msra.mxu3 %v7642_v8  ;;  %v8048_v8 = vld [vmem:[%s9909_s3 + $0x38] sm:$0xff] }
 0xcb4   :  { %2675 = vmatpush.bf16.msra.mxu3 %v7648_v13  ;;  %v8054_v13 = vld [vmem:[%s9911_s5 + $0x30] sm:$0xff] }
 0xcb8   :  { %2676 = vmatpush.bf16.msra.mxu3 %v7654_v22  ;;  %v8061_v22 = vld [vmem:[%s9909_s3 + $0x30] sm:$0xff] }
 0xcbc   :  { %2677 = vmatpush.bf16.msra.mxu3 %v7660_v47  ;;  %v8067_v47 = vld [vmem:[%s9911_s5 + $0x28] sm:$0xff] }
 0xcbf   :  { %v8034_v25 = vpop.f32.mrf.mxu0 }
 0xcc0   :  { %v2593_v19 = vadd.f32 %v8034_v25, %v10635_v14  ;;  %v4796_v25 = vld [vmem:[%s10318_s0 + $0x20] sm:$0xff] }
 0xcc7   :  { %v2594_v33 = vpop.f32.mrf.mxu0 }
 0xcc8   :  { %v10743_v33 = vld [vmem:[#allocation5_spill] sm:$0xff] }
 0xd22   :  { %v2524_v44 = vpop.f32.mrf.mxu3 }
 0xd23   :  { %v2538_v23 = vadd.f32 %v2537_v26, %v2524_v44 }
 0xd25   :  { %v2541_v1 = vadd.f32 %v7668_v46, %v2538_v23  ;;  %v8074_v46 = vld [vmem:[%s9909_s3 + $0x28] sm:$0xff] }
 0xd27   :  { %v2542_v53 = vmax.f32 %v2541_v1, 0.0 }
 0xd29   :  { %v2543_v38 = vpack.c.bf16 %v2542_v53, %v2542_v53 }
 0xd2a   :  { %v2526_v16 = vpop.f32.mrf.mxu3 }
 0xd2b   :  { %2552 = vmatmul.bf16.vlgmr.msrb.gmra.mxu1 %v2543_v38  ;;  %2565 = vmatmul.bf16.vlgmr.msrb.gmra.mxu2 %v2543_v38 }
 0xd2c   :  { %2578 = vmatmul.bf16.vlgmr.msrb.gmra.mxu3 %v2543_v38  ;;  %2723 = vmatpush.bf16.msrb.mxu1 %v8041_v50 }
 0xd2d   :  { %2788 = vmatpush.bf16.msrb.mxu3 %v7675_v60  ;;  %2775 = vmatpush.bf16.msrb.mxu2 %v8048_v8  ;;  %v8080_v60 = vld [vmem:[%s9911_s5 + $0x20] sm:$0xff] }
 0xd30   :  { %2724 = vmatpush.bf16.msrb.mxu1 %v8054_v13 }
 0xd31   :  { %2789 = vmatpush.bf16.msrb.mxu3 %v7683_v12  ;;  %2776 = vmatpush.bf16.msrb.mxu2 %v8061_v22  ;;  %v8087_v12 = vld [vmem:[%s9909_s3 + $0x20] sm:$0xff] }
 0xd34   :  { %2725 = vmatpush.bf16.msrb.mxu1 %v8067_v47 }
 0xd35   :  { %2790 = vmatpush.bf16.msrb.mxu3 %v7691_v41  ;;  %2777 = vmatpush.bf16.msrb.mxu2 %v8074_v46  ;;  %v8095_v41 = vld [vmem:[%s9911_s5 + $0x18] sm:$0xff] }
 0xd38   :  { %2726 = vmatpush.bf16.msrb.mxu1 %v8080_v60 }
 0xd39   :  { %2791 = vmatpush.bf16.msrb.mxu3 %v7699_v45  ;;  %2778 = vmatpush.bf16.msrb.mxu2 %v8087_v12  ;;  %v8102_v45 = vld [vmem:[%s9909_s3 + $0x18] sm:$0xff] }
 0xd3b   :  { %2604 = vmatmul.bf16.vlgmr.msra.gmra.mxu1 %v7779_v51  ;;  %2617 = vmatmul.bf16.vlgmr.msra.gmra.mxu2 %v7779_v51  ;;  %v8108_v51 = vld [vmem:[%s9911_s5 + $0x10] sm:$0xff] }
 0xd3c   :  { %2727 = vmatpush.bf16.msrb.mxu1 %v8095_v41 }
 0xd3d   :  { %2792 = vmatpush.bf16.msrb.mxu3 %v7709_v57  ;;  %2779 = vmatpush.bf16.msrb.mxu2 %v8102_v45  ;;  %v8115_v57 = vld [vmem:[%s9909_s3 + $0x10] sm:$0xff] }
 0xd40   :  { %2728 = vmatpush.bf16.msrb.mxu1 %v8108_v51 }
 0xd41   :  { %2793 = vmatpush.bf16.msrb.mxu3 %v7717_v0  ;;  %2780 = vmatpush.bf16.msrb.mxu2 %v8115_v57  ;;  %v8128_v0 = vld [vmem:[%s9909_s3 + $0x8] sm:$0xff] }
 0xd44   :  { %2729 = vmatpush.bf16.msrb.mxu1 %v8121_v5 }
 0xd45   :  { %2794 = vmatpush.bf16.msrb.mxu3 %v7725_v34  ;;  %2781 = vmatpush.bf16.msrb.mxu2 %v8128_v0  ;;  %v8147_v34 = vld [vmem:[%s9909_s3] sm:$0xff] }
 0xd48   :  { %2730 = vmatpush.bf16.msrb.mxu1 %v8134_v32 }
 0xd49   :  { %2795 = vmatpush.bf16.msrb.mxu3 %v7734_v55  ;;  %2782 = vmatpush.bf16.msrb.mxu2 %v8147_v34  ;;  %v8165_v55 = vld [vmem:[%s9909_s3 + $0x130] sm:$0xff] }
 0xd4c   :  { %2814 = vmatpush.bf16.msra.mxu1 %v8140_v40 }
 0xd4d   :  { %2827 = vmatpush.bf16.msra.mxu2 %v8153_v42 }
 0xd50   :  { %2815 = vmatpush.bf16.msra.mxu1 %v8159_v11 }
 0xd51   :  { %2828 = vmatpush.bf16.msra.mxu2 %v8165_v55 }
 0xd54   :  { %2816 = vmatpush.bf16.msra.mxu1 %v8171_v31 }
 0xd55   :  { %2829 = vmatpush.bf16.msra.mxu2 %v8177_v39 }
 0xd58   :  { %2817 = vmatpush.bf16.msra.mxu1 %v8183_v37 }
 0xd59   :  { %2830 = vmatpush.bf16.msra.mxu2 %v8189_v30  ;;  %v10745_v30 = vld [vmem:[#allocation6_spill] sm:$0xff] }
 0xd5c   :  { %2818 = vmatpush.bf16.msra.mxu1 %v8195_v61  ;;  %v10744_v61 = vld [vmem:[#allocation14_spill] sm:$0xff] }
 0xd5d   :  { %2831 = vmatpush.bf16.msra.mxu2 %v8201_v17 }
 0xd60   :  { %2819 = vmatpush.bf16.msra.mxu1 %v8207_v24 }
 0xd61   :  { %2832 = vmatpush.bf16.msra.mxu2 %v8213_v4 }
 0xd64   :  { %2820 = vmatpush.bf16.msra.mxu1 %v8219_v3 }
 0xd65   :  { %2833 = vmatpush.bf16.msra.mxu2 %v8225_v15 }
 0xd68   :  { %2821 = vmatpush.bf16.msra.mxu1 %v8231_v59 }
 0xd69   :  { %2834 = vmatpush.bf16.msra.mxu2 %v8237_v18 }
 0xda8   :  { %v2553_v26 = vpop.f32.mrf.mxu1 }
 0xda9   :  { %v2554_v44 = vadd.f32 %v2553_v26, %v10743_v33 }
 0xdab   :  { %v2622_v23 = vadd.f32 %v2593_v19, %v2554_v44  ;;  %v8248_v19 = vpack.c.bf16 %v4796_v25, %v4796_v25 }
 0xdad   :  { %v2623_v1 = vsub.f32 0.0, %v2622_v23  ;;  %2731 = vmatmul.bf16.vlgmr.msrb.gmra.mxu1 %v8248_v19 }
 0xdae   :  { %v2566_v53 = vpop.f32.mrf.mxu2 }
 0xdaf   :  { %v2624_v38 = vmul.f32 1.442695, %v2623_v1  ;;  %v2579_v16 = vpop.f32.mrf.mxu3  ;;  %v2567_v18 = vadd.f32 %v2566_v53, %v10744_v61 }
 0xdb0   :  { %v2555_v15 = vpop.f32.mrf.mxu1 }
 0xdb1   :  { %5022 = vpow2.f32 %v2624_v38 }
 0xdb6   :  { %v2568_v59 = vpop.f32.mrf.mxu2 }
 0xdb7   :  { %v5023_v3 = vpop.eup %5022  ;;  %v2581_v4 = vpop.f32.mrf.mxu3 }
 0xdb8   :  { %v2626_v24 = vadd.f32 1.0, %v5023_v3  ;;  %v2605_v17 = vpop.f32.mrf.mxu1  ;;  %v8254_v4 = vld [vmem:[%s9909_s3 + $0x1f8] sm:$0xff] }
 0xdb9   :  { %v2606_v37 = vadd.f32 %v2605_v17, %v10745_v30  ;;  %10746 = vst [vmem:[#allocation110_spill] sm:$0xff] %v8254_v4  ;;  %2866 = vmatpush.bf16.msrb.mxu1 %v8254_v4 }
 0xdba   :  { %5024 = vrcp.f32 %v2626_v24  ;;  %v2638_v53 = vand.u32 2147483648, %v2626_v24  ;;  %v2636_v38 = vand.u32 2147483647, %v2626_v24  ;;  %vm2632_vm9 = vweird.f32 %v2626_v24 }
 0xdbb   :  { %v2642_v26 = vadd.f32 %v2606_v37, %v2567_v18  ;;  %v8260_v37 = vld [vmem:[%s9909_s3 + $0x1f0] sm:$0xff] }
 0xdbc   :  { %10747 = vst [vmem:[#allocation111_spill] sm:$0xff] %v8260_v37  ;;  %vm2637_vm11 = vcmp.eq.f32.partialorder %v2636_v38, 8.507059e+37 }
 0xdbd   :  { %v2643_v44 = vsub.f32 0.0, %v2642_v26  ;;  %2867 = vmatpush.bf16.msrb.mxu1 %v8260_v37  ;;  %v8266_v26 = vld [vmem:[%s9909_s3 + $0x1e8] sm:$0xff]  ;;  %v2639_v37 = vor.u32 1.1754944e-38, %v2638_v53 }
 0xdbe   :  { %v2618_v15 = vpop.f32.mrf.mxu2  ;;  %10748 = vst [vmem:[#allocation17_spill] sm:$0xff] %v8266_v26 }
 0xdbf   :  { %v2644_v17 = vmul.f32 1.442695, %v2643_v44 }
 0xdc0   :  { %v5025_v3 = vpop.eup %5024  ;;  %v2607_v59 = vpop.f32.mrf.mxu1 }
 0xdc1   :  { %5026 = vpow2.f32 %v2644_v17  ;;  %v2628_v23 = vmul.f32 %v5025_v3, %v2626_v24  ;;  %vm2633_vm8 = vweird.f32 %v5025_v3  ;;  %2868 = vmatpush.bf16.msrb.mxu1 %v8266_v26  ;;  %v8279_v24 = vld [vmem:[%s9909_s3 + $0x1d8] sm:$0xff] }
 0xdc2   :  { %vm2634_vm10 = vmor %vm2632_vm9, %vm2633_vm8  ;;  %10750 = vst [vmem:[#allocation25_spill] sm:$0xff] %v8279_v24 }
 0xdc3   :  { %v2629_v18 = vsub.f32 1.0, %v2628_v23  ;;  %v8272_v23 = vld [vmem:[%s9909_s3 + $0x1e0] sm:$0xff] }
 0xdc4   :  { %10749 = vst [vmem:[#allocation21_spill] sm:$0xff] %v8272_v23 }
 0xdc5   :  { %v2630_v1 = vmul.f32 %v5025_v3, %v2629_v18  ;;  %2869 = vmatpush.bf16.msrb.mxu1 %v8272_v23 }
 0xdc6   :  { %v2620_v25 = vpop.f32.mrf.mxu2 }
 0xdc7   :  { %v5027_v44 = vpop.eup %5026  ;;  %v2631_v17 = vadd.f32 %v5025_v3, %v2630_v1  ;;  %v2619_v25 = vadd.f32 %v2618_v15, %v10644_v63  ;;  %v2580_v1 = vadd.f32 %v2579_v16, %v10646_v62 }
 0xdc8   :  { %v2646_v59 = vadd.f32 1.0, %v5027_v44  ;;  %v8286_v44 = vld [vmem:[%s9909_s3 + $0x1d0] sm:$0xff] }
 0xdc9   :  { %v2635_v4 = vsel %vm2634_vm10, %v5025_v3, %v2631_v17  ;;  %2870 = vmatpush.bf16.msrb.mxu1 %v8279_v24  ;;  %10751 = vst [vmem:[#allocation98_spill] sm:$0xff] %v8286_v44  ;;  %v10754_v24 = vld [vmem:[#allocation19_spill] sm:$0xff] }
 0xdca   :  { %5028 = vrcp.f32 %v2646_v59  ;;  %v2640_v18 = vsel %vm2637_vm11, %v2639_v37, %v2635_v4  ;;  %v2658_v4 = vand.u32 2147483648, %v2646_v59  ;;  %v2656_v17 = vand.u32 2147483647, %v2646_v59 }
 0xdcb   :  { %v2662_v26 = vmul.f32 %v2640_v18, %v2619_v25  ;;  %v8292_v18 = vld [vmem:[%s9909_s3 + $0x1c8] sm:$0xff]  ;;  %vm2652_vm13 = vweird.f32 %v2646_v59 }
 0xdcc   :  { %10752 = vst [vmem:[#allocation99_spill] sm:$0xff] %v8292_v18  ;;  %vm2657_vm15 = vcmp.eq.f32.partialorder %v2656_v17, 8.507059e+37  ;;  %v10759_v17 = vld [vmem:[#allocation26_spill] sm:$0xff] }
 0xdcd   :  { %v2663_v38 = vadd.f32 %v2662_v26, %v2580_v1  ;;  %2871 = vmatpush.bf16.msrb.mxu1 %v8286_v44  ;;  %v2659_v26 = vor.u32 1.1754944e-38, %v2658_v4  ;;  %v10757_v4 = vld [vmem:[#allocation23_spill] sm:$0xff] }
 0xdcf   :  { %5030 = vtanh.f32 %v2663_v38 }
 0xdd0   :  { %v5029_v3 = vpop.eup %5028 }
 0xdd1   :  { %v2648_v53 = vmul.f32 %v5029_v3, %v2646_v59  ;;  %vm2653_vm12 = vweird.f32 %v5029_v3  ;;  %2872 = vmatpush.bf16.msrb.mxu1 %v8292_v18 }
 0xdd2   :  { %vm2654_vm14 = vmor %vm2652_vm13, %vm2653_vm12 }
 0xdd3   :  { %v2649_v15 = vsub.f32 1.0, %v2648_v53  ;;  %v8298_v53 = vld [vmem:[%s9909_s3 + $0x1c0] sm:$0xff] }
 0xdd4   :  { %10753 = vst [vmem:[#allocation100_spill] sm:$0xff] %v8298_v53 }
 0xdd5   :  { %v2650_v37 = vmul.f32 %v5029_v3, %v2649_v15  ;;  %2873 = vmatpush.bf16.msrb.mxu1 %v8298_v53  ;;  %v5031_v15 = vpop.eup %5030 }
 0xdd7   :  { %v2651_v16 = vadd.f32 %v5029_v3, %v2650_v37  ;;  %v10758_v37 = vld [vmem:[#allocation24_spill] sm:$0xff] }
 0xdd9   :  { %v2655_v25 = vsel %vm2654_vm14, %v5029_v3, %v2651_v16  ;;  %v10756_v3 = vld [vmem:[#allocation20_spill] sm:$0xff]  ;;  %v10760_v16 = vld [vmem:[#allocation27_spill] sm:$0xff] }
 0xdda   :  { %v2660_v1 = vsel %vm2657_vm15, %v2659_v26, %v2655_v25  ;;  %v10764_v26 = vld [vmem:[#allocation36_spill] sm:$0xff]  ;;  %v10765_v25 = vld [vmem:[#allocation31_spill] sm:$0xff] }
 0xddb   :  { %v2665_v38 = vsub.f32 1.0, %v2660_v1  ;;  %v2667_v62 = vmul.f32 %v2660_v1, %v10754_v24  ;;  %v10762_v24 = vld [vmem:[#allocation29_spill] sm:$0xff]  ;;  %v8323_v1 = vld [vmem:[%s9909_s3 + $0x150] sm:$0xff] }
 0xddc   :  { %10766 = vst [vmem:[#allocation103_spill] sm:$0xff] %v8323_v1 }
 0xddd   :  { %v2666_v44 = vmul.f32 %v5031_v15, %v2665_v38  ;;  %v8329_v38 = vld [vmem:[%s9909_s3 + $0x190] sm:$0xff]  ;;  %v8335_v15 = vld [vmem:[%s9909_s3 + $0x148] sm:$0xff] }
 0xdde   :  { %10767 = vst [vmem:[#allocation104_spill] sm:$0xff] %v8329_v38 }
 0xddf   :  { %v8302_v18 = vadd.f32 %v2667_v62, %v2666_v44  ;;  %v10761_v62 = vld [vmem:[#allocation28_spill] sm:$0xff]  ;;  %v10763_v44 = vld [vmem:[#allocation30_spill] sm:$0xff]  ;;  %10768 = vst [vmem:[#allocation105_spill] sm:$0xff] %v8335_v15 }
 0xde1   :  { %10755 = vst [vmem:[#allocation101_spill] sm:$0xff] %v8302_v18  ;;  %v8306_v59 = vpack.c.bf16 %v8302_v18, %v8302_v18 }
 0xde3   :  { %2678 = vmatmul.bf16.vlgmr.msra.gmra.mxu3 %v8306_v59  ;;  %2718 = vmatmul.bf16.vlgmr.msrb.gmra.mxu0 %v8306_v59 }
 0xde4   :  { %2840 = vmatpush.bf16.msra.mxu3 %v10756_v3  ;;  %2853 = vmatpush.bf16.msrb.mxu0 %v10757_v4  ;;  %v8341_v3 = vld [vmem:[%s9909_s3 + $0x188] sm:$0xff]  ;;  %v8347_v4 = vld [vmem:[%s9909_s3 + $0x140] sm:$0xff] }
 0xde5   :  { %10769 = vst [vmem:[#allocation16_spill] sm:$0xff] %v8341_v3 }
 0xde6   :  { %10770 = vst [vmem:[#allocation112_spill] sm:$0xff] %v8347_v4 }
 0xde8   :  { %2841 = vmatpush.bf16.msra.mxu3 %v10758_v37  ;;  %2854 = vmatpush.bf16.msrb.mxu0 %v10759_v17  ;;  %v8353_v37 = vld [vmem:[%s9909_s3 + $0x180] sm:$0xff] }
 0xde9   :  { %10771 = vst [vmem:[#allocation113_spill] sm:$0xff] %v8353_v37 }
 0xdec   :  { %2842 = vmatpush.bf16.msra.mxu3 %v10760_v16  ;;  %2855 = vmatpush.bf16.msrb.mxu0 %v10761_v62 }
 0xdf0   :  { %2843 = vmatpush.bf16.msra.mxu3 %v10762_v24  ;;  %2856 = vmatpush.bf16.msrb.mxu0 %v10763_v44  ;;  %v10772_v44 = vld [vmem:[#allocation37_spill] sm:$0xff] }
 0xdf4   :  { %2844 = vmatpush.bf16.msra.mxu3 %v10764_v26  ;;  %2857 = vmatpush.bf16.msrb.mxu0 %v10765_v25 }
 0xdf8   :  { %2845 = vmatpush.bf16.msra.mxu3 %v8323_v1  ;;  %2858 = vmatpush.bf16.msrb.mxu0 %v8329_v38 }
 0xdfc   :  { %2846 = vmatpush.bf16.msra.mxu3 %v8335_v15  ;;  %2859 = vmatpush.bf16.msrb.mxu0 %v8341_v3 }
 0xe00   :  { %2847 = vmatpush.bf16.msra.mxu3 %v8347_v4  ;;  %2860 = vmatpush.bf16.msrb.mxu0 %v8353_v37 }
 0xe2a   :  { %v2732_v17 = vpop.f32.mrf.mxu1 }
 0xe32   :  { %v2734_v16 = vpop.f32.mrf.mxu1 }
 0xe60   :  { %v2719_v62 = vpop.f32.mrf.mxu0 }
 0xe61   :  { %v2733_v24 = vadd.f32 %v2732_v17, %v2719_v62 }
 0xe63   :  { %v2736_v26 = vadd.f32 %v10772_v44, %v2733_v24 }
 0xe65   :  { %2737 = vmax.xlane.f32.xlu2 %v2736_v26 }
 0xe66   :  { %v8357_v25 = vpop.f32.mrf.mxu3 }
 0xe67   :  { %10773 = vst [vmem:[#allocation114_spill] sm:$0xff] %v8357_v25 }
 0xe68   :  { %v2721_v3 = vpop.f32.mrf.mxu0 }
 0xe6e   :  { %v2681_v15 = vpop.f32.mrf.mxu3 }
 0xed8   :  { %v2738_v38 = vpop.xlane.xlu2 %2737 }
 0xed9   :  { %v2739_v4 = vsub.f32 %v2736_v26, %v2738_v38 }
 0xedb   :  { %v2740_v1 = vmul.f32 1.442695, %v2739_v4 }
 0xedd   :  { %5032 = vpow2.f32 %v2740_v1  ;;  %v8362_v1 = vld [vmem:[%s9910_s4] sm:$0xff] }
 0xee3   :  { %v5033_v53 = vpop.eup %5032 }
 0xee4   :  { %2742 = vadd.xlane.f32.xlu0 %v5033_v53 }
 0xf57   :  { %v2743_v18 = vpop.xlane.xlu0 %2742 }
 0xf58   :  { %5034 = vrcp.f32 %v2743_v18  ;;  %v2755_v63 = vand.u32 2147483648, %v2743_v18  ;;  %v2753_v62 = vand.u32 2147483647, %v2743_v18  ;;  %vm2749_vm1 = vweird.f32 %v2743_v18 }
 0xf5a   :  { %v2756_v3 = vor.u32 1.1754944e-38, %v2755_v63  ;;  %vm2754_vm3 = vcmp.eq.f32.partialorder %v2753_v62, 8.507059e+37  ;;  %v8374_v63 = vld [vmem:[%s9910_s4 + $0x10] sm:$0xff] }
 0xf5e   :  { %v5035_v37 = vpop.eup %5034 }
 0xf5f   :  { %v2745_v23 = vmul.f32 %v5035_v37, %v2743_v18  ;;  %vm2750_vm0 = vweird.f32 %v5035_v37 }
 0xf60   :  { %vm2751_vm2 = vmor %vm2749_vm1, %vm2750_vm0 }
 0xf61   :  { %v2746_v16 = vsub.f32 1.0, %v2745_v23  ;;  %v8368_v23 = vld [vmem:[%s9910_s4 + $0x8] sm:$0xff] }
 0xf63   :  { %v2747_v17 = vmul.f32 %v5035_v37, %v2746_v16 }
 0xf65   :  { %v2748_v24 = vadd.f32 %v5035_v37, %v2747_v17 }
 0xf67   :  { %v2752_v15 = vsel %vm2751_vm2, %v5035_v37, %v2748_v24  ;;  %v8380_v37 = vld [vmem:[%s9910_s4 + $0x18] sm:$0xff] }
 0xf68   :  { %v2757_v38 = vsel %vm2754_vm3, %v2756_v3, %v2752_v15  ;;  %v8386_v3 = vld [vmem:[%s9914_s8 + $0x38] sm:$0xff] }
 0xf69   :  { %v2758_v4 = vmul.f32 %v5033_v53, %v2757_v38  ;;  %v8392_v15 = vld [vmem:[%s9915_s9 + $0x38] sm:$0xff]  ;;  %v8400_v38 = vld [vmem:[%s9914_s8 + $0x30] sm:$0xff] }
 0xf6b   :  { %v2759_v44 = vmul.f32 %v8362_v1, %v2758_v4  ;;  %v2760_v18 = vmul.f32 %v8368_v23, %v2758_v4  ;;  %v2761_v53 = vmul.f32 %v8374_v63, %v2758_v4  ;;  %v2762_v26 = vmul.f32 %v8380_v37, %v2758_v4 }
 0xf6d   :  { %v2767_v16 = vpack.c.bf16 %v2759_v44, %v2759_v44  ;;  %v2768_v17 = vpack.c.bf16 %v2760_v18, %v2760_v18  ;;  %v2769_v62 = vpack.c.bf16 %v2761_v53, %v2761_v53  ;;  %v2770_v24 = vpack.c.bf16 %v2762_v26, %v2762_v26  ;;  %v8406_v44 = vld [vmem:[%s9915_s9 + $0x30] sm:$0xff]  ;;  %v8414_v18 = vld [vmem:[%s9914_s8 + $0x28] sm:$0xff]  ;;  %v8420_v53 = vld [vmem:[%s9910_s4 + $0x20] sm:$0xff] }
 0xf6e   :  { %10774 = vst [vmem:[#allocation115_spill] sm:$0xff] %v8414_v18  ;;  %v2763_v26 = vmul.f32 %v8420_v53, %v2758_v4 }
 0xf6f   :  { %2783 = vmatmul.bf16.vlgmr.msrb.gmra.mxu2 %v2767_v16  ;;  %2796 = vmatmul.bf16.vlgmr.msrb.gmra.mxu3 %v2768_v17  ;;  %10775 = vst [vmem:[#allocation116_spill] sm:$0xff] %v8420_v53  ;;  %v8426_v16 = vld [vmem:[%s9910_s4 + $0x28] sm:$0xff]  ;;  %v8444_v53 = vld [vmem:[%s9910_s4 + $0x38] sm:$0xff] }
 0xf70   :  { %2809 = vmatmul.bf16.vlgmr.msra.gmra.mxu0 %v2769_v62  ;;  %2822 = vmatmul.bf16.vlgmr.msra.gmra.mxu1 %v2770_v24  ;;  %10776 = vst [vmem:[#allocation5_spill] sm:$0xff] %v8426_v16  ;;  %v2764_v17 = vmul.f32 %v8426_v16, %v2758_v4  ;;  %v8432_v62 = vld [vmem:[%s9915_s9 + $0x28] sm:$0xff]  ;;  %v8438_v24 = vld [vmem:[%s9910_s4 + $0x30] sm:$0xff]  ;;  %v2766_v16 = vmul.f32 %v8444_v53, %v2758_v4 }
 0xf71   :  { %2893 = vmatpush.bf16.msrb.mxu3 %v8386_v3  ;;  %2880 = vmatpush.bf16.msrb.mxu2 %v8392_v15  ;;  %10777 = vst [vmem:[#allocation14_spill] sm:$0xff] %v8432_v62  ;;  %v2765_v25 = vmul.f32 %v8438_v24, %v2758_v4 }
 0xf72   :  { %2909 = vmatpush.bf16.msra.mxu0 %v10464_v2  ;;  %2922 = vmatpush.bf16.msra.mxu1 %v10465_v48  ;;  %10778 = vst [vmem:[#allocation6_spill] sm:$0xff] %v8438_v24  ;;  %v2772_v24 = vpack.c.bf16 %v2764_v17, %v2764_v17  ;;  %v8500_v17 = vld [vmem:[%s9915_s9 + $0x8] sm:$0xff] }
 0xf73   :  { %v2773_v4 = vpack.c.bf16 %v2765_v25, %v2765_v25  ;;  %v8472_v25 = vld [vmem:[%s9915_s9 + $0x18] sm:$0xff]  ;;  %10786 = vst [vmem:[#allocation29_spill] sm:$0xff] %v8500_v17 }
 0xf74   :  { %10782 = vst [vmem:[#allocation24_spill] sm:$0xff] %v8472_v25 }
 0xf75   :  { %2894 = vmatpush.bf16.msrb.mxu3 %v8400_v38  ;;  %2881 = vmatpush.bf16.msrb.mxu2 %v8406_v44 }
 0xf76   :  { %2910 = vmatpush.bf16.msra.mxu0 %v10468_v21  ;;  %2923 = vmatpush.bf16.msra.mxu1 %v10668_v10  ;;  %v8458_v10 = vld [vmem:[%s9915_s9 + $0x20] sm:$0xff] }
 0xf77   :  { %10780 = vst [vmem:[#allocation20_spill] sm:$0xff] %v8458_v10 }
 0xf79   :  { %2895 = vmatpush.bf16.msrb.mxu3 %v8414_v18  ;;  %2882 = vmatpush.bf16.msrb.mxu2 %v8432_v62  ;;  %v8452_v62 = vld [vmem:[%s9914_s8 + $0x20] sm:$0xff]  ;;  %v2771_v18 = vpack.c.bf16 %v2763_v26, %v2763_v26  ;;  %v8466_v26 = vld [vmem:[%s9914_s8 + $0x18] sm:$0xff] }
 0xf7a   :  { %2911 = vmatpush.bf16.msra.mxu0 %v10674_v29  ;;  %2924 = vmatpush.bf16.msra.mxu1 %v6302_v28  ;;  %10779 = vst [vmem:[#allocation19_spill] sm:$0xff] %v8452_v62  ;;  %v2774_v29 = vpack.c.bf16 %v2766_v16, %v2766_v16  ;;  %v8494_v16 = vld [vmem:[%s9914_s8 + $0x8] sm:$0xff] }
 0xf7b   :  { %10781 = vst [vmem:[#allocation23_spill] sm:$0xff] %v8466_v26 }
 0xf7c   :  { %10785 = vst [vmem:[#allocation28_spill] sm:$0xff] %v8494_v16 }
 0xf7d   :  { %2896 = vmatpush.bf16.msrb.mxu3 %v8452_v62  ;;  %2883 = vmatpush.bf16.msrb.mxu2 %v8458_v10 }
 0xf7e   :  { %2912 = vmatpush.bf16.msra.mxu0 %v10478_v36  ;;  %2925 = vmatpush.bf16.msra.mxu1 %v10479_v43 }
 0xf7f   :  { %2835 = vmatmul.bf16.vlgmr.msra.gmra.mxu2 %v2771_v18  ;;  %2848 = vmatmul.bf16.vlgmr.msra.gmra.mxu3 %v2772_v24  ;;  %v8486_v18 = vld [vmem:[%s9915_s9 + $0x10] sm:$0xff]  ;;  %v8508_v24 = vld [vmem:[%s9914_s8] sm:$0xff] }
 0xf80   :  { %2861 = vmatmul.bf16.vlgmr.msrb.gmra.mxu0 %v2773_v4  ;;  %2874 = vmatmul.bf16.vlgmr.msrb.gmra.mxu1 %v2774_v29  ;;  %v8480_v29 = vld [vmem:[%s9914_s8 + $0x10] sm:$0xff]  ;;  %10784 = vst [vmem:[#allocation27_spill] sm:$0xff] %v8486_v18  ;;  %v8514_v4 = vld [vmem:[%s9915_s9] sm:$0xff] }
 0xf81   :  { %2897 = vmatpush.bf16.msrb.mxu3 %v8466_v26  ;;  %2884 = vmatpush.bf16.msrb.mxu2 %v8472_v25  ;;  %10783 = vst [vmem:[#allocation26_spill] sm:$0xff] %v8480_v29 }
 0xf82   :  { %2913 = vmatpush.bf16.msra.mxu0 %v10482_v49  ;;  %2926 = vmatpush.bf16.msra.mxu1 %v6393_v52  ;;  %10787 = vst [vmem:[#allocation30_spill] sm:$0xff] %v8508_v24 }
 0xf83   :  { %10788 = vst [vmem:[#allocation36_spill] sm:$0xff] %v8514_v4 }
 0xf85   :  { %2898 = vmatpush.bf16.msrb.mxu3 %v8480_v29  ;;  %2885 = vmatpush.bf16.msrb.mxu2 %v8486_v18 }
 0xf86   :  { %2914 = vmatpush.bf16.msra.mxu0 %v10675_v56  ;;  %2927 = vmatpush.bf16.msra.mxu1 %v10676_v35 }
 0xf89   :  { %2899 = vmatpush.bf16.msrb.mxu3 %v8494_v16  ;;  %2886 = vmatpush.bf16.msrb.mxu2 %v8500_v17  ;;  %v10792_v17 = vld [vmem:[#allocation78_spill] sm:$0xff] }
 0xf8a   :  { %2915 = vmatpush.bf16.msra.mxu0 %v10679_v58  ;;  %2928 = vmatpush.bf16.msra.mxu1 %v10680_v20  ;;  %v10790_v20 = vld [vmem:[#allocation53_spill] sm:$0xff]  ;;  %v10791_v58 = vld [vmem:[#allocation59_spill] sm:$0xff] }
 0xf8d   :  { %2900 = vmatpush.bf16.msrb.mxu3 %v8508_v24  ;;  %2887 = vmatpush.bf16.msrb.mxu2 %v8514_v4  ;;  %v10789_v24 = vld [vmem:[#allocation86_spill] sm:$0xff]  ;;  %v10793_v4 = vld [vmem:[#allocation88_spill] sm:$0xff] }
 0xf8e   :  { %2916 = vmatpush.bf16.msra.mxu0 %v10685_v54  ;;  %2929 = vmatpush.bf16.msra.mxu1 %v10686_v27  ;;  %v10796_v54 = vld [vmem:[#allocation82_spill] sm:$0xff] }
 0xf8f   :  { %v10797_v27 = vld [vmem:[#allocation90_spill] sm:$0xff] }
 0xf90   :  { %2901 = vmatmul.bf16.vlgmr.msrb.gmra.mxu3 %v8248_v19  ;;  %v10798_v19 = vld [vmem:[#allocation62_spill] sm:$0xff] }
 0xf91   :  { %2948 = vmatpush.bf16.msra.mxu3 %v10683_v9  ;;  %2935 = vmatpush.bf16.msra.mxu2 %v10684_v6  ;;  %v10794_v9 = vld [vmem:[#allocation57_spill] sm:$0xff]  ;;  %v10795_v6 = vld [vmem:[#allocation63_spill] sm:$0xff] }
 0xf92   :  { %2961 = vmatpush.bf16.msrb.mxu0 %v10687_v7  ;;  %2974 = vmatpush.bf16.msrb.mxu1 %v10789_v24  ;;  %v10799_v7 = vld [vmem:[#allocation67_spill] sm:$0xff]  ;;  %v10800_v24 = vld [vmem:[#allocation85_spill] sm:$0xff] }
 0xf95   :  { %2949 = vmatpush.bf16.msra.mxu3 %v10790_v20  ;;  %2936 = vmatpush.bf16.msra.mxu2 %v10791_v58  ;;  %v10801_v20 = vld [vmem:[#allocation92_spill] sm:$0xff]  ;;  %v10802_v58 = vld [vmem:[#allocation66_spill] sm:$0xff] }
 0xf96   :  { %2962 = vmatpush.bf16.msrb.mxu0 %v10792_v17  ;;  %2975 = vmatpush.bf16.msrb.mxu1 %v10793_v4  ;;  %v10803_v17 = vld [vmem:[#allocation73_spill] sm:$0xff]  ;;  %v10804_v4 = vld [vmem:[#allocation87_spill] sm:$0xff] }
 0xf99   :  { %2950 = vmatpush.bf16.msra.mxu3 %v10794_v9  ;;  %2937 = vmatpush.bf16.msra.mxu2 %v10795_v6  ;;  %v10805_v9 = vld [vmem:[#allocation94_spill] sm:$0xff]  ;;  %v10806_v6 = vld [vmem:[#allocation69_spill] sm:$0xff] }
 0xf9a   :  { %2963 = vmatpush.bf16.msrb.mxu0 %v10796_v54  ;;  %2976 = vmatpush.bf16.msrb.mxu1 %v10797_v27  ;;  %v10807_v54 = vld [vmem:[#allocation77_spill] sm:$0xff] }
 0xf9b   :  { %v10808_v27 = vld [vmem:[#allocation89_spill] sm:$0xff] }
 0xf9d   :  { %2951 = vmatpush.bf16.msra.mxu3 %v10798_v19  ;;  %2938 = vmatpush.bf16.msra.mxu2 %v10799_v7  ;;  %v10809_v19 = vld [vmem:[#allocation95_spill] sm:$0xff] }
 0xf9e   :  { %2964 = vmatpush.bf16.msrb.mxu0 %v10800_v24  ;;  %2977 = vmatpush.bf16.msrb.mxu1 %v10801_v20  ;;  %v10810_v7 = vld [vmem:[#allocation75_spill] sm:$0xff]  ;;  %v10811_v24 = vld [vmem:[#allocation81_spill] sm:$0xff] }
 0xf9f   :  { %v10812_v20 = vld [vmem:[#allocation91_spill] sm:$0xff] }
 0xfa1   :  { %2952 = vmatpush.bf16.msra.mxu3 %v10802_v58  ;;  %2939 = vmatpush.bf16.msra.mxu2 %v10803_v17  ;;  %v10813_v58 = vld [vmem:[#allocation96_spill] sm:$0xff]  ;;  %v10814_v17 = vld [vmem:[#allocation79_spill] sm:$0xff] }
 0xfa2   :  { %2965 = vmatpush.bf16.msrb.mxu0 %v10804_v4  ;;  %2978 = vmatpush.bf16.msrb.mxu1 %v10805_v9  ;;  %v10815_v4 = vld [vmem:[#allocation84_spill] sm:$0xff] }
 0xfa3   :  { %v10816_v9 = vld [vmem:[#allocation32_spill] sm:$0xff] }
 0xfa5   :  { %2953 = vmatpush.bf16.msra.mxu3 %v10806_v6  ;;  %2940 = vmatpush.bf16.msra.mxu2 %v10807_v54  ;;  %v10817_v6 = vld [vmem:[#allocation93_spill] sm:$0xff]  ;;  %v10828_v54 = vld [vmem:[#allocation46_spill] sm:$0xff] }
 0xfa6   :  { %2966 = vmatpush.bf16.msrb.mxu0 %v10808_v27  ;;  %2979 = vmatpush.bf16.msrb.mxu1 %v10809_v19  ;;  %v10818_v27 = vld [vmem:[#allocation97_spill] sm:$0xff] }
 0xfa7   :  { %v10819_v19 = vld [vmem:[#allocation33_spill] sm:$0xff] }
 0xfa9   :  { %2954 = vmatpush.bf16.msra.mxu3 %v10810_v7  ;;  %2941 = vmatpush.bf16.msra.mxu2 %v10811_v24  ;;  %v10820_v7 = vld [vmem:[#allocation40_spill] sm:$0xff]  ;;  %v10821_v24 = vld [vmem:[#allocation34_spill] sm:$0xff] }
 0xfaa   :  { %2967 = vmatpush.bf16.msrb.mxu0 %v10812_v20  ;;  %2980 = vmatpush.bf16.msrb.mxu1 %v10813_v58  ;;  %v10822_v20 = vld [vmem:[#allocation35_spill] sm:$0xff] }
 0xfab   :  { %v10823_v58 = vld [vmem:[#allocation39_spill] sm:$0xff] }
 0xfad   :  { %2955 = vmatpush.bf16.msra.mxu3 %v10814_v17  ;;  %2942 = vmatpush.bf16.msra.mxu2 %v10815_v4  ;;  %v10824_v17 = vld [vmem:[#allocation42_spill] sm:$0xff]  ;;  %v10825_v4 = vld [vmem:[#allocation41_spill] sm:$0xff] }
 0xfae   :  { %2968 = vmatpush.bf16.msrb.mxu0 %v10817_v6  ;;  %2981 = vmatpush.bf16.msrb.mxu1 %v10818_v27  ;;  %v10827_v6 = vld [vmem:[#allocation43_spill] sm:$0xff]  ;;  %v10829_v27 = vld [vmem:[#allocation45_spill] sm:$0xff] }
 0xfb0   :  { %2956 = vmatmul.bf16.vlgmr.msra.gmra.mxu3 %v8306_v59 }
 0xfb1   :  { %3075 = vmatpush.bf16.msrb.mxu3 %v10816_v9  ;;  %v10826_v9 = vld [vmem:[#allocation44_spill] sm:$0xff] }
 0xfb5   :  { %3076 = vmatpush.bf16.msrb.mxu3 %v10819_v19  ;;  %v10830_v19 = vld [vmem:[#allocation48_spill] sm:$0xff] }
 0xfb9   :  { %3077 = vmatpush.bf16.msrb.mxu3 %v10820_v7  ;;  %v10831_v7 = vld [vmem:[#allocation47_spill] sm:$0xff] }
 0xfbd   :  { %3078 = vmatpush.bf16.msrb.mxu3 %v10821_v24  ;;  %v10832_v24 = vld [vmem:[#allocation49_spill] sm:$0xff] }
 0xfc1   :  { %3079 = vmatpush.bf16.msrb.mxu3 %v10822_v20  ;;  %v10833_v20 = vld [vmem:[#allocation7_spill] sm:$0xff] }
 0xfc5   :  { %3080 = vmatpush.bf16.msrb.mxu3 %v10823_v58 }
 0xfc9   :  { %3081 = vmatpush.bf16.msrb.mxu3 %v10824_v17 }
 0xfcd   :  { %3082 = vmatpush.bf16.msrb.mxu3 %v10825_v4 }
 0xfd1   :  { %3166 = vmatpush.bf16.msra.mxu3 %v10826_v9 }
 0xfd5   :  { %3167 = vmatpush.bf16.msra.mxu3 %v10827_v6 }
 0xfd9   :  { %3168 = vmatpush.bf16.msra.mxu3 %v10828_v54 }
 0xfdd   :  { %3169 = vmatpush.bf16.msra.mxu3 %v10829_v27 }
 0xfe1   :  { %3170 = vmatpush.bf16.msra.mxu3 %v10830_v19 }
 0xfe5   :  { %3171 = vmatpush.bf16.msra.mxu3 %v10831_v7 }
 0xfe9   :  { %3172 = vmatpush.bf16.msra.mxu3 %v10832_v24 }
 0xfed   :  { %3173 = vmatpush.bf16.msra.mxu3 %v10833_v20  ;;  %v2810_v58 = vpop.f32.mrf.mxu0  ;;  %v2823_v17 = vpop.f32.mrf.mxu1 }
 0xff2   :  { %v2784_v16 = vpop.f32.mrf.mxu2  ;;  %v2797_v4 = vpop.f32.mrf.mxu3 }
 0xff3   :  { %v2798_v56 = vadd.f32 %v2797_v4, %v2784_v16 }
 0xff5   :  { %v2812_v35 = vpop.f32.mrf.mxu0  ;;  %v2825_v9 = vpop.f32.mrf.mxu1  ;;  %v2811_v54 = vadd.f32 %v2810_v58, %v2798_v56  ;;  %v8596_v56 = vld [vmem:[%s9921_s15 + $0x18] sm:$0xff] }
 0xff6   :  { %v8572_v35 = vld [vmem:[%s9921_s15 + $0x38] sm:$0xff] }
 0xff7   :  { %v2824_v52 = vadd.f32 %v2823_v17, %v2811_v54  ;;  %v8622_v17 = vld [vmem:[%s9916_s10] ss:$0 sm:$0xff] }
 0xffa   :  { %v2786_v6 = vpop.f32.mrf.mxu2  ;;  %v2799_v18 = vpop.f32.mrf.mxu3 }
 0xffd   :  { %v2862_v29 = vpop.f32.mrf.mxu0  ;;  %v2875_v27 = vpop.f32.mrf.mxu1 }
0x1002   :  { %v2836_v19 = vpop.f32.mrf.mxu2  ;;  %v2849_v49 = vpop.f32.mrf.mxu3 }
0x1003   :  { %v2837_v7 = vadd.f32 %v2836_v19, %v2824_v52  ;;  %v8578_v52 = vld [vmem:[%s9921_s15 + $0x30] sm:$0xff] }
0x1004   :  { %v8637_v19 = vld [vmem:[%s9909_s3 + $0x70] sm:$0xff] }
0x1005   :  { %v2850_v25 = vadd.f32 %v2849_v49, %v2837_v7  ;;  %v2864_v24 = vpop.f32.mrf.mxu0  ;;  %v2877_v26 = vpop.f32.mrf.mxu1 }
0x1006   :  { %v8608_v26 = vld [vmem:[%s9921_s15 + $0x8] sm:$0xff] }
0x1007   :  { %v2863_v20 = vadd.f32 %v2862_v29, %v2850_v25  ;;  %v8614_v25 = vld [vmem:[%s9921_s15] sm:$0xff] }
0x1009   :  { %v2876_v43 = vadd.f32 %v2875_v27, %v2863_v20  ;;  %v8629_v27 = vld [vmem:[%s9909_s3 + $0x78] sm:$0xff] }
0x100a   :  { %v2838_v36 = vpop.f32.mrf.mxu2  ;;  %v2851_v10 = vpop.f32.mrf.mxu3 }
0x100b   :  { %v2879_v62 = vpack.c.bf16 %v2876_v43, %v2876_v43  ;;  %v8584_v36 = vld [vmem:[%s9921_s15 + $0x28] sm:$0xff]  ;;  %v8590_v43 = vld [vmem:[%s9921_s15 + $0x20] sm:$0xff] }
0x100d   :  { %2888 = vmatmul.bf16.vlgmr.msrb.gmra.mxu2 %v2879_v62  ;;  %v8602_v62 = vld [vmem:[%s9921_s15 + $0x10] sm:$0xff] }
0x100e   :  { %3035 = vmatpush.bf16.msrb.mxu2 %v8572_v35 }
0x1012   :  { %3036 = vmatpush.bf16.msrb.mxu2 %v8578_v52 }
0x1013   :  { %v2902_v49 = vpop.f32.mrf.mxu3 }
0x1016   :  { %3037 = vmatpush.bf16.msrb.mxu2 %v8584_v36 }
0x101a   :  { %3038 = vmatpush.bf16.msrb.mxu2 %v8590_v43 }
0x101b   :  { %v2904_v10 = vpop.f32.mrf.mxu3 }
0x101e   :  { %3039 = vmatpush.bf16.msrb.mxu2 %v8596_v56 }
0x1022   :  { %3040 = vmatpush.bf16.msrb.mxu2 %v8602_v62 }
0x1026   :  { %3041 = vmatpush.bf16.msrb.mxu2 %v8608_v26 }
0x102a   :  { %3042 = vmatpush.bf16.msrb.mxu2 %v8614_v25 }
0x1033   :  { %v8617_v29 = vpop.f32.mrf.mxu3 }
0x103b   :  { %v2959_v18 = vpop.f32.mrf.mxu3 }
0x1090   :  { %v2889_v16 = vpop.f32.mrf.mxu2 }
0x1091   :  { %v2903_v58 = vadd.f32 %v2902_v49, %v2889_v16 }
0x1093   :  { %v2906_v4 = vadd.f32 %v8622_v17, %v2903_v58 }
0x1095   :  { %v2907_v9 = vmax.f32 %v2906_v4, 0.0 }
0x1097   :  { %v2908_v6 = vpack.c.bf16 %v2907_v9, %v2907_v9 }
0x1098   :  { %v2891_v54 = vpop.f32.mrf.mxu2 }
0x1099   :  { %2917 = vmatmul.bf16.vlgmr.msra.gmra.mxu0 %v2908_v6  ;;  %2930 = vmatmul.bf16.vlgmr.msra.gmra.mxu1 %v2908_v6  ;;  %v4798_v54 = vld [vmem:[%s10318_s0 + $0x28] sm:$0xff] }
0x109a   :  { %2943 = vmatmul.bf16.vlgmr.msra.gmra.mxu2 %v2908_v6  ;;  %3088 = vmatpush.bf16.msra.mxu0 %v8041_v50  ;;  %v8645_v50 = vld [vmem:[%s9909_s3 + $0x68] sm:$0xff] }
0x109b   :  { %3153 = vmatpush.bf16.msra.mxu2 %v8629_v27  ;;  %3140 = vmatpush.bf16.msra.mxu1 %v8048_v8  ;;  %v8653_v8 = vld [vmem:[%s9909_s3 + $0x60] sm:$0xff] }
0x109e   :  { %3089 = vmatpush.bf16.msra.mxu0 %v8054_v13  ;;  %v8663_v13 = vld [vmem:[%s9909_s3 + $0x58] sm:$0xff] }
0x109f   :  { %3154 = vmatpush.bf16.msra.mxu2 %v8637_v19  ;;  %3141 = vmatpush.bf16.msra.mxu1 %v8061_v22  ;;  %v8671_v22 = vld [vmem:[%s9909_s3 + $0x50] sm:$0xff] }
0x10a2   :  { %3090 = vmatpush.bf16.msra.mxu0 %v8067_v47  ;;  %v8679_v47 = vld [vmem:[%s9909_s3 + $0x48] sm:$0xff] }
0x10a3   :  { %3155 = vmatpush.bf16.msra.mxu2 %v8645_v50  ;;  %3142 = vmatpush.bf16.msra.mxu1 %v8074_v46  ;;  %v8688_v46 = vld [vmem:[%s9909_s3 + $0x40] sm:$0xff] }
0x10a6   :  { %3091 = vmatpush.bf16.msra.mxu0 %v8080_v60  ;;  %v10834_v60 = vld [vmem:[#allocation8_spill] sm:$0xff] }
0x10a7   :  { %3156 = vmatpush.bf16.msra.mxu2 %v8653_v8  ;;  %3143 = vmatpush.bf16.msra.mxu1 %v8087_v12  ;;  %v10835_v12 = vld [vmem:[#allocation9_spill] sm:$0xff] }
0x10a9   :  { %2969 = vmatmul.bf16.vlgmr.msrb.gmra.mxu0 %v8306_v59  ;;  %2982 = vmatmul.bf16.vlgmr.msrb.gmra.mxu1 %v8306_v59 }
0x10aa   :  { %3092 = vmatpush.bf16.msra.mxu0 %v8095_v41  ;;  %v10836_v41 = vld [vmem:[#allocation10_spill] sm:$0xff] }
0x10ab   :  { %3157 = vmatpush.bf16.msra.mxu2 %v8663_v13  ;;  %3144 = vmatpush.bf16.msra.mxu1 %v8102_v45  ;;  %v10837_v45 = vld [vmem:[#allocation12_spill] sm:$0xff] }
0x10ae   :  { %3093 = vmatpush.bf16.msra.mxu0 %v8108_v51  ;;  %v10838_v51 = vld [vmem:[#allocation11_spill] sm:$0xff] }
0x10af   :  { %3158 = vmatpush.bf16.msra.mxu2 %v8671_v22  ;;  %3145 = vmatpush.bf16.msra.mxu1 %v8115_v57  ;;  %v10839_v57 = vld [vmem:[#allocation13_spill] sm:$0xff] }
0x10b2   :  { %3094 = vmatpush.bf16.msra.mxu0 %v8121_v5  ;;  %v10840_v5 = vld [vmem:[#allocation106_spill] sm:$0xff] }
0x10b3   :  { %3159 = vmatpush.bf16.msra.mxu2 %v8679_v47  ;;  %3146 = vmatpush.bf16.msra.mxu1 %v8128_v0  ;;  %v10841_v0 = vld [vmem:[#allocation107_spill] sm:$0xff] }
0x10b6   :  { %3095 = vmatpush.bf16.msra.mxu0 %v8134_v32  ;;  %v10842_v32 = vld [vmem:[#allocation108_spill] sm:$0xff] }
0x10b7   :  { %3160 = vmatpush.bf16.msra.mxu2 %v8688_v46  ;;  %3147 = vmatpush.bf16.msra.mxu1 %v8147_v34 }
0x10ba   :  { %3179 = vmatpush.bf16.msrb.mxu0 %v8140_v40  ;;  %v10843_v40 = vld [vmem:[#allocation109_spill] sm:$0xff] }
0x10bb   :  { %3192 = vmatpush.bf16.msrb.mxu1 %v8153_v42 }
0x10be   :  { %3180 = vmatpush.bf16.msrb.mxu0 %v8159_v11  ;;  %v2958_v11 = vadd.f32 %v8617_v29, %v10635_v14 }
0x10bf   :  { %3193 = vmatpush.bf16.msrb.mxu1 %v8165_v55 }
0x10c2   :  { %3181 = vmatpush.bf16.msrb.mxu0 %v8171_v31 }
0x10c3   :  { %3194 = vmatpush.bf16.msrb.mxu1 %v8177_v39 }
0x10c6   :  { %3182 = vmatpush.bf16.msrb.mxu0 %v10834_v60  ;;  %v8715_v60 = vpack.c.bf16 %v4798_v54, %v4798_v54 }
0x10c7   :  { %3195 = vmatpush.bf16.msrb.mxu1 %v10835_v12 }
0x10c8   :  { %3096 = vmatmul.bf16.vlgmr.msra.gmra.mxu0 %v8715_v60 }
0x10ca   :  { %3183 = vmatpush.bf16.msrb.mxu0 %v10836_v41 }
0x10cb   :  { %3196 = vmatpush.bf16.msrb.mxu1 %v10837_v45 }
0x10ce   :  { %3184 = vmatpush.bf16.msrb.mxu0 %v10838_v51 }
0x10cf   :  { %3197 = vmatpush.bf16.msrb.mxu1 %v10839_v57 }
0x10d2   :  { %3185 = vmatpush.bf16.msrb.mxu0 %v10840_v5  ;;  %v10844_v5 = vld [vmem:[#allocation110_spill] sm:$0xff] }
0x10d3   :  { %3198 = vmatpush.bf16.msrb.mxu1 %v10841_v0 }
0x10d6   :  { %3186 = vmatpush.bf16.msrb.mxu0 %v10842_v32 }
0x10d7   :  { %3199 = vmatpush.bf16.msrb.mxu1 %v10843_v40 }
0x10da   :  { %3231 = vmatpush.bf16.msra.mxu0 %v10844_v5  ;;  %v10851_v5 = vld [vmem:[#allocation98_spill] sm:$0xff] }
0x1116   :  { %v2918_v34 = vpop.f32.mrf.mxu0  ;;  %v2931_v42 = vpop.f32.mrf.mxu1 }
0x1117   :  { %v2919_v55 = vadd.f32 %v2918_v34, %v10743_v33  ;;  %v2932_v4 = vadd.f32 %v2931_v42, %v10744_v61  ;;  %v10845_v34 = vld [vmem:[#allocation111_spill] sm:$0xff] }
0x1118   :  { %3232 = vmatpush.bf16.msra.mxu0 %v10845_v34 }
0x1119   :  { %v2987_v31 = vadd.f32 %v2958_v11, %v2919_v55 }
0x111b   :  { %v2988_v39 = vsub.f32 0.0, %v2987_v31 }
0x111d   :  { %v2989_v59 = vmul.f32 1.442695, %v2988_v39  ;;  %v2944_v7 = vpop.f32.mrf.mxu2 }
0x111e   :  { %v2920_v24 = vpop.f32.mrf.mxu0  ;;  %v2933_v20 = vpop.f32.mrf.mxu1 }
0x111f   :  { %5036 = vpow2.f32 %v2989_v59  ;;  %v10846_v24 = vld [vmem:[#allocation17_spill] sm:$0xff] }
0x1120   :  { %3233 = vmatpush.bf16.msra.mxu0 %v10846_v24 }
0x1125   :  { %v5037_v49 = vpop.eup %5036  ;;  %v2946_v10 = vpop.f32.mrf.mxu2 }
0x1126   :  { %v2991_v18 = vadd.f32 1.0, %v5037_v49  ;;  %v2970_v16 = vpop.f32.mrf.mxu0  ;;  %v2983_v58 = vpop.f32.mrf.mxu1  ;;  %v10847_v49 = vld [vmem:[#allocation18_spill] sm:$0xff] }
0x1127   :  { %v2971_v9 = vadd.f32 %v2970_v16, %v10745_v30  ;;  %v2984_v10 = vadd.f32 %v2983_v58, %v10847_v49  ;;  %v10848_v16 = vld [vmem:[#allocation21_spill] sm:$0xff] }
0x1128   :  { %5038 = vrcp.f32 %v2991_v18  ;;  %v3003_v40 = vand.u32 2147483648, %v2991_v18  ;;  %v3001_v42 = vand.u32 2147483647, %v2991_v18  ;;  %vm2997_vm5 = vweird.f32 %v2991_v18  ;;  %3234 = vmatpush.bf16.msra.mxu0 %v10848_v16  ;;  %v8752_v16 = vld [vmem:[%s9909_s3 + $0x170] sm:$0xff] }
0x1129   :  { %v3007_v29 = vadd.f32 %v2971_v9, %v2932_v4 }
0x112a   :  { %v3004_v59 = vor.u32 1.1754944e-38, %v3003_v40  ;;  %vm3002_vm7 = vcmp.eq.f32.partialorder %v3001_v42, 8.507059e+37  ;;  %v10852_v40 = vld [vmem:[#allocation99_spill] sm:$0xff] }
0x112b   :  { %v3008_v6 = vsub.f32 0.0, %v3007_v29  ;;  %v10849_v29 = vld [vmem:[#allocation22_spill] sm:$0xff] }
0x112d   :  { %v3009_v12 = vmul.f32 1.442695, %v3008_v6  ;;  %v2945_v6 = vadd.f32 %v2944_v7, %v10849_v29 }
0x112e   :  { %v5039_v41 = vpop.eup %5038  ;;  %v2972_v45 = vpop.f32.mrf.mxu0 }
0x112f   :  { %v2985_v51 = vpop.f32.mrf.mxu1  ;;  %5040 = vpow2.f32 %v3009_v12  ;;  %v2993_v57 = vmul.f32 %v5039_v41, %v2991_v18  ;;  %vm2998_vm4 = vweird.f32 %v5039_v41  ;;  %v10850_v12 = vld [vmem:[#allocation25_spill] sm:$0xff] }
0x1130   :  { %vm2999_vm6 = vmor %vm2997_vm5, %vm2998_vm4  ;;  %3235 = vmatpush.bf16.msra.mxu0 %v10850_v12  ;;  %v8782_v12 = vld [vmem:[%s9909_s3 + $0x1a0] sm:$0xff] }
0x1131   :  { %v2994_v0 = vsub.f32 1.0, %v2993_v57  ;;  %10856 = vst [vmem:[#allocation37_spill] sm:$0xff] %v8782_v12 }
0x1133   :  { %v2995_v32 = vmul.f32 %v5039_v41, %v2994_v0 }
0x1134   :  { %3236 = vmatpush.bf16.msra.mxu0 %v10851_v5  ;;  %v10862_v5 = vld [vmem:[#allocation16_spill] sm:$0xff] }
0x1135   :  { %v5041_v11 = vpop.eup %5040  ;;  %v2996_v55 = vadd.f32 %v5039_v41, %v2995_v32 }
0x1136   :  { %v3011_v31 = vadd.f32 1.0, %v5041_v11 }
0x1137   :  { %v3000_v39 = vsel %vm2999_vm6, %v5039_v41, %v2996_v55  ;;  %v10853_v55 = vld [vmem:[#allocation101_spill] sm:$0xff] }
0x1138   :  { %5042 = vrcp.f32 %v3011_v31  ;;  %v3005_v20 = vsel %vm3002_vm7, %v3004_v59, %v3000_v39  ;;  %v3023_v41 = vand.u32 2147483648, %v3011_v31  ;;  %v3021_v57 = vand.u32 2147483647, %v3011_v31  ;;  %3237 = vmatpush.bf16.msra.mxu0 %v10852_v40  ;;  %v10854_v59 = vld [vmem:[#allocation100_spill] sm:$0xff] }
0x1139   :  { %v3027_v4 = vmul.f32 %v3005_v20, %v2984_v10  ;;  %vm3017_vm9 = vweird.f32 %v3011_v31  ;;  %v8740_v20 = vld [vmem:[%s9909_s3 + $0x178] sm:$0xff] }
0x113a   :  { %v3024_v0 = vor.u32 1.1754944e-38, %v3023_v41  ;;  %vm3022_vm11 = vcmp.eq.f32.partialorder %v3021_v57, 8.507059e+37  ;;  %v8746_v10 = vld [vmem:[%s9909_s3 + $0x1b8] sm:$0xff]  ;;  %v10859_v41 = vld [vmem:[#allocation103_spill] sm:$0xff]  ;;  %v10861_v57 = vld [vmem:[#allocation105_spill] sm:$0xff] }
0x113b   :  { %v3028_v18 = vadd.f32 %v3027_v4, %v2945_v6  ;;  %v8758_v4 = vld [vmem:[%s9909_s3 + $0x1b0] sm:$0xff]  ;;  %v8770_v6 = vld [vmem:[%s9909_s3 + $0x1a8] sm:$0xff] }
0x113c   :  { %3238 = vmatpush.bf16.msra.mxu0 %v10854_v59 }
0x113d   :  { %5044 = vtanh.f32 %v3028_v18  ;;  %v8788_v18 = vld [vmem:[%s9909_s3 + $0x158] sm:$0xff] }
0x113e   :  { %v5043_v9 = vpop.eup %5042  ;;  %10857 = vst [vmem:[#allocation32_spill] sm:$0xff] %v8788_v18 }
0x113f   :  { %v3013_v54 = vmul.f32 %v5043_v9, %v3011_v31  ;;  %vm3018_vm8 = vweird.f32 %v5043_v9 }
0x1140   :  { %vm3019_vm10 = vmor %vm3017_vm9, %vm3018_vm8 }
0x1141   :  { %v3014_v45 = vsub.f32 1.0, %v3013_v54  ;;  %v8776_v54 = vld [vmem:[%s9909_s3 + $0x160] sm:$0xff] }
0x1142   :  { %10855 = vst [vmem:[#allocation31_spill] sm:$0xff] %v8776_v54 }
0x1143   :  { %v3015_v51 = vmul.f32 %v5043_v9, %v3014_v45  ;;  %v5045_v42 = vpop.eup %5044  ;;  %v8794_v45 = vld [vmem:[%s9909_s3 + $0x198] sm:$0xff] }
0x1144   :  { %10858 = vst [vmem:[#allocation33_spill] sm:$0xff] %v8794_v45 }
0x1145   :  { %v3016_v58 = vadd.f32 %v5043_v9, %v3015_v51  ;;  %v10860_v51 = vld [vmem:[#allocation104_spill] sm:$0xff] }
0x1147   :  { %v3020_v32 = vsel %vm3019_vm10, %v5043_v9, %v3016_v58  ;;  %v8764_v9 = vld [vmem:[%s9909_s3 + $0x168] sm:$0xff]  ;;  %v10863_v58 = vld [vmem:[#allocation112_spill] sm:$0xff] }
0x1148   :  { %v3025_v7 = vsel %vm3022_vm11, %v3024_v0, %v3020_v32  ;;  %v10864_v0 = vld [vmem:[#allocation113_spill] sm:$0xff]  ;;  %v3097_v32 = vpop.f32.mrf.mxu0 }
0x1149   :  { %v3030_v34 = vsub.f32 1.0, %v3025_v7  ;;  %v3032_v39 = vmul.f32 %v3025_v7, %v10853_v55 }
0x114b   :  { %v3031_v11 = vmul.f32 %v5045_v42, %v3030_v34 }
0x114d   :  { %v8729_v24 = vadd.f32 %v3032_v39, %v3031_v11  ;;  %v8808_v11 = vld [vmem:[%s9913_s7] ss:$0 sm:$0xff] }
0x114e   :  { %10866 = vst [vmem:[#allocation34_spill] sm:$0xff] %v8808_v11 }
0x114f   :  { %v8733_v31 = vpack.c.bf16 %v8729_v24, %v8729_v24 }
0x1150   :  { %v3099_v40 = vpop.f32.mrf.mxu0 }
0x1151   :  { %3043 = vmatmul.bf16.vlgmr.msrb.gmra.mxu2 %v8733_v31  ;;  %3083 = vmatmul.bf16.vlgmr.msrb.gmra.mxu3 %v8733_v31 }
0x1152   :  { %3205 = vmatpush.bf16.msrb.mxu2 %v8740_v20  ;;  %3218 = vmatpush.bf16.msrb.mxu3 %v8746_v10 }
0x1156   :  { %3206 = vmatpush.bf16.msrb.mxu2 %v8752_v16  ;;  %3219 = vmatpush.bf16.msrb.mxu3 %v8758_v4 }
0x115a   :  { %3207 = vmatpush.bf16.msrb.mxu2 %v8764_v9  ;;  %3220 = vmatpush.bf16.msrb.mxu3 %v8770_v6 }
0x115e   :  { %3208 = vmatpush.bf16.msrb.mxu2 %v8776_v54  ;;  %3221 = vmatpush.bf16.msrb.mxu3 %v8782_v12 }
0x1162   :  { %3209 = vmatpush.bf16.msrb.mxu2 %v8788_v18  ;;  %3222 = vmatpush.bf16.msrb.mxu3 %v8794_v45 }
0x1166   :  { %3210 = vmatpush.bf16.msrb.mxu2 %v10859_v41  ;;  %3223 = vmatpush.bf16.msrb.mxu3 %v10860_v51 }
0x116a   :  { %3211 = vmatpush.bf16.msrb.mxu2 %v10861_v57  ;;  %3224 = vmatpush.bf16.msrb.mxu3 %v10862_v5 }
0x116e   :  { %3212 = vmatpush.bf16.msrb.mxu2 %v10863_v58  ;;  %3225 = vmatpush.bf16.msrb.mxu3 %v10864_v0 }
0x11d4   :  { %v8803_v7 = vpop.f32.mrf.mxu2  ;;  %v3084_v34 = vpop.f32.mrf.mxu3 }
0x11d5   :  { %10865 = vst [vmem:[#allocation40_spill] sm:$0xff] %v8803_v7  ;;  %v3098_v42 = vadd.f32 %v3097_v32, %v3084_v34 }
0x11d7   :  { %v3101_v55 = vadd.f32 %v8808_v11, %v3098_v42 }
0x11d9   :  { %3102 = vmax.xlane.f32.xlu1 %v3101_v55 }
0x11dc   :  { %v3046_v39 = vpop.f32.mrf.mxu2  ;;  %v3086_v59 = vpop.f32.mrf.mxu3 }
0x124c   :  { %v3103_v41 = vpop.xlane.xlu1 %3102 }
0x124d   :  { %v3104_v51 = vsub.f32 %v3101_v55, %v3103_v41 }
0x124f   :  { %v3105_v57 = vmul.f32 1.442695, %v3104_v51 }
0x1251   :  { %5046 = vpow2.f32 %v3105_v57 }
0x1257   :  { %v5047_v5 = vpop.eup %5046 }
0x1258   :  { %3107 = vadd.xlane.f32.xlu2 %v5047_v5 }
0x12cb   :  { %v3108_v58 = vpop.xlane.xlu2 %3107 }
0x12cc   :  { %5048 = vrcp.f32 %v3108_v58  ;;  %v3120_v34 = vand.u32 2147483648, %v3108_v58  ;;  %v3118_v45 = vand.u32 2147483647, %v3108_v58  ;;  %vm3114_vm13 = vweird.f32 %v3108_v58 }
0x12ce   :  { %v3121_v42 = vor.u32 1.1754944e-38, %v3120_v34  ;;  %vm3119_vm15 = vcmp.eq.f32.partialorder %v3118_v45, 8.507059e+37  ;;  %v10876_v34 = vld [vmem:[#allocation60_spill] sm:$0xff] }
0x12d2   :  { %v5049_v0 = vpop.eup %5048 }
0x12d3   :  { %v3110_v32 = vmul.f32 %v5049_v0, %v3108_v58  ;;  %vm3115_vm12 = vweird.f32 %v5049_v0 }
0x12d4   :  { %vm3116_vm14 = vmor %vm3114_vm13, %vm3115_vm12 }
0x12d5   :  { %v3111_v40 = vsub.f32 1.0, %v3110_v32 }
0x12d7   :  { %v3112_v7 = vmul.f32 %v5049_v0, %v3111_v40 }
0x12d9   :  { %v3113_v18 = vadd.f32 %v5049_v0, %v3112_v7  ;;  %v10873_v7 = vld [vmem:[#allocation56_spill] sm:$0xff] }
0x12db   :  { %v3117_v39 = vsel %vm3116_vm14, %v5049_v0, %v3113_v18 }
0x12dc   :  { %v3122_v55 = vsel %vm3119_vm15, %v3121_v42, %v3117_v39  ;;  %v10877_v42 = vld [vmem:[#allocation65_spill] sm:$0xff]  ;;  %v10879_v39 = vld [vmem:[#allocation24_spill] sm:$0xff] }
0x12dd   :  { %v3123_v59 = vmul.f32 %v5047_v5, %v3122_v55  ;;  %v10875_v5 = vld [vmem:[#allocation20_spill] sm:$0xff] }
0x12de   :  { %v10880_v55 = vld [vmem:[#allocation64_spill] sm:$0xff] }
0x12df   :  { %v3124_v41 = vmul.f32 %v8362_v1, %v3123_v59  ;;  %v3125_v51 = vmul.f32 %v8368_v23, %v3123_v59  ;;  %v3126_v57 = vmul.f32 %v8374_v63, %v3123_v59  ;;  %v3127_v32 = vmul.f32 %v8380_v37, %v3123_v59  ;;  %v10867_v1 = vld [vmem:[#allocation58_spill] sm:$0xff]  ;;  %v10868_v23 = vld [vmem:[#allocation115_spill] sm:$0xff]  ;;  %v10869_v63 = vld [vmem:[#allocation116_spill] sm:$0xff] }
0x12e0   :  { %v3128_v37 = vmul.f32 %v10869_v63, %v3123_v59  ;;  %v3131_v45 = vmul.f32 %v8444_v53, %v3123_v59  ;;  %v10878_v53 = vld [vmem:[#allocation23_spill] sm:$0xff]  ;;  %v10888_v63 = vld [vmem:[#allocation70_spill] sm:$0xff] }
0x12e1   :  { %v3132_v11 = vpack.c.bf16 %v3124_v41, %v3124_v41  ;;  %v3133_v40 = vpack.c.bf16 %v3125_v51, %v3125_v51  ;;  %v3134_v12 = vpack.c.bf16 %v3126_v57, %v3126_v57  ;;  %v3135_v54 = vpack.c.bf16 %v3127_v32, %v3127_v32  ;;  %v10882_v41 = vld [vmem:[#allocation26_spill] sm:$0xff]  ;;  %v10883_v51 = vld [vmem:[#allocation27_spill] sm:$0xff]  ;;  %v10884_v57 = vld [vmem:[#allocation68_spill] sm:$0xff] }
0x12e2   :  { %v3139_v0 = vpack.c.bf16 %v3131_v45, %v3131_v45  ;;  %v10885_v32 = vld [vmem:[#allocation76_spill] sm:$0xff]  ;;  %v10895_v45 = vld [vmem:[#allocation83_spill] sm:$0xff] }
0x12e3   :  { %3148 = vmatmul.bf16.vlgmr.msra.gmra.mxu1 %v3132_v11  ;;  %3161 = vmatmul.bf16.vlgmr.msra.gmra.mxu2 %v3133_v40  ;;  %v10886_v40 = vld [vmem:[#allocation28_spill] sm:$0xff] }
0x12e4   :  { %3174 = vmatmul.bf16.vlgmr.msra.gmra.mxu3 %v3134_v12  ;;  %3187 = vmatmul.bf16.vlgmr.msrb.gmra.mxu0 %v3135_v54  ;;  %v10870_v54 = vld [vmem:[#allocation5_spill] sm:$0xff]  ;;  %v10871_v12 = vld [vmem:[#allocation14_spill] sm:$0xff] }
0x12e5   :  { %3258 = vmatpush.bf16.msra.mxu2 %v8386_v3  ;;  %3245 = vmatpush.bf16.msra.mxu1 %v8392_v15  ;;  %v3129_v3 = vmul.f32 %v10870_v54, %v3123_v59  ;;  %v10872_v15 = vld [vmem:[#allocation6_spill] sm:$0xff] }
0x12e6   :  { %3274 = vmatpush.bf16.msra.mxu3 %v10464_v2  ;;  %3287 = vmatpush.bf16.msrb.mxu0 %v10465_v48  ;;  %v3130_v18 = vmul.f32 %v10872_v15, %v3123_v59  ;;  %v10881_v59 = vld [vmem:[#allocation72_spill] sm:$0xff]  ;;  %v10890_v54 = vld [vmem:[#allocation30_spill] sm:$0xff]  ;;  %v10893_v15 = vld [vmem:[#allocation55_spill] sm:$0xff] }
0x12e7   :  { %v3137_v11 = vpack.c.bf16 %v3129_v3, %v3129_v3  ;;  %v10891_v3 = vld [vmem:[#allocation36_spill] sm:$0xff] }
0x12e8   :  { %v3138_v58 = vpack.c.bf16 %v3130_v18, %v3130_v18  ;;  %v10894_v18 = vld [vmem:[#allocation71_spill] sm:$0xff] }
0x12e9   :  { %3259 = vmatpush.bf16.msra.mxu2 %v8400_v38  ;;  %3246 = vmatpush.bf16.msra.mxu1 %v8406_v44  ;;  %v10874_v38 = vld [vmem:[#allocation19_spill] sm:$0xff]  ;;  %v3136_v44 = vpack.c.bf16 %v3128_v37, %v3128_v37  ;;  %v10889_v37 = vld [vmem:[#allocation80_spill] sm:$0xff] }
0x12ea   :  { %3275 = vmatpush.bf16.msra.mxu3 %v10468_v21  ;;  %3288 = vmatpush.bf16.msrb.mxu0 %v10867_v1 }
0x12ed   :  { %3260 = vmatpush.bf16.msra.mxu2 %v10868_v23  ;;  %3247 = vmatpush.bf16.msra.mxu1 %v10871_v12  ;;  %v10887_v23 = vld [vmem:[#allocation29_spill] sm:$0xff]  ;;  %v10892_v12 = vld [vmem:[#allocation51_spill] sm:$0xff] }
0x12ee   :  { %3276 = vmatpush.bf16.msra.mxu3 %v10873_v7  ;;  %3289 = vmatpush.bf16.msrb.mxu0 %v6302_v28 }
0x12f1   :  { %3261 = vmatpush.bf16.msra.mxu2 %v10874_v38  ;;  %3248 = vmatpush.bf16.msra.mxu1 %v10875_v5  ;;  %v10896_v38 = vld [vmem:[#allocation74_spill] sm:$0xff]  ;;  %v10899_v5 = vld [vmem:[#allocation59_spill] sm:$0xff] }
0x12f2   :  { %3277 = vmatpush.bf16.msra.mxu3 %v10876_v34  ;;  %3290 = vmatpush.bf16.msrb.mxu0 %v10877_v42 }
0x12f3   :  { %3200 = vmatmul.bf16.vlgmr.msrb.gmra.mxu1 %v3136_v44  ;;  %3213 = vmatmul.bf16.vlgmr.msrb.gmra.mxu2 %v3137_v11  ;;  %v10897_v44 = vld [vmem:[#allocation86_spill] sm:$0xff]  ;;  %v10898_v11 = vld [vmem:[#allocation53_spill] sm:$0xff] }
0x12f4   :  { %3226 = vmatmul.bf16.vlgmr.msrb.gmra.mxu3 %v3138_v58  ;;  %3239 = vmatmul.bf16.vlgmr.msra.gmra.mxu0 %v3139_v0  ;;  %v10900_v58 = vld [vmem:[#allocation78_spill] sm:$0xff]  ;;  %v10901_v0 = vld [vmem:[#allocation88_spill] sm:$0xff] }
0x12f5   :  { %3262 = vmatpush.bf16.msra.mxu2 %v10878_v53  ;;  %3249 = vmatpush.bf16.msra.mxu1 %v10879_v39  ;;  %v10902_v53 = vld [vmem:[#allocation57_spill] sm:$0xff]  ;;  %v10903_v39 = vld [vmem:[#allocation63_spill] sm:$0xff] }
0x12f6   :  { %3278 = vmatpush.bf16.msra.mxu3 %v10880_v55  ;;  %3291 = vmatpush.bf16.msrb.mxu0 %v10881_v59 }
0x12f9   :  { %3263 = vmatpush.bf16.msra.mxu2 %v10882_v41  ;;  %3250 = vmatpush.bf16.msra.mxu1 %v10883_v51  ;;  %v10904_v41 = vld [vmem:[#allocation82_spill] sm:$0xff] }
0x12fa   :  { %3279 = vmatpush.bf16.msra.mxu3 %v10884_v57  ;;  %3292 = vmatpush.bf16.msrb.mxu0 %v10885_v32  ;;  %v10905_v51 = vld [vmem:[#allocation90_spill] sm:$0xff] }
0x12fd   :  { %3264 = vmatpush.bf16.msra.mxu2 %v10886_v40  ;;  %3251 = vmatpush.bf16.msra.mxu1 %v10887_v23  ;;  %v10907_v40 = vld [vmem:[#allocation67_spill] sm:$0xff]  ;;  %v10908_v23 = vld [vmem:[#allocation85_spill] sm:$0xff] }
0x12fe   :  { %3280 = vmatpush.bf16.msra.mxu3 %v10888_v63  ;;  %3293 = vmatpush.bf16.msrb.mxu0 %v10889_v37 }
0x1301   :  { %3265 = vmatpush.bf16.msra.mxu2 %v10890_v54  ;;  %3252 = vmatpush.bf16.msra.mxu1 %v10891_v3  ;;  %v10909_v54 = vld [vmem:[#allocation92_spill] sm:$0xff]  ;;  %v10910_v3 = vld [vmem:[#allocation66_spill] sm:$0xff] }
0x1302   :  { %3281 = vmatpush.bf16.msra.mxu3 %v10894_v18  ;;  %3294 = vmatpush.bf16.msrb.mxu0 %v10895_v45 }
0x1304   :  { %3266 = vmatmul.bf16.vlgmr.msra.gmra.mxu2 %v8715_v60  ;;  %v10906_v60 = vld [vmem:[#allocation62_spill] sm:$0xff] }
0x1305   :  { %3313 = vmatpush.bf16.msrb.mxu2 %v10892_v12  ;;  %3300 = vmatpush.bf16.msrb.mxu1 %v10893_v15 }
0x1306   :  { %3326 = vmatpush.bf16.msrb.mxu3 %v10896_v38  ;;  %3339 = vmatpush.bf16.msra.mxu0 %v10897_v44 }
0x1309   :  { %3314 = vmatpush.bf16.msrb.mxu2 %v10898_v11  ;;  %3301 = vmatpush.bf16.msrb.mxu1 %v10899_v5 }
0x130a   :  { %3327 = vmatpush.bf16.msrb.mxu3 %v10900_v58  ;;  %3340 = vmatpush.bf16.msra.mxu0 %v10901_v0  ;;  %v10911_v58 = vld [vmem:[#allocation73_spill] sm:$0xff]  ;;  %v10912_v0 = vld [vmem:[#allocation87_spill] sm:$0xff] }
0x130d   :  { %3315 = vmatpush.bf16.msrb.mxu2 %v10902_v53  ;;  %3302 = vmatpush.bf16.msrb.mxu1 %v10903_v39  ;;  %v10913_v53 = vld [vmem:[#allocation94_spill] sm:$0xff]  ;;  %v10914_v39 = vld [vmem:[#allocation69_spill] sm:$0xff] }
0x130e   :  { %3328 = vmatpush.bf16.msrb.mxu3 %v10904_v41  ;;  %3341 = vmatpush.bf16.msra.mxu0 %v10905_v51  ;;  %v10915_v41 = vld [vmem:[#allocation77_spill] sm:$0xff] }
0x130f   :  { %v10916_v51 = vld [vmem:[#allocation89_spill] sm:$0xff] }
0x1311   :  { %3316 = vmatpush.bf16.msrb.mxu2 %v10906_v60  ;;  %3303 = vmatpush.bf16.msrb.mxu1 %v10907_v40  ;;  %v10917_v60 = vld [vmem:[#allocation95_spill] sm:$0xff] }
0x1312   :  { %3329 = vmatpush.bf16.msrb.mxu3 %v10908_v23  ;;  %3342 = vmatpush.bf16.msra.mxu0 %v10909_v54  ;;  %v10918_v40 = vld [vmem:[#allocation75_spill] sm:$0xff]  ;;  %v10919_v23 = vld [vmem:[#allocation81_spill] sm:$0xff] }
0x1313   :  { %v10920_v54 = vld [vmem:[#allocation91_spill] sm:$0xff] }
0x1315   :  { %3317 = vmatpush.bf16.msrb.mxu2 %v10910_v3  ;;  %3304 = vmatpush.bf16.msrb.mxu1 %v10911_v58  ;;  %v10921_v3 = vld [vmem:[#allocation96_spill] sm:$0xff]  ;;  %v10922_v58 = vld [vmem:[#allocation79_spill] sm:$0xff] }
0x1316   :  { %3330 = vmatpush.bf16.msrb.mxu3 %v10912_v0  ;;  %3343 = vmatpush.bf16.msra.mxu0 %v10913_v53  ;;  %v10923_v0 = vld [vmem:[#allocation84_spill] sm:$0xff] }
0x1319   :  { %3318 = vmatpush.bf16.msrb.mxu2 %v10914_v39  ;;  %3305 = vmatpush.bf16.msrb.mxu1 %v10915_v41  ;;  %v8885_v41 = vld [vmem:[%s9912_s6 + $0x38] sm:$0xff] }
0x131a   :  { %3331 = vmatpush.bf16.msrb.mxu3 %v10916_v51  ;;  %3344 = vmatpush.bf16.msra.mxu0 %v10917_v60  ;;  %10924 = vst [vmem:[#allocation35_spill] sm:$0xff] %v8885_v41  ;;  %v10925_v60 = vld [vmem:[#allocation93_spill] sm:$0xff] }
0x131d   :  { %3319 = vmatpush.bf16.msrb.mxu2 %v10918_v40  ;;  %3306 = vmatpush.bf16.msrb.mxu1 %v10919_v23  ;;  %v10926_v23 = vld [vmem:[#allocation97_spill] sm:$0xff] }
0x131e   :  { %3332 = vmatpush.bf16.msrb.mxu3 %v10920_v54  ;;  %3345 = vmatpush.bf16.msra.mxu0 %v10921_v3  ;;  %v8894_v3 = vld [vmem:[%s9912_s6 + $0x30] sm:$0xff] }
0x131f   :  { %10927 = vst [vmem:[#allocation39_spill] sm:$0xff] %v8894_v3 }
0x1321   :  { %3320 = vmatpush.bf16.msrb.mxu2 %v10922_v58  ;;  %3307 = vmatpush.bf16.msrb.mxu1 %v10923_v0  ;;  %v8900_v0 = vld [vmem:[%s9912_s6 + $0x28] sm:$0xff] }
0x1322   :  { %3333 = vmatpush.bf16.msrb.mxu3 %v10925_v60  ;;  %3346 = vmatpush.bf16.msra.mxu0 %v10926_v23  ;;  %10928 = vst [vmem:[#allocation42_spill] sm:$0xff] %v8900_v0  ;;  %v8906_v60 = vld [vmem:[%s9912_s6 + $0x20] sm:$0xff]  ;;  %v8912_v23 = vld [vmem:[%s9912_s6 + $0x18] sm:$0xff] }
0x1323   :  { %10929 = vst [vmem:[#allocation41_spill] sm:$0xff] %v8906_v60 }
0x1324   :  { %3321 = vmatmul.bf16.vlgmr.msrb.gmra.mxu2 %v8733_v31  ;;  %10930 = vst [vmem:[#allocation44_spill] sm:$0xff] %v8912_v23 }
0x1325   :  { %3440 = vmatpush.bf16.msra.mxu2 %v8885_v41 }
0x1329   :  { %3441 = vmatpush.bf16.msra.mxu2 %v8894_v3  ;;  %v8918_v3 = vld [vmem:[%s9912_s6 + $0x10] sm:$0xff] }
0x132a   :  { %10931 = vst [vmem:[#allocation43_spill] sm:$0xff] %v8918_v3 }
0x132d   :  { %3442 = vmatpush.bf16.msra.mxu2 %v8900_v0  ;;  %v8924_v0 = vld [vmem:[%s9912_s6 + $0x8] sm:$0xff] }
0x132e   :  { %10932 = vst [vmem:[#allocation46_spill] sm:$0xff] %v8924_v0 }
0x1331   :  { %3443 = vmatpush.bf16.msra.mxu2 %v8906_v60  ;;  %v8930_v60 = vld [vmem:[%s9912_s6] sm:$0xff] }
0x1332   :  { %10933 = vst [vmem:[#allocation45_spill] sm:$0xff] %v8930_v60 }
0x1335   :  { %3444 = vmatpush.bf16.msra.mxu2 %v8912_v23  ;;  %v8936_v23 = vld [vmem:[%s9909_s3 + $0xb8] sm:$0xff] }
0x1336   :  { %10934 = vst [vmem:[#allocation48_spill] sm:$0xff] %v8936_v23 }
0x1339   :  { %3445 = vmatpush.bf16.msra.mxu2 %v8918_v3  ;;  %v8942_v3 = vld [vmem:[%s9909_s3 + $0xb0] sm:$0xff] }
0x133a   :  { %10935 = vst [vmem:[#allocation47_spill] sm:$0xff] %v8942_v3 }
0x133d   :  { %3446 = vmatpush.bf16.msra.mxu2 %v8924_v0  ;;  %v8948_v0 = vld [vmem:[%s9909_s3 + $0xa8] sm:$0xff] }
0x133e   :  { %10936 = vst [vmem:[#allocation49_spill] sm:$0xff] %v8948_v0 }
0x1341   :  { %3447 = vmatpush.bf16.msra.mxu2 %v8930_v60  ;;  %v8954_v60 = vld [vmem:[%s9909_s3 + $0xa0] sm:$0xff] }
0x1342   :  { %10937 = vst [vmem:[#allocation7_spill] sm:$0xff] %v8954_v60 }
0x1345   :  { %3531 = vmatpush.bf16.msrb.mxu2 %v8936_v23  ;;  %v8960_v23 = vld [vmem:[%s9909_s3 + $0x98] sm:$0xff] }
0x1346   :  { %10938 = vst [vmem:[#allocation8_spill] sm:$0xff] %v8960_v23 }
0x1349   :  { %3532 = vmatpush.bf16.msrb.mxu2 %v8942_v3  ;;  %v8966_v3 = vld [vmem:[%s9909_s3 + $0x90] sm:$0xff] }
0x134a   :  { %10939 = vst [vmem:[#allocation9_spill] sm:$0xff] %v8966_v3 }
0x134d   :  { %3533 = vmatpush.bf16.msrb.mxu2 %v8948_v0  ;;  %v8972_v0 = vld [vmem:[%s9909_s3 + $0x88] sm:$0xff] }
0x134e   :  { %10940 = vst [vmem:[#allocation10_spill] sm:$0xff] %v8972_v0 }
0x1351   :  { %3534 = vmatpush.bf16.msrb.mxu2 %v8954_v60  ;;  %v8978_v60 = vld [vmem:[%s9909_s3 + $0x80] sm:$0xff] }
0x1352   :  { %10941 = vst [vmem:[#allocation12_spill] sm:$0xff] %v8978_v60 }
0x1355   :  { %3535 = vmatpush.bf16.msrb.mxu2 %v8960_v23 }
0x1359   :  { %3536 = vmatpush.bf16.msrb.mxu2 %v8966_v3 }
0x135d   :  { %3537 = vmatpush.bf16.msrb.mxu2 %v8972_v0 }
0x1360   :  { %v3149_v23 = vpop.f32.mrf.mxu1 }
0x1361   :  { %3538 = vmatpush.bf16.msrb.mxu2 %v8978_v60  ;;  %v3188_v41 = vpop.f32.mrf.mxu0 }
0x1366   :  { %v3162_v58 = vpop.f32.mrf.mxu2 }
0x1367   :  { %v3175_v54 = vpop.f32.mrf.mxu3  ;;  %v3163_v51 = vadd.f32 %v3162_v58, %v3149_v23  ;;  %v9131_v58 = vld [vmem:[%s9909_s3 + $0x128] sm:$0xff] }
0x1368   :  { %v3151_v40 = vpop.f32.mrf.mxu1  ;;  %v9179_v23 = vld [vmem:[%s9909_s3 + $0x108] sm:$0xff] }
0x1369   :  { %v3190_v3 = vpop.f32.mrf.mxu0  ;;  %v3176_v53 = vadd.f32 %v3175_v54, %v3163_v51  ;;  %v9161_v51 = vld [vmem:[%s9909_s3 + $0xd0] sm:$0xff]  ;;  %v9173_v40 = vld [vmem:[%s9909_s3 + $0xc8] sm:$0xff]  ;;  %10947 = vst [vmem:[#allocation109_spill] sm:$0xff] %v9179_v23  ;;  %v9185_v54 = vld [vmem:[%s9909_s3 + $0xc0] sm:$0xff] }
0x136a   :  { %10944 = vst [vmem:[#allocation106_spill] sm:$0xff] %v9161_v51  ;;  %v9191_v3 = vld [vmem:[%s9909_s3 + $0x100] sm:$0xff] }
0x136b   :  { %v3189_v0 = vadd.f32 %v3188_v41, %v3176_v53  ;;  %v9143_v53 = vld [vmem:[%s9909_s3 + $0x120] sm:$0xff]  ;;  %v9155_v41 = vld [vmem:[%s9909_s3 + $0x118] sm:$0xff]  ;;  %10946 = vst [vmem:[#allocation108_spill] sm:$0xff] %v9173_v40 }
0x136c   :  { %10943 = vst [vmem:[#allocation13_spill] sm:$0xff] %v9155_v41 }
0x136d   :  { %10948 = vst [vmem:[#allocation110_spill] sm:$0xff] %v9185_v54 }
0x136e   :  { %v3164_v39 = vpop.f32.mrf.mxu2  ;;  %10949 = vst [vmem:[#allocation111_spill] sm:$0xff] %v9191_v3 }
0x136f   :  { %v3177_v5 = vpop.f32.mrf.mxu3  ;;  %v9149_v39 = vld [vmem:[%s9909_s3 + $0xd8] sm:$0xff] }
0x1370   :  { %v3201_v11 = vpop.f32.mrf.mxu1  ;;  %10942 = vst [vmem:[#allocation11_spill] sm:$0xff] %v9149_v39 }
0x1371   :  { %v3240_v44 = vpop.f32.mrf.mxu0  ;;  %v3202_v38 = vadd.f32 %v3201_v11, %v3189_v0  ;;  %v9137_v0 = vld [vmem:[%s9909_s3 + $0xe0] sm:$0xff] }
0x1376   :  { %v3214_v45 = vpop.f32.mrf.mxu2 }
0x1377   :  { %v3215_v18 = vadd.f32 %v3214_v45, %v3202_v38  ;;  %v3227_v15 = vpop.f32.mrf.mxu3  ;;  %v9107_v45 = vld [vmem:[%s9909_s3 + $0x138] sm:$0xff]  ;;  %v9113_v38 = vld [vmem:[%s9909_s3 + $0xf0] sm:$0xff] }
0x1378   :  { %v3203_v12 = vpop.f32.mrf.mxu1 }
0x1379   :  { %v3228_v37 = vadd.f32 %v3227_v15, %v3215_v18  ;;  %v3242_v60 = vpop.f32.mrf.mxu0  ;;  %v9075_v12 = vld [vmem:[%s9911_s5 + $0x8] sm:$0xff]  ;;  %v9088_v15 = vld [vmem:[%s9911_s5] sm:$0xff]  ;;  %v9094_v18 = vld [vmem:[%s9909_s3 + $0xf8] sm:$0xff] }
0x137a   :  { %v9167_v60 = vld [vmem:[%s9909_s3 + $0x110] sm:$0xff] }
0x137b   :  { %v3241_v63 = vadd.f32 %v3240_v44, %v3228_v37  ;;  %v9125_v44 = vld [vmem:[%s9909_s3 + $0xe8] sm:$0xff]  ;;  %10945 = vst [vmem:[#allocation107_spill] sm:$0xff] %v9167_v60 }
0x137d   :  { %v3244_v32 = vpack.c.bf16 %v3241_v63, %v3241_v63 }
0x137e   :  { %v3216_v57 = vpop.f32.mrf.mxu2 }
0x137f   :  { %v3229_v59 = vpop.f32.mrf.mxu3  ;;  %3253 = vmatmul.bf16.vlgmr.msra.gmra.mxu1 %v3244_v32 }
0x1380   :  { %3400 = vmatpush.bf16.msra.mxu1 %v8572_v35 }
0x1384   :  { %3401 = vmatpush.bf16.msra.mxu1 %v8578_v52 }
0x1387   :  { %v3267_v5 = vpop.f32.mrf.mxu2 }
0x1388   :  { %3402 = vmatpush.bf16.msra.mxu1 %v8584_v36 }
0x138c   :  { %3403 = vmatpush.bf16.msra.mxu1 %v8590_v43  ;;  %v8995_v43 = vld [vmem:[%s9911_s5 + $0x38] sm:$0xff] }
0x138f   :  { %v3269_v11 = vpop.f32.mrf.mxu2 }
0x1390   :  { %3404 = vmatpush.bf16.msra.mxu1 %v8596_v56  ;;  %v9002_v56 = vld [vmem:[%s9909_s3 + $0x38] sm:$0xff] }
0x1394   :  { %3405 = vmatpush.bf16.msra.mxu1 %v8602_v62  ;;  %v9008_v62 = vld [vmem:[%s9911_s5 + $0x30] sm:$0xff] }
0x1398   :  { %3406 = vmatpush.bf16.msra.mxu1 %v8608_v26  ;;  %v9015_v26 = vld [vmem:[%s9909_s3 + $0x30] sm:$0xff] }
0x139c   :  { %3407 = vmatpush.bf16.msra.mxu1 %v8614_v25  ;;  %v9021_v25 = vld [vmem:[%s9911_s5 + $0x28] sm:$0xff] }
0x13a7   :  { %v8989_v59 = vpop.f32.mrf.mxu2 }
0x13af   :  { %v3324_v57 = vpop.f32.mrf.mxu2 }
0x13fc   :  { %v3254_v35 = vpop.f32.mrf.mxu1 }
0x13fd   :  { %v3268_v32 = vadd.f32 %v3267_v5, %v3254_v35  ;;  %v3323_v35 = vadd.f32 %v8989_v59, %v10635_v14 }
0x13ff   :  { %v3271_v52 = vadd.f32 %v8622_v17, %v3268_v32  ;;  %v9028_v17 = vld [vmem:[%s9909_s3 + $0x28] sm:$0xff] }
0x1401   :  { %v3272_v63 = vmax.f32 %v3271_v52, 0.0 }
0x1403   :  { %v3273_v36 = vpack.c.bf16 %v3272_v63, %v3272_v63 }
0x1404   :  { %v3256_v37 = vpop.f32.mrf.mxu1 }
0x1405   :  { %3282 = vmatmul.bf16.vlgmr.msra.gmra.mxu3 %v3273_v36  ;;  %3295 = vmatmul.bf16.vlgmr.msrb.gmra.mxu0 %v3273_v36 }
0x1406   :  { %3308 = vmatmul.bf16.vlgmr.msrb.gmra.mxu1 %v3273_v36  ;;  %3453 = vmatpush.bf16.msra.mxu3 %v8995_v43 }
0x1407   :  { %3518 = vmatpush.bf16.msrb.mxu1 %v8629_v27  ;;  %3505 = vmatpush.bf16.msrb.mxu0 %v9002_v56  ;;  %v9034_v27 = vld [vmem:[%s9911_s5 + $0x20] sm:$0xff] }
0x140a   :  { %3454 = vmatpush.bf16.msra.mxu3 %v9008_v62 }
0x140b   :  { %3519 = vmatpush.bf16.msrb.mxu1 %v8637_v19  ;;  %3506 = vmatpush.bf16.msrb.mxu0 %v9015_v26  ;;  %v9041_v19 = vld [vmem:[%s9909_s3 + $0x20] sm:$0xff] }
0x140e   :  { %3455 = vmatpush.bf16.msra.mxu3 %v9021_v25 }
0x140f   :  { %3520 = vmatpush.bf16.msrb.mxu1 %v8645_v50  ;;  %3507 = vmatpush.bf16.msrb.mxu0 %v9028_v17  ;;  %v9049_v50 = vld [vmem:[%s9911_s5 + $0x18] sm:$0xff] }
0x1412   :  { %3456 = vmatpush.bf16.msra.mxu3 %v9034_v27 }
0x1413   :  { %3521 = vmatpush.bf16.msrb.mxu1 %v8653_v8  ;;  %3508 = vmatpush.bf16.msrb.mxu0 %v9041_v19  ;;  %v9056_v8 = vld [vmem:[%s9909_s3 + $0x18] sm:$0xff] }
0x1415   :  { %3334 = vmatmul.bf16.vlgmr.msrb.gmra.mxu3 %v8733_v31  ;;  %3347 = vmatmul.bf16.vlgmr.msra.gmra.mxu0 %v8733_v31  ;;  %v9062_v31 = vld [vmem:[%s9911_s5 + $0x10] sm:$0xff] }
0x1416   :  { %3457 = vmatpush.bf16.msra.mxu3 %v9049_v50 }
0x1417   :  { %3522 = vmatpush.bf16.msrb.mxu1 %v8663_v13  ;;  %3509 = vmatpush.bf16.msrb.mxu0 %v9056_v8  ;;  %v9069_v13 = vld [vmem:[%s9909_s3 + $0x10] sm:$0xff] }
0x141a   :  { %3458 = vmatpush.bf16.msra.mxu3 %v9062_v31 }
0x141b   :  { %3523 = vmatpush.bf16.msrb.mxu1 %v8671_v22  ;;  %3510 = vmatpush.bf16.msrb.mxu0 %v9069_v13  ;;  %v9082_v22 = vld [vmem:[%s9909_s3 + $0x8] sm:$0xff] }
0x141e   :  { %3459 = vmatpush.bf16.msra.mxu3 %v9075_v12 }
0x141f   :  { %3524 = vmatpush.bf16.msrb.mxu1 %v8679_v47  ;;  %3511 = vmatpush.bf16.msrb.mxu0 %v9082_v22  ;;  %v9101_v47 = vld [vmem:[%s9909_s3] sm:$0xff] }
0x1422   :  { %3460 = vmatpush.bf16.msra.mxu3 %v9088_v15 }
0x1423   :  { %3525 = vmatpush.bf16.msrb.mxu1 %v8688_v46  ;;  %3512 = vmatpush.bf16.msrb.mxu0 %v9101_v47  ;;  %v9119_v46 = vld [vmem:[%s9909_s3 + $0x130] sm:$0xff] }
0x1426   :  { %3544 = vmatpush.bf16.msrb.mxu3 %v9094_v18 }
0x1427   :  { %3557 = vmatpush.bf16.msra.mxu0 %v9107_v45 }
0x142a   :  { %3545 = vmatpush.bf16.msrb.mxu3 %v9113_v38 }
0x142b   :  { %3558 = vmatpush.bf16.msra.mxu0 %v9119_v46 }
0x142e   :  { %3546 = vmatpush.bf16.msrb.mxu3 %v9125_v44 }
0x142f   :  { %3559 = vmatpush.bf16.msra.mxu0 %v9131_v58 }
0x1432   :  { %3547 = vmatpush.bf16.msrb.mxu3 %v9137_v0 }
0x1433   :  { %3560 = vmatpush.bf16.msra.mxu0 %v9143_v53 }
0x1436   :  { %3548 = vmatpush.bf16.msrb.mxu3 %v9149_v39 }
0x1437   :  { %3561 = vmatpush.bf16.msra.mxu0 %v9155_v41 }
0x143a   :  { %3549 = vmatpush.bf16.msrb.mxu3 %v9161_v51 }
0x143b   :  { %3562 = vmatpush.bf16.msra.mxu0 %v9167_v60 }
0x143e   :  { %3550 = vmatpush.bf16.msrb.mxu3 %v9173_v40 }
0x143f   :  { %3563 = vmatpush.bf16.msra.mxu0 %v9179_v23 }
0x1442   :  { %3551 = vmatpush.bf16.msrb.mxu3 %v9185_v54 }
0x1443   :  { %3564 = vmatpush.bf16.msra.mxu0 %v9191_v3  ;;  %v4800_v3 = vld [vmem:[%s10318_s0 + $0x30] sm:$0xff] }
0x1444   :  { %v9200_v39 = vpack.c.bf16 %v4800_v3, %v4800_v3  ;;  %v9214_v3 = vld [vmem:[%s9909_s3 + $0x1f0] sm:$0xff] }
0x1446   :  { %3461 = vmatmul.bf16.vlgmr.msra.gmra.mxu3 %v9200_v39 }
0x1482   :  { %v3296_v5 = vpop.f32.mrf.mxu0 }
0x1483   :  { %v3309_v11 = vpop.f32.mrf.mxu1  ;;  %v3297_v59 = vadd.f32 %v3296_v5, %v10744_v61 }
0x1488   :  { %v3283_v57 = vpop.f32.mrf.mxu3 }
0x1489   :  { %v3284_v32 = vadd.f32 %v3283_v57, %v10743_v33 }
0x148a   :  { %v3298_v52 = vpop.f32.mrf.mxu0 }
0x148b   :  { %v3352_v63 = vadd.f32 %v3323_v35, %v3284_v32  ;;  %v3311_v36 = vpop.f32.mrf.mxu1 }
0x148c   :  { %v9220_v36 = vld [vmem:[%s9909_s3 + $0x1e8] sm:$0xff] }
0x148d   :  { %v3353_v37 = vsub.f32 0.0, %v3352_v63  ;;  %10950 = vst [vmem:[#allocation17_spill] sm:$0xff] %v9220_v36 }
0x148f   :  { %v3354_v54 = vmul.f32 1.442695, %v3353_v37 }
0x1490   :  { %v3285_v23 = vpop.f32.mrf.mxu3 }
0x1491   :  { %5050 = vpow2.f32 %v3354_v54  ;;  %v9208_v54 = vld [vmem:[%s9909_s3 + $0x1f8] sm:$0xff] }
0x1492   :  { %v3348_v40 = vpop.f32.mrf.mxu0  ;;  %3596 = vmatpush.bf16.msra.mxu3 %v9208_v54 }
0x1496   :  { %3597 = vmatpush.bf16.msra.mxu3 %v9214_v3 }
0x1497   :  { %v5051_v60 = vpop.eup %5050 }
0x1498   :  { %v3356_v51 = vadd.f32 1.0, %v5051_v60  ;;  %v3335_v41 = vpop.f32.mrf.mxu3 }
0x1499   :  { %v3336_v57 = vadd.f32 %v3335_v41, %v10745_v30 }
0x149a   :  { %5052 = vrcp.f32 %v3356_v51  ;;  %v3350_v35 = vpop.f32.mrf.mxu0  ;;  %3598 = vmatpush.bf16.msra.mxu3 %v9220_v36  ;;  %vm3362_vm1 = vweird.f32 %v3356_v51  ;;  %v9232_v36 = vld [vmem:[%s9909_s3 + $0x1d8] sm:$0xff] }
0x149b   :  { %v3372_v23 = vadd.f32 %v3336_v57, %v3297_v59  ;;  %v3368_v59 = vand.u32 2147483648, %v3356_v51  ;;  %v3366_v57 = vand.u32 2147483647, %v3356_v51 }
0x149d   :  { %v3373_v60 = vsub.f32 0.0, %v3372_v23  ;;  %vm3367_vm3 = vcmp.eq.f32.partialorder %v3366_v57, 8.507059e+37 }
0x149f   :  { %v3374_v32 = vmul.f32 1.442695, %v3373_v60  ;;  %v9226_v60 = vld [vmem:[%s9909_s3 + $0x1e0] sm:$0xff] }
0x14a0   :  { %v5053_v41 = vpop.eup %5052  ;;  %v3337_v5 = vpop.f32.mrf.mxu3  ;;  %10951 = vst [vmem:[#allocation18_spill] sm:$0xff] %v9226_v60  ;;  %3599 = vmatpush.bf16.msra.mxu3 %v9226_v60  ;;  %v9239_v60 = vld [vmem:[%s9909_s3 + $0x1d0] sm:$0xff] }
0x14a1   :  { %v3358_v52 = vmul.f32 %v5053_v41, %v3356_v51  ;;  %5054 = vpow2.f32 %v3374_v32  ;;  %vm3363_vm0 = vweird.f32 %v5053_v41  ;;  %v3349_v51 = vadd.f32 %v3348_v40, %v10847_v49  ;;  %10952 = vst [vmem:[#allocation21_spill] sm:$0xff] %v9239_v60 }
0x14a2   :  { %vm3364_vm2 = vmor %vm3362_vm1, %vm3363_vm0 }
0x14a3   :  { %v3359_v63 = vsub.f32 1.0, %v3358_v52  ;;  %v3369_v52 = vor.u32 1.1754944e-38, %v3368_v59  ;;  %v3310_v59 = vadd.f32 %v3309_v11, %v10849_v29  ;;  %v9252_v11 = vld [vmem:[%s9909_s3 + $0x1c0] sm:$0xff] }
0x14a4   :  { %3600 = vmatpush.bf16.msra.mxu3 %v9232_v36 }
0x14a5   :  { %v3360_v37 = vmul.f32 %v5053_v41, %v3359_v63 }
0x14a7   :  { %v5055_v35 = vpop.eup %5054  ;;  %v3361_v23 = vadd.f32 %v5053_v41, %v3360_v37 }
0x14a8   :  { %v3376_v32 = vadd.f32 1.0, %v5055_v35  ;;  %3601 = vmatpush.bf16.msra.mxu3 %v9239_v60 }
0x14a9   :  { %v3365_v5 = vsel %vm3364_vm2, %v5053_v41, %v3361_v23 }
0x14aa   :  { %5056 = vrcp.f32 %v3376_v32  ;;  %v3370_v63 = vsel %vm3367_vm3, %v3369_v52, %v3365_v5  ;;  %v9246_v5 = vld [vmem:[%s9909_s3 + $0x1c8] sm:$0xff]  ;;  %v3388_v40 = vand.u32 2147483648, %v3376_v32  ;;  %vm3382_vm5 = vweird.f32 %v3376_v32 }
0x14ab   :  { %v3392_v37 = vmul.f32 %v3370_v63, %v3349_v51  ;;  %10953 = vst [vmem:[#allocation25_spill] sm:$0xff] %v9246_v5  ;;  %v3386_v63 = vand.u32 2147483647, %v3376_v32 }
0x14ac   :  { %3602 = vmatpush.bf16.msra.mxu3 %v9246_v5 }
0x14ad   :  { %v3393_v35 = vadd.f32 %v3392_v37, %v3310_v59  ;;  %v3389_v37 = vor.u32 1.1754944e-38, %v3388_v40  ;;  %vm3387_vm7 = vcmp.eq.f32.partialorder %v3386_v63, 8.507059e+37 }
0x14af   :  { %5058 = vtanh.f32 %v3393_v35 }
0x14b0   :  { %v5057_v41 = vpop.eup %5056  ;;  %3603 = vmatpush.bf16.msra.mxu3 %v9252_v11 }
0x14b1   :  { %v3378_v57 = vmul.f32 %v5057_v41, %v3376_v32  ;;  %vm3383_vm4 = vweird.f32 %v5057_v41 }
0x14b2   :  { %vm3384_vm6 = vmor %vm3382_vm5, %vm3383_vm4 }
0x14b3   :  { %v3379_v23 = vsub.f32 1.0, %v3378_v57 }
0x14b5   :  { %v3380_v52 = vmul.f32 %v5057_v41, %v3379_v23  ;;  %v5059_v29 = vpop.eup %5058 }
0x14b7   :  { %v3381_v51 = vadd.f32 %v5057_v41, %v3380_v52 }
0x14b9   :  { %v3385_v59 = vsel %vm3384_vm6, %v5057_v41, %v3381_v51  ;;  %v10957_v41 = vld [vmem:[#allocation33_spill] sm:$0xff] }
0x14ba   :  { %v3390_v57 = vsel %vm3387_vm7, %v3389_v37, %v3385_v59  ;;  %v10961_v59 = vld [vmem:[#allocation34_spill] sm:$0xff] }
0x14bb   :  { %v3395_v5 = vsub.f32 1.0, %v3390_v57  ;;  %v3397_v60 = vmul.f32 %v3390_v57, %v8729_v24  ;;  %v10955_v24 = vld [vmem:[#allocation37_spill] sm:$0xff] }
0x14bd   :  { %v3396_v23 = vmul.f32 %v5059_v29, %v3395_v5  ;;  %v10954_v29 = vld [vmem:[#allocation31_spill] sm:$0xff] }
0x14bf   :  { %v9256_v35 = vadd.f32 %v3397_v60, %v3396_v23  ;;  %v10956_v60 = vld [vmem:[#allocation32_spill] sm:$0xff] }
0x14c1   :  { %v9260_v32 = vpack.c.bf16 %v9256_v35, %v9256_v35 }
0x14c3   :  { %3408 = vmatmul.bf16.vlgmr.msra.gmra.mxu1 %v9260_v32  ;;  %3448 = vmatmul.bf16.vlgmr.msra.gmra.mxu2 %v9260_v32 }
0x14c4   :  { %3570 = vmatpush.bf16.msra.mxu1 %v8740_v20  ;;  %3583 = vmatpush.bf16.msra.mxu2 %v8746_v10  ;;  %v9277_v20 = vld [vmem:[%s9909_s3 + $0x150] sm:$0xff] }
0x14c5   :  { %v9283_v10 = vld [vmem:[%s9909_s3 + $0x190] sm:$0xff] }
0x14c8   :  { %3571 = vmatpush.bf16.msra.mxu1 %v8752_v16  ;;  %3584 = vmatpush.bf16.msra.mxu2 %v8758_v4  ;;  %v9289_v16 = vld [vmem:[%s9909_s3 + $0x148] sm:$0xff] }
0x14c9   :  { %v9295_v4 = vld [vmem:[%s9909_s3 + $0x188] sm:$0xff]  ;;  %v3462_v5 = vpop.f32.mrf.mxu3 }
0x14cc   :  { %3572 = vmatpush.bf16.msra.mxu1 %v8764_v9  ;;  %3585 = vmatpush.bf16.msra.mxu2 %v8770_v6  ;;  %v9301_v9 = vld [vmem:[%s9909_s3 + $0x140] sm:$0xff] }
0x14cd   :  { %10958 = vst [vmem:[#allocation98_spill] sm:$0xff] %v9301_v9  ;;  %v9307_v6 = vld [vmem:[%s9909_s3 + $0x180] sm:$0xff] }
0x14ce   :  { %10959 = vst [vmem:[#allocation99_spill] sm:$0xff] %v9307_v6 }
0x14d0   :  { %3573 = vmatpush.bf16.msra.mxu1 %v10954_v29  ;;  %3586 = vmatpush.bf16.msra.mxu2 %v10955_v24 }
0x14d1   :  { %v3464_v40 = vpop.f32.mrf.mxu3 }
0x14d2   :  { %v10963_v40 = vld [vmem:[#allocation15_spill] sm:$0xff] }
0x14d4   :  { %3574 = vmatpush.bf16.msra.mxu1 %v10956_v60  ;;  %3587 = vmatpush.bf16.msra.mxu2 %v10957_v41 }
0x14d8   :  { %3575 = vmatpush.bf16.msra.mxu1 %v9277_v20  ;;  %3588 = vmatpush.bf16.msra.mxu2 %v9283_v10 }
0x14dc   :  { %3576 = vmatpush.bf16.msra.mxu1 %v9289_v16  ;;  %3589 = vmatpush.bf16.msra.mxu2 %v9295_v4 }
0x14e0   :  { %3577 = vmatpush.bf16.msra.mxu1 %v9301_v9  ;;  %3590 = vmatpush.bf16.msra.mxu2 %v9307_v6  ;;  %v9316_v6 = vld [vmem:[%s9922_s16] ss:$0 sm:$0xff] }
0x14e1   :  { %10962 = vst [vmem:[#allocation100_spill] sm:$0xff] %v9316_v6 }
0x1540   :  { %v9310_v52 = vpop.f32.mrf.mxu1 }
0x1541   :  { %10960 = vst [vmem:[#allocation101_spill] sm:$0xff] %v9310_v52  ;;  %v9320_v52 = vadd.f32 %v9316_v6, %v10963_v40 }
0x1543   :  { %10964 = vst [vmem:[#allocation103_spill] sm:$0xff] %v9320_v52 }
0x1546   :  { %v3449_v63 = vpop.f32.mrf.mxu2 }
0x1547   :  { %v3463_v51 = vadd.f32 %v3462_v5, %v3449_v63  ;;  %v10965_v5 = vld [vmem:[#allocation114_spill] sm:$0xff] }
0x1548   :  { %v3411_v37 = vpop.f32.mrf.mxu1  ;;  %v9325_v63 = vadd.f32 %v9316_v6, %v10965_v5 }
0x1549   :  { %v3466_v57 = vadd.f32 %v10961_v59, %v3463_v51 }
0x154a   :  { %10966 = vst [vmem:[#allocation104_spill] sm:$0xff] %v9325_v63 }
0x154b   :  { %3467 = vmax.xlane.f32.xlu0 %v3466_v57 }
0x154e   :  { %v3451_v23 = vpop.f32.mrf.mxu2 }
0x15be   :  { %v3468_v29 = vpop.xlane.xlu0 %3467 }
0x15bf   :  { %v3469_v24 = vsub.f32 %v3466_v57, %v3468_v29 }
0x15c1   :  { %v3470_v60 = vmul.f32 1.442695, %v3469_v24 }
0x15c3   :  { %5060 = vpow2.f32 %v3470_v60 }
0x15c9   :  { %v5061_v41 = vpop.eup %5060 }
0x15ca   :  { %3472 = vadd.xlane.f32.xlu1 %v5061_v41 }
0x15d2   :  { %1588 = vmax.xlane.f32.xlu1 %v9320_v52 }
0x15da   :  { %2683 = vmax.xlane.f32.xlu1 %v9325_v63  ;;  %v9331_v63 = vld [vmem:[%s9910_s4] sm:$0xff] }
0x163d   :  { %v3473_v51 = vpop.xlane.xlu1 %3472 }
0x163e   :  { %5062 = vrcp.f32 %v3473_v51  ;;  %v3485_v23 = vand.u32 2147483648, %v3473_v51  ;;  %v3483_v24 = vand.u32 2147483647, %v3473_v51  ;;  %vm3479_vm9 = vweird.f32 %v3473_v51 }
0x1640   :  { %v3486_v40 = vor.u32 1.1754944e-38, %v3485_v23  ;;  %vm3484_vm11 = vcmp.eq.f32.partialorder %v3483_v24, 8.507059e+37 }
0x1644   :  { %v5063_v37 = vpop.eup %5062 }
0x1645   :  { %v3475_v59 = vmul.f32 %v5063_v37, %v3473_v51  ;;  %vm3480_vm8 = vweird.f32 %v5063_v37 }
0x1646   :  { %vm3481_vm10 = vmor %vm3479_vm9, %vm3480_vm8 }
0x1647   :  { %v3476_v57 = vsub.f32 1.0, %v3475_v59  ;;  %v9337_v59 = vld [vmem:[%s9910_s4 + $0x8] sm:$0xff] }
0x1649   :  { %v3477_v29 = vmul.f32 %v5063_v37, %v3476_v57 }
0x164b   :  { %v3478_v60 = vadd.f32 %v5063_v37, %v3477_v29 }
0x164d   :  { %v3482_v52 = vsel %vm3481_vm10, %v5063_v37, %v3478_v60  ;;  %v9343_v37 = vld [vmem:[%s9910_s4 + $0x10] sm:$0xff]  ;;  %v9355_v60 = vld [vmem:[%s9914_s8 + $0x38] sm:$0xff] }
0x164e   :  { %v3487_v9 = vsel %vm3484_vm11, %v3486_v40, %v3482_v52  ;;  %10967 = vst [vmem:[#allocation105_spill] sm:$0xff] %v9343_v37  ;;  %v9349_v52 = vld [vmem:[%s9910_s4 + $0x18] sm:$0xff] }
0x164f   :  { %v3488_v5 = vmul.f32 %v5061_v41, %v3487_v9  ;;  %10968 = vst [vmem:[#allocation16_spill] sm:$0xff] %v9349_v52  ;;  %v9361_v40 = vld [vmem:[%s9915_s9 + $0x38] sm:$0xff] }
0x1650   :  { %10969 = vst [vmem:[#allocation112_spill] sm:$0xff] %v9355_v60 }
0x1651   :  { %v3489_v6 = vmul.f32 %v9331_v63, %v3488_v5  ;;  %v3490_v51 = vmul.f32 %v9337_v59, %v3488_v5  ;;  %v3491_v9 = vmul.f32 %v9343_v37, %v3488_v5  ;;  %v3492_v41 = vmul.f32 %v9349_v52, %v3488_v5  ;;  %10970 = vst [vmem:[#allocation113_spill] sm:$0xff] %v9361_v40 }
0x1653   :  { %v3497_v57 = vpack.c.bf16 %v3489_v6, %v3489_v6  ;;  %v3498_v23 = vpack.c.bf16 %v3490_v51, %v3490_v51  ;;  %v3499_v29 = vpack.c.bf16 %v3491_v9, %v3491_v9  ;;  %v3500_v24 = vpack.c.bf16 %v3492_v41, %v3492_v41  ;;  %v9369_v6 = vld [vmem:[%s9914_s8 + $0x30] sm:$0xff]  ;;  %v9383_v9 = vld [vmem:[%s9914_s8 + $0x28] sm:$0xff]  ;;  %v9389_v41 = vld [vmem:[%s9910_s4 + $0x20] sm:$0xff] }
0x1654   :  { %10971 = vst [vmem:[#allocation115_spill] sm:$0xff] %v9369_v6  ;;  %v9375_v51 = vld [vmem:[%s9915_s9 + $0x30] sm:$0xff] }
0x1655   :  { %3513 = vmatmul.bf16.vlgmr.msrb.gmra.mxu0 %v3497_v57  ;;  %3526 = vmatmul.bf16.vlgmr.msrb.gmra.mxu1 %v3498_v23  ;;  %10972 = vst [vmem:[#allocation116_spill] sm:$0xff] %v9375_v51  ;;  %v3493_v57 = vmul.f32 %v9389_v41, %v3488_v5  ;;  %v9395_v23 = vld [vmem:[%s9910_s4 + $0x28] sm:$0xff] }
0x1656   :  { %3539 = vmatmul.bf16.vlgmr.msrb.gmra.mxu2 %v3499_v29  ;;  %3552 = vmatmul.bf16.vlgmr.msrb.gmra.mxu3 %v3500_v24  ;;  %10973 = vst [vmem:[#allocation5_spill] sm:$0xff] %v9383_v9  ;;  %v3494_v29 = vmul.f32 %v9395_v23, %v3488_v5  ;;  %v9401_v24 = vld [vmem:[%s9915_s9 + $0x28] sm:$0xff] }
0x1657   :  { %3623 = vmatpush.bf16.msrb.mxu1 %v9355_v60  ;;  %3610 = vmatpush.bf16.msrb.mxu0 %v9361_v40  ;;  %10974 = vst [vmem:[#allocation14_spill] sm:$0xff] %v9389_v41 }
0x1658   :  { %3639 = vmatpush.bf16.msrb.mxu2 %v10464_v2  ;;  %3652 = vmatpush.bf16.msrb.mxu3 %v10465_v48  ;;  %10975 = vst [vmem:[#allocation6_spill] sm:$0xff] %v9395_v23 }
0x1659   :  { %10976 = vst [vmem:[#allocation19_spill] sm:$0xff] %v9401_v24 }
0x165b   :  { %3624 = vmatpush.bf16.msrb.mxu1 %v9369_v6  ;;  %3611 = vmatpush.bf16.msrb.mxu0 %v9375_v51  ;;  %v9427_v51 = vld [vmem:[%s9915_s9 + $0x20] sm:$0xff] }
0x165c   :  { %3640 = vmatpush.bf16.msrb.mxu2 %v10468_v21  ;;  %3653 = vmatpush.bf16.msrb.mxu3 %v10867_v1  ;;  %v9413_v1 = vld [vmem:[%s9910_s4 + $0x38] sm:$0xff]  ;;  %v3501_v21 = vpack.c.bf16 %v3493_v57, %v3493_v57  ;;  %10980 = vst [vmem:[#allocation26_spill] sm:$0xff] %v9427_v51 }
0x165d   :  { %10978 = vst [vmem:[#allocation23_spill] sm:$0xff] %v9413_v1  ;;  %v3496_v23 = vmul.f32 %v9413_v1, %v3488_v5  ;;  %v9435_v57 = vld [vmem:[%s9914_s8 + $0x18] sm:$0xff] }
0x165e   :  { %10981 = vst [vmem:[#allocation27_spill] sm:$0xff] %v9435_v57 }
0x165f   :  { %3625 = vmatpush.bf16.msrb.mxu1 %v9383_v9  ;;  %3612 = vmatpush.bf16.msrb.mxu0 %v9401_v24  ;;  %v9407_v9 = vld [vmem:[%s9910_s4 + $0x30] sm:$0xff]  ;;  %v9421_v24 = vld [vmem:[%s9914_s8 + $0x20] sm:$0xff] }
0x1660   :  { %10977 = vst [vmem:[#allocation20_spill] sm:$0xff] %v9407_v9  ;;  %v3495_v41 = vmul.f32 %v9407_v9, %v3488_v5  ;;  %3641 = vmatpush.bf16.msrb.mxu2 %v10873_v7  ;;  %3654 = vmatpush.bf16.msrb.mxu3 %v6302_v28  ;;  %v3502_v9 = vpack.c.bf16 %v3494_v29, %v3494_v29  ;;  %v10987_v29 = vld [vmem:[#allocation76_spill] sm:$0xff] }
0x1661   :  { %10979 = vst [vmem:[#allocation24_spill] sm:$0xff] %v9421_v24  ;;  %v3504_v7 = vpack.c.bf16 %v3496_v23, %v3496_v23  ;;  %v10986_v23 = vld [vmem:[#allocation68_spill] sm:$0xff] }
0x1662   :  { %v3503_v5 = vpack.c.bf16 %v3495_v41, %v3495_v41  ;;  %v9441_v41 = vld [vmem:[%s9915_s9 + $0x18] sm:$0xff] }
0x1663   :  { %3626 = vmatpush.bf16.msrb.mxu1 %v9421_v24  ;;  %3613 = vmatpush.bf16.msrb.mxu0 %v9427_v51  ;;  %10982 = vst [vmem:[#allocation28_spill] sm:$0xff] %v9441_v41 }
0x1664   :  { %3642 = vmatpush.bf16.msrb.mxu2 %v10876_v34  ;;  %3655 = vmatpush.bf16.msrb.mxu3 %v10877_v42  ;;  %v11001_v42 = vld [vmem:[#allocation59_spill] sm:$0xff] }
0x1665   :  { %3565 = vmatmul.bf16.vlgmr.msra.gmra.mxu0 %v3501_v21  ;;  %3578 = vmatmul.bf16.vlgmr.msra.gmra.mxu1 %v3502_v9  ;;  %v10983_v21 = vld [vmem:[#allocation72_spill] sm:$0xff]  ;;  %v9455_v9 = vld [vmem:[%s9915_s9 + $0x10] sm:$0xff] }
0x1666   :  { %3591 = vmatmul.bf16.vlgmr.msra.gmra.mxu2 %v3503_v5  ;;  %3604 = vmatmul.bf16.vlgmr.msra.gmra.mxu3 %v3504_v7  ;;  %v9449_v7 = vld [vmem:[%s9914_s8 + $0x10] sm:$0xff]  ;;  %10985 = vst [vmem:[#allocation30_spill] sm:$0xff] %v9455_v9  ;;  %v9463_v5 = vld [vmem:[%s9914_s8 + $0x8] sm:$0xff] }
0x1667   :  { %3627 = vmatpush.bf16.msrb.mxu1 %v9435_v57  ;;  %3614 = vmatpush.bf16.msrb.mxu0 %v9441_v41  ;;  %10984 = vst [vmem:[#allocation29_spill] sm:$0xff] %v9449_v7  ;;  %v11000_v41 = vld [vmem:[#allocation53_spill] sm:$0xff]  ;;  %v11002_v57 = vld [vmem:[#allocation78_spill] sm:$0xff] }
0x1668   :  { %3643 = vmatpush.bf16.msrb.mxu2 %v10880_v55  ;;  %3656 = vmatpush.bf16.msrb.mxu3 %v10983_v21  ;;  %10988 = vst [vmem:[#allocation36_spill] sm:$0xff] %v9463_v5  ;;  %v9469_v21 = vld [vmem:[%s9915_s9 + $0x8] sm:$0xff] }
0x1669   :  { %10989 = vst [vmem:[#allocation31_spill] sm:$0xff] %v9469_v21  ;;  %v10998_v55 = vld [vmem:[#allocation74_spill] sm:$0xff] }
0x166b   :  { %3628 = vmatpush.bf16.msrb.mxu1 %v9449_v7  ;;  %3615 = vmatpush.bf16.msrb.mxu0 %v9455_v9  ;;  %v10990_v7 = vld [vmem:[#allocation70_spill] sm:$0xff]  ;;  %v10991_v9 = vld [vmem:[#allocation80_spill] sm:$0xff] }
0x166c   :  { %3644 = vmatpush.bf16.msrb.mxu2 %v10986_v23  ;;  %3657 = vmatpush.bf16.msrb.mxu3 %v10987_v29  ;;  %v9477_v29 = vld [vmem:[%s9914_s8] sm:$0xff]  ;;  %v10994_v23 = vld [vmem:[#allocation51_spill] sm:$0xff] }
0x166d   :  { %10992 = vst [vmem:[#allocation37_spill] sm:$0xff] %v9477_v29 }
0x166f   :  { %3629 = vmatpush.bf16.msrb.mxu1 %v9463_v5  ;;  %3616 = vmatpush.bf16.msrb.mxu0 %v9469_v21  ;;  %v9483_v5 = vld [vmem:[%s9915_s9] sm:$0xff]  ;;  %v10995_v21 = vld [vmem:[#allocation55_spill] sm:$0xff] }
0x1670   :  { %3645 = vmatpush.bf16.msrb.mxu2 %v10990_v7  ;;  %3658 = vmatpush.bf16.msrb.mxu3 %v10991_v9  ;;  %10993 = vst [vmem:[#allocation32_spill] sm:$0xff] %v9483_v5  ;;  %v10996_v7 = vld [vmem:[#allocation71_spill] sm:$0xff] }
0x1671   :  { %v10997_v9 = vld [vmem:[#allocation83_spill] sm:$0xff] }
0x1673   :  { %3630 = vmatpush.bf16.msrb.mxu1 %v9477_v29  ;;  %3617 = vmatpush.bf16.msrb.mxu0 %v9483_v5  ;;  %v10999_v29 = vld [vmem:[#allocation86_spill] sm:$0xff]  ;;  %v11003_v5 = vld [vmem:[#allocation88_spill] sm:$0xff] }
0x1674   :  { %3646 = vmatpush.bf16.msrb.mxu2 %v10996_v7  ;;  %3659 = vmatpush.bf16.msrb.mxu3 %v10997_v9  ;;  %v11006_v7 = vld [vmem:[#allocation82_spill] sm:$0xff] }
0x1675   :  { %v11007_v9 = vld [vmem:[#allocation90_spill] sm:$0xff] }
0x1676   :  { %3631 = vmatmul.bf16.vlgmr.msrb.gmra.mxu1 %v9200_v39  ;;  %v11008_v39 = vld [vmem:[#allocation62_spill] sm:$0xff] }
0x1677   :  { %3678 = vmatpush.bf16.msra.mxu1 %v10994_v23  ;;  %3665 = vmatpush.bf16.msra.mxu0 %v10995_v21  ;;  %v11004_v23 = vld [vmem:[#allocation57_spill] sm:$0xff]  ;;  %v11005_v21 = vld [vmem:[#allocation63_spill] sm:$0xff] }
0x1678   :  { %3691 = vmatpush.bf16.msra.mxu2 %v10998_v55  ;;  %3704 = vmatpush.bf16.msra.mxu3 %v10999_v29  ;;  %v11009_v55 = vld [vmem:[#allocation67_spill] sm:$0xff]  ;;  %v11010_v29 = vld [vmem:[#allocation85_spill] sm:$0xff] }
0x167b   :  { %3679 = vmatpush.bf16.msra.mxu1 %v11000_v41  ;;  %3666 = vmatpush.bf16.msra.mxu0 %v11001_v42  ;;  %v11011_v41 = vld [vmem:[#allocation92_spill] sm:$0xff]  ;;  %v11012_v42 = vld [vmem:[#allocation66_spill] sm:$0xff] }
0x167c   :  { %3692 = vmatpush.bf16.msra.mxu2 %v11002_v57  ;;  %3705 = vmatpush.bf16.msra.mxu3 %v11003_v5  ;;  %v11013_v57 = vld [vmem:[#allocation73_spill] sm:$0xff]  ;;  %v11014_v5 = vld [vmem:[#allocation87_spill] sm:$0xff] }
0x167f   :  { %3680 = vmatpush.bf16.msra.mxu1 %v11004_v23  ;;  %3667 = vmatpush.bf16.msra.mxu0 %v11005_v21  ;;  %v11015_v23 = vld [vmem:[#allocation94_spill] sm:$0xff]  ;;  %v11016_v21 = vld [vmem:[#allocation69_spill] sm:$0xff] }
0x1680   :  { %3693 = vmatpush.bf16.msra.mxu2 %v11006_v7  ;;  %3706 = vmatpush.bf16.msra.mxu3 %v11007_v9  ;;  %v11017_v7 = vld [vmem:[#allocation77_spill] sm:$0xff] }
0x1681   :  { %v11018_v9 = vld [vmem:[#allocation89_spill] sm:$0xff] }
0x1683   :  { %3681 = vmatpush.bf16.msra.mxu1 %v11008_v39  ;;  %3668 = vmatpush.bf16.msra.mxu0 %v11009_v55  ;;  %v11019_v39 = vld [vmem:[#allocation95_spill] sm:$0xff] }
0x1684   :  { %3694 = vmatpush.bf16.msra.mxu2 %v11010_v29  ;;  %3707 = vmatpush.bf16.msra.mxu3 %v11011_v41  ;;  %v11020_v55 = vld [vmem:[#allocation75_spill] sm:$0xff]  ;;  %v11021_v29 = vld [vmem:[#allocation81_spill] sm:$0xff] }
0x1685   :  { %v11022_v41 = vld [vmem:[#allocation91_spill] sm:$0xff] }
0x1687   :  { %3682 = vmatpush.bf16.msra.mxu1 %v11012_v42  ;;  %3669 = vmatpush.bf16.msra.mxu0 %v11013_v57  ;;  %v11023_v42 = vld [vmem:[#allocation96_spill] sm:$0xff]  ;;  %v11024_v57 = vld [vmem:[#allocation79_spill] sm:$0xff] }
0x1688   :  { %3695 = vmatpush.bf16.msra.mxu2 %v11014_v5  ;;  %3708 = vmatpush.bf16.msra.mxu3 %v11015_v23  ;;  %v11025_v5 = vld [vmem:[#allocation84_spill] sm:$0xff]  ;;  %v11026_v23 = vld [vmem:[#allocation35_spill] sm:$0xff] }
0x168b   :  { %3683 = vmatpush.bf16.msra.mxu1 %v11016_v21  ;;  %3670 = vmatpush.bf16.msra.mxu0 %v11017_v7  ;;  %v11027_v21 = vld [vmem:[#allocation93_spill] sm:$0xff] }
0x168c   :  { %3696 = vmatpush.bf16.msra.mxu2 %v11018_v9  ;;  %3709 = vmatpush.bf16.msra.mxu3 %v11019_v39  ;;  %v11028_v9 = vld [vmem:[#allocation97_spill] sm:$0xff]  ;;  %v11029_v39 = vld [vmem:[#allocation39_spill] sm:$0xff] }
0x168d   :  { %v11038_v7 = vld [vmem:[#allocation49_spill] sm:$0xff] }
0x168f   :  { %3684 = vmatpush.bf16.msra.mxu1 %v11020_v55  ;;  %3671 = vmatpush.bf16.msra.mxu0 %v11021_v29  ;;  %v11030_v55 = vld [vmem:[#allocation42_spill] sm:$0xff]  ;;  %v11031_v29 = vld [vmem:[#allocation41_spill] sm:$0xff] }
0x1690   :  { %3697 = vmatpush.bf16.msra.mxu2 %v11022_v41  ;;  %3710 = vmatpush.bf16.msra.mxu3 %v11023_v42  ;;  %v11032_v41 = vld [vmem:[#allocation44_spill] sm:$0xff]  ;;  %v11033_v42 = vld [vmem:[#allocation43_spill] sm:$0xff] }
0x1693   :  { %3685 = vmatpush.bf16.msra.mxu1 %v11024_v57  ;;  %3672 = vmatpush.bf16.msra.mxu0 %v11025_v5  ;;  %v11034_v57 = vld [vmem:[#allocation46_spill] sm:$0xff]  ;;  %v11035_v5 = vld [vmem:[#allocation45_spill] sm:$0xff] }
0x1694   :  { %3698 = vmatpush.bf16.msra.mxu2 %v11027_v21  ;;  %3711 = vmatpush.bf16.msra.mxu3 %v11028_v9  ;;  %v11037_v21 = vld [vmem:[#allocation47_spill] sm:$0xff] }
0x1695   :  { %v11039_v9 = vld [vmem:[#allocation7_spill] sm:$0xff] }
0x1696   :  { %3686 = vmatmul.bf16.vlgmr.msra.gmra.mxu1 %v9260_v32 }
0x1697   :  { %3805 = vmatpush.bf16.msrb.mxu1 %v11026_v23  ;;  %v11036_v23 = vld [vmem:[#allocation48_spill] sm:$0xff] }
0x169b   :  { %3806 = vmatpush.bf16.msrb.mxu1 %v11029_v39  ;;  %v11040_v39 = vld [vmem:[#allocation8_spill] sm:$0xff] }
0x169f   :  { %3807 = vmatpush.bf16.msrb.mxu1 %v11030_v55  ;;  %v11041_v55 = vld [vmem:[#allocation9_spill] sm:$0xff] }
0x16a3   :  { %3808 = vmatpush.bf16.msrb.mxu1 %v11031_v29  ;;  %v11042_v29 = vld [vmem:[#allocation10_spill] sm:$0xff] }
0x16a7   :  { %3809 = vmatpush.bf16.msrb.mxu1 %v11032_v41  ;;  %v11043_v41 = vld [vmem:[#allocation12_spill] sm:$0xff] }
0x16ab   :  { %3810 = vmatpush.bf16.msrb.mxu1 %v11033_v42 }
0x16af   :  { %3811 = vmatpush.bf16.msrb.mxu1 %v11034_v57 }
0x16b3   :  { %3812 = vmatpush.bf16.msrb.mxu1 %v11035_v5 }
0x16b7   :  { %3896 = vmatpush.bf16.msra.mxu1 %v11036_v23 }
0x16bb   :  { %3897 = vmatpush.bf16.msra.mxu1 %v11037_v21 }
0x16bf   :  { %3898 = vmatpush.bf16.msra.mxu1 %v11038_v7 }
0x16c3   :  { %3899 = vmatpush.bf16.msra.mxu1 %v11039_v9 }
0x16c7   :  { %3900 = vmatpush.bf16.msra.mxu1 %v11040_v39 }
0x16cb   :  { %3901 = vmatpush.bf16.msra.mxu1 %v11041_v55 }
0x16cf   :  { %3902 = vmatpush.bf16.msra.mxu1 %v11042_v29 }
0x16d2   :  { %v3514_v42 = vpop.f32.mrf.mxu0  ;;  %v3527_v57 = vpop.f32.mrf.mxu1 }
0x16d3   :  { %3903 = vmatpush.bf16.msra.mxu1 %v11043_v41  ;;  %v3528_v24 = vadd.f32 %v3527_v57, %v3514_v42 }
0x16d9   :  { %v3540_v34 = vpop.f32.mrf.mxu2  ;;  %v3553_v5 = vpop.f32.mrf.mxu3 }
0x16da   :  { %v3516_v51 = vpop.f32.mrf.mxu0  ;;  %v3529_v23 = vpop.f32.mrf.mxu1  ;;  %v3541_v21 = vadd.f32 %v3540_v34, %v3528_v24 }
0x16db   :  { %v9591_v23 = vld [vmem:[%s9916_s10] ss:$0 sm:$0xff] }
0x16dc   :  { %v3554_v1 = vadd.f32 %v3553_v5, %v3541_v21 }
0x16e1   :  { %v3542_v28 = vpop.f32.mrf.mxu2  ;;  %v3555_v7 = vpop.f32.mrf.mxu3 }
0x16e2   :  { %v3566_v9 = vpop.f32.mrf.mxu0  ;;  %v3579_v6 = vpop.f32.mrf.mxu1  ;;  %v9541_v28 = vld [vmem:[%s9921_s15 + $0x38] sm:$0xff] }
0x16e3   :  { %v3567_v39 = vadd.f32 %v3566_v9, %v3554_v1  ;;  %v9547_v1 = vld [vmem:[%s9921_s15 + $0x30] sm:$0xff] }
0x16e5   :  { %v3580_v48 = vadd.f32 %v3579_v6, %v3567_v39  ;;  %v9583_v6 = vld [vmem:[%s9921_s15] sm:$0xff] }
0x16e9   :  { %v3592_v55 = vpop.f32.mrf.mxu2  ;;  %v3605_v2 = vpop.f32.mrf.mxu3 }
0x16ea   :  { %v3593_v29 = vadd.f32 %v3592_v55, %v3580_v48  ;;  %v3568_v40 = vpop.f32.mrf.mxu0  ;;  %v3581_v41 = vpop.f32.mrf.mxu1  ;;  %v5463_v55 = vld [vmem:[%s9909_s3 + $0x78] sm:$0xff] }
0x16eb   :  { %v9577_v40 = vld [vmem:[%s9921_s15 + $0x8] sm:$0xff]  ;;  %v4802_v41 = vld [vmem:[%s10318_s0 + $0x38] sm:$0xff]  ;;  %s5497_s0 = smov [#allocation2]  }
0x16ec   :  { %v3606_v60 = vadd.f32 %v3605_v2, %v3593_v29  ;;  %v9553_v2 = vld [vmem:[%s9921_s15 + $0x28] sm:$0xff]  ;;  %v5464_v29 = vld [vmem:[%s9909_s3 + $0x70] sm:$0xff] }
0x16ee   :  { %v3609_v52 = vpack.c.bf16 %v3606_v60, %v3606_v60  ;;  %v9571_v60 = vld [vmem:[%s9921_s15 + $0x10] sm:$0xff] }
0x16f0   :  { %3618 = vmatmul.bf16.vlgmr.msrb.gmra.mxu0 %v3609_v52  ;;  %v9565_v52 = vld [vmem:[%s9921_s15 + $0x18] sm:$0xff] }
0x16f1   :  { %v3594_v37 = vpop.f32.mrf.mxu2  ;;  %v3607_v51 = vpop.f32.mrf.mxu3  ;;  %3765 = vmatpush.bf16.msrb.mxu0 %v9541_v28 }
0x16f2   :  { %v9559_v37 = vld [vmem:[%s9921_s15 + $0x20] sm:$0xff]  ;;  %v9658_v51 = vpack.c.bf16 %v4802_v41, %v4802_v41 }
0x16f3   :  { %v3632_v34 = vpop.f32.mrf.mxu1 }
0x16f5   :  { %3766 = vmatpush.bf16.msrb.mxu0 %v9547_v1 }
0x16f9   :  { %3767 = vmatpush.bf16.msrb.mxu0 %v9553_v2 }
0x16fb   :  { %v3634_v48 = vpop.f32.mrf.mxu1 }
0x16fd   :  { %3768 = vmatpush.bf16.msrb.mxu0 %v9559_v37 }
0x1701   :  { %3769 = vmatpush.bf16.msrb.mxu0 %v9565_v52 }
0x1705   :  { %3770 = vmatpush.bf16.msrb.mxu0 %v9571_v60 }
0x1709   :  { %3771 = vmatpush.bf16.msrb.mxu0 %v9577_v40 }
0x170d   :  { %3772 = vmatpush.bf16.msrb.mxu0 %v9583_v6 }
0x1713   :  { %v9586_v24 = vpop.f32.mrf.mxu1 }
0x171b   :  { %v3689_v42 = vpop.f32.mrf.mxu1 }
0x176d   :  { %v3619_v57 = vpop.f32.mrf.mxu0 }
0x176e   :  { %v3633_v5 = vadd.f32 %v3632_v34, %v3619_v57 }
0x1770   :  { %v3636_v21 = vadd.f32 %v9591_v23, %v3633_v5 }
0x1772   :  { %v3637_v7 = vmax.f32 %v3636_v21, 0.0 }
0x1774   :  { %v3638_v9 = vpack.c.bf16 %v3637_v7, %v3637_v7 }
0x1775   :  { %v3621_v39 = vpop.f32.mrf.mxu0 }
0x1776   :  { %3647 = vmatmul.bf16.vlgmr.msrb.gmra.mxu2 %v3638_v9  ;;  %3660 = vmatmul.bf16.vlgmr.msrb.gmra.mxu3 %v3638_v9 }
0x1777   :  { %3673 = vmatmul.bf16.vlgmr.msra.gmra.mxu0 %v3638_v9  ;;  %3818 = vmatpush.bf16.msrb.mxu2 %v8995_v43  ;;  %v5465_v43 = vld [vmem:[%s9909_s3 + $0x68] sm:$0xff] }
0x1778   :  { %3883 = vmatpush.bf16.msra.mxu0 %v5463_v55  ;;  %3870 = vmatpush.bf16.msrb.mxu3 %v9002_v56  ;;  %v5466_v56 = vld [vmem:[%s9909_s3 + $0x60] sm:$0xff] }
0x177b   :  { %3819 = vmatpush.bf16.msrb.mxu2 %v9008_v62  ;;  %v5467_v62 = vld [vmem:[%s9909_s3 + $0x58] sm:$0xff] }
0x177c   :  { %3884 = vmatpush.bf16.msra.mxu0 %v5464_v29  ;;  %3871 = vmatpush.bf16.msrb.mxu3 %v9015_v26  ;;  %v5468_v26 = vld [vmem:[%s9909_s3 + $0x50] sm:$0xff] }
0x177f   :  { %3820 = vmatpush.bf16.msrb.mxu2 %v9021_v25  ;;  %v5469_v25 = vld [vmem:[%s9909_s3 + $0x48] sm:$0xff] }
0x1780   :  { %3885 = vmatpush.bf16.msra.mxu0 %v5465_v43  ;;  %3872 = vmatpush.bf16.msrb.mxu3 %v9028_v17  ;;  %v5470_v17 = vld [vmem:[%s9909_s3 + $0x40] sm:$0xff] }
0x1781   :  { %v11052_v43 = vld [vmem:[#allocation17_spill] sm:$0xff] }
0x1783   :  { %3821 = vmatpush.bf16.msrb.mxu2 %v9034_v27  ;;  %v11044_v27 = vld [vmem:[#allocation11_spill] sm:$0xff] }
0x1784   :  { %3886 = vmatpush.bf16.msra.mxu0 %v5466_v56  ;;  %3873 = vmatpush.bf16.msrb.mxu3 %v9041_v19  ;;  %v11045_v19 = vld [vmem:[#allocation13_spill] sm:$0xff] }
0x1786   :  { %3699 = vmatmul.bf16.vlgmr.msra.gmra.mxu2 %v9260_v32  ;;  %3712 = vmatmul.bf16.vlgmr.msra.gmra.mxu3 %v9260_v32 }
0x1787   :  { %3822 = vmatpush.bf16.msrb.mxu2 %v9049_v50  ;;  %v11046_v50 = vld [vmem:[#allocation106_spill] sm:$0xff] }
0x1788   :  { %3887 = vmatpush.bf16.msra.mxu0 %v5467_v62  ;;  %3874 = vmatpush.bf16.msrb.mxu3 %v9056_v8  ;;  %v11047_v8 = vld [vmem:[#allocation107_spill] sm:$0xff] }
0x178b   :  { %3823 = vmatpush.bf16.msrb.mxu2 %v9062_v31  ;;  %v11048_v31 = vld [vmem:[#allocation108_spill] sm:$0xff] }
0x178c   :  { %3888 = vmatpush.bf16.msra.mxu0 %v5468_v26  ;;  %3875 = vmatpush.bf16.msrb.mxu3 %v9069_v13  ;;  %v11049_v13 = vld [vmem:[#allocation109_spill] sm:$0xff]  ;;  %v11053_v26 = vld [vmem:[#allocation18_spill] sm:$0xff] }
0x178f   :  { %3824 = vmatpush.bf16.msrb.mxu2 %v9075_v12  ;;  %v11050_v12 = vld [vmem:[#allocation110_spill] sm:$0xff] }
0x1790   :  { %3889 = vmatpush.bf16.msra.mxu0 %v5469_v25  ;;  %3876 = vmatpush.bf16.msrb.mxu3 %v9082_v22  ;;  %v11051_v22 = vld [vmem:[#allocation111_spill] sm:$0xff] }
0x1793   :  { %3825 = vmatpush.bf16.msrb.mxu2 %v9088_v15 }
0x1794   :  { %3890 = vmatpush.bf16.msra.mxu0 %v5470_v17  ;;  %3877 = vmatpush.bf16.msrb.mxu3 %v9101_v47 }
0x1796   :  { %3826 = vmatmul.bf16.vlgmr.msrb.gmra.mxu2 %v9658_v51 }
0x1797   :  { %3909 = vmatpush.bf16.msra.mxu2 %v9094_v18 }
0x1798   :  { %3922 = vmatpush.bf16.msra.mxu3 %v9107_v45  ;;  %v3688_v45 = vadd.f32 %v9586_v24, %v10635_v14 }
0x179b   :  { %3910 = vmatpush.bf16.msra.mxu2 %v9113_v38 }
0x179c   :  { %3923 = vmatpush.bf16.msra.mxu3 %v9119_v46 }
0x179f   :  { %3911 = vmatpush.bf16.msra.mxu2 %v9125_v44 }
0x17a0   :  { %3924 = vmatpush.bf16.msra.mxu3 %v9131_v58 }
0x17a3   :  { %3912 = vmatpush.bf16.msra.mxu2 %v9137_v0 }
0x17a4   :  { %3925 = vmatpush.bf16.msra.mxu3 %v9143_v53 }
0x17a7   :  { %3913 = vmatpush.bf16.msra.mxu2 %v11044_v27 }
0x17a8   :  { %3926 = vmatpush.bf16.msra.mxu3 %v11045_v19 }
0x17ab   :  { %3914 = vmatpush.bf16.msra.mxu2 %v11046_v50 }
0x17ac   :  { %3927 = vmatpush.bf16.msra.mxu3 %v11047_v8 }
0x17af   :  { %3915 = vmatpush.bf16.msra.mxu2 %v11048_v31 }
0x17b0   :  { %3928 = vmatpush.bf16.msra.mxu3 %v11049_v13 }
0x17b3   :  { %3916 = vmatpush.bf16.msra.mxu2 %v11050_v12  ;;  %v11054_v12 = vld [vmem:[#allocation21_spill] sm:$0xff] }
0x17b4   :  { %3929 = vmatpush.bf16.msra.mxu3 %v11051_v22 }
0x17b7   :  { %3961 = vmatpush.bf16.msrb.mxu2 %v9208_v54 }
0x17bb   :  { %3962 = vmatpush.bf16.msrb.mxu2 %v9214_v3 }
0x17bf   :  { %3963 = vmatpush.bf16.msrb.mxu2 %v11052_v43  ;;  %v5478_v43 = vld [vmem:[%s9909_s3 + $0x1a0] sm:$0xff] }
0x17c3   :  { %3964 = vmatpush.bf16.msrb.mxu2 %v11053_v26  ;;  %v11057_v26 = vld [vmem:[#allocation98_spill] sm:$0xff] }
0x17c7   :  { %3965 = vmatpush.bf16.msrb.mxu2 %v9232_v36 }
0x17cb   :  { %3966 = vmatpush.bf16.msrb.mxu2 %v11054_v12  ;;  %v11061_v12 = vld [vmem:[#allocation40_spill] sm:$0xff] }
0x17f4   :  { %v3674_v15 = vpop.f32.mrf.mxu0 }
0x17f9   :  { %v3648_v18 = vpop.f32.mrf.mxu2  ;;  %v3661_v47 = vpop.f32.mrf.mxu3 }
0x17fa   :  { %v3649_v38 = vadd.f32 %v3648_v18, %v10743_v33  ;;  %v3662_v57 = vadd.f32 %v3661_v47, %v10744_v61  ;;  %v11055_v47 = vld [vmem:[#allocation22_spill] sm:$0xff] }
0x17fc   :  { %v3717_v46 = vadd.f32 %v3688_v45, %v3649_v38  ;;  %v3676_v44 = vpop.f32.mrf.mxu0  ;;  %v3675_v45 = vadd.f32 %v3674_v15, %v11055_v47  ;;  %v11056_v38 = vld [vmem:[#allocation25_spill] sm:$0xff] }
0x17fd   :  { %3967 = vmatpush.bf16.msrb.mxu2 %v11056_v38 }
0x17fe   :  { %v3718_v58 = vsub.f32 0.0, %v3717_v46 }
0x1800   :  { %v3719_v0 = vmul.f32 1.442695, %v3718_v58 }
0x1801   :  { %v3650_v53 = vpop.f32.mrf.mxu2  ;;  %v3663_v32 = vpop.f32.mrf.mxu3  ;;  %3968 = vmatpush.bf16.msrb.mxu2 %v9252_v11 }
0x1802   :  { %5064 = vpow2.f32 %v3719_v0 }
0x1808   :  { %v5065_v34 = vpop.eup %5064 }
0x1809   :  { %v3721_v48 = vadd.f32 1.0, %v5065_v34  ;;  %v3700_v24 = vpop.f32.mrf.mxu2  ;;  %v3713_v42 = vpop.f32.mrf.mxu3 }
0x180a   :  { %v3701_v5 = vadd.f32 %v3700_v24, %v10745_v30  ;;  %v3714_v13 = vadd.f32 %v3713_v42, %v10847_v49 }
0x180b   :  { %5066 = vrcp.f32 %v3721_v48  ;;  %v3733_v25 = vand.u32 2147483648, %v3721_v48  ;;  %v3731_v17 = vand.u32 2147483647, %v3721_v48  ;;  %vm3727_vm13 = vweird.f32 %v3721_v48 }
0x180c   :  { %v3737_v21 = vadd.f32 %v3701_v5, %v3662_v57 }
0x180d   :  { %v3734_v8 = vor.u32 1.1754944e-38, %v3733_v25  ;;  %vm3732_vm15 = vcmp.eq.f32.partialorder %v3731_v17, 8.507059e+37 }
0x180e   :  { %v3738_v7 = vsub.f32 0.0, %v3737_v21  ;;  %v5471_v21 = vld [vmem:[%s9909_s3 + $0x178] sm:$0xff] }
0x1810   :  { %v3739_v9 = vmul.f32 1.442695, %v3738_v7  ;;  %v5472_v7 = vld [vmem:[%s9909_s3 + $0x1b8] sm:$0xff] }
0x1811   :  { %v5067_v39 = vpop.eup %5066  ;;  %v3702_v55 = vpop.f32.mrf.mxu2 }
0x1812   :  { %v3715_v29 = vpop.f32.mrf.mxu3  ;;  %5068 = vpow2.f32 %v3739_v9  ;;  %v3723_v56 = vmul.f32 %v5067_v39, %v3721_v48  ;;  %vm3728_vm12 = vweird.f32 %v5067_v39  ;;  %v5474_v9 = vld [vmem:[%s9909_s3 + $0x1b0] sm:$0xff]  ;;  %v5476_v55 = vld [vmem:[%s9909_s3 + $0x1a8] sm:$0xff] }
0x1813   :  { %vm3729_vm14 = vmor %vm3727_vm13, %vm3728_vm12  ;;  %v5477_v29 = vld [vmem:[%s9909_s3 + $0x160] sm:$0xff] }
0x1814   :  { %v3724_v62 = vsub.f32 1.0, %v3723_v56  ;;  %v5479_v56 = vld [vmem:[%s9909_s3 + $0x158] sm:$0xff] }
0x1816   :  { %v3725_v54 = vmul.f32 %v5067_v39, %v3724_v62  ;;  %v5480_v62 = vld [vmem:[%s9909_s3 + $0x198] sm:$0xff] }
0x1818   :  { %v5069_v27 = vpop.eup %5068  ;;  %v3726_v19 = vadd.f32 %v5067_v39, %v3725_v54  ;;  %v11058_v54 = vld [vmem:[#allocation99_spill] sm:$0xff] }
0x1819   :  { %v3741_v3 = vadd.f32 1.0, %v5069_v27  ;;  %v3827_v25 = vpop.f32.mrf.mxu2 }
0x181a   :  { %v3730_v50 = vsel %vm3729_vm14, %v5067_v39, %v3726_v19  ;;  %v5475_v39 = vld [vmem:[%s9909_s3 + $0x168] sm:$0xff] }
0x181b   :  { %5070 = vrcp.f32 %v3741_v3  ;;  %v3735_v31 = vsel %vm3732_vm15, %v3734_v8, %v3730_v50  ;;  %v3753_v0 = vand.u32 2147483648, %v3741_v3  ;;  %v3751_v53 = vand.u32 2147483647, %v3741_v3 }
0x181c   :  { %v3757_v22 = vmul.f32 %v3735_v31, %v3714_v13  ;;  %vm3747_vm1 = vweird.f32 %v3741_v3  ;;  %v11060_v31 = vld [vmem:[#allocation102_spill] sm:$0xff] }
0x181d   :  { %v3754_v41 = vor.u32 1.1754944e-38, %v3753_v0  ;;  %vm3752_vm3 = vcmp.eq.f32.partialorder %v3751_v53, 8.507059e+37 }
0x181e   :  { %v3758_v44 = vadd.f32 %v3757_v22, %v3675_v45 }
0x1820   :  { %5072 = vtanh.f32 %v3758_v44 }
0x1821   :  { %v5071_v18 = vpop.eup %5070  ;;  %v3829_v17 = vpop.f32.mrf.mxu2 }
0x1822   :  { %v3743_v46 = vmul.f32 %v5071_v18, %v3741_v3  ;;  %vm3748_vm0 = vweird.f32 %v5071_v18  ;;  %v11059_v3 = vld [vmem:[#allocation100_spill] sm:$0xff] }
0x1823   :  { %vm3749_vm2 = vmor %vm3747_vm1, %vm3748_vm0  ;;  %v9727_v13 = vadd.f32 %v11059_v3, %v11060_v31  ;;  %v9732_v22 = vadd.f32 %v11059_v3, %v11061_v12 }
0x1824   :  { %v3744_v58 = vsub.f32 1.0, %v3743_v46 }
0x1826   :  { %v3745_v36 = vmul.f32 %v5071_v18, %v3744_v58  ;;  %v5073_v24 = vpop.eup %5072 }
0x1828   :  { %v3746_v32 = vadd.f32 %v5071_v18, %v3745_v36  ;;  %v9736_v36 = vpop.xlane.xlu1 %1588 }
0x182a   :  { %v3750_v34 = vsel %vm3749_vm2, %v5071_v18, %v3746_v32 }
0x182b   :  { %v3755_v48 = vsel %vm3752_vm3, %v3754_v41, %v3750_v34  ;;  %v11062_v41 = vld [vmem:[#allocation38_spill] sm:$0xff] }
0x182c   :  { %v3760_v15 = vsub.f32 1.0, %v3755_v48  ;;  %v3762_v57 = vmul.f32 %v3755_v48, %v9256_v35  ;;  %v5473_v35 = vld [vmem:[%s9909_s3 + $0x170] sm:$0xff]  ;;  %v9744_v34 = vadd.f32 %v11059_v3, %v11062_v41 }
0x182e   :  { %v3761_v42 = vmul.f32 %v5073_v24, %v3760_v15  ;;  %v11063_v24 = vld [vmem:[#allocation103_spill] sm:$0xff] }
0x1830   :  { %v9674_v5 = vadd.f32 %v3762_v57, %v3761_v42  ;;  %v1590_v42 = vsub.f32 %v11063_v24, %v9736_v36 }
0x1832   :  { %v9678_v11 = vpack.c.bf16 %v9674_v5, %v9674_v5  ;;  %v1591_v57 = vmul.f32 1.442695, %v1590_v42 }
0x1834   :  { %3773 = vmatmul.bf16.vlgmr.msrb.gmra.mxu0 %v9678_v11  ;;  %3813 = vmatmul.bf16.vlgmr.msrb.gmra.mxu1 %v9678_v11 }
0x1835   :  { %3935 = vmatpush.bf16.msrb.mxu0 %v5471_v21  ;;  %3948 = vmatpush.bf16.msrb.mxu1 %v5472_v7  ;;  %v11064_v21 = vld [vmem:[#allocation101_spill] sm:$0xff] }
0x1836   :  { %v9751_v7 = vadd.f32 %v11059_v3, %v11064_v21 }
0x1839   :  { %3936 = vmatpush.bf16.msrb.mxu0 %v5473_v35  ;;  %3949 = vmatpush.bf16.msrb.mxu1 %v5474_v9  ;;  %v9753_v35 = vpop.xlane.xlu1 %2683 }
0x183d   :  { %3937 = vmatpush.bf16.msrb.mxu0 %v5475_v39  ;;  %3950 = vmatpush.bf16.msrb.mxu1 %v5476_v55  ;;  %v11065_v39 = vld [vmem:[#allocation104_spill] sm:$0xff] }
0x183e   :  { %v2685_v55 = vsub.f32 %v11065_v39, %v9753_v35 }
0x1841   :  { %3938 = vmatpush.bf16.msrb.mxu0 %v5477_v29  ;;  %3951 = vmatpush.bf16.msrb.mxu1 %v5478_v43  ;;  %v2686_v29 = vmul.f32 1.442695, %v2685_v55 }
0x1845   :  { %3939 = vmatpush.bf16.msrb.mxu0 %v5479_v56  ;;  %3952 = vmatpush.bf16.msrb.mxu1 %v5480_v62 }
0x1849   :  { %3940 = vmatpush.bf16.msrb.mxu0 %v9277_v20  ;;  %3953 = vmatpush.bf16.msrb.mxu1 %v9283_v10  ;;  %v5481_v20 = vld [vmem:[%s9913_s7] ss:$0 sm:$0xff] }
0x184d   :  { %3941 = vmatpush.bf16.msrb.mxu0 %v9289_v16  ;;  %3954 = vmatpush.bf16.msrb.mxu1 %v9295_v4 }
0x1851   :  { %3942 = vmatpush.bf16.msrb.mxu0 %v11057_v26  ;;  %3955 = vmatpush.bf16.msrb.mxu1 %v11058_v54 }
0x18b1   :  { %v3774_v27 = vpop.f32.mrf.mxu0  ;;  %v3814_v19 = vpop.f32.mrf.mxu1 }
0x18b2   :  { %v9719_v50 = vadd.f32 %v11059_v3, %v3774_v27  ;;  %v3828_v8 = vadd.f32 %v3827_v25, %v3814_v19 }
0x18b4   :  { %3778 = vmax.xlane.f32.xlu1 %v9719_v50  ;;  %v3831_v10 = vadd.f32 %v5481_v20, %v3828_v8 }
0x18b6   :  { %3832 = vmax.xlane.f32.xlu2 %v3831_v10 }
0x18b9   :  { %v3776_v16 = vpop.f32.mrf.mxu0  ;;  %v3816_v4 = vpop.f32.mrf.mxu1 }
0x18be   :  { %1953 = vmax.xlane.f32.xlu2 %v9727_v13 }
0x18c6   :  { %3048 = vmax.xlane.f32.xlu2 %v9732_v22 }
0x1927   :  { %v9758_v43 = vpop.xlane.xlu1 %3778 }
0x1928   :  { %v3780_v62 = vsub.f32 %v9719_v50, %v9758_v43 }
0x1929   :  { %v3833_v18 = vpop.xlane.xlu2 %3832 }
0x192a   :  { %v3834_v45 = vsub.f32 %v3831_v10, %v3833_v18  ;;  %v3781_v26 = vmul.f32 1.442695, %v3780_v62 }
0x192c   :  { %v3835_v38 = vmul.f32 1.442695, %v3834_v45 }
0x192e   :  { %5074 = vpow2.f32 %v3835_v38 }
0x1931   :  { %v1954_v46 = vpop.xlane.xlu2 %1953 }
0x1932   :  { %v1955_v44 = vsub.f32 %v9727_v13, %v1954_v46 }
0x1934   :  { %v5075_v58 = vpop.eup %5074  ;;  %v1956_v0 = vmul.f32 1.442695, %v1955_v44 }
0x1935   :  { %3837 = vadd.xlane.f32.xlu0 %v5075_v58 }
0x1936   :  { %5076 = vpow2.f32 %v1956_v0 }
0x1939   :  { %v9738_v53 = vpop.xlane.xlu2 %3048 }
0x193a   :  { %v3050_v32 = vsub.f32 %v9732_v22, %v9738_v53 }
0x193c   :  { %v5077_v48 = vpop.eup %5076  ;;  %v3051_v15 = vmul.f32 1.442695, %v3050_v32 }
0x193d   :  { %2318 = vmax.xlane.f32.xlu0 %v9744_v34  ;;  %1958 = vadd.xlane.f32.xlu1 %v5077_v48 }
0x193e   :  { %5078 = vpow2.f32 %v3051_v15  ;;  %v11066_v15 = vld [vmem:[#allocation105_spill] sm:$0xff] }
0x193f   :  { %5080 = vpow2.f32 %v1591_v57  ;;  %v11067_v57 = vld [vmem:[#allocation16_spill] sm:$0xff] }
0x1940   :  { %5082 = vpow2.f32 %v2686_v29 }
0x1941   :  { %5084 = vpow2.f32 %v3781_v26 }
0x1944   :  { %v5079_v9 = vpop.eup %5078 }
0x1945   :  { %3413 = vmax.xlane.f32.xlu0 %v9751_v7  ;;  %3053 = vadd.xlane.f32.xlu1 %v5079_v9  ;;  %v5081_v56 = vpop.eup %5080  ;;  %v4791_v9 = vld [vmem:[%s11068_s25 + $0x8] sm:$0xff] }
0x1946   :  { %v5083_v54 = vpop.eup %5082 }
0x1947   :  { %v5085_v25 = vpop.eup %5084 }
0x194d   :  { %1593 = vadd.xlane.f32.xlu0 %v5081_v56 }
0x1955   :  { %2688 = vadd.xlane.f32.xlu0 %v5083_v54 }
0x195d   :  { %3783 = vadd.xlane.f32.xlu0 %v5085_v25  ;;  %v11070_v25 = vld [vmem:[#allocation113_spill] sm:$0xff] }
0x19a8   :  { %v3838_v17 = vpop.xlane.xlu0 %3837 }
0x19a9   :  { %5086 = vrcp.f32 %v3838_v17  ;;  %v3850_v20 = vand.u32 2147483648, %v3838_v17  ;;  %v3848_v16 = vand.u32 2147483647, %v3838_v17  ;;  %vm3844_vm5 = vweird.f32 %v3838_v17 }
0x19ab   :  { %v3851_v12 = vor.u32 1.1754944e-38, %v3850_v20  ;;  %vm3849_vm7 = vcmp.eq.f32.partialorder %v3848_v16, 8.507059e+37  ;;  %v11074_v20 = vld [vmem:[#allocation116_spill] sm:$0xff]  ;;  %v11077_v16 = vld [vmem:[#allocation5_spill] sm:$0xff] }
0x19af   :  { %v5087_v27 = vpop.eup %5086 }
0x19b0   :  { %v3840_v19 = vmul.f32 %v5087_v27, %v3838_v17  ;;  %v1959_v3 = vpop.xlane.xlu1 %1958  ;;  %vm3845_vm4 = vweird.f32 %v5087_v27  ;;  %v11071_v17 = vld [vmem:[#allocation50_spill] sm:$0xff] }
0x19b1   :  { %5088 = vlog2.f32 %v1959_v3  ;;  %vm3846_vm6 = vmor %vm3844_vm5, %vm3845_vm4  ;;  %v11073_v3 = vld [vmem:[#allocation115_spill] sm:$0xff] }
0x19b2   :  { %v3841_v8 = vsub.f32 1.0, %v3840_v19  ;;  %v11072_v19 = vld [vmem:[#allocation54_spill] sm:$0xff] }
0x19b4   :  { %v3842_v10 = vmul.f32 %v5087_v27, %v3841_v8 }
0x19b6   :  { %v3843_v4 = vadd.f32 %v5087_v27, %v3842_v10  ;;  %v11076_v10 = vld [vmem:[#allocation58_spill] sm:$0xff] }
0x19b7   :  { %v5089_v31 = vpop.eup %5088 }
0x19b8   :  { %v3847_v18 = vsel %vm3846_vm6, %v5087_v27, %v3843_v4  ;;  %v1961_v45 = vmul.f32 0.6931472, %v5089_v31  ;;  %v3054_v38 = vpop.xlane.xlu1 %3053  ;;  %v11078_v4 = vld [vmem:[#allocation14_spill] sm:$0xff] }
0x19b9   :  { %v3852_v44 = vsel %vm3849_vm7, %v3851_v12, %v3847_v18  ;;  %5090 = vlog2.f32 %v3054_v38  ;;  %v11079_v12 = vld [vmem:[#allocation6_spill] sm:$0xff]  ;;  %v11081_v38 = vld [vmem:[#allocation23_spill] sm:$0xff] }
0x19ba   :  { %v3853_v0 = vmul.f32 %v5075_v58, %v3852_v44  ;;  %v1962_v32 = vadd.f32 %v1961_v45, %v1954_v46  ;;  %v11080_v45 = vld [vmem:[#allocation20_spill] sm:$0xff] }
0x19bc   :  { %v3854_v41 = vmul.f32 %v9331_v63, %v3853_v0  ;;  %v3855_v48 = vmul.f32 %v9337_v59, %v3853_v0  ;;  %v3856_v42 = vmul.f32 %v11066_v15, %v3853_v0  ;;  %v3857_v21 = vmul.f32 %v11067_v57, %v3853_v0  ;;  %v11069_v59 = vld [vmem:[#allocation112_spill] sm:$0xff] }
0x19bd   :  { %v1963_v55 = vsub.f32 %v9727_v13, %v1962_v32  ;;  %v4797_v13 = vld [vmem:[%s11068_s25 + $0x20] sm:$0xff]  ;;  %v3858_v31 = vmul.f32 %v11078_v4, %v3853_v0  ;;  %v3859_v18 = vmul.f32 %v11079_v12, %v3853_v0  ;;  %v3861_v44 = vmul.f32 %v11081_v38, %v3853_v0  ;;  %v11082_v32 = vld [vmem:[#allocation19_spill] sm:$0xff]  ;;  %v11085_v15 = vld [vmem:[#allocation24_spill] sm:$0xff] }
0x19be   :  { %v3862_v29 = vpack.c.bf16 %v3854_v41, %v3854_v41  ;;  %v3863_v56 = vpack.c.bf16 %v3855_v48, %v3855_v48  ;;  %v3864_v62 = vpack.c.bf16 %v3856_v42, %v3856_v42  ;;  %v3865_v26 = vpack.c.bf16 %v3857_v21, %v3857_v21  ;;  %v11083_v41 = vld [vmem:[#allocation56_spill] sm:$0xff]  ;;  %v11084_v48 = vld [vmem:[#allocation61_spill] sm:$0xff]  ;;  %v11110_v12 = vld [vmem:[#allocation59_spill] sm:$0xff] }
0x19bf   :  { %v5091_v58 = vpop.eup %5090  ;;  %v1964_v46 = vmul.f32 %v4791_v9, %v1963_v55  ;;  %v3866_v42 = vpack.c.bf16 %v3858_v31, %v3858_v31  ;;  %v3867_v57 = vpack.c.bf16 %v3859_v18, %v3859_v18  ;;  %v3869_v9 = vpack.c.bf16 %v3861_v44, %v3861_v44  ;;  %v11086_v55 = vld [vmem:[#allocation26_spill] sm:$0xff]  ;;  %v11108_v4 = vld [vmem:[#allocation53_spill] sm:$0xff]  ;;  %v11114_v38 = vld [vmem:[#allocation63_spill] sm:$0xff] }
0x19c0   :  { %v3056_v54 = vmul.f32 0.6931472, %v5091_v58  ;;  %3878 = vmatmul.bf16.vlgmr.msrb.gmra.mxu3 %v3862_v29  ;;  %3891 = vmatmul.bf16.vlgmr.msra.gmra.mxu0 %v3863_v56  ;;  %v11087_v29 = vld [vmem:[#allocation60_spill] sm:$0xff]  ;;  %v11089_v56 = vld [vmem:[#allocation65_spill] sm:$0xff]  ;;  %v11109_v31 = vld [vmem:[#allocation86_spill] sm:$0xff] }
0x19c1   :  { %3904 = vmatmul.bf16.vlgmr.msra.gmra.mxu1 %v3864_v62  ;;  %3917 = vmatmul.bf16.vlgmr.msra.gmra.mxu2 %v3865_v26  ;;  %v11090_v62 = vld [vmem:[#allocation28_spill] sm:$0xff]  ;;  %v11092_v58 = vld [vmem:[#allocation29_spill] sm:$0xff]  ;;  %v11111_v18 = vld [vmem:[#allocation78_spill] sm:$0xff] }
0x19c2   :  { %v3057_v63 = vadd.f32 %v3056_v54, %v9738_v53  ;;  %3988 = vmatpush.bf16.msra.mxu0 %v11069_v59  ;;  %1965 = vadd.xlane.f32.xlu0 %v1964_v46  ;;  %v11075_v53 = vld [vmem:[#allocation52_spill] sm:$0xff]  ;;  %v11094_v54 = vld [vmem:[#allocation30_spill] sm:$0xff] }
0x19c3   :  { %3975 = vmatpush.bf16.msrb.mxu3 %v11070_v25  ;;  %4004 = vmatpush.bf16.msra.mxu1 %v11071_v17  ;;  %v11091_v26 = vld [vmem:[#allocation64_spill] sm:$0xff]  ;;  %v11098_v25 = vld [vmem:[#allocation31_spill] sm:$0xff]  ;;  %v11099_v17 = vld [vmem:[#allocation70_spill] sm:$0xff] }
0x19c4   :  { %v3058_v27 = vsub.f32 %v9732_v22, %v3057_v63  ;;  %4017 = vmatpush.bf16.msra.mxu2 %v11072_v19  ;;  %v3860_v22 = vmul.f32 %v11080_v45, %v3853_v0  ;;  %v11088_v0 = vld [vmem:[#allocation27_spill] sm:$0xff]  ;;  %v11093_v46 = vld [vmem:[#allocation72_spill] sm:$0xff]  ;;  %v11112_v45 = vld [vmem:[#allocation57_spill] sm:$0xff] }
0x19c5   :  { %v11095_v63 = vld [vmem:[#allocation68_spill] sm:$0xff]  ;;  %v11115_v44 = vld [vmem:[#allocation82_spill] sm:$0xff] }
0x19c6   :  { %3989 = vmatpush.bf16.msra.mxu0 %v11073_v3  ;;  %v3059_v8 = vmul.f32 %v4797_v13, %v3058_v27  ;;  %v3868_v21 = vpack.c.bf16 %v3860_v22, %v3860_v22  ;;  %v11096_v59 = vld [vmem:[#allocation36_spill] sm:$0xff]  ;;  %v11100_v27 = vld [vmem:[#allocation37_spill] sm:$0xff]  ;;  %v11102_v3 = vld [vmem:[#allocation51_spill] sm:$0xff] }
0x19c7   :  { %3976 = vmatpush.bf16.msrb.mxu3 %v11074_v20  ;;  %4005 = vmatpush.bf16.msra.mxu1 %v11075_v53  ;;  %v11097_v13 = vld [vmem:[#allocation76_spill] sm:$0xff]  ;;  %v11104_v20 = vld [vmem:[#allocation55_spill] sm:$0xff] }
0x19c8   :  { %4018 = vmatpush.bf16.msra.mxu2 %v11076_v10  ;;  %v11101_v19 = vld [vmem:[#allocation80_spill] sm:$0xff]  ;;  %v11105_v53 = vld [vmem:[#allocation71_spill] sm:$0xff]  ;;  %v11106_v10 = vld [vmem:[#allocation74_spill] sm:$0xff] }
0x19c9   :  { %v11113_v22 = vld [vmem:[#allocation88_spill] sm:$0xff] }
0x19ca   :  { %3990 = vmatpush.bf16.msra.mxu0 %v11077_v16  ;;  %3060 = vadd.xlane.f32.xlu0 %v3059_v8  ;;  %v11103_v8 = vld [vmem:[#allocation32_spill] sm:$0xff]  ;;  %v11107_v16 = vld [vmem:[#allocation83_spill] sm:$0xff] }
0x19cb   :  { %3977 = vmatpush.bf16.msrb.mxu3 %v11082_v32  ;;  %4006 = vmatpush.bf16.msra.mxu1 %v11083_v41  ;;  %v11117_v32 = vld [vmem:[#allocation90_spill] sm:$0xff]  ;;  %v11118_v41 = vld [vmem:[#allocation67_spill] sm:$0xff] }
0x19cc   :  { %4019 = vmatpush.bf16.msra.mxu2 %v11084_v48  ;;  %v11119_v48 = vld [vmem:[#allocation85_spill] sm:$0xff] }
0x19ce   :  { %3991 = vmatpush.bf16.msra.mxu0 %v11085_v15  ;;  %v11120_v15 = vld [vmem:[#allocation66_spill] sm:$0xff] }
0x19cf   :  { %3978 = vmatpush.bf16.msrb.mxu3 %v11086_v55  ;;  %4007 = vmatpush.bf16.msra.mxu1 %v11087_v29  ;;  %v11125_v55 = vld [vmem:[#allocation94_spill] sm:$0xff]  ;;  %v11126_v29 = vld [vmem:[#allocation77_spill] sm:$0xff] }
0x19d0   :  { %3930 = vmatmul.bf16.vlgmr.msra.gmra.mxu3 %v3866_v42  ;;  %3943 = vmatmul.bf16.vlgmr.msrb.gmra.mxu0 %v3867_v57  ;;  %v11121_v42 = vld [vmem:[#allocation92_spill] sm:$0xff]  ;;  %v11122_v57 = vld [vmem:[#allocation73_spill] sm:$0xff] }
0x19d1   :  { %3956 = vmatmul.bf16.vlgmr.msrb.gmra.mxu1 %v3868_v21  ;;  %3969 = vmatmul.bf16.vlgmr.msrb.gmra.mxu2 %v3869_v9  ;;  %v11123_v21 = vld [vmem:[#allocation87_spill] sm:$0xff]  ;;  %v11124_v9 = vld [vmem:[#allocation69_spill] sm:$0xff] }
0x19d2   :  { %3992 = vmatpush.bf16.msra.mxu0 %v11088_v0  ;;  %4020 = vmatpush.bf16.msra.mxu2 %v11089_v56  ;;  %v11127_v0 = vld [vmem:[#allocation89_spill] sm:$0xff]  ;;  %v11128_v56 = vld [vmem:[#allocation75_spill] sm:$0xff] }
0x19d3   :  { %3979 = vmatpush.bf16.msrb.mxu3 %v11090_v62  ;;  %4008 = vmatpush.bf16.msra.mxu1 %v11091_v26  ;;  %v11129_v62 = vld [vmem:[#allocation95_spill] sm:$0xff]  ;;  %v11130_v26 = vld [vmem:[#allocation81_spill] sm:$0xff] }
0x19d6   :  { %3993 = vmatpush.bf16.msra.mxu0 %v11092_v58  ;;  %4021 = vmatpush.bf16.msra.mxu2 %v11093_v46  ;;  %v11131_v58 = vld [vmem:[#allocation91_spill] sm:$0xff] }
0x19d7   :  { %3980 = vmatpush.bf16.msrb.mxu3 %v11094_v54  ;;  %4009 = vmatpush.bf16.msra.mxu1 %v11095_v63  ;;  %v11132_v46 = vld [vmem:[#allocation79_spill] sm:$0xff]  ;;  %v11133_v54 = vld [vmem:[#allocation96_spill] sm:$0xff] }
0x19d8   :  { %v11134_v63 = vld [vmem:[#allocation84_spill] sm:$0xff] }
0x19da   :  { %3994 = vmatpush.bf16.msra.mxu0 %v11096_v59  ;;  %4022 = vmatpush.bf16.msra.mxu2 %v11097_v13  ;;  %v11135_v59 = vld [vmem:[#allocation93_spill] sm:$0xff] }
0x19db   :  { %3981 = vmatpush.bf16.msrb.mxu3 %v11098_v25  ;;  %4010 = vmatpush.bf16.msra.mxu1 %v11099_v17  ;;  %v11136_v13 = vld [vmem:[#allocation97_spill] sm:$0xff] }
0x19de   :  { %3995 = vmatpush.bf16.msra.mxu0 %v11100_v27  ;;  %4023 = vmatpush.bf16.msra.mxu2 %v11101_v19 }
0x19df   :  { %3982 = vmatpush.bf16.msrb.mxu3 %v11103_v8  ;;  %4011 = vmatpush.bf16.msra.mxu1 %v11105_v53 }
0x19e1   :  { %3996 = vmatmul.bf16.vlgmr.msra.gmra.mxu0 %v9658_v51  ;;  %v11116_v51 = vld [vmem:[#allocation62_spill] sm:$0xff] }
0x19e2   :  { %4043 = vmatpush.bf16.msrb.mxu0 %v11102_v3  ;;  %4024 = vmatpush.bf16.msra.mxu2 %v11107_v16 }
0x19e3   :  { %4030 = vmatpush.bf16.msra.mxu3 %v11104_v20  ;;  %4056 = vmatpush.bf16.msrb.mxu1 %v11106_v10 }
0x19e6   :  { %4044 = vmatpush.bf16.msrb.mxu0 %v11108_v4  ;;  %4069 = vmatpush.bf16.msrb.mxu2 %v11109_v31 }
0x19e7   :  { %4031 = vmatpush.bf16.msra.mxu3 %v11110_v12  ;;  %4057 = vmatpush.bf16.msrb.mxu1 %v11111_v18 }
0x19ea   :  { %4045 = vmatpush.bf16.msrb.mxu0 %v11112_v45  ;;  %4070 = vmatpush.bf16.msrb.mxu2 %v11113_v22 }
0x19eb   :  { %4032 = vmatpush.bf16.msra.mxu3 %v11114_v38  ;;  %4058 = vmatpush.bf16.msrb.mxu1 %v11115_v44 }
0x19ee   :  { %4046 = vmatpush.bf16.msrb.mxu0 %v11116_v51  ;;  %4071 = vmatpush.bf16.msrb.mxu2 %v11117_v32 }
0x19ef   :  { %4033 = vmatpush.bf16.msra.mxu3 %v11118_v41  ;;  %4059 = vmatpush.bf16.msrb.mxu1 %v11119_v48 }
0x19f2   :  { %4047 = vmatpush.bf16.msrb.mxu0 %v11120_v15  ;;  %4072 = vmatpush.bf16.msrb.mxu2 %v11121_v42 }
0x19f3   :  { %4034 = vmatpush.bf16.msra.mxu3 %v11122_v57  ;;  %4060 = vmatpush.bf16.msrb.mxu1 %v11123_v21 }
0x19f6   :  { %4048 = vmatpush.bf16.msrb.mxu0 %v11124_v9  ;;  %4073 = vmatpush.bf16.msrb.mxu2 %v11125_v55 }
0x19f7   :  { %4035 = vmatpush.bf16.msra.mxu3 %v11126_v29  ;;  %4061 = vmatpush.bf16.msrb.mxu1 %v11127_v0 }
0x19fa   :  { %4049 = vmatpush.bf16.msrb.mxu0 %v11128_v56  ;;  %4074 = vmatpush.bf16.msrb.mxu2 %v11129_v62 }
0x19fb   :  { %4036 = vmatpush.bf16.msra.mxu3 %v11130_v26  ;;  %4062 = vmatpush.bf16.msrb.mxu1 %v11131_v58 }
0x19fe   :  { %4050 = vmatpush.bf16.msrb.mxu0 %v11132_v46  ;;  %4075 = vmatpush.bf16.msrb.mxu2 %v11133_v54 }
0x19ff   :  { %4037 = vmatpush.bf16.msra.mxu3 %v11134_v63  ;;  %4063 = vmatpush.bf16.msrb.mxu1 %v11135_v59 }
0x1a01   :  { %4051 = vmatmul.bf16.vlgmr.msrb.gmra.mxu0 %v9678_v11 }
0x1a02   :  { %4076 = vmatpush.bf16.msrb.mxu2 %v11136_v13 }
0x1a3d   :  { %v3892_v25 = vpop.f32.mrf.mxu0 }
0x1a3e   :  { %v3905_v17 = vpop.f32.mrf.mxu1 }
0x1a43   :  { %v3879_v27 = vpop.f32.mrf.mxu3 }
0x1a44   :  { %v3918_v19 = vpop.f32.mrf.mxu2  ;;  %v3893_v20 = vadd.f32 %v3892_v25, %v3879_v27 }
0x1a45   :  { %v3894_v3 = vpop.f32.mrf.mxu0 }
0x1a46   :  { %v3907_v8 = vpop.f32.mrf.mxu1  ;;  %v3906_v4 = vadd.f32 %v3905_v17, %v3893_v20 }
0x1a48   :  { %v3919_v12 = vadd.f32 %v3918_v19, %v3906_v4 }
0x1a4b   :  { %v3881_v53 = vpop.f32.mrf.mxu3 }
0x1a4c   :  { %v3920_v10 = vpop.f32.mrf.mxu2 }
0x1a4d   :  { %v3944_v16 = vpop.f32.mrf.mxu0 }
0x1a4e   :  { %v3957_v31 = vpop.f32.mrf.mxu1 }
0x1a53   :  { %v3931_v18 = vpop.f32.mrf.mxu3 }
0x1a54   :  { %v3932_v45 = vadd.f32 %v3931_v18, %v3919_v12  ;;  %v3970_v22 = vpop.f32.mrf.mxu2 }
0x1a55   :  { %v3946_v38 = vpop.f32.mrf.mxu0 }
0x1a56   :  { %v3945_v44 = vadd.f32 %v3944_v16, %v3932_v45  ;;  %v3959_v51 = vpop.f32.mrf.mxu1 }
0x1a58   :  { %v3958_v32 = vadd.f32 %v3957_v31, %v3945_v44 }
0x1a5a   :  { %v3971_v41 = vadd.f32 %v3970_v22, %v3958_v32 }
0x1a5b   :  { %v3933_v48 = vpop.f32.mrf.mxu3 }
0x1a5c   :  { %v3974_v15 = vpack.c.bf16 %v3971_v41, %v3971_v41  ;;  %v3972_v42 = vpop.f32.mrf.mxu2 }
0x1a5e   :  { %3983 = vmatmul.bf16.vlgmr.msrb.gmra.mxu3 %v3974_v15  ;;  %v3997_v57 = vpop.f32.mrf.mxu0 }
0x1a5f   :  { %4130 = vmatpush.bf16.msrb.mxu3 %v9541_v28 }
0x1a63   :  { %4131 = vmatpush.bf16.msrb.mxu3 %v9547_v1 }
0x1a66   :  { %v3999_v21 = vpop.f32.mrf.mxu0 }
0x1a67   :  { %4132 = vmatpush.bf16.msrb.mxu3 %v9553_v2 }
0x1a6b   :  { %4133 = vmatpush.bf16.msrb.mxu3 %v9559_v37 }
0x1a6f   :  { %4134 = vmatpush.bf16.msrb.mxu3 %v9565_v52 }
0x1a73   :  { %4135 = vmatpush.bf16.msrb.mxu3 %v9571_v60 }
0x1a77   :  { %4136 = vmatpush.bf16.msrb.mxu3 %v9577_v40 }
0x1a7b   :  { %4137 = vmatpush.bf16.msrb.mxu3 %v9583_v6 }
0x1a7e   :  { %v4052_v9 = vpop.f32.mrf.mxu0 }
0x1a7f   :  { %v4053_v37 = vadd.f32 %v4052_v9, %v10635_v14 }
0x1a86   :  { %v4054_v55 = vpop.f32.mrf.mxu0 }
0x1ae1   :  { %v3984_v29 = vpop.f32.mrf.mxu3 }
0x1ae2   :  { %v3998_v0 = vadd.f32 %v3997_v57, %v3984_v29 }
0x1ae4   :  { %v4001_v28 = vadd.f32 %v9591_v23, %v3998_v0 }
0x1ae6   :  { %v4002_v1 = vmax.f32 %v4001_v28, 0.0 }
0x1ae8   :  { %v4003_v56 = vpack.c.bf16 %v4002_v1, %v4002_v1 }
0x1ae9   :  { %v3986_v62 = vpop.f32.mrf.mxu3 }
0x1aea   :  { %4012 = vmatmul.bf16.vlgmr.msra.gmra.mxu1 %v4003_v56  ;;  %4025 = vmatmul.bf16.vlgmr.msra.gmra.mxu2 %v4003_v56  ;;  %v2319_v62 = vpop.xlane.xlu0 %2318 }
0x1aeb   :  { %4038 = vmatmul.bf16.vlgmr.msra.gmra.mxu3 %v4003_v56 }
0x1afa   :  { %4064 = vmatmul.bf16.vlgmr.msrb.gmra.mxu1 %v9678_v11  ;;  %4077 = vmatmul.bf16.vlgmr.msrb.gmra.mxu2 %v9678_v11 }
0x1b67   :  { %v4013_v2 = vpop.f32.mrf.mxu1 }
0x1b68   :  { %v4014_v52 = vadd.f32 %v4013_v2, %v10743_v33  ;;  %v9863_v2 = vpop.xlane.xlu0 %3413 }
0x1b6a   :  { %v4082_v60 = vadd.f32 %v4053_v37, %v4014_v52  ;;  %v2320_v37 = vsub.f32 %v9744_v34, %v2319_v62 }
0x1b6c   :  { %v4083_v40 = vsub.f32 0.0, %v4082_v60  ;;  %v2321_v60 = vmul.f32 1.442695, %v2320_v37 }
0x1b6d   :  { %v4026_v6 = vpop.f32.mrf.mxu2 }
0x1b6e   :  { %v4084_v26 = vmul.f32 1.442695, %v4083_v40  ;;  %v4039_v23 = vpop.f32.mrf.mxu3  ;;  %v4027_v25 = vadd.f32 %v4026_v6, %v10744_v61  ;;  %v5482_v6 = vld [vmem:[%s9922_s16] ss:$0 sm:$0xff] }
0x1b6f   :  { %v4015_v58 = vpop.f32.mrf.mxu1  ;;  %v4040_v51 = vadd.f32 %v4039_v23, %v11055_v47 }
0x1b70   :  { %5092 = vpow2.f32 %v4084_v26  ;;  %v1594_v52 = vpop.xlane.xlu0 %1593 }
0x1b75   :  { %v4028_v46 = vpop.f32.mrf.mxu2 }
0x1b76   :  { %v5093_v54 = vpop.eup %5092  ;;  %v4041_v63 = vpop.f32.mrf.mxu3 }
0x1b77   :  { %v4086_v59 = vadd.f32 1.0, %v5093_v54  ;;  %v4065_v13 = vpop.f32.mrf.mxu1 }
0x1b78   :  { %v4066_v11 = vadd.f32 %v4065_v13, %v10745_v30  ;;  %v2689_v58 = vpop.xlane.xlu0 %2688 }
0x1b79   :  { %5094 = vrcp.f32 %v4086_v59  ;;  %v4098_v10 = vand.u32 2147483648, %v4086_v59  ;;  %v4096_v16 = vand.u32 2147483647, %v4086_v59  ;;  %vm4092_vm9 = vweird.f32 %v4086_v59 }
0x1b7a   :  { %v4102_v14 = vadd.f32 %v4066_v11, %v4027_v25 }
0x1b7b   :  { %v4099_v18 = vor.u32 1.1754944e-38, %v4098_v10  ;;  %vm4097_vm11 = vcmp.eq.f32.partialorder %v4096_v16, 8.507059e+37 }
0x1b7c   :  { %v4103_v17 = vsub.f32 0.0, %v4102_v14 }
0x1b7d   :  { %v4078_v33 = vpop.f32.mrf.mxu2 }
0x1b7e   :  { %v4104_v27 = vmul.f32 1.442695, %v4103_v17  ;;  %v4079_v22 = vadd.f32 %v4078_v33, %v10847_v49 }
0x1b7f   :  { %v5095_v19 = vpop.eup %5094  ;;  %v4067_v3 = vpop.f32.mrf.mxu1 }
0x1b80   :  { %5096 = vpow2.f32 %v4104_v27  ;;  %v4088_v8 = vmul.f32 %v5095_v19, %v4086_v59  ;;  %vm4093_vm8 = vweird.f32 %v5095_v19  ;;  %v3784_v11 = vpop.xlane.xlu0 %3783  ;;  %v344_v27 = vld [vmem:[%s11068_s25] sm:$0xff] }
0x1b81   :  { %vm4094_vm10 = vmor %vm4092_vm9, %vm4093_vm8 }
0x1b82   :  { %v4089_v20 = vsub.f32 1.0, %v4088_v8 }
0x1b84   :  { %v4090_v53 = vmul.f32 %v5095_v19, %v4089_v20 }
0x1b85   :  { %v4080_v4 = vpop.f32.mrf.mxu2 }
0x1b86   :  { %v5097_v31 = vpop.eup %5096  ;;  %v4091_v12 = vadd.f32 %v5095_v19, %v4090_v53 }
0x1b87   :  { %v4106_v61 = vadd.f32 1.0, %v5097_v31 }
0x1b88   :  { %v4095_v30 = vsel %vm4094_vm10, %v5095_v19, %v4091_v12 }
0x1b89   :  { %5098 = vrcp.f32 %v4106_v61  ;;  %v4100_v45 = vsel %vm4097_vm11, %v4099_v18, %v4095_v30  ;;  %v4118_v15 = vand.u32 2147483648, %v4106_v61  ;;  %v4116_v57 = vand.u32 2147483647, %v4106_v61 }
0x1b8a   :  { %v4122_v38 = vmul.f32 %v4100_v45, %v4079_v22  ;;  %vm4112_vm13 = vweird.f32 %v4106_v61 }
0x1b8b   :  { %v4119_v9 = vor.u32 1.1754944e-38, %v4118_v15  ;;  %vm4117_vm15 = vcmp.eq.f32.partialorder %v4116_v57, 8.507059e+37 }
0x1b8c   :  { %v4123_v41 = vadd.f32 %v4122_v38, %v4040_v51 }
0x1b8e   :  { %5100 = vtanh.f32 %v4123_v41 }
0x1b8f   :  { %v5099_v44 = vpop.eup %5098  ;;  %5102 = vpow2.f32 %v2321_v60 }
0x1b90   :  { %v4108_v32 = vmul.f32 %v5099_v44, %v4106_v61  ;;  %vm4113_vm12 = vweird.f32 %v5099_v44  ;;  %5104 = vlog2.f32 %v1594_v52 }
0x1b91   :  { %vm4114_vm14 = vmor %vm4112_vm13, %vm4113_vm12 }
0x1b92   :  { %v4109_v48 = vsub.f32 1.0, %v4108_v32 }
0x1b94   :  { %v4110_v42 = vmul.f32 %v5099_v44, %v4109_v48  ;;  %v5101_v0 = vpop.eup %5100 }
0x1b95   :  { %v5103_v54 = vpop.eup %5102 }
0x1b96   :  { %v4111_v21 = vadd.f32 %v5099_v44, %v4110_v42  ;;  %v5105_v63 = vpop.eup %5104 }
0x1b97   :  { %v1596_v59 = vmul.f32 0.6931472, %v5105_v63  ;;  %v4803_v63 = vld [vmem:[%s11068_s25 + $0x38] sm:$0xff] }
0x1b98   :  { %v4115_v55 = vsel %vm4114_vm14, %v5099_v44, %v4111_v21  ;;  %v4793_v44 = vld [vmem:[%s11068_s25 + $0x10] sm:$0xff] }
0x1b99   :  { %v4120_v29 = vsel %vm4117_vm15, %v4119_v9, %v4115_v55  ;;  %v1597_v25 = vadd.f32 %v1596_v59, %v9736_v36  ;;  %v4795_v36 = vld [vmem:[%s11068_s25 + $0x18] sm:$0xff] }
0x1b9a   :  { %v4125_v49 = vsub.f32 1.0, %v4120_v29  ;;  %v4127_v47 = vmul.f32 %v4120_v29, %v9674_v5  ;;  %v3415_v5 = vsub.f32 %v9751_v7, %v9863_v2  ;;  %v4799_v29 = vld [vmem:[%s11068_s25 + $0x28] sm:$0xff] }
0x1b9b   :  { %v1598_v33 = vsub.f32 %v11063_v24, %v1597_v25 }
0x1b9c   :  { %v4126_v28 = vmul.f32 %v5101_v0, %v4125_v49  ;;  %v3416_v23 = vmul.f32 1.442695, %v3415_v5 }
0x1b9d   :  { %v1599_v3 = vmul.f32 %v1598_v33, %v344_v27 }
0x1b9e   :  { %v4128_v1 = vadd.f32 %v4127_v47, %v4126_v28  ;;  %5106 = vpow2.f32 %v3416_v23 }
0x1b9f   :  { %5108 = vlog2.f32 %v2689_v58 }
0x1ba0   :  { %v4129_v56 = vpack.c.bf16 %v4128_v1, %v4128_v1  ;;  %5110 = vlog2.f32 %v3784_v11 }
0x1ba2   :  { %4138 = vmatmul.bf16.vlgmr.msrb.gmra.mxu3 %v4129_v56 }
0x1ba4   :  { %v5107_v13 = vpop.eup %5106 }
0x1ba5   :  { %v5109_v14 = vpop.eup %5108 }
0x1ba6   :  { %v2691_v17 = vmul.f32 0.6931472, %v5109_v14  ;;  %v5111_v8 = vpop.eup %5110 }
0x1ba7   :  { %v3786_v20 = vmul.f32 0.6931472, %v5111_v8 }
0x1ba8   :  { %v2692_v19 = vadd.f32 %v2691_v17, %v9753_v35  ;;  %v4801_v35 = vld [vmem:[%s11068_s25 + $0x30] sm:$0xff] }
0x1ba9   :  { %v3787_v10 = vadd.f32 %v3786_v20, %v9758_v43  ;;  %v1966_v43 = vpop.xlane.xlu0 %1965 }
0x1baa   :  { %v2693_v53 = vsub.f32 %v11065_v39, %v2692_v19  ;;  %v1967_v45 = vrot.slane %v1966_v43, 4 }
0x1bab   :  { %v3788_v24 = vsub.f32 %v9719_v50, %v3787_v10 }
0x1bac   :  { %v2694_v16 = vmul.f32 %v4795_v36, %v2693_v53  ;;  %v1968_v51 = vadd.f32 %v1967_v45, %v1966_v43 }
0x1bad   :  { %v3789_v4 = vmul.f32 %v4801_v35, %v3788_v24 }
0x1bae   :  { %v1969_v15 = vrot.slane %v1968_v51, 2 }
0x1bb0   :  { %v1970_v0 = vadd.f32 %v1969_v15, %v1968_v51 }
0x1bb1   :  { %v3061_v60 = vpop.xlane.xlu0 %3060 }
0x1bb2   :  { %v1971_v1 = vrot.slane %v1970_v0, 1 }
0x1bb4   :  { %v1972_v37 = vadd.f32 %v1971_v1, %v1970_v0 }
0x1c25   :  { %v4139_v40 = vpop.f32.mrf.mxu3 }
0x1c26   :  { %v9869_v26 = vadd.f32 %v5482_v6, %v4139_v40  ;;  %v3062_v6 = vrot.slane %v3061_v60, 4 }
0x1c28   :  { %4143 = vmax.xlane.f32.xlu2 %v9869_v26  ;;  %v3063_v58 = vadd.f32 %v3062_v6, %v3061_v60 }
0x1c2a   :  { %v3064_v14 = vrot.slane %v3063_v58, 2 }
0x1c2c   :  { %v3065_v20 = vadd.f32 %v3064_v14, %v3063_v58 }
0x1c2d   :  { %v4141_v46 = vpop.f32.mrf.mxu3 }
0x1c30   :  { %2323 = vadd.xlane.f32.xlu2 %v5103_v54 }
0x1c38   :  { %3418 = vadd.xlane.f32.xlu2 %v5107_v13 }
0x1c40   :  { %1600 = vadd.xlane.f32.xlu2 %v1599_v3 }
0x1c48   :  { %2695 = vadd.xlane.f32.xlu2 %v2694_v16 }
0x1c50   :  { %3790 = vadd.xlane.f32.xlu2 %v3789_v4  ;;  %v3066_v4 = vrot.slane %v3065_v20, 1 }
0x1c9b   :  { %v4144_v31 = vpop.xlane.xlu2 %4143 }
0x1c9c   :  { %v4145_v12 = vsub.f32 %v9869_v26, %v4144_v31 }
0x1c9e   :  { %v4146_v39 = vmul.f32 1.442695, %v4145_v12 }
0x1ca0   :  { %5112 = vpow2.f32 %v4146_v39 }
0x1ca3   :  { %v2324_v61 = vpop.xlane.xlu2 %2323 }
0x1ca4   :  { %5114 = vlog2.f32 %v2324_v61 }
0x1ca6   :  { %v5113_v30 = vpop.eup %5112 }
0x1ca7   :  { %4148 = vadd.xlane.f32.xlu1 %v5113_v30  ;;  %v3067_v30 = vadd.f32 %v3066_v4, %v3065_v20 }
0x1caa   :  { %v5115_v18 = vpop.eup %5114 }
0x1cab   :  { %v2326_v22 = vmul.f32 0.6931472, %v5115_v18  ;;  %v3419_v50 = vpop.xlane.xlu2 %3418 }
0x1cac   :  { %5116 = vlog2.f32 %v3419_v50 }
0x1cad   :  { %v2327_v38 = vadd.f32 %v2326_v22, %v2319_v62 }
0x1caf   :  { %v2328_v32 = vsub.f32 %v9744_v34, %v2327_v38 }
0x1cb1   :  { %v2329_v41 = vmul.f32 %v4793_v44, %v2328_v32 }
0x1cb2   :  { %v5117_v48 = vpop.eup %5116 }
0x1cb3   :  { %v3421_v42 = vmul.f32 0.6931472, %v5117_v48  ;;  %2330 = vadd.xlane.f32.xlu1 %v2329_v41  ;;  %v1601_v57 = vpop.xlane.xlu2 %1600 }
0x1cb4   :  { %v1602_v21 = vrot.slane %v1601_v57, 4 }
0x1cb5   :  { %v3422_v9 = vadd.f32 %v3421_v42, %v9863_v2 }
0x1cb6   :  { %v1603_v55 = vadd.f32 %v1602_v21, %v1601_v57 }
0x1cb7   :  { %v3423_v49 = vsub.f32 %v9751_v7, %v3422_v9 }
0x1cb8   :  { %v1604_v28 = vrot.slane %v1603_v55, 2 }
0x1cb9   :  { %v3424_v47 = vmul.f32 %v4799_v29, %v3423_v49 }
0x1cba   :  { %v1605_v34 = vadd.f32 %v1604_v28, %v1603_v55 }
0x1cbb   :  { %3425 = vadd.xlane.f32.xlu1 %v3424_v47  ;;  %v2696_v52 = vpop.xlane.xlu2 %2695 }
0x1cbc   :  { %v1606_v56 = vrot.slane %v1605_v34, 1  ;;  %v2697_v40 = vrot.slane %v2696_v52, 4 }
0x1cbe   :  { %v1607_v62 = vadd.f32 %v1606_v56, %v1605_v34  ;;  %v2698_v23 = vadd.f32 %v2697_v40, %v2696_v52 }
0x1cc0   :  { %4956 = vpush %v1607_v62  ;;  %v2699_v59 = vrot.slane %v2698_v23, 2 }
0x1cc1   :  { %4958 = vpush %v1972_v37 }
0x1cc2   :  { %v2700_v3 = vadd.f32 %v2699_v59, %v2698_v23 }
0x1cc3   :  { %v3791_v46 = vpop.xlane.xlu2 %3790 }
0x1cc4   :  { %v3792_v13 = vrot.slane %v3791_v46, 4  ;;  %v2701_v16 = vrot.slane %v2700_v3, 1 }
0x1cc6   :  { %v3793_v19 = vadd.f32 %v3792_v13, %v3791_v46 }
0x1cc8   :  { %v3794_v36 = vrot.slane %v3793_v19, 2 }
0x1cca   :  { %v3795_v39 = vadd.f32 %v3794_v36, %v3793_v19 }
0x1ccc   :  { %v3796_v18 = vrot.slane %v3795_v39, 1 }
0x1cce   :  { %v3797_v50 = vadd.f32 %v3796_v18, %v3795_v39 }
0x1cf1   :  { %s4957_s10 = spop %4956 }
0x1cf2   :  { %s1609_s20 = ssub.f32 0.0, %s4957_s10  ;;  %s4959_s5 = spop %4958 }
0x1cf4   :  { %s1974_s22 = ssub.f32 %s1609_s20, %s4959_s5 }
0x1d1a   :  { %v4149_v2 = vpop.xlane.xlu1 %4148 }
0x1d1b   :  { %5118 = vlog2.f32 %v4149_v2 }
0x1d21   :  { %v5119_v5 = vpop.eup %5118 }
0x1d22   :  { %v4151_v7 = vmul.f32 0.6931472, %v5119_v5 }
0x1d24   :  { %v4152_v54 = vadd.f32 %v4151_v7, %v4144_v31 }
0x1d26   :  { %v2331_v25 = vpop.xlane.xlu1 %2330  ;;  %v4153_v11 = vsub.f32 %v9869_v26, %v4152_v54  ;;  %v2702_v26 = vadd.f32 %v2701_v16, %v2700_v3 }
0x1d27   :  { %v2332_v17 = vrot.slane %v2331_v25, 4 }
0x1d28   :  { %v4154_v33 = vmul.f32 %v4803_v63, %v4153_v11 }
0x1d29   :  { %v2333_v27 = vadd.f32 %v2332_v17, %v2331_v25 }
0x1d2a   :  { %4155 = vadd.xlane.f32.xlu0 %v4154_v33 }
0x1d2b   :  { %v2334_v8 = vrot.slane %v2333_v27, 2 }
0x1d2d   :  { %v2335_v53 = vadd.f32 %v2334_v8, %v2333_v27 }
0x1d2e   :  { %v3426_v10 = vpop.xlane.xlu1 %3425 }
0x1d2f   :  { %v3427_v24 = vrot.slane %v3426_v10, 4  ;;  %v2336_v35 = vrot.slane %v2335_v53, 1 }
0x1d31   :  { %v3428_v31 = vadd.f32 %v3427_v24, %v3426_v10  ;;  %v2337_v12 = vadd.f32 %v2336_v35, %v2335_v53 }
0x1d33   :  { %v3429_v61 = vrot.slane %v3428_v31, 2  ;;  %4960 = vpush %v2337_v12 }
0x1d34   :  { %4962 = vpush %v2702_v26 }
0x1d35   :  { %v3430_v43 = vadd.f32 %v3429_v61, %v3428_v31  ;;  %4964 = vpush %v3067_v30 }
0x1d37   :  { %v3431_v45 = vrot.slane %v3430_v43, 1 }
0x1d39   :  { %v3432_v22 = vadd.f32 %v3431_v45, %v3430_v43 }
0x1d3b   :  { %4966 = vpush %v3432_v22 }
0x1d3c   :  { %4968 = vpush %v3797_v50 }
0x1d64   :  { %s4961_s21 = spop %4960 }
0x1d65   :  { %s2339_s2 = ssub.f32 %s1974_s22, %s4961_s21  ;;  %s4963_s8 = spop %4962 }
0x1d66   :  { %s4965_s23 = spop %4964 }
0x1d67   :  { %s2704_s9 = ssub.f32 %s2339_s2, %s4963_s8 }
0x1d69   :  { %s3069_s24 = ssub.f32 %s2704_s9, %s4965_s23 }
0x1d6c   :  { %s4967_s3 = spop %4966 }
0x1d6d   :  { %s3434_s7 = ssub.f32 %s3069_s24, %s4967_s3  ;;  %s4969_s14 = spop %4968 }
0x1d6f   :  { %s3799_s4 = ssub.f32 %s3434_s7, %s4969_s14 }
0x1d9d   :  { %v4156_v38 = vpop.xlane.xlu0 %4155 }
0x1d9e   :  { %v4157_v44 = vrot.slane %v4156_v38, 4 }
0x1da0   :  { %v4158_v51 = vadd.f32 %v4157_v44, %v4156_v38 }
0x1da2   :  { %v4159_v32 = vrot.slane %v4158_v51, 2 }
0x1da4   :  { %v4160_v41 = vadd.f32 %v4159_v32, %v4158_v51 }
0x1da6   :  { %v4161_v48 = vrot.slane %v4160_v41, 1 }
0x1da8   :  { %v4162_v15 = vadd.f32 %v4161_v48, %v4160_v41 }
0x1daa   :  { %4970 = vpush %v4162_v15 }
0x1ddb   :  { %s4971_s27 = spop %4970 }
0x1ddc   :  { %s4164_s16 = ssub.f32 %s3799_s4, %s4971_s27 }
0x1dde   :  { %4166 = sst [smem:[#allocation2]] %s4164_s16 }
0x1ddf   :  { %4175 = dma.smem_to_hbm %s5497_s0, 16, %s4173_s26, [#allocation3]  }
0x1de0   :  { %5495 = dma.done.wait [#allocation3], 16  }
0x1de1   :  { %5496 = vsyncadd [#allocation3], 4294967280 }
0x1de2   :  { %4180 = sfence }
0x1de3   :  { %4181 = vsyncpa [#allocation3], 1 }

</bundles_post_ra>
